<compile_context>
chip_gen: v7x
topology: tpu7x:2x2x1
jax: 0.10.0
libtpu: 0.0.40
codegen_flags: <defaults>
</compile_context>

<pallas_src>
import numpy as np
import jax
import jax.numpy as jnp
from jax.experimental import pallas as pl
from jax.experimental.pallas import tpu as pltpu

_EPS = 1e-5
_PREC = jax.lax.Precision.HIGHEST


# ------------------------------ in-kernel helpers -----------------------------

def _store_padded(pad_ref, a):
    """Store `a` (H, L) into rows [1, H] of pad_ref (H+2, L); zero only the two
    border rows so shifted reads see zero-padded row neighbours."""
    h, w = a.shape
    z = jnp.zeros((1, w), jnp.float32)
    pad_ref[pl.ds(0, 1), :] = z
    pad_ref[pl.ds(h + 1, 1), :] = z
    pad_ref[pl.ds(1, h), :] = a


def _conv_rows(down, mid, up, m_ref):
    """out[y] = down[y] @ M[0] + mid[y] @ M[1] + up[y] @ M[2]: the 3x3 'SAME'
    cross-correlation as three banded matmuls over row-shifted, lane-dense
    activations (down[y] = act[y-1], up[y] = act[y+1], zero at the borders)."""
    return (jnp.dot(down, m_ref[0], preferred_element_type=jnp.float32, precision=_PREC)
            + jnp.dot(mid, m_ref[1], preferred_element_type=jnp.float32, precision=_PREC)
            + jnp.dot(up, m_ref[2], preferred_element_type=jnp.float32, precision=_PREC))


# --------------------------------- kernels -----------------------------------

def _pass1_kernel(ge_ref, go_ref, x_ref, gbn_ref, xbn_ref, bg_ref, mg_ref, mx_ref,
                  s_ref, mom_ref, pe_scr, po_scr, px_scr):
    # Fused: g-branch (BN->ReLU->Conv3x3->MaxPool2x2), x-branch (BN->ReLU->Conv3x3),
    # gc_sum = g_pool + x_conv, plus per-column batch moments of gc_sum.
    h = ge_ref.shape[0]          # = H (pooled rows)
    l = s_ref.shape[1]           # = W * Cout lanes

    # folded BatchNorm (batch stats precomputed in glue) + ReLU, lane-dense (H, W*C)
    a_e = jnp.maximum(ge_ref[...] * gbn_ref[pl.ds(0, 1), :] + gbn_ref[pl.ds(1, 1), :], 0.0)
    a_o = jnp.maximum(go_ref[...] * gbn_ref[pl.ds(0, 1), :] + gbn_ref[pl.ds(1, 1), :], 0.0)
    a_x = jnp.maximum(x_ref[...] * xbn_ref[pl.ds(0, 1), :] + xbn_ref[pl.ds(1, 1), :], 0.0)

    # zero-padded row shifts via tiny (H+2, L) scratches
    _store_padded(po_scr, a_o)
    d_o = po_scr[pl.ds(0, h), :]          # a_odd[i-1]  (0 at i=0)
    _store_padded(pe_scr, a_e)
    u_e = pe_scr[pl.ds(2, h), :]          # a_even[i+1] (0 at i=H-1)
    _store_padded(px_scr, a_x)
    d_x = px_scr[pl.ds(0, h), :]
    u_x = px_scr[pl.ds(2, h), :]

    # g branch: conv rows 2*yp (even phase) and 2*yp+1 (odd phase); the band-matrix
    # columns are permuted [even-x | odd-x] so the 2x2 max-pool is two elementwise maxes.
    co_even = _conv_rows(d_o, a_e, a_o, mg_ref)       # conv output rows 2*yp
    co_odd = _conv_rows(a_e, a_o, u_e, mg_ref)        # conv output rows 2*yp+1
    rp = jnp.maximum(co_even, co_odd)                 # (H, 2*L)
    g_pool = jnp.maximum(rp[:, :l], rp[:, l:]) + bg_ref[...]

    # x branch: plain 3x3 conv (+ bias)
    x_conv = _conv_rows(d_x, a_x, u_x, mx_ref) + xbn_ref[pl.ds(2, 1), :]

    s = g_pool + x_conv
    s_ref[...] = s
    # per-column batch moments of gc_sum for the third BatchNorm (reduced in glue)
    mom_ref[pl.ds(0, 1), :] = jnp.sum(s, axis=0, keepdims=True)
    mom_ref[pl.ds(1, 1), :] = jnp.sum(s * s, axis=0, keepdims=True)


def _pass2_kernel(s_ref, x_ref, bn_ref, m_ref, o_ref, pad_scr):
    # (g_pool + x_conv) -> BN -> ReLU -> Conv3x3 -> * x
    h = s_ref.shape[0]
    a = jnp.maximum(s_ref[...] * bn_ref[pl.ds(0, 1), :] + bn_ref[pl.ds(1, 1), :], 0.0)
    _store_padded(pad_scr, a)
    d = pad_scr[pl.ds(0, h), :]
    u = pad_scr[pl.ds(2, h), :]
    gc = _conv_rows(d, a, u, m_ref) + bn_ref[pl.ds(2, 1), :]
    o_ref[...] = gc * x_ref[...]


# ------------------------------ pallas_call glue ------------------------------

def _per_batch_spec(shape):
    nd = len(shape)
    return pl.BlockSpec((None,) + tuple(shape[1:]),
                        lambda b, _nd=nd: (b,) + (0,) * (_nd - 1))


def _broadcast_spec(shape):
    nd = len(shape)
    return pl.BlockSpec(tuple(shape), lambda b, _nd=nd: (0,) * _nd)


_CPARAMS = pltpu.CompilerParams(dimension_semantics=("parallel",))


def _pass1(g_even, g_odd, x2d, gbn, xbn, bg, mg, mx):
    B, H, L = x2d.shape
    Lg = g_even.shape[2]
    return pl.pallas_call(
        _pass1_kernel,
        out_shape=(jax.ShapeDtypeStruct((B, H, L), jnp.float32),
                   jax.ShapeDtypeStruct((B, 2, L), jnp.float32)),
        grid=(B,),
        in_specs=[_per_batch_spec(g_even.shape), _per_batch_spec(g_odd.shape),
                  _per_batch_spec(x2d.shape), _broadcast_spec(gbn.shape),
                  _broadcast_spec(xbn.shape), _broadcast_spec(bg.shape),
                  _broadcast_spec(mg.shape), _broadcast_spec(mx.shape)],
        out_specs=(_per_batch_spec((B, H, L)), _per_batch_spec((B, 2, L))),
        scratch_shapes=[pltpu.VMEM((H + 2, Lg), jnp.float32),   # a_even shifts
                        pltpu.VMEM((H + 2, Lg), jnp.float32),   # a_odd shifts
                        pltpu.VMEM((H + 2, L), jnp.float32)],   # a_x shifts
        compiler_params=_CPARAMS,
    )(g_even, g_odd, x2d, gbn, xbn, bg, mg, mx)


def _pass2(s2d, x2d, bn, mgc):
    B, H, L = x2d.shape
    return pl.pallas_call(
        _pass2_kernel,
        out_shape=jax.ShapeDtypeStruct((B, H, L), jnp.float32),
        grid=(B,),
        in_specs=[_per_batch_spec(s2d.shape), _per_batch_spec(x2d.shape),
                  _broadcast_spec(bn.shape), _broadcast_spec(mgc.shape)],
        out_specs=_per_batch_spec((B, H, L)),
        scratch_shapes=[pltpu.VMEM((H + 2, L), jnp.float32)],
        compiler_params=_CPARAMS,
    )(s2d, x2d, bn, mgc)


# ---------------------------- parameter preparation ---------------------------

def _bn_fold(v, gamma, beta):
    # PyTorch training-mode BatchNorm2d forward: per-channel batch statistics
    # (biased variance), folded into a scale/shift applied inside the kernels.
    mean = jnp.mean(v, axis=(0, 1, 2))
    var = jnp.mean(jnp.square(v - mean), axis=(0, 1, 2))
    scale = gamma * jax.lax.rsqrt(var + _EPS)
    shift = beta - mean * scale
    return scale, shift


def _banded_conv_mats(w, w_in, x_out_pos):
    # w: [3, 3, Cin, Cout] (HWIO).  Returns [3, w_in*Cin, len(x_out_pos)*Cout]:
    # for each ky a banded matrix M with
    #   M[x_in*Cin + ci, k*Cout + co] = w[ky, x_in - x_out_pos[k] + 1, ci, co]
    # (zero outside the +-1 band), so a lane-dense (H, W*Cin) activation times M is
    # one row-tap of the SAME 3x3 cross-correlation (nn.Conv2d, padding=1).
    xi = np.arange(w_in)[:, None]
    xo = np.asarray(x_out_pos)[None, :]
    mats = []
    for ky in range(3):
        m = None
        for kx in range(3):
            band = jnp.asarray((xi == xo + (kx - 1)).astype(np.float32))
            term = jnp.kron(band, w[ky, kx])
            m = term if m is None else m + term
        mats.append(m)
    return jnp.stack(mats)


@jax.jit
def attention_block(g, x, params):
    """g: [B, 2H, 2W, Cg], x: [B, H, W, Cx] (NHWC); returns [B, H, W, Cx]."""
    B, H2, W2, Cg = g.shape
    _, H, W, Cx = x.shape
    Cout = Cx                       # out_c = in_c[1]

    # lane-dense views; g is split into even/odd rows so the fused max-pool
    # needs no strided subsampling inside the kernel (free reshapes / tiny slices).
    g2d = g.reshape(B, H2, W2 * Cg)
    x2d = x.reshape(B, H, W * Cx)
    g_even = g2d[:, 0::2, :]
    g_odd = g2d[:, 1::2, :]

    # first two BatchNorms: batch stats of the raw inputs (glue), folded + lane-tiled
    sc_g, sh_g = _bn_fold(g, params["g"]["gamma"], params["g"]["beta"])
    sc_x, sh_x = _bn_fold(x, params["x"]["gamma"], params["x"]["beta"])
    gbn = jnp.stack([jnp.tile(sc_g, W2), jnp.tile(sh_g, W2)])            # (2, W2*Cg)
    xbn = jnp.stack([jnp.tile(sc_x, W), jnp.tile(sh_x, W),
                     jnp.tile(params["x"]["b"], W)])                     # (3, W*Cout)
    bg = jnp.tile(params["g"]["b"], W)[None, :]                          # (1, W*Cout)

    # banded conv matrices (g-branch output columns permuted [even-x | odd-x])
    pooled_order = np.concatenate([np.arange(0, W2, 2), np.arange(1, W2, 2)])
    mg = _banded_conv_mats(params["g"]["w"], W2, pooled_order)   # (3, W2*Cg, W2*Cout)
    mx = _banded_conv_mats(params["x"]["w"], W, np.arange(W))    # (3, W*Cx,  W*Cout)

    gc_sum, mom = _pass1(g_even, g_odd, x2d, gbn, xbn, bg, mg, mx)

    # third BatchNorm: batch stats of (g_pool + x_conv) from the kernel's moments
    cnt = B * H * W
    ssum = jnp.sum(mom[:, 0, :].reshape(B, W, Cout), axis=(0, 1))
    ssq = jnp.sum(mom[:, 1, :].reshape(B, W, Cout), axis=(0, 1))
    mean = ssum / cnt
    var = ssq / cnt - mean * mean
    sc_gc = params["gc"]["gamma"] * jax.lax.rsqrt(var + _EPS)
    sh_gc = params["gc"]["beta"] - mean * sc_gc
    gcbn = jnp.stack([jnp.tile(sc_gc, W), jnp.tile(sh_gc, W),
                      jnp.tile(params["gc"]["b"], W)])                   # (3, W*Cout)
    mgc = _banded_conv_mats(params["gc"]["w"], W, np.arange(W))  # (3, W*Cout, W*Cout)

    y2d = _pass2(gc_sum, x2d, gcbn, mgc)
    return y2d.reshape(B, H, W, Cout)


# --------------------------- pure-JAX reference check -------------------------

def attention_block_reference(g, x, params):
    def bn(v, gamma, beta):
        mean = jnp.mean(v, axis=(0, 1, 2))
        var = jnp.mean(jnp.square(v - mean), axis=(0, 1, 2))
        return (v - mean) * jax.lax.rsqrt(var + _EPS) * gamma + beta

    def conv(v, w, b):
        return jax.lax.conv_general_dilated(
            v, w, window_strides=(1, 1), padding="SAME",
            dimension_numbers=("NHWC", "HWIO", "NHWC"),
            precision=jax.lax.Precision.HIGHEST) + b

    def pool(v):
        B, H2, W2, C = v.shape
        return jnp.max(v.reshape(B, H2 // 2, 2, W2 // 2, 2, C), axis=(2, 4))

    gp = pool(conv(jax.nn.relu(bn(g, params["g"]["gamma"], params["g"]["beta"])),
                   params["g"]["w"], params["g"]["b"]))
    xc = conv(jax.nn.relu(bn(x, params["x"]["gamma"], params["x"]["beta"])),
              params["x"]["w"], params["x"]["b"])
    s = gp + xc
    gc = conv(jax.nn.relu(bn(s, params["gc"]["gamma"], params["gc"]["beta"])),
              params["gc"]["w"], params["gc"]["b"])
    return gc * x


# ----------------------------------- main -------------------------------------

if __name__ == "__main__":
    B = 2
    in_c = (4, 8)                 # Attention_Block(in_c): Cg = in_c[0], out_c = in_c[1]
    Cg, Cx = in_c
    Cout = in_c[1]
    H = W = 16                    # spatial size of x; g is 2x larger spatially
    H2, W2 = 2 * H, 2 * W

    root = jax.random.PRNGKey(0)
    keys = jax.random.split(root, 14)

    g = jax.random.normal(keys[0], (B, H2, W2, Cg), jnp.float32)
    x = jax.random.normal(keys[1], (B, H, W, Cx), jnp.float32)

    def branch_params(k0, k1, k2, k3, cin, cout):
        return {
            "gamma": 1.0 + 0.1 * jax.random.normal(k0, (cin,), jnp.float32),
            "beta": 0.1 * jax.random.normal(k1, (cin,), jnp.float32),
            "w": 0.1 * jax.random.normal(k2, (3, 3, cin, cout), jnp.float32),
            "b": 0.1 * jax.random.normal(k3, (cout,), jnp.float32),
        }

    params = {
        "g": branch_params(keys[2], keys[3], keys[4], keys[5], Cg, Cout),
        "x": branch_params(keys[6], keys[7], keys[8], keys[9], Cx, Cout),
        "gc": branch_params(keys[10], keys[11], keys[12], keys[13], Cout, Cout),
    }

    y = attention_block(g, x, params)
    y = jax.block_until_ready(y)

    y_ref = attention_block_reference(g, x, params)
    assert y.shape == (B, H, W, Cout), y.shape
    err = float(jnp.max(jnp.abs(y - y_ref)))
    assert err < 1e-3, f"max abs error vs reference: {err}"
    print("KERNEL_OK")
</pallas_src>

<mosaic_0001>
module attributes {stable_mosaic.version = 11 : i64} {
  func.func @_pass1_kernel(%arg0: i32, %arg1: memref<1x16x128xf32, #tpu.memory_space<vmem>>, %arg2: memref<1x16x128xf32, #tpu.memory_space<vmem>>, %arg3: memref<1x16x128xf32, #tpu.memory_space<vmem>>, %arg4: memref<2x128xf32, #tpu.memory_space<vmem>>, %arg5: memref<3x128xf32, #tpu.memory_space<vmem>>, %arg6: memref<1x128xf32, #tpu.memory_space<vmem>>, %arg7: memref<3x128x256xf32, #tpu.memory_space<vmem>>, %arg8: memref<3x128x128xf32, #tpu.memory_space<vmem>>, %arg9: memref<1x16x128xf32, #tpu.memory_space<vmem>>, %arg10: memref<1x2x128xf32, #tpu.memory_space<vmem>>, %arg11: memref<18x128xf32, #tpu.memory_space<vmem>>, %arg12: memref<18x128xf32, #tpu.memory_space<vmem>>, %arg13: memref<18x128xf32, #tpu.memory_space<vmem>>) attributes {dimension_semantics = [#tpu.dimension_semantics<parallel>], iteration_bounds = array<i64: 2>, scalar_prefetch = 0 : i64, scratch_operands = 3 : i64, tpu.core_type = #tpu.core_type<tc>, window_params = [{transform_indices = @transform_0, window_bounds = array<i64: 1, 16, 128>}, {transform_indices = @transform_1, window_bounds = array<i64: 1, 16, 128>}, {transform_indices = @transform_2, window_bounds = array<i64: 1, 16, 128>}, {pipeline_mode = #tpu.pipeline_mode<synchronous>, transform_indices = @transform_3, window_bounds = array<i64: 2, 128>}, {pipeline_mode = #tpu.pipeline_mode<synchronous>, transform_indices = @transform_4, window_bounds = array<i64: 3, 128>}, {pipeline_mode = #tpu.pipeline_mode<synchronous>, transform_indices = @transform_5, window_bounds = array<i64: 1, 128>}, {pipeline_mode = #tpu.pipeline_mode<synchronous>, transform_indices = @transform_6, window_bounds = array<i64: 3, 128, 256>}, {pipeline_mode = #tpu.pipeline_mode<synchronous>, transform_indices = @transform_7, window_bounds = array<i64: 3, 128, 128>}, {transform_indices = @transform_8, window_bounds = array<i64: 1, 16, 128>}, {transform_indices = @transform_9, window_bounds = array<i64: 1, 2, 128>}]} {
    %c0 = arith.constant 0 : index
    %c0_0 = arith.constant 0 : index
    %c0_1 = arith.constant 0 : index
    %0 = vector.load %arg1[%c0, %c0_0, %c0_1] : memref<1x16x128xf32, #tpu.memory_space<vmem>>, vector<1x16x128xf32>
    %1 = vector.shape_cast %0 : vector<1x16x128xf32> to vector<16x128xf32>
    %c0_2 = arith.constant 0 : index
    %c0_3 = arith.constant 0 : index
    %2 = vector.load %arg4[%c0_2, %c0_3] : memref<2x128xf32, #tpu.memory_space<vmem>>, vector<1x128xf32>
    %3 = vector.broadcast %2 : vector<1x128xf32> to vector<16x128xf32>
    %4 = arith.mulf %1, %3 : vector<16x128xf32>
    %c1 = arith.constant 1 : index
    %c0_4 = arith.constant 0 : index
    %5 = vector.load %arg4[%c1, %c0_4] : memref<2x128xf32, #tpu.memory_space<vmem>>, vector<1x128xf32>
    %6 = vector.broadcast %5 : vector<1x128xf32> to vector<16x128xf32>
    %7 = arith.addf %4, %6 : vector<16x128xf32>
    %cst = arith.constant 0.000000e+00 : f32
    %8 = vector.broadcast %cst : f32 to vector<16x128xf32>
    %9 = arith.maximumf %7, %8 : vector<16x128xf32>
    %c0_5 = arith.constant 0 : index
    %c0_6 = arith.constant 0 : index
    %c0_7 = arith.constant 0 : index
    %10 = vector.load %arg2[%c0_5, %c0_6, %c0_7] : memref<1x16x128xf32, #tpu.memory_space<vmem>>, vector<1x16x128xf32>
    %11 = vector.shape_cast %10 : vector<1x16x128xf32> to vector<16x128xf32>
    %c0_8 = arith.constant 0 : index
    %c0_9 = arith.constant 0 : index
    %12 = vector.load %arg4[%c0_8, %c0_9] : memref<2x128xf32, #tpu.memory_space<vmem>>, vector<1x128xf32>
    %13 = vector.broadcast %12 : vector<1x128xf32> to vector<16x128xf32>
    %14 = arith.mulf %11, %13 : vector<16x128xf32>
    %c1_10 = arith.constant 1 : index
    %c0_11 = arith.constant 0 : index
    %15 = vector.load %arg4[%c1_10, %c0_11] : memref<2x128xf32, #tpu.memory_space<vmem>>, vector<1x128xf32>
    %16 = vector.broadcast %15 : vector<1x128xf32> to vector<16x128xf32>
    %17 = arith.addf %14, %16 : vector<16x128xf32>
    %cst_12 = arith.constant 0.000000e+00 : f32
    %18 = vector.broadcast %cst_12 : f32 to vector<16x128xf32>
    %19 = arith.maximumf %17, %18 : vector<16x128xf32>
    %c0_13 = arith.constant 0 : index
    %c0_14 = arith.constant 0 : index
    %c0_15 = arith.constant 0 : index
    %20 = vector.load %arg3[%c0_13, %c0_14, %c0_15] : memref<1x16x128xf32, #tpu.memory_space<vmem>>, vector<1x16x128xf32>
    %21 = vector.shape_cast %20 : vector<1x16x128xf32> to vector<16x128xf32>
    %c0_16 = arith.constant 0 : index
    %c0_17 = arith.constant 0 : index
    %22 = vector.load %arg5[%c0_16, %c0_17] : memref<3x128xf32, #tpu.memory_space<vmem>>, vector<1x128xf32>
    %23 = vector.broadcast %22 : vector<1x128xf32> to vector<16x128xf32>
    %24 = arith.mulf %21, %23 : vector<16x128xf32>
    %c1_18 = arith.constant 1 : index
    %c0_19 = arith.constant 0 : index
    %25 = vector.load %arg5[%c1_18, %c0_19] : memref<3x128xf32, #tpu.memory_space<vmem>>, vector<1x128xf32>
    %26 = vector.broadcast %25 : vector<1x128xf32> to vector<16x128xf32>
    %27 = arith.addf %24, %26 : vector<16x128xf32>
    %cst_20 = arith.constant 0.000000e+00 : f32
    %28 = vector.broadcast %cst_20 : f32 to vector<16x128xf32>
    %29 = arith.maximumf %27, %28 : vector<16x128xf32>
    %cst_21 = arith.constant 0.000000e+00 : f32
    %30 = vector.broadcast %cst_21 : f32 to vector<1x128xf32>
    %c0_22 = arith.constant 0 : index
    %c0_23 = arith.constant 0 : index
    %31 = vector.load %arg12[%c0_22, %c0_23] : memref<18x128xf32, #tpu.memory_space<vmem>>, vector<1x128xf32>
    tpu.vector_store %arg12[%c0_22, %c0_23], %30 {strides = array<i32>} : memref<18x128xf32, #tpu.memory_space<vmem>>, vector<1x128xf32>,
    %c17 = arith.constant 17 : index
    %c0_24 = arith.constant 0 : index
    %32 = vector.load %arg12[%c17, %c0_24] : memref<18x128xf32, #tpu.memory_space<vmem>>, vector<1x128xf32>
    tpu.vector_store %arg12[%c17, %c0_24], %30 {strides = array<i32>} : memref<18x128xf32, #tpu.memory_space<vmem>>, vector<1x128xf32>,
    %c1_25 = arith.constant 1 : index
    %c0_26 = arith.constant 0 : index
    %33 = vector.load %arg12[%c1_25, %c0_26] : memref<18x128xf32, #tpu.memory_space<vmem>>, vector<16x128xf32>
    tpu.vector_store %arg12[%c1_25, %c0_26], %19 {strides = array<i32>} : memref<18x128xf32, #tpu.memory_space<vmem>>, vector<16x128xf32>,
    %c0_27 = arith.constant 0 : index
    %c0_28 = arith.constant 0 : index
    %34 = vector.load %arg12[%c0_27, %c0_28] : memref<18x128xf32, #tpu.memory_space<vmem>>, vector<16x128xf32>
    %cst_29 = arith.constant 0.000000e+00 : f32
    %35 = vector.broadcast %cst_29 : f32 to vector<1x128xf32>
    %c0_30 = arith.constant 0 : index
    %c0_31 = arith.constant 0 : index
    %36 = vector.load %arg11[%c0_30, %c0_31] : memref<18x128xf32, #tpu.memory_space<vmem>>, vector<1x128xf32>
    tpu.vector_store %arg11[%c0_30, %c0_31], %35 {strides = array<i32>} : memref<18x128xf32, #tpu.memory_space<vmem>>, vector<1x128xf32>,
    %c17_32 = arith.constant 17 : index
    %c0_33 = arith.constant 0 : index
    %37 = vector.load %arg11[%c17_32, %c0_33] : memref<18x128xf32, #tpu.memory_space<vmem>>, vector<1x128xf32>
    tpu.vector_store %arg11[%c17_32, %c0_33], %35 {strides = array<i32>} : memref<18x128xf32, #tpu.memory_space<vmem>>, vector<1x128xf32>,
    %c1_34 = arith.constant 1 : index
    %c0_35 = arith.constant 0 : index
    %38 = vector.load %arg11[%c1_34, %c0_35] : memref<18x128xf32, #tpu.memory_space<vmem>>, vector<16x128xf32>
    tpu.vector_store %arg11[%c1_34, %c0_35], %9 {strides = array<i32>} : memref<18x128xf32, #tpu.memory_space<vmem>>, vector<16x128xf32>,
    %c2 = arith.constant 2 : index
    %c0_36 = arith.constant 0 : index
    %39 = vector.load %arg11[%c2, %c0_36] : memref<18x128xf32, #tpu.memory_space<vmem>>, vector<16x128xf32>
    %cst_37 = arith.constant 0.000000e+00 : f32
    %40 = vector.broadcast %cst_37 : f32 to vector<1x128xf32>
    %c0_38 = arith.constant 0 : index
    %c0_39 = arith.constant 0 : index
    %41 = vector.load %arg13[%c0_38, %c0_39] : memref<18x128xf32, #tpu.memory_space<vmem>>, vector<1x128xf32>
    tpu.vector_store %arg13[%c0_38, %c0_39], %40 {strides = array<i32>} : memref<18x128xf32, #tpu.memory_space<vmem>>, vector<1x128xf32>,
    %c17_40 = arith.constant 17 : index
    %c0_41 = arith.constant 0 : index
    %42 = vector.load %arg13[%c17_40, %c0_41] : memref<18x128xf32, #tpu.memory_space<vmem>>, vector<1x128xf32>
    tpu.vector_store %arg13[%c17_40, %c0_41], %40 {strides = array<i32>} : memref<18x128xf32, #tpu.memory_space<vmem>>, vector<1x128xf32>,
    %c1_42 = arith.constant 1 : index
    %c0_43 = arith.constant 0 : index
    %43 = vector.load %arg13[%c1_42, %c0_43] : memref<18x128xf32, #tpu.memory_space<vmem>>, vector<16x128xf32>
    tpu.vector_store %arg13[%c1_42, %c0_43], %29 {strides = array<i32>} : memref<18x128xf32, #tpu.memory_space<vmem>>, vector<16x128xf32>,
    %c0_44 = arith.constant 0 : index
    %c0_45 = arith.constant 0 : index
    %44 = vector.load %arg13[%c0_44, %c0_45] : memref<18x128xf32, #tpu.memory_space<vmem>>, vector<16x128xf32>
    %c2_46 = arith.constant 2 : index
    %c0_47 = arith.constant 0 : index
    %45 = vector.load %arg13[%c2_46, %c0_47] : memref<18x128xf32, #tpu.memory_space<vmem>>, vector<16x128xf32>
    %c0_48 = arith.constant 0 : index
    %c0_49 = arith.constant 0 : index
    %c0_50 = arith.constant 0 : index
    %46 = vector.load %arg7[%c0_48, %c0_49, %c0_50] : memref<3x128x256xf32, #tpu.memory_space<vmem>>, vector<1x128x256xf32>
    %47 = vector.shape_cast %46 : vector<1x128x256xf32> to vector<128x256xf32>
    %cst_51 = arith.constant dense<0.000000e+00> : vector<16x256xf32>
    %48 = tpu.matmul %34, %47, %cst_51 {dimension_numbers = #tpu.dot_dimension_numbers<[1], [0], [0], [1], [0, 0, 1, 1], [], []>, precision = #tpu.contract_precision<fp32>} : vector<16x128xf32>, vector<128x256xf32>, vector<16x256xf32> -> vector<16x256xf32>
    %c1_52 = arith.constant 1 : index
    %c0_53 = arith.constant 0 : index
    %c0_54 = arith.constant 0 : index
    %49 = vector.load %arg7[%c1_52, %c0_53, %c0_54] : memref<3x128x256xf32, #tpu.memory_space<vmem>>, vector<1x128x256xf32>
    %50 = vector.shape_cast %49 : vector<1x128x256xf32> to vector<128x256xf32>
    %cst_55 = arith.constant dense<0.000000e+00> : vector<16x256xf32>
    %51 = tpu.matmul %9, %50, %cst_55 {dimension_numbers = #tpu.dot_dimension_numbers<[1], [0], [0], [1], [0, 0, 1, 1], [], []>, precision = #tpu.contract_precision<fp32>} : vector<16x128xf32>, vector<128x256xf32>, vector<16x256xf32> -> vector<16x256xf32>
    %52 = arith.addf %48, %51 : vector<16x256xf32>
    %c2_56 = arith.constant 2 : index
    %c0_57 = arith.constant 0 : index
    %c0_58 = arith.constant 0 : index
    %53 = vector.load %arg7[%c2_56, %c0_57, %c0_58] : memref<3x128x256xf32, #tpu.memory_space<vmem>>, vector<1x128x256xf32>
    %54 = vector.shape_cast %53 : vector<1x128x256xf32> to vector<128x256xf32>
    %cst_59 = arith.constant dense<0.000000e+00> : vector<16x256xf32>
    %55 = tpu.matmul %19, %54, %cst_59 {dimension_numbers = #tpu.dot_dimension_numbers<[1], [0], [0], [1], [0, 0, 1, 1], [], []>, precision = #tpu.contract_precision<fp32>} : vector<16x128xf32>, vector<128x256xf32>, vector<16x256xf32> -> vector<16x256xf32>
    %56 = arith.addf %52, %55 : vector<16x256xf32>
    %c0_60 = arith.constant 0 : index
    %c0_61 = arith.constant 0 : index
    %c0_62 = arith.constant 0 : index
    %57 = vector.load %arg7[%c0_60, %c0_61, %c0_62] : memref<3x128x256xf32, #tpu.memory_space<vmem>>, vector<1x128x256xf32>
    %58 = vector.shape_cast %57 : vector<1x128x256xf32> to vector<128x256xf32>
    %cst_63 = arith.constant dense<0.000000e+00> : vector<16x256xf32>
    %59 = tpu.matmul %9, %58, %cst_63 {dimension_numbers = #tpu.dot_dimension_numbers<[1], [0], [0], [1], [0, 0, 1, 1], [], []>, precision = #tpu.contract_precision<fp32>} : vector<16x128xf32>, vector<128x256xf32>, vector<16x256xf32> -> vector<16x256xf32>
    %c1_64 = arith.constant 1 : index
    %c0_65 = arith.constant 0 : index
    %c0_66 = arith.constant 0 : index
    %60 = vector.load %arg7[%c1_64, %c0_65, %c0_66] : memref<3x128x256xf32, #tpu.memory_space<vmem>>, vector<1x128x256xf32>
    %61 = vector.shape_cast %60 : vector<1x128x256xf32> to vector<128x256xf32>
    %cst_67 = arith.constant dense<0.000000e+00> : vector<16x256xf32>
    %62 = tpu.matmul %19, %61, %cst_67 {dimension_numbers = #tpu.dot_dimension_numbers<[1], [0], [0], [1], [0, 0, 1, 1], [], []>, precision = #tpu.contract_precision<fp32>} : vector<16x128xf32>, vector<128x256xf32>, vector<16x256xf32> -> vector<16x256xf32>
    %63 = arith.addf %59, %62 : vector<16x256xf32>
    %c2_68 = arith.constant 2 : index
    %c0_69 = arith.constant 0 : index
    %c0_70 = arith.constant 0 : index
    %64 = vector.load %arg7[%c2_68, %c0_69, %c0_70] : memref<3x128x256xf32, #tpu.memory_space<vmem>>, vector<1x128x256xf32>
    %65 = vector.shape_cast %64 : vector<1x128x256xf32> to vector<128x256xf32>
    %cst_71 = arith.constant dense<0.000000e+00> : vector<16x256xf32>
    %66 = tpu.matmul %39, %65, %cst_71 {dimension_numbers = #tpu.dot_dimension_numbers<[1], [0], [0], [1], [0, 0, 1, 1], [], []>, precision = #tpu.contract_precision<fp32>} : vector<16x128xf32>, vector<128x256xf32>, vector<16x256xf32> -> vector<16x256xf32>
    %67 = arith.addf %63, %66 : vector<16x256xf32>
    %68 = arith.maximumf %56, %67 : vector<16x256xf32>
    %69 = vector.extract_strided_slice %68 {offsets = [0, 0], sizes = [16, 128], strides = [1, 1]} : vector<16x256xf32> to vector<16x128xf32>
    %70 = vector.extract_strided_slice %68 {offsets = [0, 128], sizes = [16, 128], strides = [1, 1]} : vector<16x256xf32> to vector<16x128xf32>
    %71 = arith.maximumf %69, %70 : vector<16x128xf32>
    %c0_72 = arith.constant 0 : index
    %c0_73 = arith.constant 0 : index
    %72 = vector.load %arg6[%c0_72, %c0_73] : memref<1x128xf32, #tpu.memory_space<vmem>>, vector<1x128xf32>
    %73 = vector.broadcast %72 : vector<1x128xf32> to vector<16x128xf32>
    %74 = arith.addf %71, %73 : vector<16x128xf32>
    %c0_74 = arith.constant 0 : index
    %c0_75 = arith.constant 0 : index
    %c0_76 = arith.constant 0 : index
    %75 = vector.load %arg8[%c0_74, %c0_75, %c0_76] : memref<3x128x128xf32, #tpu.memory_space<vmem>>, vector<1x128x128xf32>
    %76 = vector.shape_cast %75 : vector<1x128x128xf32> to vector<128x128xf32>
    %cst_77 = arith.constant dense<0.000000e+00> : vector<16x128xf32>
    %77 = tpu.matmul %44, %76, %cst_77 {dimension_numbers = #tpu.dot_dimension_numbers<[1], [0], [0], [1], [0, 0, 1, 1], [], []>, precision = #tpu.contract_precision<fp32>} : vector<16x128xf32>, vector<128x128xf32>, vector<16x128xf32> -> vector<16x128xf32>
    %c1_78 = arith.constant 1 : index
    %c0_79 = arith.constant 0 : index
    %c0_80 = arith.constant 0 : index
    %78 = vector.load %arg8[%c1_78, %c0_79, %c0_80] : memref<3x128x128xf32, #tpu.memory_space<vmem>>, vector<1x128x128xf32>
    %79 = vector.shape_cast %78 : vector<1x128x128xf32> to vector<128x128xf32>
    %cst_81 = arith.constant dense<0.000000e+00> : vector<16x128xf32>
    %80 = tpu.matmul %29, %79, %cst_81 {dimension_numbers = #tpu.dot_dimension_numbers<[1], [0], [0], [1], [0, 0, 1, 1], [], []>, precision = #tpu.contract_precision<fp32>} : vector<16x128xf32>, vector<128x128xf32>, vector<16x128xf32> -> vector<16x128xf32>
    %81 = arith.addf %77, %80 : vector<16x128xf32>
    %c2_82 = arith.constant 2 : index
    %c0_83 = arith.constant 0 : index
    %c0_84 = arith.constant 0 : index
    %82 = vector.load %arg8[%c2_82, %c0_83, %c0_84] : memref<3x128x128xf32, #tpu.memory_space<vmem>>, vector<1x128x128xf32>
    %83 = vector.shape_cast %82 : vector<1x128x128xf32> to vector<128x128xf32>
    %cst_85 = arith.constant dense<0.000000e+00> : vector<16x128xf32>
    %84 = tpu.matmul %45, %83, %cst_85 {dimension_numbers = #tpu.dot_dimension_numbers<[1], [0], [0], [1], [0, 0, 1, 1], [], []>, precision = #tpu.contract_precision<fp32>} : vector<16x128xf32>, vector<128x128xf32>, vector<16x128xf32> -> vector<16x128xf32>
    %85 = arith.addf %81, %84 : vector<16x128xf32>
    %c2_86 = arith.constant 2 : index
    %c0_87 = arith.constant 0 : index
    %86 = vector.load %arg5[%c2_86, %c0_87] : memref<3x128xf32, #tpu.memory_space<vmem>>, vector<1x128xf32>
    %87 = vector.broadcast %86 : vector<1x128xf32> to vector<16x128xf32>
    %88 = arith.addf %85, %87 : vector<16x128xf32>
    %89 = arith.addf %74, %88 : vector<16x128xf32>
    %c0_88 = arith.constant 0 : index
    %c0_89 = arith.constant 0 : index
    %c0_90 = arith.constant 0 : index
    %90 = vector.load %arg9[%c0_88, %c0_89, %c0_90] : memref<1x16x128xf32, #tpu.memory_space<vmem>>, vector<1x16x128xf32>
    %91 = vector.shape_cast %90 : vector<1x16x128xf32> to vector<16x128xf32>
    %92 = vector.shape_cast %89 : vector<16x128xf32> to vector<1x16x128xf32>
    tpu.vector_store %arg9[%c0_88, %c0_89, %c0_90], %92 {strides = array<i32>} : memref<1x16x128xf32, #tpu.memory_space<vmem>>, vector<1x16x128xf32>,
    %cst_91 = arith.constant dense<0.000000e+00> : vector<128xf32>
    %93 = vector.multi_reduction <add>, %89, %cst_91 [0] : vector<16x128xf32> to vector<128xf32>
    %94 = vector.shape_cast %93 : vector<128xf32> to vector<1x128xf32>
    %c0_92 = arith.constant 0 : index
    %c0_93 = arith.constant 0 : index
    %c0_94 = arith.constant 0 : index
    %95 = vector.load %arg10[%c0_92, %c0_93, %c0_94] : memref<1x2x128xf32, #tpu.memory_space<vmem>>, vector<1x1x128xf32>
    %96 = vector.shape_cast %95 : vector<1x1x128xf32> to vector<1x128xf32>
    %97 = vector.shape_cast %94 : vector<1x128xf32> to vector<1x1x128xf32>
    tpu.vector_store %arg10[%c0_92, %c0_93, %c0_94], %97 {strides = array<i32>} : memref<1x2x128xf32, #tpu.memory_space<vmem>>, vector<1x1x128xf32>,
    %98 = arith.mulf %89, %89 : vector<16x128xf32>
    %cst_95 = arith.constant dense<0.000000e+00> : vector<128xf32>
    %99 = vector.multi_reduction <add>, %98, %cst_95 [0] : vector<16x128xf32> to vector<128xf32>
    %100 = vector.shape_cast %99 : vector<128xf32> to vector<1x128xf32>
    %c0_96 = arith.constant 0 : index
    %c1_97 = arith.constant 1 : index
    %c0_98 = arith.constant 0 : index
    %101 = vector.load %arg10[%c0_96, %c1_97, %c0_98] : memref<1x2x128xf32, #tpu.memory_space<vmem>>, vector<1x1x128xf32>
    %102 = vector.shape_cast %101 : vector<1x1x128xf32> to vector<1x128xf32>
    %103 = vector.shape_cast %100 : vector<1x128xf32> to vector<1x1x128xf32>
    tpu.vector_store %arg10[%c0_96, %c1_97, %c0_98], %103 {strides = array<i32>} : memref<1x2x128xf32, #tpu.memory_space<vmem>>, vector<1x1x128xf32>,
    return
  }
  func.func @transform_0(%arg0: i32) -> (i32, i32, i32) {
    %c0_i32 = arith.constant 0 : i32
    %c0_i32_0 = arith.constant 0 : i32
    %c0_i32_1 = arith.constant 0 : i32
    return %arg0, %c0_i32, %c0_i32_0 : i32, i32, i32
  }
  func.func @transform_1(%arg0: i32) -> (i32, i32, i32) {
    %c0_i32 = arith.constant 0 : i32
    %c0_i32_0 = arith.constant 0 : i32
    %c0_i32_1 = arith.constant 0 : i32
    return %arg0, %c0_i32, %c0_i32_0 : i32, i32, i32
  }
  func.func @transform_2(%arg0: i32) -> (i32, i32, i32) {
    %c0_i32 = arith.constant 0 : i32
    %c0_i32_0 = arith.constant 0 : i32
    %c0_i32_1 = arith.constant 0 : i32
    return %arg0, %c0_i32, %c0_i32_0 : i32, i32, i32
  }
  func.func @transform_3(%arg0: i32) -> (i32, i32) {
    %c0_i32 = arith.constant 0 : i32
    %c0_i32_0 = arith.constant 0 : i32
    %c0_i32_1 = arith.constant 0 : i32
    return %c0_i32, %c0_i32_0 : i32, i32
  }
  func.func @transform_4(%arg0: i32) -> (i32, i32) {
    %c0_i32 = arith.constant 0 : i32
    %c0_i32_0 = arith.constant 0 : i32
    %c0_i32_1 = arith.constant 0 : i32
    return %c0_i32, %c0_i32_0 : i32, i32
  }
  func.func @transform_5(%arg0: i32) -> (i32, i32) {
    %c0_i32 = arith.constant 0 : i32
    %c0_i32_0 = arith.constant 0 : i32
    %c0_i32_1 = arith.constant 0 : i32
    return %c0_i32, %c0_i32_0 : i32, i32
  }
  func.func @transform_6(%arg0: i32) -> (i32, i32, i32) {
    %c0_i32 = arith.constant 0 : i32
    %c0_i32_0 = arith.constant 0 : i32
    %c0_i32_1 = arith.constant 0 : i32
    %c0_i32_2 = arith.constant 0 : i32
    return %c0_i32, %c0_i32_0, %c0_i32_1 : i32, i32, i32
  }
  func.func @transform_7(%arg0: i32) -> (i32, i32, i32) {
    %c0_i32 = arith.constant 0 : i32
    %c0_i32_0 = arith.constant 0 : i32
    %c0_i32_1 = arith.constant 0 : i32
    %c0_i32_2 = arith.constant 0 : i32
    return %c0_i32, %c0_i32_0, %c0_i32_1 : i32, i32, i32
  }
  func.func @transform_8(%arg0: i32) -> (i32, i32, i32) {
    %c0_i32 = arith.constant 0 : i32
    %c0_i32_0 = arith.constant 0 : i32
    %c0_i32_1 = arith.constant 0 : i32
    return %arg0, %c0_i32, %c0_i32_0 : i32, i32, i32
  }
  func.func @transform_9(%arg0: i32) -> (i32, i32, i32) {
    %c0_i32 = arith.constant 0 : i32
    %c0_i32_0 = arith.constant 0 : i32
    %c0_i32_1 = arith.constant 0 : i32
    return %arg0, %c0_i32, %c0_i32_0 : i32, i32, i32
  }
}

module attributes {stable_mosaic.version = 11 : i64} {
  func.func @_pass2_kernel(%arg0: i32, %arg1: memref<1x16x128xf32, #tpu.memory_space<vmem>>, %arg2: memref<1x16x128xf32, #tpu.memory_space<vmem>>, %arg3: memref<3x128xf32, #tpu.memory_space<vmem>>, %arg4: memref<3x128x128xf32, #tpu.memory_space<vmem>>, %arg5: memref<1x16x128xf32, #tpu.memory_space<vmem>>, %arg6: memref<18x128xf32, #tpu.memory_space<vmem>>) attributes {dimension_semantics = [#tpu.dimension_semantics<parallel>], iteration_bounds = array<i64: 2>, scalar_prefetch = 0 : i64, scratch_operands = 1 : i64, tpu.core_type = #tpu.core_type<tc>, window_params = [{transform_indices = @transform_0, window_bounds = array<i64: 1, 16, 128>}, {transform_indices = @transform_1, window_bounds = array<i64: 1, 16, 128>}, {pipeline_mode = #tpu.pipeline_mode<synchronous>, transform_indices = @transform_2, window_bounds = array<i64: 3, 128>}, {pipeline_mode = #tpu.pipeline_mode<synchronous>, transform_indices = @transform_3, window_bounds = array<i64: 3, 128, 128>}, {transform_indices = @transform_4, window_bounds = array<i64: 1, 16, 128>}]} {
    %c0 = arith.constant 0 : index
    %c0_0 = arith.constant 0 : index
    %c0_1 = arith.constant 0 : index
    %0 = vector.load %arg1[%c0, %c0_0, %c0_1] : memref<1x16x128xf32, #tpu.memory_space<vmem>>, vector<1x16x128xf32>
    %1 = vector.shape_cast %0 : vector<1x16x128xf32> to vector<16x128xf32>
    %c0_2 = arith.constant 0 : index
    %c0_3 = arith.constant 0 : index
    %2 = vector.load %arg3[%c0_2, %c0_3] : memref<3x128xf32, #tpu.memory_space<vmem>>, vector<1x128xf32>
    %3 = vector.broadcast %2 : vector<1x128xf32> to vector<16x128xf32>
    %4 = arith.mulf %1, %3 : vector<16x128xf32>
    %c1 = arith.constant 1 : index
    %c0_4 = arith.constant 0 : index
    %5 = vector.load %arg3[%c1, %c0_4] : memref<3x128xf32, #tpu.memory_space<vmem>>, vector<1x128xf32>
    %6 = vector.broadcast %5 : vector<1x128xf32> to vector<16x128xf32>
    %7 = arith.addf %4, %6 : vector<16x128xf32>
    %cst = arith.constant 0.000000e+00 : f32
    %8 = vector.broadcast %cst : f32 to vector<16x128xf32>
    %9 = arith.maximumf %7, %8 : vector<16x128xf32>
    %cst_5 = arith.constant 0.000000e+00 : f32
    %10 = vector.broadcast %cst_5 : f32 to vector<1x128xf32>
    %c0_6 = arith.constant 0 : index
    %c0_7 = arith.constant 0 : index
    %11 = vector.load %arg6[%c0_6, %c0_7] : memref<18x128xf32, #tpu.memory_space<vmem>>, vector<1x128xf32>
    tpu.vector_store %arg6[%c0_6, %c0_7], %10 {strides = array<i32>} : memref<18x128xf32, #tpu.memory_space<vmem>>, vector<1x128xf32>,
    %c17 = arith.constant 17 : index
    %c0_8 = arith.constant 0 : index
    %12 = vector.load %arg6[%c17, %c0_8] : memref<18x128xf32, #tpu.memory_space<vmem>>, vector<1x128xf32>
    tpu.vector_store %arg6[%c17, %c0_8], %10 {strides = array<i32>} : memref<18x128xf32, #tpu.memory_space<vmem>>, vector<1x128xf32>,
    %c1_9 = arith.constant 1 : index
    %c0_10 = arith.constant 0 : index
    %13 = vector.load %arg6[%c1_9, %c0_10] : memref<18x128xf32, #tpu.memory_space<vmem>>, vector<16x128xf32>
    tpu.vector_store %arg6[%c1_9, %c0_10], %9 {strides = array<i32>} : memref<18x128xf32, #tpu.memory_space<vmem>>, vector<16x128xf32>,
    %c0_11 = arith.constant 0 : index
    %c0_12 = arith.constant 0 : index
    %14 = vector.load %arg6[%c0_11, %c0_12] : memref<18x128xf32, #tpu.memory_space<vmem>>, vector<16x128xf32>
    %c2 = arith.constant 2 : index
    %c0_13 = arith.constant 0 : index
    %15 = vector.load %arg6[%c2, %c0_13] : memref<18x128xf32, #tpu.memory_space<vmem>>, vector<16x128xf32>
    %c0_14 = arith.constant 0 : index
    %c0_15 = arith.constant 0 : index
    %c0_16 = arith.constant 0 : index
    %16 = vector.load %arg4[%c0_14, %c0_15, %c0_16] : memref<3x128x128xf32, #tpu.memory_space<vmem>>, vector<1x128x128xf32>
    %17 = vector.shape_cast %16 : vector<1x128x128xf32> to vector<128x128xf32>
    %cst_17 = arith.constant dense<0.000000e+00> : vector<16x128xf32>
    %18 = tpu.matmul %14, %17, %cst_17 {dimension_numbers = #tpu.dot_dimension_numbers<[1], [0], [0], [1], [0, 0, 1, 1], [], []>, precision = #tpu.contract_precision<fp32>} : vector<16x128xf32>, vector<128x128xf32>, vector<16x128xf32> -> vector<16x128xf32>
    %c1_18 = arith.constant 1 : index
    %c0_19 = arith.constant 0 : index
    %c0_20 = arith.constant 0 : index
    %19 = vector.load %arg4[%c1_18, %c0_19, %c0_20] : memref<3x128x128xf32, #tpu.memory_space<vmem>>, vector<1x128x128xf32>
    %20 = vector.shape_cast %19 : vector<1x128x128xf32> to vector<128x128xf32>
    %cst_21 = arith.constant dense<0.000000e+00> : vector<16x128xf32>
    %21 = tpu.matmul %9, %20, %cst_21 {dimension_numbers = #tpu.dot_dimension_numbers<[1], [0], [0], [1], [0, 0, 1, 1], [], []>, precision = #tpu.contract_precision<fp32>} : vector<16x128xf32>, vector<128x128xf32>, vector<16x128xf32> -> vector<16x128xf32>
    %22 = arith.addf %18, %21 : vector<16x128xf32>
    %c2_22 = arith.constant 2 : index
    %c0_23 = arith.constant 0 : index
    %c0_24 = arith.constant 0 : index
    %23 = vector.load %arg4[%c2_22, %c0_23, %c0_24] : memref<3x128x128xf32, #tpu.memory_space<vmem>>, vector<1x128x128xf32>
    %24 = vector.shape_cast %23 : vector<1x128x128xf32> to vector<128x128xf32>
    %cst_25 = arith.constant dense<0.000000e+00> : vector<16x128xf32>
    %25 = tpu.matmul %15, %24, %cst_25 {dimension_numbers = #tpu.dot_dimension_numbers<[1], [0], [0], [1], [0, 0, 1, 1], [], []>, precision = #tpu.contract_precision<fp32>} : vector<16x128xf32>, vector<128x128xf32>, vector<16x128xf32> -> vector<16x128xf32>
    %26 = arith.addf %22, %25 : vector<16x128xf32>
    %c2_26 = arith.constant 2 : index
    %c0_27 = arith.constant 0 : index
    %27 = vector.load %arg3[%c2_26, %c0_27] : memref<3x128xf32, #tpu.memory_space<vmem>>, vector<1x128xf32>
    %28 = vector.broadcast %27 : vector<1x128xf32> to vector<16x128xf32>
    %29 = arith.addf %26, %28 : vector<16x128xf32>
    %c0_28 = arith.constant 0 : index
    %c0_29 = arith.constant 0 : index
    %c0_30 = arith.constant 0 : index
    %30 = vector.load %arg2[%c0_28, %c0_29, %c0_30] : memref<1x16x128xf32, #tpu.memory_space<vmem>>, vector<1x16x128xf32>
    %31 = vector.shape_cast %30 : vector<1x16x128xf32> to vector<16x128xf32>
    %32 = arith.mulf %29, %31 : vector<16x128xf32>
    %c0_31 = arith.constant 0 : index
    %c0_32 = arith.constant 0 : index
    %c0_33 = arith.constant 0 : index
    %33 = vector.load %arg5[%c0_31, %c0_32, %c0_33] : memref<1x16x128xf32, #tpu.memory_space<vmem>>, vector<1x16x128xf32>
    %34 = vector.shape_cast %33 : vector<1x16x128xf32> to vector<16x128xf32>
    %35 = vector.shape_cast %32 : vector<16x128xf32> to vector<1x16x128xf32>
    tpu.vector_store %arg5[%c0_31, %c0_32, %c0_33], %35 {strides = array<i32>} : memref<1x16x128xf32, #tpu.memory_space<vmem>>, vector<1x16x128xf32>,
    return
  }
  func.func @transform_0(%arg0: i32) -> (i32, i32, i32) {
    %c0_i32 = arith.constant 0 : i32
    %c0_i32_0 = arith.constant 0 : i32
    %c0_i32_1 = arith.constant 0 : i32
    return %arg0, %c0_i32, %c0_i32_0 : i32, i32, i32
  }
  func.func @transform_1(%arg0: i32) -> (i32, i32, i32) {
    %c0_i32 = arith.constant 0 : i32
    %c0_i32_0 = arith.constant 0 : i32
    %c0_i32_1 = arith.constant 0 : i32
    return %arg0, %c0_i32, %c0_i32_0 : i32, i32, i32
  }
  func.func @transform_2(%arg0: i32) -> (i32, i32) {
    %c0_i32 = arith.constant 0 : i32
    %c0_i32_0 = arith.constant 0 : i32
    %c0_i32_1 = arith.constant 0 : i32
    return %c0_i32, %c0_i32_0 : i32, i32
  }
  func.func @transform_3(%arg0: i32) -> (i32, i32, i32) {
    %c0_i32 = arith.constant 0 : i32
    %c0_i32_0 = arith.constant 0 : i32
    %c0_i32_1 = arith.constant 0 : i32
    %c0_i32_2 = arith.constant 0 : i32
    return %c0_i32, %c0_i32_0, %c0_i32_1 : i32, i32, i32
  }
  func.func @transform_4(%arg0: i32) -> (i32, i32, i32) {
    %c0_i32 = arith.constant 0 : i32
    %c0_i32_0 = arith.constant 0 : i32
    %c0_i32_1 = arith.constant 0 : i32
    return %arg0, %c0_i32, %c0_i32_0 : i32, i32, i32
  }
}

</mosaic_0001>

<bundles_post_ra>
// kernel: tile.52
= control target key start
LH: loop header
LB: loop body
LE: loop exit
PB: predicated region body
PF: predicated region fallthrough
CT: control target
= control target key end

     0   :  { %s40_s0 = inlined_call_operand.vmem [shape: f32[4], index: 0, kind: input, shape index: {}]   ;;  %s41_s1 = inlined_call_operand.vmem [shape: f32[32,4], index: 1, kind: output, shape index: {}]  }
   0x1   :  { %v4_v0 = vld [vmem:[%s40_s0] ss:$0 sm:$0xff] }
   0x2   :  { %5 = vst [vmem:[%s41_s1] sm:$0xff] %v4_v0  ;;  %12 = vst [vmem:[%s41_s1 + $0x8] sm:$0xff] %v4_v0 }
   0x3   :  { %13 = vst [vmem:[%s41_s1 + $0x10] sm:$0xff] %v4_v0  ;;  %14 = vst [vmem:[%s41_s1 + $0x18] sm:$0xff] %v4_v0 }

// kernel: tile.54
= control target key start
LH: loop header
LB: loop body
LE: loop exit
PB: predicated region body
PF: predicated region fallthrough
CT: control target
= control target key end

     0   :  { %s259_s10 = smov 124   ;;  %s260_s11 = smov 116   ;;  %vm3_vm0 = vcmask 31744   ;;  %vm9_vm1 = vcmask 1048544   ;;  %vm15_vm2 = vcmask 1015744   ;;  %vm21_vm3 = vcmask 982944   ;;  %s399_s0 = inlined_call_operand.vmem [shape: f32[32,4], index: 0, kind: input, shape index: {}]   ;;  %s400_s1 = inlined_call_operand.vmem [shape: f32[1,128], index: 1, kind: output, shape index: {}]  }
   0x1   :  { %v197_v0 = vld [vmem:[%s399_s0 + $0x1f] sm:$0x1]   ;;  %v199_v1 = vld [vmem:[%s399_s0 + $0x1d] sm:$0x1]   ;;  %v198_v2 = vld [vmem:[%s399_s0 + $0x1e] sm:$0x1]  }
   0x2   :  { %7 = vrot.lane.b32.xlu0 %v197_v0, %s259_s10  ;;  %19 = vrot.lane.b32.xlu1 %v199_v1, %s260_s11  ;;  %v200_v3 = vld [vmem:[%s399_s0 + $0x1c] sm:$0x1]   ;;  %s261_s16 = smov 120   ;;  %s262_s17 = smov 112   ;;  %v201_v4 = vld [vmem:[%s399_s0 + $0x1b] sm:$0x1]  }
   0x3   :  { %v202_v5 = vld [vmem:[%s399_s0 + $0x1a] sm:$0x1]   ;;  %s263_s22 = smov 108   ;;  %s264_s23 = smov 104   ;;  %v203_v6 = vld [vmem:[%s399_s0 + $0x19] sm:$0x1]  }
   0x4   :  { %v204_v7 = vld [vmem:[%s399_s0 + $0x18] sm:$0x1]   ;;  %s265_s28 = smov 100   ;;  %s266_s29 = smov 96   ;;  %v205_v8 = vld [vmem:[%s399_s0 + $0x17] sm:$0x1]  }
   0x5   :  { %v206_v9 = vld [vmem:[%s399_s0 + $0x16] sm:$0x1]   ;;  %v2_v10 = vld [vmem:[%s399_s0] sm:$0x1]   ;;  %s267_s7 = smov 92   ;;  %s268_s8 = smov 88  }
   0x6   :  { %13 = vrot.lane.b32.xlu0 %v198_v2, %s261_s16  ;;  %25 = vrot.lane.b32.xlu1 %v200_v3, %s262_s17  ;;  %4 = vst.msk [vmem:[#allocation0] sm:$0x1] %vm3_vm0, %v2_v10   ;;  %v207_v11 = vld [vmem:[%s399_s0 + $0x15] sm:$0x1]   ;;  %v208_v12 = vld [vmem:[%s399_s0 + $0x14] sm:$0x1]  }
   0x7   :  { %s269_s13 = smov 84   ;;  %s270_s14 = smov 80   ;;  %v209_v13 = vld [vmem:[%s399_s0 + $0x13] sm:$0x1]   ;;  %v210_v14 = vld [vmem:[%s399_s0 + $0x12] sm:$0x1]  }
   0x8   :  { %s271_s19 = smov 76   ;;  %s272_s20 = smov 72   ;;  %v211_v15 = vld [vmem:[%s399_s0 + $0x11] sm:$0x1]   ;;  %v212_v16 = vld [vmem:[%s399_s0 + $0x10] sm:$0x1]  }
   0x9   :  { %s273_s25 = smov 68   ;;  %s274_s26 = smov 64   ;;  %v213_v17 = vld [vmem:[%s399_s0 + $0xf] sm:$0x1]   ;;  %v214_v18 = vld [vmem:[%s399_s0 + $0xe] sm:$0x1]  }
   0xa   :  { %31 = vrot.lane.b32.xlu0 %v201_v4, %s263_s22  ;;  %37 = vrot.lane.b32.xlu1 %v202_v5, %s264_s23  ;;  %s275_s2 = smov 60   ;;  %s276_s3 = smov 56   ;;  %v215_v19 = vld [vmem:[%s399_s0 + $0xd] sm:$0x1]   ;;  %v216_v20 = vld [vmem:[%s399_s0 + $0xc] sm:$0x1]  }
   0xb   :  { %s278_s9 = smov 48   ;;  %v217_v21 = vld [vmem:[%s399_s0 + $0xb] sm:$0x1]   ;;  %v218_v22 = vld [vmem:[%s399_s0 + $0xa] sm:$0x1]   ;;  %s280_s15 = smov 40  }
   0xc   :  { %v219_v23 = vld [vmem:[%s399_s0 + $0x9] sm:$0x1]   ;;  %v220_v24 = vld [vmem:[%s399_s0 + $0x8] sm:$0x1]   ;;  %s282_s21 = smov 32   ;;  %s284_s27 = smov 24  }
   0xd   :  { %v221_v25 = vld [vmem:[%s399_s0 + $0x7] sm:$0x1]   ;;  %v222_v26 = vld [vmem:[%s399_s0 + $0x6] sm:$0x1]   ;;  %v223_v27 = vld [vmem:[%s399_s0 + $0x5] sm:$0x1]  }
   0xe   :  { %43 = vrot.lane.b32.xlu0 %v203_v6, %s265_s28  ;;  %49 = vrot.lane.b32.xlu1 %v204_v7, %s266_s29  ;;  %v224_v28 = vld [vmem:[%s399_s0 + $0x4] sm:$0x1]   ;;  %s286_s4 = smov 16   ;;  %v225_v29 = vld [vmem:[%s399_s0 + $0x3] sm:$0x1]   ;;  %s288_s10 = smov 8  }
   0xf   :  { %v226_v30 = vld [vmem:[%s399_s0 + $0x2] sm:$0x1]   ;;  %v227_v31 = vld [vmem:[%s399_s0 + $0x1] sm:$0x1]   ;;  %s289_s0 = smov 4   ;;  %vm27_vm4 = vcmask 950144  }
  0x10   :  { %vm33_vm5 = vcmask 917344   ;;  %vm39_vm6 = vcmask 884544   ;;  %vm45_vm7 = vcmask 851744   ;;  %vm51_vm8 = vcmask 818944  }
  0x11   :  { %vm57_vm9 = vcmask 786144   ;;  %vm63_vm10 = vcmask 753344   ;;  %vm69_vm11 = vcmask 720544   ;;  %vm75_vm12 = vcmask 687744  }
  0x12   :  { %55 = vrot.lane.b32.xlu0 %v205_v8, %s267_s7  ;;  %61 = vrot.lane.b32.xlu1 %v206_v9, %s268_s8  ;;  %s277_s8 = smov 52   ;;  %vm81_vm13 = vcmask 654944   ;;  %vm87_vm14 = vcmask 622144   ;;  %vm93_vm15 = vcmask 589344   ;;  %vm99_vm0 = vcmask 556544  }
  0x16   :  { %67 = vrot.lane.b32.xlu0 %v207_v11, %s269_s13  ;;  %73 = vrot.lane.b32.xlu1 %v208_v12, %s270_s14  ;;  %s279_s14 = smov 44  }
  0x1a   :  { %79 = vrot.lane.b32.xlu0 %v209_v13, %s271_s19  ;;  %85 = vrot.lane.b32.xlu1 %v210_v14, %s272_s20  ;;  %s281_s20 = smov 36  }
  0x1e   :  { %91 = vrot.lane.b32.xlu0 %v211_v15, %s273_s25  ;;  %97 = vrot.lane.b32.xlu1 %v212_v16, %s274_s26  ;;  %s283_s26 = smov 28  }
  0x22   :  { %103 = vrot.lane.b32.xlu0 %v213_v17, %s275_s2  ;;  %109 = vrot.lane.b32.xlu1 %v214_v18, %s276_s3  ;;  %s285_s3 = smov 20  }
  0x26   :  { %115 = vrot.lane.b32.xlu0 %v215_v19, %s277_s8  ;;  %121 = vrot.lane.b32.xlu1 %v216_v20, %s278_s9  ;;  %s287_s9 = smov 12  }
  0x2a   :  { %127 = vrot.lane.b32.xlu0 %v217_v21, %s279_s14  ;;  %133 = vrot.lane.b32.xlu1 %v218_v22, %s280_s15 }
  0x2e   :  { %139 = vrot.lane.b32.xlu0 %v219_v23, %s281_s20  ;;  %145 = vrot.lane.b32.xlu1 %v220_v24, %s282_s21 }
  0x32   :  { %151 = vrot.lane.b32.xlu0 %v221_v25, %s283_s26  ;;  %157 = vrot.lane.b32.xlu1 %v222_v26, %s284_s27 }
  0x36   :  { %163 = vrot.lane.b32.xlu0 %v223_v27, %s285_s3  ;;  %169 = vrot.lane.b32.xlu1 %v224_v28, %s286_s4 }
  0x3a   :  { %175 = vrot.lane.b32.xlu0 %v225_v29, %s287_s9  ;;  %181 = vrot.lane.b32.xlu1 %v226_v30, %s288_s10 }
  0x3e   :  { %187 = vrot.lane.b32.xlu0 %v227_v31, %s289_s0 }
  0x74   :  { %v8_v32 = vpop.permute.xlu0 %7   ;;  %v20_v33 = vpop.permute.xlu1 %19  }
  0x75   :  { %10 = vst.msk [vmem:[#allocation0] sm:$0x1] %vm9_vm1, %v8_v32   ;;  %vm105_vm1 = vcmask 523744  }
  0x78   :  { %v14_v34 = vpop.permute.xlu0 %13   ;;  %v26_v35 = vpop.permute.xlu1 %25  }
  0x79   :  { %16 = vst.msk [vmem:[#allocation0] sm:$0x1] %vm15_vm2, %v14_v34   ;;  %vm111_vm2 = vcmask 490944  }
  0x7a   :  { %22 = vst.msk [vmem:[#allocation0] sm:$0x1] %vm21_vm3, %v20_v33   ;;  %vm117_vm3 = vcmask 458144  }
  0x7b   :  { %28 = vst.msk [vmem:[#allocation0] sm:$0x1] %vm27_vm4, %v26_v35   ;;  %vm123_vm4 = vcmask 425344  }
  0x7c   :  { %v32_v36 = vpop.permute.xlu0 %31   ;;  %v38_v37 = vpop.permute.xlu1 %37  }
  0x7d   :  { %34 = vst.msk [vmem:[#allocation0] sm:$0x1] %vm33_vm5, %v32_v36   ;;  %vm129_vm5 = vcmask 392544  }
  0x7e   :  { %40 = vst.msk [vmem:[#allocation0] sm:$0x1] %vm39_vm6, %v38_v37   ;;  %vm135_vm6 = vcmask 359744  }
  0x80   :  { %v44_v38 = vpop.permute.xlu0 %43   ;;  %v50_v39 = vpop.permute.xlu1 %49  }
  0x81   :  { %46 = vst.msk [vmem:[#allocation0] sm:$0x1] %vm45_vm7, %v44_v38   ;;  %vm141_vm7 = vcmask 326944  }
  0x82   :  { %52 = vst.msk [vmem:[#allocation0] sm:$0x1] %vm51_vm8, %v50_v39   ;;  %vm147_vm8 = vcmask 294144  }
  0x84   :  { %v56_v40 = vpop.permute.xlu0 %55   ;;  %v62_v41 = vpop.permute.xlu1 %61  }
  0x85   :  { %58 = vst.msk [vmem:[#allocation0] sm:$0x1] %vm57_vm9, %v56_v40   ;;  %vm153_vm9 = vcmask 261344  }
  0x86   :  { %64 = vst.msk [vmem:[#allocation0] sm:$0x1] %vm63_vm10, %v62_v41   ;;  %vm159_vm10 = vcmask 228544  }
  0x88   :  { %v68_v42 = vpop.permute.xlu0 %67   ;;  %v74_v43 = vpop.permute.xlu1 %73  }
  0x89   :  { %70 = vst.msk [vmem:[#allocation0] sm:$0x1] %vm69_vm11, %v68_v42   ;;  %vm165_vm11 = vcmask 195744  }
  0x8a   :  { %76 = vst.msk [vmem:[#allocation0] sm:$0x1] %vm75_vm12, %v74_v43   ;;  %vm171_vm12 = vcmask 162944  }
  0x8c   :  { %v80_v44 = vpop.permute.xlu0 %79   ;;  %v86_v45 = vpop.permute.xlu1 %85  }
  0x8d   :  { %82 = vst.msk [vmem:[#allocation0] sm:$0x1] %vm81_vm13, %v80_v44   ;;  %vm177_vm13 = vcmask 130144  }
  0x8e   :  { %88 = vst.msk [vmem:[#allocation0] sm:$0x1] %vm87_vm14, %v86_v45   ;;  %vm183_vm14 = vcmask 97344  }
  0x90   :  { %v92_v46 = vpop.permute.xlu0 %91   ;;  %v98_v47 = vpop.permute.xlu1 %97  }
  0x91   :  { %94 = vst.msk [vmem:[#allocation0] sm:$0x1] %vm93_vm15, %v92_v46   ;;  %vm189_vm15 = vcmask 64544  }
  0x92   :  { %100 = vst.msk [vmem:[#allocation0] sm:$0x1] %vm99_vm0, %v98_v47  }
  0x94   :  { %v104_v48 = vpop.permute.xlu0 %103   ;;  %v110_v49 = vpop.permute.xlu1 %109  }
  0x95   :  { %106 = vst.msk [vmem:[#allocation0] sm:$0x1] %vm105_vm1, %v104_v48  }
  0x96   :  { %112 = vst.msk [vmem:[#allocation0] sm:$0x1] %vm111_vm2, %v110_v49  }
  0x98   :  { %v116_v50 = vpop.permute.xlu0 %115   ;;  %v122_v51 = vpop.permute.xlu1 %121  }
  0x99   :  { %118 = vst.msk [vmem:[#allocation0] sm:$0x1] %vm117_vm3, %v116_v50  }
  0x9a   :  { %124 = vst.msk [vmem:[#allocation0] sm:$0x1] %vm123_vm4, %v122_v51  }
  0x9c   :  { %v128_v52 = vpop.permute.xlu0 %127   ;;  %v134_v53 = vpop.permute.xlu1 %133  }
  0x9d   :  { %130 = vst.msk [vmem:[#allocation0] sm:$0x1] %vm129_vm5, %v128_v52  }
  0x9e   :  { %136 = vst.msk [vmem:[#allocation0] sm:$0x1] %vm135_vm6, %v134_v53  }
  0xa0   :  { %v140_v54 = vpop.permute.xlu0 %139   ;;  %v146_v55 = vpop.permute.xlu1 %145  }
  0xa1   :  { %142 = vst.msk [vmem:[#allocation0] sm:$0x1] %vm141_vm7, %v140_v54  }
  0xa2   :  { %148 = vst.msk [vmem:[#allocation0] sm:$0x1] %vm147_vm8, %v146_v55  }
  0xa4   :  { %v152_v56 = vpop.permute.xlu0 %151   ;;  %v158_v57 = vpop.permute.xlu1 %157  }
  0xa5   :  { %154 = vst.msk [vmem:[#allocation0] sm:$0x1] %vm153_vm9, %v152_v56  }
  0xa6   :  { %160 = vst.msk [vmem:[#allocation0] sm:$0x1] %vm159_vm10, %v158_v57  }
  0xa8   :  { %v164_v58 = vpop.permute.xlu0 %163   ;;  %v170_v59 = vpop.permute.xlu1 %169  }
  0xa9   :  { %166 = vst.msk [vmem:[#allocation0] sm:$0x1] %vm165_vm11, %v164_v58  }
  0xaa   :  { %172 = vst.msk [vmem:[#allocation0] sm:$0x1] %vm171_vm12, %v170_v59  }
  0xac   :  { %v176_v60 = vpop.permute.xlu0 %175   ;;  %v182_v61 = vpop.permute.xlu1 %181  }
  0xad   :  { %178 = vst.msk [vmem:[#allocation0] sm:$0x1] %vm177_vm13, %v176_v60  }
  0xae   :  { %184 = vst.msk [vmem:[#allocation0] sm:$0x1] %vm183_vm14, %v182_v61  }
  0xb0   :  { %v188_v62 = vpop.permute.xlu0 %187  }
  0xb1   :  { %190 = vst.msk [vmem:[#allocation0] sm:$0x1] %vm189_vm15, %v188_v62  }
  0xb8   :  { %v194_v63 = vld [vmem:[#allocation0] sm:$0x1] }
  0xb9   :  { %196 = vst [vmem:[%s400_s1] sm:$0x1] %v194_v63 }

// kernel: tile.66
= control target key start
LH: loop header
LB: loop body
LE: loop exit
PB: predicated region body
PF: predicated region fallthrough
CT: control target
= control target key end

     0   :  { %2 = vsyncpa [#allocation1], 0  ;;  %s47_s6 = smov [#allocation0]   ;;  %s76_s0 = inlined_call_operand.hbm [shape: f32[8], index: 0, kind: input, shape index: {}]   ;;  %s77_s1 = inlined_call_operand.vmem [shape: f32[16,8], index: 1, kind: output, shape index: {}]  }
   0x1   :  { %s9_s7 = sshll.u32 %s47_s6, 4  ;;  %s23_s10 = scalar_lea.hbm %s76_s0, 16  ;;  %s10_s7 = int_to_ptr.vmem [resolvable:$true] %s9_s7 }
   0x2   :  { %p24_p0 = scmp.ne.s32.totalorder %s76_s0, %s23_s10  ;;  %p27_p1 = scmp.lt.u32.totalorder %s23_s10, %s76_s0 }
   0x4   :  { %p29_p2 = pnand %p27_p1, %p24_p0 }
   0x6   :  { %32 = shalt.err (!%p29_p2)
}
   0x7   :  { %s33_s15 = scalar_lea.vmem %s10_s7, 16  ;;  %s37_s16 = scalar_lea.vmem %s10_s7, 32 }
   0x8   :  { %p34_p3 = scmp.ne.s32.totalorder %s10_s7, %s33_s15  ;;  %p38_p4 = scmp.lt.s32.totalorder %s10_s7, %s10_s7 }
   0x9   :  { %p39_p5 = scmp.lt.s32.totalorder %s37_s16, %s33_s15 }
   0xb   :  { %p40_p6 = por %p39_p5, %p38_p4 }
   0xd   :  { %p41_p7 = pnand %p40_p6, %p34_p3 }
   0xf   :  { %44 = shalt.err (!%p41_p7)
}
  0x10   :  { %12 = dma.hbm_to_vmem [thread:$0]  %s76_s0, 16, %s10_s7, [#allocation1]  }
  0x11   :  { %45 = dma.done.wait [#allocation1], 16  }
  0x12   :  { %46 = vsyncadd [#allocation1], 4294967280  ;;  %v16_v0 = vld [vmem:[#allocation0] ss:$0 sm:$0xff] }
  0x13   :  { %17 = vst [vmem:[%s77_s1] sm:$0xff] %v16_v0  ;;  %21 = vst [vmem:[%s77_s1 + $0x8] sm:$0xff] %v16_v0 }
  0x14   :  { %20 = vsyncpa [#allocation1], 1 }

// kernel: tile.69
= control target key start
LH: loop header
LB: loop body
LE: loop exit
PB: predicated region body
PF: predicated region fallthrough
CT: control target
= control target key end

     0   :  { %s131_s10 = smov 120   ;;  %s132_s11 = smov 104   ;;  %vm3_vm0 = vcmask 64512   ;;  %vm9_vm1 = vcmask 1048512   ;;  %vm15_vm2 = vcmask 982912   ;;  %vm21_vm3 = vcmask 917312   ;;  %s207_s0 = inlined_call_operand.vmem [shape: f32[16,8], index: 0, kind: input, shape index: {}]   ;;  %s208_s1 = inlined_call_operand.vmem [shape: f32[1,128], index: 1, kind: output, shape index: {}]  }
   0x1   :  { %v101_v0 = vld [vmem:[%s207_s0 + $0xf] sm:$0x1]   ;;  %v103_v1 = vld [vmem:[%s207_s0 + $0xd] sm:$0x1]   ;;  %v102_v2 = vld [vmem:[%s207_s0 + $0xe] sm:$0x1]  }
   0x2   :  { %7 = vrot.lane.b32.xlu0 %v101_v0, %s131_s10  ;;  %19 = vrot.lane.b32.xlu1 %v103_v1, %s132_s11  ;;  %v104_v3 = vld [vmem:[%s207_s0 + $0xc] sm:$0x1]   ;;  %s133_s16 = smov 112   ;;  %s134_s17 = smov 96   ;;  %v105_v4 = vld [vmem:[%s207_s0 + $0xb] sm:$0x1]  }
   0x3   :  { %v106_v5 = vld [vmem:[%s207_s0 + $0xa] sm:$0x1]   ;;  %v2_v6 = vld [vmem:[%s207_s0] sm:$0x1]   ;;  %s135_s24 = smov 88   ;;  %s136_s25 = smov 80  }
   0x4   :  { %4 = vst.msk [vmem:[#allocation0] sm:$0x1] %vm3_vm0, %v2_v6   ;;  %v107_v7 = vld [vmem:[%s207_s0 + $0x9] sm:$0x1]   ;;  %v108_v8 = vld [vmem:[%s207_s0 + $0x8] sm:$0x1]  }
   0x5   :  { %s137_s30 = smov 72   ;;  %s138_s2 = smov 64   ;;  %v109_v9 = vld [vmem:[%s207_s0 + $0x7] sm:$0x1]   ;;  %v110_v10 = vld [vmem:[%s207_s0 + $0x6] sm:$0x1]  }
   0x6   :  { %13 = vrot.lane.b32.xlu0 %v102_v2, %s133_s16  ;;  %25 = vrot.lane.b32.xlu1 %v104_v3, %s134_s17  ;;  %s139_s7 = smov 56   ;;  %s140_s8 = smov 48   ;;  %v111_v11 = vld [vmem:[%s207_s0 + $0x5] sm:$0x1]   ;;  %v112_v12 = vld [vmem:[%s207_s0 + $0x4] sm:$0x1]  }
   0x7   :  { %s141_s13 = smov 40   ;;  %s142_s14 = smov 32   ;;  %v113_v13 = vld [vmem:[%s207_s0 + $0x3] sm:$0x1]   ;;  %v114_v14 = vld [vmem:[%s207_s0 + $0x2] sm:$0x1]  }
   0x8   :  { %s143_s19 = smov 24   ;;  %s144_s20 = smov 16   ;;  %v115_v15 = vld [vmem:[%s207_s0 + $0x1] sm:$0x1]   ;;  %vm27_vm4 = vcmask 851712   ;;  %vm33_vm5 = vcmask 786112  }
   0x9   :  { %s145_s0 = smov 8   ;;  %vm39_vm6 = vcmask 720512   ;;  %vm45_vm7 = vcmask 654912   ;;  %vm51_vm8 = vcmask 589312   ;;  %vm57_vm9 = vcmask 523712  }
   0xa   :  { %31 = vrot.lane.b32.xlu0 %v105_v4, %s135_s24  ;;  %37 = vrot.lane.b32.xlu1 %v106_v5, %s136_s25  ;;  %vm63_vm10 = vcmask 458112   ;;  %vm69_vm11 = vcmask 392512   ;;  %vm75_vm12 = vcmask 326912   ;;  %vm81_vm13 = vcmask 261312  }
   0xb   :  { %vm87_vm14 = vcmask 195712   ;;  %vm93_vm15 = vcmask 130112  }
   0xe   :  { %43 = vrot.lane.b32.xlu0 %v107_v7, %s137_s30  ;;  %49 = vrot.lane.b32.xlu1 %v108_v8, %s138_s2 }
  0x12   :  { %55 = vrot.lane.b32.xlu0 %v109_v9, %s139_s7  ;;  %61 = vrot.lane.b32.xlu1 %v110_v10, %s140_s8 }
  0x16   :  { %67 = vrot.lane.b32.xlu0 %v111_v11, %s141_s13  ;;  %73 = vrot.lane.b32.xlu1 %v112_v12, %s142_s14 }
  0x1a   :  { %79 = vrot.lane.b32.xlu0 %v113_v13, %s143_s19  ;;  %85 = vrot.lane.b32.xlu1 %v114_v14, %s144_s20 }
  0x1e   :  { %91 = vrot.lane.b32.xlu0 %v115_v15, %s145_s0 }
  0x74   :  { %v8_v16 = vpop.permute.xlu0 %7   ;;  %v20_v17 = vpop.permute.xlu1 %19  }
  0x75   :  { %10 = vst.msk [vmem:[#allocation0] sm:$0x1] %vm9_vm1, %v8_v16  }
  0x78   :  { %v14_v18 = vpop.permute.xlu0 %13   ;;  %v26_v19 = vpop.permute.xlu1 %25  }
  0x79   :  { %16 = vst.msk [vmem:[#allocation0] sm:$0x1] %vm15_vm2, %v14_v18  }
  0x7a   :  { %22 = vst.msk [vmem:[#allocation0] sm:$0x1] %vm21_vm3, %v20_v17  }
  0x7b   :  { %28 = vst.msk [vmem:[#allocation0] sm:$0x1] %vm27_vm4, %v26_v19  }
  0x7c   :  { %v32_v20 = vpop.permute.xlu0 %31   ;;  %v38_v21 = vpop.permute.xlu1 %37  }
  0x7d   :  { %34 = vst.msk [vmem:[#allocation0] sm:$0x1] %vm33_vm5, %v32_v20  }
  0x7e   :  { %40 = vst.msk [vmem:[#allocation0] sm:$0x1] %vm39_vm6, %v38_v21  }
  0x80   :  { %v44_v22 = vpop.permute.xlu0 %43   ;;  %v50_v23 = vpop.permute.xlu1 %49  }
  0x81   :  { %46 = vst.msk [vmem:[#allocation0] sm:$0x1] %vm45_vm7, %v44_v22  }
  0x82   :  { %52 = vst.msk [vmem:[#allocation0] sm:$0x1] %vm51_vm8, %v50_v23  }
  0x84   :  { %v56_v24 = vpop.permute.xlu0 %55   ;;  %v62_v25 = vpop.permute.xlu1 %61  }
  0x85   :  { %58 = vst.msk [vmem:[#allocation0] sm:$0x1] %vm57_vm9, %v56_v24  }
  0x86   :  { %64 = vst.msk [vmem:[#allocation0] sm:$0x1] %vm63_vm10, %v62_v25  }
  0x88   :  { %v68_v26 = vpop.permute.xlu0 %67   ;;  %v74_v27 = vpop.permute.xlu1 %73  }
  0x89   :  { %70 = vst.msk [vmem:[#allocation0] sm:$0x1] %vm69_vm11, %v68_v26  }
  0x8a   :  { %76 = vst.msk [vmem:[#allocation0] sm:$0x1] %vm75_vm12, %v74_v27  }
  0x8c   :  { %v80_v28 = vpop.permute.xlu0 %79   ;;  %v86_v29 = vpop.permute.xlu1 %85  }
  0x8d   :  { %82 = vst.msk [vmem:[#allocation0] sm:$0x1] %vm81_vm13, %v80_v28  }
  0x8e   :  { %88 = vst.msk [vmem:[#allocation0] sm:$0x1] %vm87_vm14, %v86_v29  }
  0x90   :  { %v92_v30 = vpop.permute.xlu0 %91  }
  0x91   :  { %94 = vst.msk [vmem:[#allocation0] sm:$0x1] %vm93_vm15, %v92_v30  }
  0x98   :  { %v98_v31 = vld [vmem:[#allocation0] sm:$0x1] }
  0x99   :  { %100 = vst [vmem:[%s208_s1] sm:$0x1] %v98_v31 }

// kernel: tile.62
= control target key start
LH: loop header
LB: loop body
LE: loop exit
PB: predicated region body
PF: predicated region fallthrough
CT: control target
= control target key end

     0   :  { %s28_s0 = inlined_call_operand.vmem [shape: f32[8], index: 0, kind: input, shape index: {}]   ;;  %s29_s1 = inlined_call_operand.vmem [shape: f32[16,8], index: 1, kind: output, shape index: {}]  }
   0x1   :  { %v4_v0 = vld [vmem:[%s28_s0] ss:$0 sm:$0xff] }
   0x2   :  { %5 = vst [vmem:[%s29_s1] sm:$0xff] %v4_v0  ;;  %8 = vst [vmem:[%s29_s1 + $0x8] sm:$0xff] %v4_v0 }

// kernel: attention_block.2
= control target key start
LH: loop header
LB: loop body
LE: loop exit
PB: predicated region body
PF: predicated region fallthrough
CT: control target
= control target key end

     0   :  { %s11279_s30 = smov 0   ;;  %s15706_s0 = inlined_call_operand.vmem [shape: f32[2,16,128], index: 0, kind: input, shape index: {}]   ;;  %s15707_s1 = inlined_call_operand.vmem [shape: f32[2,16,128], index: 1, kind: input, shape index: {}]   ;;  %s15708_s2 = inlined_call_operand.vmem [shape: f32[2,16,128], index: 2, kind: input, shape index: {}]   ;;  %s15709_s3 = inlined_call_operand.vmem [shape: f32[2,128], index: 3, kind: input, shape index: {}]   ;;  %s15710_s4 = inlined_call_operand.vmem [shape: f32[3,128], index: 4, kind: input, shape index: {}]   ;;  %s15711_s5 = inlined_call_operand.vmem [shape: f32[1,128], index: 5, kind: input, shape index: {}]   ;;  %s15712_s6 = inlined_call_operand.vmem [shape: f32[3,128,256], index: 6, kind: input, shape index: {}]   ;;  %s15713_s7 = inlined_call_operand.vmem [shape: f32[3,128,128], index: 7, kind: input, shape index: {}]   ;;  %s15714_s8 = inlined_call_operand.vmem [shape: f32[2,16,128], index: 8, kind: output, shape index: {0}]   ;;  %s15715_s9 = inlined_call_operand.vmem [shape: f32[2,2,128], index: 9, kind: output, shape index: {1}]  }
   0x1 LB: > { %s8236_s10 = sadd.s32 4294967295, %s11226_s30   ;;  %p8240_p0 = scmp.ge.s32.totalorder %s11226_s30, 1  ;;  %s11226_s30 = sphi %s11279_s30, %s20_s30  }
   0x2   : > { %p310_p1 = scmp.lt.s32.totalorder %s11226_s30, 3 }
   0x4   : > { %p311_p2 = pnand %p8240_p0, %p310_p1 }
   0x6   : > { %314 = sbr.rel (%p311_p2) target bundleno = 1182 (0x49e), region = 52 }
   0xd   : > { %v11290_v0 = vld [vmem:[%s15712_s6 + $0x108] sm:$0xff]  ;;  %v11295_v1 = vld [vmem:[%s15712_s6 + $0x118] sm:$0xff]  ;;  %v11300_v2 = vld [vmem:[%s15712_s6 + $0x100] sm:$0xff]  ;;  %v15716_v9 = vmov 0.0   ;;  %p11743_p3 = scmp.lt.s32.totalorder %s8236_s10, 1 }
   0xe   : > { %v15729_v3 = vand.u32 4294901760, %v11290_v0  ;;  %v15728_v4 = vand.u32 4294901760, %v11295_v1  ;;  %v11307_v5 = vld [vmem:[%s15712_s6 + $0x110] sm:$0xff]  ;;  %v15727_v6 = vand.u32 4294901760, %v11300_v2  ;;  %v11313_v7 = vld [vmem:[%s15712_s6 + $0x8] sm:$0xff]  ;;  %v11318_v8 = vld [vmem:[%s15712_s6 + $0x18] sm:$0xff]  ;;  %609 = vmatprep.mubr.f32.mxu1 %v15716_v9  ;;  %1903 = vmatprep.mubr.f32.mxu0 %v15716_v9 }
   0xf   : > { %428 = vst [vmem:[#allocation3] sm:$0x1] %v15716_v9  ;;  %435 = vst [vmem:[#allocation2 + $0x11] sm:$0x1] %v15716_v9  ;;  %v15724_v10 = vand.u32 4294901760, %v11307_v5  ;;  %v1417_v11 = vand.u32 4294901760, %v11313_v7 }
  0x10   : > { %440 = vst [vmem:[#allocation4] sm:$0x1] %v15716_v9  ;;  %441 = vst [vmem:[#allocation4 + $0x11] sm:$0x1] %v15716_v9  ;;  %v1421_v12 = vand.u32 4294901760, %v11318_v8  ;;  %v11332_v13 = vld [vmem:[%s15712_s6] sm:$0xff]  ;;  %v11348_v16 = vpack.c.bf16 %v15728_v4, %v15729_v3 }
  0x11   : > { %v11337_v14 = vld [vmem:[%s15712_s6 + $0x10] sm:$0xff]  ;;  %v11342_v15 = vld [vmem:[%s15712_s6 + $0x128] sm:$0xff]  ;;  %v1419_v17 = vand.u32 4294901760, %v11332_v13  ;;  %v11355_v19 = vld [vmem:[%s15712_s6 + $0x138] sm:$0xff]  ;;  %v11372_v23 = vpack.c.bf16 %v15724_v10, %v15727_v6  ;;  %v11377_v24 = vsub.f32 %v11313_v7, %v1417_v11  ;;  %s17382_s10 = smov (!%p11743_p3, %s8236_s10), 1 }
  0x12   : > { %16248 = vst [vmem:[#allocation5_spill] sm:$0xff] %v11348_v16  ;;  %v1423_v18 = vand.u32 4294901760, %v11337_v14  ;;  %v15723_v20 = vand.u32 4294901760, %v11342_v15  ;;  %v11361_v21 = vld [vmem:[%s15712_s6 + $0x120] sm:$0xff]  ;;  %v11366_v22 = vld [vmem:[%s15712_s6 + $0x130] sm:$0xff]  ;;  %v11382_v25 = vsub.f32 %v11318_v8, %v1421_v12  ;;  %v11387_v26 = vld [vmem:[%s15712_s6 + $0x28] sm:$0xff]  ;;  %9313 = vmatprep.subr.bf16.mxu1 %v11348_v16 }
  0x13   : > { %16249 = vst [vmem:[#allocation6_spill] sm:$0xff] %v11372_v23  ;;  %16250 = vst [vmem:[#allocation7_spill] sm:$0xff] %v11377_v24  ;;  %v11392_v27 = vld [vmem:[%s15712_s6 + $0x38] sm:$0xff]  ;;  %v11397_v28 = vld [vmem:[%s15712_s6 + $0x20] sm:$0xff]  ;;  %v11403_v29 = vsub.f32 %v11332_v13, %v1419_v17  ;;  %v15722_v31 = vand.u32 4294901760, %v11355_v19  ;;  %9315 = vmatpush1.bf16.msra.mxu1 %v11372_v23  ;;  %v15719_v35 = vand.u32 4294901760, %v11361_v21 }
  0x14   : > { %16251 = vst [vmem:[#allocation8_spill] sm:$0xff] %v11382_v25  ;;  %v11408_v30 = vsub.f32 %v11337_v14, %v1423_v18  ;;  %v11414_v32 = vld [vmem:[%s15712_s6 + $0x30] sm:$0xff]  ;;  %v11419_v33 = vld [vmem:[%s15712_s6 + $0x148] sm:$0xff]  ;;  %v11424_v34 = vpack.c.bf16 %v11382_v25, %v11377_v24  ;;  %v15718_v36 = vand.u32 4294901760, %v11366_v22  ;;  %v15737_v37 = vand.u32 4294901760, %v11387_v26  ;;  %v11432_v38 = vld [vmem:[%s15712_s6 + $0x158] sm:$0xff] }
  0x15   : > { %16252 = vst [vmem:[#allocation9_spill] sm:$0xff] %v11403_v29  ;;  %v11442_v40 = vpack.c.bf16 %v15722_v31, %v15723_v20  ;;  %v15736_v41 = vand.u32 4294901760, %v11392_v27  ;;  %v15735_v42 = vand.u32 4294901760, %v11397_v28  ;;  %v11449_v43 = vld [vmem:[%s15712_s6 + $0x140] sm:$0xff]  ;;  %v11454_v44 = vld [vmem:[%s15712_s6 + $0x150] sm:$0xff]  ;;  %v15734_v47 = vand.u32 4294901760, %v11414_v32 }
  0x16   : > { %16253 = vst [vmem:[#allocation10_spill] sm:$0xff] %v11408_v30  ;;  %16254 = vst [vmem:[#allocation11_spill] sm:$0xff] %v11424_v34  ;;  %v11436_v39 = vpack.c.bf16 %v11408_v30, %v11403_v29  ;;  %9569 = vmatprep.subr.bf16.mxu0 %v11424_v34  ;;  %v11461_v45 = vpack.c.bf16 %v15718_v36, %v15719_v35  ;;  %v11466_v46 = vsub.f32 %v11387_v26, %v15737_v37  ;;  %v11473_v49 = vld [vmem:[%s15712_s6 + $0x48] sm:$0xff]  ;;  %v11478_v50 = vld [vmem:[%s15712_s6 + $0x58] sm:$0xff]  ;;  %s11945_s12 = sshll.u32 %s17382_s10, 4  ;;  %s8249_s13 = sshll.u32 %s17382_s10, 1 }
  0x17   : > { %16256 = vst [vmem:[#allocation13_spill] sm:$0xff] %v11442_v40  ;;  %v15721_v48 = vand.u32 4294901760, %v11419_v33  ;;  %9317 = vmatprep.subr.bf16.mxu1 %v11442_v40  ;;  %v11485_v51 = vsub.f32 %v11392_v27, %v15736_v41  ;;  %v11490_v52 = vsub.f32 %v11397_v28, %v15735_v42  ;;  %v15720_v53 = vand.u32 4294901760, %v11432_v38  ;;  %v11496_v54 = vld [vmem:[%s15712_s6 + $0x40] sm:$0xff]  ;;  %v11501_v55 = vld [vmem:[%s15712_s6 + $0x50] sm:$0xff]  ;;  %v11514_v59 = vld [vmem:[%s15712_s6 + $0x168] sm:$0xff]  ;;  %s12024_s27 = scalar_lea.vmem %s15706_s0, %s11945_s12  ;;  %s369_s14 = scalar_lea.vmem %s15707_s1, %s11945_s12 }
  0x18   : > { %16255 = vst [vmem:[#allocation12_spill] sm:$0xff] %v11436_v39  ;;  %16257 = vst [vmem:[#allocation14_spill] sm:$0xff] %v11461_v45  ;;  %9571 = vmatpush1.bf16.msra.mxu0 %v11436_v39  ;;  %9319 = vmatpush1.bf16.msra.mxu1 %v11461_v45  ;;  %v11507_v56 = vsub.f32 %v11414_v32, %v15734_v47  ;;  %v15726_v57 = vand.u32 4294901760, %v11449_v43  ;;  %v15725_v58 = vand.u32 4294901760, %v11454_v44  ;;  %v15733_v62 = vand.u32 4294901760, %v11473_v49  ;;  %v11531_v9 = vld [vmem:[%s15712_s6 + $0x178] sm:$0xff]  ;;  %s379_s11 = scalar_lea.vmem %s15714_s8, %s11945_s12  ;;  %s383_s15 = scalar_lea.vmem %s15715_s9, %s8249_s13 }
  0x19   : > { %16258 = vst [vmem:[#allocation15_spill] sm:$0xff] %v11466_v46  ;;  %16259 = vst [vmem:[#allocation16_spill] sm:$0xff] %v11485_v51  ;;  %v11518_v60 = vpack.c.bf16 %v11485_v51, %v11466_v46  ;;  %v11524_v61 = vpack.c.bf16 %v15720_v53, %v15721_v48  ;;  %v15732_v63 = vand.u32 4294901760, %v11478_v50  ;;  %v15730_v53 = vand.u32 4294901760, %v11496_v54  ;;  %v11548_v31 = vld [vmem:[%s15712_s6 + $0x160] sm:$0xff]  ;;  %v11553_v20 = vld [vmem:[%s15712_s6 + $0x170] sm:$0xff] }
  0x1a   : > { %16260 = vst [vmem:[#allocation17_spill] sm:$0xff] %v11490_v52  ;;  %16261 = vst [vmem:[#allocation18_spill] sm:$0xff] %v11507_v56  ;;  %v11535_v36 = vpack.c.bf16 %v11507_v56, %v11490_v52  ;;  %v11541_v35 = vpack.c.bf16 %v15725_v58, %v15726_v57  ;;  %v15731_v48 = vand.u32 4294901760, %v11501_v55  ;;  %v11558_v10 = vld [vmem:[%s15712_s6 + $0x68] sm:$0xff]  ;;  %v11564_v58 = vpack.c.bf16 %v1421_v12, %v1417_v11  ;;  %v11582_v8 = vld [vmem:[%s15712_s6 + $0x78] sm:$0xff] }
  0x1b   : > { %16262 = vst [vmem:[#allocation19_spill] sm:$0xff] %v11518_v60  ;;  %16263 = vst [vmem:[#allocation20_spill] sm:$0xff] %v11524_v61  ;;  %9573 = vmatprep.subr.bf16.mxu0 %v11518_v60  ;;  %9321 = vmatprep.subr.bf16.mxu1 %v11524_v61  ;;  %v11571_v57 = vsub.f32 %v11473_v49, %v15733_v62  ;;  %v11576_v6 = vsub.f32 %v11478_v50, %v15732_v63  ;;  %v15739_v7 = vand.u32 4294901760, %v11514_v59  ;;  %v11587_v11 = vld [vmem:[%s15712_s6 + $0x60] sm:$0xff]  ;;  %v11611_v14 = vld [vmem:[%s15712_s6 + $0x70] sm:$0xff] }
  0x1c   : > { %16264 = vst [vmem:[#allocation21_spill] sm:$0xff] %v11535_v36  ;;  %16265 = vst [vmem:[#allocation22_spill] sm:$0xff] %v11541_v35  ;;  %v11593_v12 = vpack.c.bf16 %v1423_v18, %v1419_v17  ;;  %9575 = vmatpush1.bf16.msra.mxu0 %v11535_v36  ;;  %9323 = vmatpush1.bf16.msra.mxu1 %v11541_v35  ;;  %v11600_v4 = vsub.f32 %v11496_v54, %v15730_v53  ;;  %v15738_v13 = vand.u32 4294901760, %v11531_v9  ;;  %v11616_v17 = vld [vmem:[%s15712_s6 + $0x188] sm:$0xff]  ;;  %v11628_v62 = vld [vmem:[%s15712_s6 + $0x198] sm:$0xff] }
  0x1d   : > { %16266 = vst [vmem:[#allocation23_spill] sm:$0xff] %v11564_v58  ;;  %16267 = vst [vmem:[#allocation24_spill] sm:$0xff] %v11571_v57  ;;  %v11605_v3 = vsub.f32 %v11501_v55, %v15731_v48  ;;  %v11620_v18 = vpack.c.bf16 %v11576_v6, %v11571_v57  ;;  %v15744_v53 = vand.u32 4294901760, %v11548_v31  ;;  %v11645_v63 = vld [vmem:[%s15712_s6 + $0x180] sm:$0xff]  ;;  %v11650_v48 = vld [vmem:[%s15712_s6 + $0x190] sm:$0xff]  ;;  %v16277_v37 = vand.u32 4294901760, %v11558_v10 }
  0x1e   : > { %16268 = vst [vmem:[#allocation25_spill] sm:$0xff] %v11576_v6  ;;  %16269 = vst [vmem:[#allocation26_spill] sm:$0xff] %v11593_v12  ;;  %v11638_v42 = vpack.c.bf16 %v15738_v13, %v15739_v7  ;;  %v16275_v13 = vand.u32 4294901760, %v11553_v20  ;;  %v11669_v39 = vld [vmem:[%s15712_s6 + $0x88] sm:$0xff]  ;;  %v16282_v60 = vand.u32 4294901760, %v11582_v8  ;;  %v16284_v34 = vand.u32 4294901760, %v11587_v11 }
  0x1f   : > { %16270 = vst [vmem:[#allocation27_spill] sm:$0xff] %v11600_v4  ;;  %16271 = vst [vmem:[#allocation28_spill] sm:$0xff] %v11605_v3  ;;  %v11632_v47 = vpack.c.bf16 %v11605_v3, %v11600_v4  ;;  %9577 = vmatprep.subr.bf16.mxu0 %v11620_v18  ;;  %v11662_v41 = vsub.f32 %v11558_v10, %v16277_v37  ;;  %v11722_v45 = vld [vmem:[%s15712_s6 + $0x1a8] sm:$0xff]  ;;  %v11739_v61 = vld [vmem:[%s15712_s6 + $0x1b8] sm:$0xff] }
  0x20   : > { %16272 = vst [vmem:[#allocation29_spill] sm:$0xff] %v11620_v18  ;;  %16274 = vst [vmem:[#allocation31_spill] sm:$0xff] %v11638_v42  ;;  %v11657_v7 = vpack.c.bf16 %v16275_v13, %v15744_v53  ;;  %v11674_v18 = vld [vmem:[%s15712_s6 + $0x98] sm:$0xff]  ;;  %v16279_v13 = vand.u32 4294901760, %v11387_v26  ;;  %v16280_v53 = vand.u32 4294901760, %v11392_v27  ;;  %9325 = vmatprep.subr.bf16.mxu1 %v11638_v42  ;;  %v11687_v36 = vsub.f32 %v11582_v8, %v16282_v60  ;;  %v11698_v27 = vld [vmem:[%s15712_s6 + $0x80] sm:$0xff] }
  0x21   : > { %16273 = vst [vmem:[#allocation30_spill] sm:$0xff] %v11632_v47  ;;  %16278 = vst [vmem:[#allocation33_spill] sm:$0xff] %v11662_v41  ;;  %9579 = vmatpush1.bf16.msra.mxu0 %v11632_v47  ;;  %v11692_v35 = vsub.f32 %v11587_v11, %v16284_v34  ;;  %v16286_v60 = vand.u32 4294901760, %v11397_v28  ;;  %v16289_v34 = vand.u32 4294901760, %v11611_v14  ;;  %v11762_v23 = vld [vmem:[%s15712_s6 + $0x1a0] sm:$0xff]  ;;  %v11767_v16 = vld [vmem:[%s15712_s6 + $0x1b0] sm:$0xff] }
  0x22   : > { %16276 = vst [vmem:[#allocation32_spill] sm:$0xff] %v11657_v7  ;;  %v11680_v37 = vpack.c.bf16 %v16280_v53, %v16279_v13  ;;  %16283 = vst [vmem:[#allocation35_spill] sm:$0xff] %v11687_v36  ;;  %v11703_v53 = vld [vmem:[%s15712_s6 + $0x90] sm:$0xff]  ;;  %v16287_v13 = vand.u32 4294901760, %v11414_v32  ;;  %9327 = vmatpush1.bf16.msra.mxu1 %v11657_v7  ;;  %v11726_v28 = vpack.c.bf16 %v11687_v36, %v11662_v41  ;;  %v16292_v32 = vand.u32 4294901760, %v11616_v17  ;;  %v11865_v4 = vld [vmem:[%s15712_s6 + $0x1c0] sm:$0xff] }
  0x23   : > { %16285 = vst [vmem:[#allocation36_spill] sm:$0xff] %v11692_v35  ;;  %v11715_v26 = vsub.f32 %v11611_v14, %v16289_v34  ;;  %v16303_v42 = vand.u32 4294901760, %v11669_v39  ;;  %v16305_v36 = vand.u32 4294901760, %v11674_v18  ;;  %v11889_v56 = vld [vmem:[%s15712_s6 + $0xc8] sm:$0xff] }
  0x24   : > { %16281 = vst [vmem:[#allocation34_spill] sm:$0xff] %v11680_v37  ;;  %v11709_v47 = vpack.c.bf16 %v16287_v13, %v16286_v60  ;;  %16291 = vst [vmem:[#allocation39_spill] sm:$0xff] %v11726_v28  ;;  %v16293_v60 = vand.u32 4294901760, %v11628_v62  ;;  %9581 = vmatprep.subr.bf16.mxu0 %v11726_v28  ;;  %v11942_v30 = vld [vmem:[%s15712_s6 + $0x1e8] sm:$0xff] }
  0x25   : > { %16290 = vst [vmem:[#allocation38_spill] sm:$0xff] %v11715_v26  ;;  %v11749_v7 = vpack.c.bf16 %v11715_v26, %v11692_v35  ;;  %v11772_v26 = vld [vmem:[%s15712_s6 + $0xa8] sm:$0xff]  ;;  %v11785_v35 = vsub.f32 %v11669_v39, %v16303_v42  ;;  %v11790_v41 = vsub.f32 %v11674_v18, %v16305_v36  ;;  %v16307_v42 = vand.u32 4294901760, %v11496_v54 }
  0x26   : > { %16288 = vst [vmem:[#allocation37_spill] sm:$0xff] %v11709_v47  ;;  %v11732_v13 = vpack.c.bf16 %v16293_v60, %v16292_v32  ;;  %v16297_v32 = vand.u32 4294901760, %v11645_v63  ;;  %v16298_v60 = vand.u32 4294901760, %v11650_v48 }
  0x27   : > { %16296 = vst [vmem:[#allocation41_spill] sm:$0xff] %v11749_v7  ;;  %16304 = vst [vmem:[#allocation44_spill] sm:$0xff] %v11785_v35  ;;  %9583 = vmatpush1.bf16.msra.mxu0 %v11749_v7  ;;  %v11842_v7 = vld [vmem:[%s15712_s6 + $0x1d8] sm:$0xff] }
  0x28   : > { %16294 = vst [vmem:[#allocation40_spill] sm:$0xff] %v11732_v13  ;;  %v11755_v34 = vpack.c.bf16 %v16298_v60, %v16297_v32  ;;  %v16300_v32 = vand.u32 4294901760, %v11473_v49  ;;  %v16301_v60 = vand.u32 4294901760, %v11478_v50  ;;  %9329 = vmatprep.subr.bf16.mxu1 %v11732_v13  ;;  %16306 = vst [vmem:[#allocation45_spill] sm:$0xff] %v11790_v41  ;;  %v11796_v50 = vld [vmem:[%s15712_s6 + $0xb8] sm:$0xff]  ;;  %v16310_v49 = vand.u32 4294901760, %v11698_v27 }
  0x29   : > { %v16312_v13 = vand.u32 4294901760, %v11703_v53  ;;  %v16328_v57 = vand.u32 4294901760, %v11796_v50 }
  0x2a   : > { %16299 = vst [vmem:[#allocation42_spill] sm:$0xff] %v11755_v34  ;;  %v11778_v40 = vpack.c.bf16 %v16301_v60, %v16300_v32  ;;  %v11801_v32 = vld [vmem:[%s15712_s6 + $0xa0] sm:$0xff]  ;;  %v16308_v60 = vand.u32 4294901760, %v11501_v55  ;;  %9331 = vmatpush1.bf16.msra.mxu1 %v11755_v34  ;;  %v11814_v28 = vsub.f32 %v11698_v27, %v16310_v49  ;;  %v11825_v55 = vld [vmem:[%s15712_s6 + $0xb0] sm:$0xff]  ;;  %v11834_v49 = vpack.c.bf16 %v11790_v41, %v11785_v35 }
  0x2b   : > { %v11819_v3 = vsub.f32 %v11703_v53, %v16312_v13  ;;  %v16316_v41 = vand.u32 4294901760, %v11722_v45  ;;  %v16323_v35 = vand.u32 4294901760, %v11772_v26  ;;  %v11907_v6 = vsub.f32 %v11796_v50, %v16328_v57 }
  0x2c   : > { %16302 = vst [vmem:[#allocation43_spill] sm:$0xff] %v11778_v40  ;;  %v11807_v36 = vpack.c.bf16 %v16308_v60, %v16307_v42  ;;  %16311 = vst [vmem:[#allocation47_spill] sm:$0xff] %v11814_v28  ;;  %v11830_v42 = vld [vmem:[%s15712_s6 + $0x1c8] sm:$0xff]  ;;  %v16317_v60 = vand.u32 4294901760, %v11739_v61  ;;  %9585 = vmatprep.subr.bf16.mxu0 %v11834_v49  ;;  %v16330_v52 = vand.u32 4294901760, %v11801_v32  ;;  %v16332_v57 = vand.u32 4294901760, %v11587_v11 }
  0x2d   : > { %16313 = vst [vmem:[#allocation48_spill] sm:$0xff] %v11819_v3  ;;  %16314 = vst [vmem:[#allocation49_spill] sm:$0xff] %v11834_v49  ;;  %v11852_v34 = vpack.c.bf16 %v11819_v3, %v11814_v28  ;;  %v11870_v3 = vld [vmem:[%s15712_s6 + $0x1d0] sm:$0xff]  ;;  %v16320_v28 = vand.u32 4294901760, %v11762_v23  ;;  %v11882_v54 = vsub.f32 %v11772_v26, %v16323_v35  ;;  %v16326_v35 = vand.u32 4294901760, %v11582_v8  ;;  %v11918_v8 = vld [vmem:[%s15712_s6 + $0xc0] sm:$0xff] }
  0x2e   : > { %16309 = vst [vmem:[#allocation46_spill] sm:$0xff] %v11807_v36  ;;  %v11858_v13 = vpack.c.bf16 %v16317_v60, %v16316_v41  ;;  %16319 = vst [vmem:[#allocation52_spill] sm:$0xff] %v11870_v3  ;;  %v16321_v41 = vand.u32 4294901760, %v11767_v16  ;;  %v11912_v51 = vsub.f32 %v11801_v32, %v16330_v52  ;;  %v16335_v52 = vand.u32 4294901760, %v11825_v55 }
  0x2f   : > { %16315 = vst [vmem:[#allocation50_spill] sm:$0xff] %v11852_v34  ;;  %16324 = vst [vmem:[#allocation54_spill] sm:$0xff] %v11882_v54  ;;  %9587 = vmatpush1.bf16.msra.mxu0 %v11852_v34  ;;  %v11949_v11 = vpack.c.bf16 %v11907_v6, %v11882_v54  ;;  %v16343_v54 = vand.u32 4294901760, %v11870_v3 }
  0x30   : > { %16318 = vst [vmem:[#allocation51_spill] sm:$0xff] %v11858_v13  ;;  %v11877_v60 = vpack.c.bf16 %v16321_v41, %v16320_v28  ;;  %v11894_v28 = vld [vmem:[%s15712_s6 + $0xd8] sm:$0xff]  ;;  %v16325_v41 = vand.u32 4294901760, %v11558_v10  ;;  %9333 = vmatprep.subr.bf16.mxu1 %v11858_v13  ;;  %16329 = vst [vmem:[#allocation56_spill] sm:$0xff] %v11907_v6  ;;  %v11935_v10 = vsub.f32 %v11825_v55, %v16335_v52  ;;  %v16342_v6 = vand.u32 4294901760, %v11865_v4  ;;  %v11979_v52 = vld [vmem:[%s15712_s6 + $0x1e0] sm:$0xff] }
  0x31   : > { %16331 = vst [vmem:[#allocation57_spill] sm:$0xff] %v11912_v51  ;;  %16337 = vst [vmem:[#allocation60_spill] sm:$0xff] %v11949_v11  ;;  %v11962_v13 = vld [vmem:[%s15712_s6 + $0x1f8] sm:$0xff]  ;;  %9589 = vmatprep.subr.bf16.mxu0 %v11949_v11  ;;  %v16352_v25 = vand.u32 4294901760, %v11894_v28 }
  0x32   : > { %16322 = vst [vmem:[#allocation53_spill] sm:$0xff] %v11877_v60  ;;  %v11900_v49 = vpack.c.bf16 %v16326_v35, %v16325_v41  ;;  %v11923_v41 = vld [vmem:[%s15712_s6 + $0xd0] sm:$0xff]  ;;  %v16333_v35 = vand.u32 4294901760, %v11611_v14  ;;  %9335 = vmatpush1.bf16.msra.mxu1 %v11877_v60  ;;  %16336 = vst [vmem:[#allocation59_spill] sm:$0xff] %v11935_v10  ;;  %v16338_v14 = vand.u32 4294901760, %v11830_v42  ;;  %v11966_v60 = vpack.c.bf16 %v11935_v10, %v11912_v51  ;;  %v11989_v51 = vld [vmem:[%s15712_s6 + $0xe8] sm:$0xff] }
  0x33   : > { %16345 = vst [vmem:[#allocation64_spill] sm:$0xff] %v11979_v52  ;;  %v11984_v10 = vld [vmem:[%s15712_s6 + $0x1f0] sm:$0xff]  ;;  %v12007_v24 = vsub.f32 %v11894_v28, %v16352_v25  ;;  %v16354_v25 = vand.u32 4294901760, %v11698_v27 }
  0x34   : > { %16327 = vst [vmem:[#allocation55_spill] sm:$0xff] %v11900_v49  ;;  %v11929_v34 = vpack.c.bf16 %v16333_v35, %v16332_v57  ;;  %v16339_v57 = vand.u32 4294901760, %v11842_v7  ;;  %16341 = vst [vmem:[#allocation62_spill] sm:$0xff] %v11966_v60  ;;  %9591 = vmatpush1.bf16.msra.mxu0 %v11966_v60  ;;  %v16364_v60 = vand.u32 4294901760, %v11942_v30 }
  0x35   : > { %16346 = vst [vmem:[#allocation65_spill] sm:$0xff] %v11984_v10  ;;  %16353 = vst [vmem:[#allocation68_spill] sm:$0xff] %v12007_v24 }
  0x36   : > { %16334 = vst [vmem:[#allocation58_spill] sm:$0xff] %v11929_v34  ;;  %v11955_v35 = vpack.c.bf16 %v16339_v57, %v16338_v14  ;;  %v11972_v14 = vpack.c.bf16 %v16343_v54, %v16342_v6  ;;  %v16347_v6 = vand.u32 4294901760, %v11669_v39  ;;  %v16348_v54 = vand.u32 4294901760, %v11674_v18  ;;  %v12013_v18 = vld [vmem:[%s15712_s6 + $0xf8] sm:$0xff] }
  0x37   : > { %v16350_v57 = vand.u32 4294901760, %v11889_v56  ;;  %v16357_v39 = vand.u32 4294901760, %v11918_v8 }
  0x38   : > { %16340 = vst [vmem:[#allocation61_spill] sm:$0xff] %v11955_v35  ;;  %16344 = vst [vmem:[#allocation63_spill] sm:$0xff] %v11972_v14  ;;  %v11995_v46 = vpack.c.bf16 %v16348_v54, %v16347_v6  ;;  %9337 = vmatprep.subr.bf16.mxu1 %v11955_v35  ;;  %v12018_v6 = vld [vmem:[%s15712_s6 + $0xe0] sm:$0xff]  ;;  %v16359_v35 = vand.u32 4294901760, %v11923_v41 }
  0x39   : > { %v12002_v29 = vsub.f32 %v11889_v56, %v16350_v57  ;;  %v16355_v57 = vand.u32 4294901760, %v11703_v53  ;;  %9339 = vmatpush1.bf16.msra.mxu1 %v11972_v14  ;;  %v12037_v11 = vsub.f32 %v11918_v8, %v16357_v39  ;;  %v12048_v53 = vld [vmem:[%s15712_s6 + $0xf0] sm:$0xff]  ;;  %v16365_v14 = vand.u32 4294901760, %v11962_v13 }
  0x3a   : > { %16349 = vst [vmem:[#allocation66_spill] sm:$0xff] %v11995_v46  ;;  %v12042_v3 = vsub.f32 %v11923_v41, %v16359_v35  ;;  %16361 = vst [vmem:[#allocation72_spill] sm:$0xff] %v12048_v53  ;;  %v15842_v35 = vand.u32 4294901760, %v11984_v10  ;;  %v12095_v46 = vld [vmem:[%s15709_s3] ss:$0 sm:$0xff]  ;;  %v16372_v10 = vand.u32 4294901760, %v11796_v50 }
  0x3b   : > { %16351 = vst [vmem:[#allocation67_spill] sm:$0xff] %v12002_v29  ;;  %v12030_v54 = vpack.c.bf16 %v16355_v57, %v16354_v25  ;;  %16358 = vst [vmem:[#allocation70_spill] sm:$0xff] %v12037_v11  ;;  %v12056_v39 = vpack.c.bf16 %v12007_v24, %v12002_v29  ;;  %v15843_v25 = vand.u32 4294901760, %v11979_v52  ;;  %v384_v29 = vld [vmem:[%s12024_s27] sm:$0xff]  ;;  %v16379_v50 = vand.u32 4294901760, %v11825_v55 }
  0x3c   : > { %16360 = vst [vmem:[#allocation71_spill] sm:$0xff] %v12042_v3  ;;  %v12063_v27 = vpack.c.bf16 %v12042_v3, %v12037_v11  ;;  %v16368_v3 = vand.u32 4294901760, %v11989_v51 }
  0x3d   : > { %16356 = vst [vmem:[#allocation69_spill] sm:$0xff] %v12030_v54  ;;  %16362 = vst [vmem:[#allocation73_spill] sm:$0xff] %v12056_v39  ;;  %v12069_v54 = vpack.c.bf16 %v16365_v14, %v16364_v60  ;;  %9593 = vmatprep.subr.bf16.mxu0 %v12056_v39  ;;  %v12079_v57 = vpack.c.bf16 %v15842_v35, %v15843_v25  ;;  %v16370_v14 = vand.u32 4294901760, %v11290_v0  ;;  %v402_v39 = vld [vmem:[%s369_s14] sm:$0xff]  ;;  %v403_v35 = vld [vmem:[%s369_s14 + $0x8] sm:$0xff]  ;;  %v16371_v25 = vand.u32 4294901760, %v11772_v26 }
  0x3e   : > { %16363 = vst [vmem:[#allocation74_spill] sm:$0xff] %v12063_v27  ;;  %v12084_v11 = vsub.f32 %v11989_v51, %v16368_v3  ;;  %9595 = vmatpush1.bf16.msra.mxu0 %v12063_v27  ;;  %v16376_v60 = vand.u32 4294901760, %v12018_v6  ;;  %v16378_v26 = vand.u32 4294901760, %v11801_v32  ;;  %v12136_v32 = vld [vmem:[%s15709_s3 + $0x1] ss:$0 sm:$0xff] }
  0x3f   : > { %16366 = vst [vmem:[#allocation75_spill] sm:$0xff] %v12069_v54  ;;  %16367 = vst [vmem:[#allocation76_spill] sm:$0xff] %v12079_v57  ;;  %v12090_v24 = vsub.f32 %v11290_v0, %v16370_v14  ;;  %v12101_v3 = vpack.c.bf16 %v16372_v10, %v16371_v25  ;;  %9341 = vmatprep.subr.bf16.mxu1 %v12069_v54  ;;  %v16374_v0 = vand.u32 4294901760, %v12013_v18  ;;  %v16381_v25 = vand.u32 4294901760, %v12048_v53 }
  0x40   : > { %16369 = vst [vmem:[#allocation77_spill] sm:$0xff] %v12084_v11  ;;  %v12113_v52 = vsub.f32 %v12018_v6, %v16376_v60  ;;  %v12119_v10 = vpack.c.bf16 %v16379_v50, %v16378_v26  ;;  %9343 = vmatpush1.bf16.msra.mxu1 %v12079_v57  ;;  %v16383_v54 = vand.u32 4294901760, %v11295_v1  ;;  %v391_v26 = vmul.f32 %v12095_v46, %v384_v29 }
  0x41   : > { %16373 = vst [vmem:[#allocation78_spill] sm:$0xff] %v12101_v3  ;;  %v12108_v14 = vsub.f32 %v12013_v18, %v16374_v0  ;;  %v12125_v27 = vsub.f32 %v12048_v53, %v16381_v25  ;;  %v404_v50 = vmul.f32 %v12095_v46, %v402_v39  ;;  %v405_v25 = vmul.f32 %v12095_v46, %v403_v35 }
  0x42   : > { %16377 = vst [vmem:[#allocation80_spill] sm:$0xff] %v12113_v52  ;;  %16380 = vst [vmem:[#allocation81_spill] sm:$0xff] %v12119_v10  ;;  %v12131_v60 = vsub.f32 %v11295_v1, %v16383_v54  ;;  %v16386_v1 = vand.u32 4294901760, %v12090_v24  ;;  %v16387_v53 = vand.u32 4294901760, %v11300_v2  ;;  %v398_v29 = vadd.f32 %v12136_v32, %v391_v26 }
  0x43   : > { %16375 = vst [vmem:[#allocation79_spill] sm:$0xff] %v12108_v14  ;;  %16382 = vst [vmem:[#allocation82_spill] sm:$0xff] %v12125_v27  ;;  %v12140_v55 = vpack.c.bf16 %v12108_v14, %v12084_v11  ;;  %v12147_v0 = vpack.c.bf16 %v12125_v27, %v12113_v52  ;;  %v406_v39 = vadd.f32 %v12136_v32, %v404_v50  ;;  %v16389_v27 = vand.u32 4294901760, %v11307_v5 }
  0x44   : > { %v635_v54 = vsub.f32 %v12090_v24, %v16386_v1  ;;  %v12156_v14 = vsub.f32 %v11300_v2, %v16387_v53  ;;  %v12162_v35 = vadd.f32 %v12136_v32, %v405_v25  ;;  %v16390_v2 = vand.u32 4294901760, %v12131_v60 }
  0x45   : > { %16384 = vst [vmem:[#allocation83_spill] sm:$0xff] %v12140_v55  ;;  %16385 = vst [vmem:[#allocation84_spill] sm:$0xff] %v12147_v0  ;;  %9597 = vmatprep.subr.bf16.mxu0 %v12140_v55  ;;  %v12167_v1 = vsub.f32 %v11307_v5, %v16389_v27  ;;  %v16391_v26 = vand.u32 4294901760, %v11342_v15  ;;  %v400_v25 = vmax.f32 %v398_v29, 0.0  ;;  %v12179_v52 = vmax.f32 %v406_v39, 0.0 }
  0x46   : > { %16388 = vst [vmem:[#allocation85_spill] sm:$0xff] %v12162_v35  ;;  %9599 = vmatpush1.bf16.msra.mxu0 %v12147_v0  ;;  %v636_v57 = vand.u32 4294901760, %v635_v54  ;;  %v647_v53 = vsub.f32 %v12131_v60, %v16390_v2  ;;  %v15864_v55 = vand.u32 4294901760, %v12156_v14  ;;  %v16393_v11 = vand.u32 4294901760, %v11355_v19 }
  0x47   : > { %v12177_v50 = vsub.f32 %v11342_v15, %v16391_v26  ;;  %16392 = vst [vmem:[#allocation86_spill] sm:$0xff] %v12179_v52  ;;  %9601 = vmatprep.subr.bf16.mxu0 %v11564_v58  ;;  %v16394_v29 = vand.u32 4294901760, %v11889_v56  ;;  %v16395_v39 = vand.u32 4294901760, %v11894_v28  ;;  %v16397_v27 = vand.u32 4294901760, %v11918_v8  ;;  %430 = vst [vmem:[#allocation3 + $0x1] sm:$0xff] %v12179_v52 }
  0x48   : > { %v648_v54 = vand.u32 4294901760, %v647_v53  ;;  %v641_v2 = vsub.f32 %v12156_v14, %v15864_v55  ;;  %v12191_v15 = vsub.f32 %v11355_v19, %v16393_v11  ;;  %v16398_v53 = vand.u32 4294901760, %v11923_v41  ;;  %436 = vst [vmem:[#allocation2 + $0x1] sm:$0xff] %v400_v25 }
  0x49   : > { %v15865_v0 = vand.u32 4294901760, %v12177_v50  ;;  %v12197_v26 = vpack.c.bf16 %v16395_v39, %v16394_v29  ;;  %v16400_v55 = vmax.f32 %v12162_v35, 0.0  ;;  %v12208_v19 = vand.u32 4294901760, %v400_v25 }
  0x4a   : > { %v12203_v5 = vpack.c.bf16 %v16398_v53, %v16397_v27  ;;  %v16402_v56 = vand.u32 4294901760, %v12167_v1  ;;  %v12213_v11 = vpack.c.bf16 %v648_v54, %v636_v57  ;;  %v642_v29 = vand.u32 4294901760, %v641_v2 }
  0x4b   : > { %16396 = vst [vmem:[#allocation87_spill] sm:$0xff] %v12197_v26  ;;  %431 = vst [vmem:[#allocation3 + $0x9] sm:$0xff] %v16400_v55  ;;  %v659_v8 = vsub.f32 %v12177_v50, %v15865_v0  ;;  %v15866_v41 = vand.u32 4294901760, %v12191_v15  ;;  %v12220_v27 = vsub.f32 %v400_v25, %v12208_v19  ;;  %v16405_v39 = vand.u32 4294901760, %v11361_v21 }
  0x4c   : > { %16399 = vst [vmem:[#allocation88_spill] sm:$0xff] %v12203_v5  ;;  %16401 = vst [vmem:[#allocation89_spill] sm:$0xff] %v12208_v19  ;;  %v653_v28 = vsub.f32 %v12167_v1, %v16402_v56  ;;  %v16406_v56 = vand.u32 4294901760, %v11366_v22  ;;  %9345 = vmatprep.subr.bf16.mxu1 %v12213_v11  ;;  %v16408_v25 = vand.u32 4294901760, %v11419_v33 }
  0x4d   : > { %16403 = vst [vmem:[#allocation90_spill] sm:$0xff] %v12213_v11  ;;  %16404 = vst [vmem:[#allocation91_spill] sm:$0xff] %v12220_v27  ;;  %v12225_v53 = vsub.f32 %v11361_v21, %v16405_v39  ;;  %v660_v54 = vand.u32 4294901760, %v659_v8  ;;  %v671_v2 = vsub.f32 %v12191_v15, %v15866_v41  ;;  %v16409_v21 = vand.u32 4294901760, %v11432_v38 }
  0x4e   : > { %v654_v55 = vand.u32 4294901760, %v653_v28  ;;  %v12230_v57 = vsub.f32 %v11366_v22, %v16406_v56  ;;  %v12239_v28 = vsub.f32 %v11419_v33, %v16408_v25  ;;  %v12247_v22 = vand.u32 4294901760, %v12220_v27  ;;  %v432_v33 = vld [vmem:[#allocation3] sm:$0xff] }
  0x4f   : > { %v12244_v39 = vsub.f32 %v11432_v38, %v16409_v21  ;;  %v15871_v8 = vand.u32 4294901760, %v12225_v53  ;;  %v672_v41 = vand.u32 4294901760, %v671_v2  ;;  %v16412_v25 = vand.u32 4294901760, %v11449_v43 }
  0x50   : > { %16407 = vst [vmem:[#allocation92_spill] sm:$0xff] %v12230_v57  ;;  %16410 = vst [vmem:[#allocation93_spill] sm:$0xff] %v12247_v22  ;;  %v12249_v56 = vpack.c.bf16 %v654_v55, %v642_v29  ;;  %v15876_v0 = vand.u32 4294901760, %v12230_v57  ;;  %v613_v38 = vsub.f32 %v12220_v27, %v12247_v22  ;;  %v16413_v2 = vand.u32 4294901760, %v11454_v44 }
  0x51   : > { %v12258_v35 = vsub.f32 %v11449_v43, %v16412_v25  ;;  %v665_v29 = vsub.f32 %v12225_v53, %v15871_v8  ;;  %v12273_v11 = vpack.c.bf16 %v672_v41, %v660_v54  ;;  %v16415_v43 = vand.u32 4294901760, %v12239_v28 }
  0x52   : > { %16411 = vst [vmem:[#allocation94_spill] sm:$0xff] %v12249_v56  ;;  %v677_v55 = vsub.f32 %v12230_v57, %v15876_v0  ;;  %v12271_v21 = vsub.f32 %v11454_v44, %v16413_v2  ;;  %v16416_v22 = vand.u32 4294901760, %v12244_v39  ;;  %v12282_v27 = vand.u32 4294901760, %v613_v38 }
  0x53   : > { %16414 = vst [vmem:[#allocation95_spill] sm:$0xff] %v12273_v11  ;;  %v683_v25 = vsub.f32 %v12239_v28, %v16415_v43  ;;  %v15881_v52 = vand.u32 4294901760, %v12258_v35  ;;  %v12284_v0 = vand.u32 4294901760, %v432_v33  ;;  %v666_v58 = vand.u32 4294901760, %v665_v29 }
  0x54   : > { %v695_v8 = vsub.f32 %v12244_v39, %v16416_v22  ;;  %16417 = vst [vmem:[#allocation96_spill] sm:$0xff] %v12282_v27  ;;  %v678_v44 = vand.u32 4294901760, %v677_v55  ;;  %v15882_v54 = vand.u32 4294901760, %v12271_v21  ;;  %615 = vmatmul.mubr.f32.vlgmr.msra.gmra.mrb[0].mxu1 %v12282_v27  ;;  %v16420_v38 = vand.u32 4294901760, %v11514_v59 }
  0x55   : > { %16418 = vst [vmem:[#allocation97_spill] sm:$0xff] %v12284_v0  ;;  %v684_v2 = vand.u32 4294901760, %v683_v25  ;;  %v689_v41 = vsub.f32 %v12258_v35, %v15881_v52  ;;  %v12292_v22 = vsub.f32 %v432_v33, %v12284_v0  ;;  %9347 = vmatpush1.bf16.msra.mxu1 %v12249_v56  ;;  %v16423_v33 = vand.u32 4294901760, %v11548_v31 }
  0x56   : > { %v696_v57 = vand.u32 4294901760, %v695_v8  ;;  %v12294_v43 = vpack.c.bf16 %v678_v44, %v666_v58  ;;  %v12299_v29 = vsub.f32 %v11514_v59, %v16420_v38  ;;  %v16421_v8 = vand.u32 4294901760, %v11531_v9  ;;  %9349 = vmatprep.subr.bf16.mxu1 %v12273_v11 }
  0x57   : > { %v690_v52 = vand.u32 4294901760, %v689_v41  ;;  %v701_v58 = vsub.f32 %v12271_v21, %v15882_v54  ;;  %v12315_v44 = vsub.f32 %v11548_v31, %v16423_v33  ;;  %v16424_v59 = vmov 0.0   ;;  %1906 = vmatmul.mubr.f32.vlgmr.msra.gmra.mrb[0].mxu0 %v12292_v22 }
  0x58   : > { %16419 = vst [vmem:[#allocation98_spill] sm:$0xff] %v12294_v43  ;;  %v12304_v55 = vsub.f32 %v11531_v9, %v16421_v8  ;;  %v12307_v25 = vpack.c.bf16 %v696_v57, %v684_v2  ;;  %620 = vmatprep.mubr.f32.mxu1 %v16424_v59  ;;  %v16425_v2 = vand.u32 4294901760, %v11553_v20  ;;  %9603 = vmatpush1.bf16.msra.mxu0 %v11593_v12  ;;  %v16426_v33 = vand.u32 4294901760, %v11616_v17 }
  0x59   : > { %v702_v31 = vand.u32 4294901760, %v701_v58  ;;  %v16427_v38 = vand.u32 4294901760, %v11628_v62  ;;  %1911 = vmatprep.mubr.f32.mxu0 %v16424_v59  ;;  %9605 = vmatprep.subr.bf16.mxu0 %v11680_v37  ;;  %v16430_v58 = vand.u32 4294901760, %v12299_v29  ;;  %v16434_v56 = vand.u32 4294901760, %v12013_v18 }
  0x5a   : > { %16422 = vst [vmem:[#allocation99_spill] sm:$0xff] %v12307_v25  ;;  %v15886_v57 = vand.u32 4294901760, %v12304_v55  ;;  %v12326_v41 = vsub.f32 %v11553_v20, %v16425_v2  ;;  %v12333_v54 = vsub.f32 %v11616_v17, %v16426_v33  ;;  %v16428_v20 = vand.u32 4294901760, %v12292_v22  ;;  %9351 = vmatpush1.bf16.msra.mxu1 %v12294_v43 }
  0x5b   : > { %v12338_v9 = vsub.f32 %v11628_v62, %v16427_v38  ;;  %v707_v8 = vsub.f32 %v12299_v29, %v16430_v58  ;;  %v12355_v38 = vpack.c.bf16 %v702_v31, %v690_v52  ;;  %v16432_v33 = vand.u32 4294901760, %v12315_v44  ;;  %9353 = vmatprep.subr.bf16.mxu1 %v12307_v25 }
  0x5c   : > { %v12344_v2 = vsub.f32 %v12292_v22, %v16428_v20  ;;  %v719_v17 = vsub.f32 %v12304_v55, %v15886_v57  ;;  %v15887_v27 = vand.u32 4294901760, %v12333_v54  ;;  %v16433_v58 = vand.u32 4294901760, %v11989_v51  ;;  %9607 = vmatpush1.bf16.msra.mxu0 %v11709_v47 }
  0x5d   : > { %16431 = vst [vmem:[#allocation101_spill] sm:$0xff] %v12355_v38  ;;  %v713_v20 = vsub.f32 %v12315_v44, %v16432_v33  ;;  %v708_v57 = vand.u32 4294901760, %v707_v8  ;;  %v16436_v52 = vand.u32 4294901760, %v12326_v41  ;;  %v16437_v51 = vand.u32 4294901760, %v12338_v9  ;;  %9609 = vmatprep.subr.bf16.mxu0 %v11778_v40 }
  0x5e   : > { %16429 = vst [vmem:[#allocation100_spill] sm:$0xff] %v12344_v2  ;;  %v12366_v2 = vpack.c.bf16 %v16434_v56, %v16433_v58  ;;  %v720_v62 = vand.u32 4294901760, %v719_v17  ;;  %v731_v11 = vsub.f32 %v12333_v54, %v15887_v27  ;;  %v16438_v56 = vand.u32 4294901760, %v11645_v63  ;;  %9355 = vmatpush1.bf16.msra.mxu1 %v12355_v38  ;;  %v16453_v38 = vld [vmem:[#allocation52_spill] sm:$0xff] }
  0x5f   : > { %v725_v31 = vsub.f32 %v12326_v41, %v16436_v52  ;;  %v714_v33 = vand.u32 4294901760, %v713_v20  ;;  %v743_v18 = vsub.f32 %v12338_v9, %v16437_v51  ;;  %v16440_v20 = vand.u32 4294901760, %v11650_v48 }
  0x60   : > { %16435 = vst [vmem:[#allocation102_spill] sm:$0xff] %v12366_v2  ;;  %v12382_v8 = vsub.f32 %v11645_v63, %v16438_v56  ;;  %v12385_v17 = vpack.c.bf16 %v720_v62, %v708_v57  ;;  %v16441_v27 = vand.u32 4294901760, %v11722_v45  ;;  %v732_v51 = vand.u32 4294901760, %v731_v11  ;;  %9611 = vmatpush1.bf16.msra.mxu0 %v11807_v36 }
  0x61   : > { %v726_v58 = vand.u32 4294901760, %v725_v31  ;;  %v12390_v52 = vsub.f32 %v11650_v48, %v16440_v20  ;;  %v744_v63 = vand.u32 4294901760, %v743_v18  ;;  %v16442_v57 = vand.u32 4294901760, %v11739_v61  ;;  %9613 = vmatprep.subr.bf16.mxu0 %v11900_v49 }
  0x62   : > { %16439 = vst [vmem:[#allocation103_spill] sm:$0xff] %v12385_v17  ;;  %v12395_v25 = vsub.f32 %v11722_v45, %v16441_v27  ;;  %v15890_v56 = vand.u32 4294901760, %v12382_v8  ;;  %9357 = vmatprep.subr.bf16.mxu1 %v12385_v17  ;;  %v16444_v27 = vand.u32 4294901760, %v11762_v23  ;;  %v16454_v43 = vand.u32 4294901760, %v16453_v38 }
  0x63   : > { %v12402_v62 = vsub.f32 %v11739_v61, %v16442_v57  ;;  %v12405_v48 = vpack.c.bf16 %v726_v58, %v714_v33  ;;  %v15889_v31 = vand.u32 4294901760, %v12390_v52  ;;  %v12415_v18 = vpack.c.bf16 %v744_v63, %v732_v51 }
  0x64   : > { %v15891_v45 = vand.u32 4294901760, %v12395_v25  ;;  %v12412_v11 = vsub.f32 %v11762_v23, %v16444_v27  ;;  %v737_v61 = vsub.f32 %v12382_v8, %v15890_v56  ;;  %v16446_v58 = vand.u32 4294901760, %v11767_v16  ;;  %9615 = vmatpush1.bf16.msra.mxu0 %v11929_v34 }
  0x65   : > { %16443 = vst [vmem:[#allocation104_spill] sm:$0xff] %v12405_v48  ;;  %16445 = vst [vmem:[#allocation105_spill] sm:$0xff] %v12415_v18  ;;  %v15893_v33 = vand.u32 4294901760, %v12402_v62  ;;  %v749_v23 = vsub.f32 %v12390_v52, %v15889_v31  ;;  %v16447_v57 = vand.u32 4294901760, %v11830_v42  ;;  %9359 = vmatpush1.bf16.msra.mxu1 %v12405_v48  ;;  %v16448_v56 = vand.u32 4294901760, %v11842_v7 }
  0x66   : > { %v12424_v20 = vsub.f32 %v11767_v16, %v16446_v58  ;;  %v755_v51 = vsub.f32 %v12395_v25, %v15891_v45  ;;  %v738_v16 = vand.u32 4294901760, %v737_v61  ;;  %9361 = vmatprep.subr.bf16.mxu1 %v12415_v18  ;;  %v16452_v18 = vld [vmem:[#allocation66_spill] sm:$0xff] }
  0x67   : > { %v12437_v27 = vsub.f32 %v11830_v42, %v16447_v57  ;;  %v767_v58 = vsub.f32 %v12402_v62, %v15893_v33  ;;  %v12447_v45 = vsub.f32 %v11842_v7, %v16448_v56  ;;  %v750_v63 = vand.u32 4294901760, %v749_v23  ;;  %9617 = vmatprep.subr.bf16.mxu0 %v16452_v18  ;;  %v385_v7 = vld [vmem:[%s12024_s27 + $0x8] sm:$0xff]  ;;  %s374_s27 = scalar_lea.vmem %s15708_s2, %s11945_s12 }
  0x68   : > { %v15898_v31 = vand.u32 4294901760, %v12424_v20  ;;  %v756_v42 = vand.u32 4294901760, %v755_v51  ;;  %v16449_v57 = vand.u32 4294901760, %v12412_v11  ;;  %v16450_v56 = vand.u32 4294901760, %v11865_v4  ;;  %v16480_v18 = vld [vmem:[#allocation9_spill] sm:$0xff] }
  0x69   : > { %v15903_v48 = vand.u32 4294901760, %v12437_v27  ;;  %v768_v33 = vand.u32 4294901760, %v767_v58  ;;  %v12464_v51 = vpack.c.bf16 %v750_v63, %v738_v16 }
  0x6a   : > { %v761_v61 = vsub.f32 %v12412_v11, %v16449_v57  ;;  %v773_v17 = vsub.f32 %v12424_v20, %v15898_v31  ;;  %v12462_v23 = vsub.f32 %v11865_v4, %v16450_v56  ;;  %v12473_v31 = vsub.f32 %v16453_v38, %v16454_v43 }
  0x6b   : > { %16451 = vst [vmem:[#allocation106_spill] sm:$0xff] %v12464_v51  ;;  %v779_v58 = vsub.f32 %v12437_v27, %v15903_v48  ;;  %v12476_v34 = vpack.c.bf16 %v768_v33, %v756_v42  ;;  %v16456_v4 = vand.u32 4294901760, %v12447_v45  ;;  %9363 = vmatpush1.bf16.msra.mxu1 %v12464_v51  ;;  %v16457_v48 = vand.u32 4294901760, %v11942_v30  ;;  %v16459_v33 = vld [vmem:[#allocation69_spill] sm:$0xff] }
  0x6c   : > { %v762_v57 = vand.u32 4294901760, %v761_v61  ;;  %v774_v49 = vand.u32 4294901760, %v773_v17  ;;  %v15906_v16 = vand.u32 4294901760, %v12462_v23  ;;  %v16458_v38 = vand.u32 4294901760, %v11962_v13  ;;  %9619 = vmatpush1.bf16.msra.mxu0 %v16459_v33 }
  0x6d   : > { %16455 = vst [vmem:[#allocation52_spill] sm:$0xff] %v12476_v34  ;;  %v791_v63 = vsub.f32 %v12447_v45, %v16456_v4  ;;  %v780_v61 = vand.u32 4294901760, %v779_v58  ;;  %v12487_v43 = vsub.f32 %v11942_v30, %v16457_v48  ;;  %9365 = vmatprep.subr.bf16.mxu1 %v12476_v34  ;;  %v392_v56 = vmul.f32 %v12095_v46, %v385_v7  ;;  %v16462_v34 = vld [vmem:[#allocation64_spill] sm:$0xff]  ;;  %v16465_v7 = vld [vmem:[#allocation65_spill] sm:$0xff] }
  0x6e   : > { %v12492_v17 = vsub.f32 %v11962_v13, %v16458_v38  ;;  %v12496_v42 = vpack.c.bf16 %v774_v49, %v762_v57  ;;  %v785_v58 = vsub.f32 %v12462_v23, %v15906_v16  ;;  %9621 = vmatprep.subr.bf16.mxu0 %v12101_v3  ;;  %v16461_v30 = vand.u32 4294901760, %v12473_v31 }
  0x6f   : > { %v792_v4 = vand.u32 4294901760, %v791_v63  ;;  %v15909_v48 = vand.u32 4294901760, %v12487_v43  ;;  %v16463_v49 = vand.u32 4294901760, %v16462_v34  ;;  %v433_v63 = vld [vmem:[#allocation3 + $0x8] sm:$0xff]  ;;  %v399_v46 = vadd.f32 %v12136_v32, %v392_v56 }
  0x70   : > { %16460 = vst [vmem:[#allocation107_spill] sm:$0xff] %v12496_v42  ;;  %v797_v13 = vsub.f32 %v12473_v31, %v16461_v30  ;;  %v786_v16 = vand.u32 4294901760, %v785_v58  ;;  %v16466_v3 = vand.u32 4294901760, %v16465_v7  ;;  %9367 = vmatpush1.bf16.msra.mxu1 %v12496_v42  ;;  %9623 = vmatpush1.bf16.msra.mxu0 %v12119_v10  ;;  %v12532_v56 = vand.u32 4294901760, %v433_v63  ;;  %v16469_v58 = vld [vmem:[#allocation7_spill] sm:$0xff] }
  0x71   : > { %v12511_v57 = vsub.f32 %v16462_v34, %v16463_v49  ;;  %v12513_v51 = vpack.c.bf16 %v792_v4, %v780_v61  ;;  %v803_v38 = vsub.f32 %v12487_v43, %v15909_v48  ;;  %v16467_v34 = vand.u32 4294901760, %v12492_v17  ;;  %9625 = vmatprep.subr.bf16.mxu0 %v12197_v26  ;;  %v16478_v26 = vld [vmem:[#allocation8_spill] sm:$0xff] }
  0x72   : > { %v12519_v33 = vsub.f32 %v16465_v7, %v16466_v3  ;;  %v798_v30 = vand.u32 4294901760, %v797_v13  ;;  %v401_v32 = vmax.f32 %v399_v46, 0.0  ;;  %16468 = vst [vmem:[#allocation65_spill] sm:$0xff] %v12532_v56  ;;  %v15922_v10 = vand.u32 4294901760, %v16478_v26 }
  0x73   : > { %16464 = vst [vmem:[#allocation64_spill] sm:$0xff] %v12513_v51  ;;  %v815_v61 = vsub.f32 %v12492_v17, %v16467_v34  ;;  %v15912_v4 = vand.u32 4294901760, %v12511_v57  ;;  %9369 = vmatprep.subr.bf16.mxu1 %v12513_v51  ;;  %v804_v7 = vand.u32 4294901760, %v803_v38  ;;  %v12547_v51 = vsub.f32 %v433_v63, %v12532_v56 }
  0x74   : > { %v15917_v3 = vand.u32 4294901760, %v12519_v33  ;;  %v12535_v49 = vpack.c.bf16 %v798_v30, %v786_v16  ;;  %437 = vst [vmem:[#allocation2 + $0x9] sm:$0xff] %v401_v32  ;;  %v12541_v42 = vand.u32 4294901760, %v401_v32  ;;  %v16473_v16 = vand.u32 4294901760, %v12018_v6  ;;  %v16474_v30 = vld [vmem:[#allocation72_spill] sm:$0xff]  ;;  %9627 = vmatpush1.bf16.msra.mxu0 %v12203_v5  ;;  %v16481_v6 = vld [vmem:[#allocation10_spill] sm:$0xff] }
  0x75   : > { %v816_v48 = vand.u32 4294901760, %v815_v61  ;;  %v809_v34 = vsub.f32 %v12511_v57, %v15912_v4  ;;  %16472 = vst [vmem:[#allocation110_spill] sm:$0xff] %v12547_v51  ;;  %v16475_v13 = vand.u32 4294901760, %v16474_v30  ;;  %9629 = vmatprep.subr.bf16.mxu0 %v12366_v2  ;;  %1914 = vmatmul.mubr.f32.gmra.mrb[2].mxu0 %v12547_v51 }
  0x76   : > { %16470 = vst [vmem:[#allocation108_spill] sm:$0xff] %v12535_v49  ;;  %16471 = vst [vmem:[#allocation109_spill] sm:$0xff] %v12541_v42  ;;  %v821_v46 = vsub.f32 %v12519_v33, %v15917_v3  ;;  %9371 = vmatpush1.bf16.msra.mxu1 %v12535_v49  ;;  %v12561_v3 = vsub.f32 %v401_v32, %v12541_v42  ;;  %v16485_v32 = vld [vmem:[#allocation15_spill] sm:$0xff]  ;;  %2016 = vmatprep.mubr.f32.mxu0 %v16424_v59 }
  0x77   : > { %v12553_v38 = vpack.c.bf16 %v16475_v13, %v16473_v16  ;;  %v12556_v61 = vpack.c.bf16 %v816_v48, %v804_v7  ;;  %v810_v4 = vand.u32 4294901760, %v809_v34  ;;  %v12569_v48 = vpack.c.bf16 %v12131_v60, %v12090_v24  ;;  %v16492_v34 = vld [vmem:[#allocation17_spill] sm:$0xff] }
  0x78   : > { %16479 = vst [vmem:[#allocation112_spill] sm:$0xff] %v12561_v3  ;;  %v822_v63 = vand.u32 4294901760, %v821_v46  ;;  %v16483_v13 = vand.u32 4294901760, %v16469_v58  ;;  %v16486_v46 = vld [vmem:[#allocation16_spill] sm:$0xff]  ;;  %v12580_v30 = vand.u32 4294901760, %v12561_v3  ;;  %v16494_v49 = vand.u32 4294901760, %v16485_v32 }
  0x79   : > { %16476 = vst [vmem:[#allocation72_spill] sm:$0xff] %v12553_v38  ;;  %16477 = vst [vmem:[#allocation111_spill] sm:$0xff] %v12556_v61  ;;  %9373 = vmatprep.subr.bf16.mxu1 %v12556_v61  ;;  %9631 = vmatpush1.bf16.msra.mxu0 %v12553_v38  ;;  %v16497_v58 = vld [vmem:[#allocation24_spill] sm:$0xff] }
  0x7a   : > { %16482 = vst [vmem:[#allocation113_spill] sm:$0xff] %v12569_v48  ;;  %v12575_v7 = vpack.c.bf16 %v15922_v10, %v16483_v13  ;;  %16487 = vst [vmem:[#allocation115_spill] sm:$0xff] %v12580_v30  ;;  %v12582_v40 = vpack.c.bf16 %v822_v63, %v810_v4  ;;  %v624_v36 = vsub.f32 %v12561_v3, %v12580_v30  ;;  %v16489_v13 = vand.u32 4294901760, %v16480_v18  ;;  %v16493_v63 = vld [vmem:[#allocation18_spill] sm:$0xff]  ;;  %v16498_v30 = vld [vmem:[#allocation25_spill] sm:$0xff] }
  0x7b   : > { %v16490_v10 = vand.u32 4294901760, %v16481_v6  ;;  %v15935_v4 = vand.u32 4294901760, %v16492_v34  ;;  %v15934_v61 = vand.u32 4294901760, %v16493_v63  ;;  %v15939_v6 = vand.u32 4294901760, %v16498_v30  ;;  %v16503_v18 = vld [vmem:[#allocation28_spill] sm:$0xff]  ;;  %v16514_v30 = vld [vmem:[#allocation38_spill] sm:$0xff] }
  0x7c   : > { %16484 = vst [vmem:[#allocation114_spill] sm:$0xff] %v12575_v7  ;;  %16488 = vst [vmem:[#allocation116_spill] sm:$0xff] %v12582_v40  ;;  %9375 = vmatpush1.bf16.msra.mxu1 %v12582_v40  ;;  %9633 = vmatprep.subr.bf16.mxu0 %v12575_v7  ;;  %v16495_v40 = vand.u32 4294901760, %v16486_v46  ;;  %v16524_v46 = vld [vmem:[#allocation48_spill] sm:$0xff] }
  0x7d   : > { %v12594_v16 = vpack.c.bf16 %v16490_v10, %v16489_v13  ;;  %9377 = vmatprep.subr.bf16.mxu1 %v12569_v48  ;;  %v12608_v10 = vand.u32 4294901760, %v624_v36  ;;  %v16500_v13 = vand.u32 4294901760, %v12292_v22  ;;  %v12618_v7 = vpack.c.bf16 %v15934_v61, %v15935_v4  ;;  %v16507_v61 = vld [vmem:[#allocation33_spill] sm:$0xff] }
  0x7e   : > { %v12604_v26 = vpack.c.bf16 %v16495_v40, %v16494_v49  ;;  %v16502_v40 = vld [vmem:[#allocation27_spill] sm:$0xff]  ;;  %v12625_v36 = vpack.c.bf16 %v12167_v1, %v12156_v14  ;;  %v16505_v22 = vand.u32 4294901760, %v16497_v58  ;;  %v12638_v48 = vpack.c.bf16 %v12191_v15, %v12177_v50  ;;  %v16515_v58 = vld [vmem:[#allocation92_spill] sm:$0xff] }
  0x7f   : > { %16491 = vst [vmem:[#allocation117_spill] sm:$0xff] %v12594_v16  ;;  %16499 = vst [vmem:[#allocation119_spill] sm:$0xff] %v12608_v10  ;;  %2020 = vmatmul.mubr.f32.vlgmr.msra.gmra.mrb[0].mxu0 %v16500_v13  ;;  %626 = vmatmul.mubr.f32.gmra.mrb[2].mxu1 %v12608_v10  ;;  %v16511_v10 = vand.u32 4294901760, %v16503_v18  ;;  %v12654_v63 = vpack.c.bf16 %v16515_v58, %v12225_v53  ;;  %v16521_v18 = vld [vmem:[#allocation45_spill] sm:$0xff]  ;;  %v12668_v49 = vpack.c.bf16 %v12244_v39, %v12239_v28 }
  0x80   : > { %16496 = vst [vmem:[#allocation118_spill] sm:$0xff] %v12604_v26  ;;  %9635 = vmatpush1.bf16.msra.mxu0 %v12594_v16  ;;  %16501 = vst [vmem:[#allocation120_spill] sm:$0xff] %v12618_v7  ;;  %856 = vmatprep.mubr.f32.mxu1 %v16424_v59  ;;  %v12632_v13 = vpack.c.bf16 %v15939_v6, %v16505_v22  ;;  %v16508_v16 = vld [vmem:[#allocation35_spill] sm:$0xff]  ;;  %v16513_v6 = vld [vmem:[#allocation36_spill] sm:$0xff] }
  0x81   : > { %16504 = vst [vmem:[#allocation121_spill] sm:$0xff] %v12625_v36  ;;  %9637 = vmatprep.subr.bf16.mxu0 %v12604_v26  ;;  %16509 = vst [vmem:[#allocation123_spill] sm:$0xff] %v12638_v48  ;;  %2025 = vmatprep.mubr.f32.mxu0 %v16424_v59  ;;  %v16510_v26 = vand.u32 4294901760, %v16502_v40  ;;  %v16518_v40 = vand.u32 4294901760, %v16508_v16 }
  0x82   : > { %16506 = vst [vmem:[#allocation122_spill] sm:$0xff] %v12632_v13  ;;  %16516 = vst [vmem:[#allocation92_spill] sm:$0xff] %v12654_v63 }
  0x83   : > { %858 = vmatmul.mubr.f32.vlgmr.msra.gmra.mrb[0].mxu1 %v12208_v19  ;;  %v12647_v22 = vpack.c.bf16 %v16511_v10, %v16510_v26  ;;  %v16520_v26 = vld [vmem:[#allocation44_spill] sm:$0xff]  ;;  %16522 = vst [vmem:[#allocation126_spill] sm:$0xff] %v12668_v49  ;;  %v16528_v10 = vand.u32 4294901760, %v12090_v24  ;;  %v16665_v19 = vld [vmem:[#allocation63_spill] sm:$0xff] }
  0x84   : > { %9639 = vmatpush1.bf16.msra.mxu0 %v12618_v7  ;;  %9379 = vmatpush1.bf16.msra.mxu1 %v12625_v36  ;;  %v16517_v7 = vand.u32 4294901760, %v16507_v61  ;;  %v16523_v36 = vld [vmem:[#allocation47_spill] sm:$0xff]  ;;  %v16531_v61 = vand.u32 4294901760, %v12156_v14  ;;  %v16535_v24 = vand.u32 4294901760, %v16520_v26 }
  0x85   : > { %16512 = vst [vmem:[#allocation124_spill] sm:$0xff] %v12647_v22  ;;  %9641 = vmatprep.subr.bf16.mxu0 %v12632_v13  ;;  %9381 = vmatprep.subr.bf16.mxu1 %v12638_v48  ;;  %v16529_v48 = vand.u32 4294901760, %v12131_v60  ;;  %v16532_v13 = vand.u32 4294901760, %v12167_v1  ;;  %v16536_v60 = vand.u32 4294901760, %v16521_v18  ;;  %v16548_v14 = vand.u32 4294901760, %v16523_v36 }
  0x86   : > { %v12661_v34 = vpack.c.bf16 %v16518_v40, %v16517_v7  ;;  %863 = vmatprep.mubr.f32.mxu1 %v16424_v59  ;;  %v16525_v7 = vand.u32 4294901760, %v16513_v6  ;;  %v16526_v40 = vand.u32 4294901760, %v16514_v30  ;;  %v12985_v30 = vld [vmem:[%s15712_s6 + $0x240] sm:$0xff]  ;;  %v12990_v6 = vld [vmem:[%s15712_s6 + $0x250] sm:$0xff] }
  0x87   : > { %865 = vmatmul.mubr.f32.gmra.mrb[2].mxu1 %v12541_v42  ;;  %v12686_v32 = vpack.c.bf16 %v16529_v48, %v16528_v10  ;;  %v12692_v16 = vpack.c.bf16 %v16532_v13, %v16531_v61  ;;  %v12704_v48 = vpack.c.bf16 %v16536_v60, %v16535_v24  ;;  %v16538_v10 = vld [vmem:[#allocation54_spill] sm:$0xff]  ;;  %v12711_v61 = vpack.c.bf16 %v12304_v55, %v12299_v29 }
  0x88   : > { %16519 = vst [vmem:[#allocation125_spill] sm:$0xff] %v12661_v34  ;;  %9643 = vmatpush1.bf16.msra.mxu0 %v12647_v22  ;;  %v12679_v4 = vpack.c.bf16 %v16526_v40, %v16525_v7  ;;  %9383 = vmatpush1.bf16.msra.mxu1 %v12654_v63  ;;  %v12697_v7 = vpack.c.bf16 %v12271_v21, %v12258_v35  ;;  %v16539_v40 = vld [vmem:[#allocation56_spill] sm:$0xff]  ;;  %v16541_v13 = vand.u32 4294901760, %v12547_v51  ;;  %v16543_v22 = vand.u32 4294901760, %v12191_v15  ;;  %v16645_v51 = vld [vmem:[#allocation51_spill] sm:$0xff] }
  0x89   : > { %16530 = vst [vmem:[#allocation128_spill] sm:$0xff] %v12686_v32  ;;  %16533 = vst [vmem:[#allocation129_spill] sm:$0xff] %v12692_v16  ;;  %9645 = vmatprep.subr.bf16.mxu0 %v12661_v34  ;;  %9385 = vmatprep.subr.bf16.mxu1 %v12668_v49  ;;  %v16542_v34 = vand.u32 4294901760, %v12177_v50  ;;  %v16545_v24 = vand.u32 4294901760, %v12225_v53  ;;  %v16546_v60 = vand.u32 4294901760, %v16515_v58  ;;  %v16549_v49 = vand.u32 4294901760, %v16524_v46 }
  0x8a   : > { %16527 = vst [vmem:[#allocation127_spill] sm:$0xff] %v12679_v4  ;;  %16534 = vst [vmem:[#allocation130_spill] sm:$0xff] %v12697_v7  ;;  %2029 = vmatmul.mubr.f32.gmra.mrb[2].mxu0 %v16541_v13  ;;  %999 = vmatprep.mubr.f32.mxu1 %v16424_v59  ;;  %v16551_v50 = vld [vmem:[#allocation57_spill] sm:$0xff]  ;;  %v16553_v58 = vand.u32 4294901760, %v12239_v28  ;;  %v16560_v28 = vand.u32 4294901760, %v16538_v10  ;;  %v16564_v53 = vld [vmem:[#allocation68_spill] sm:$0xff] }
  0x8b   : > { %16537 = vst [vmem:[#allocation131_spill] sm:$0xff] %v12704_v48  ;;  %16540 = vst [vmem:[#allocation132_spill] sm:$0xff] %v12711_v61  ;;  %v12719_v63 = vpack.c.bf16 %v16543_v22, %v16542_v34  ;;  %v12725_v1 = vpack.c.bf16 %v16546_v60, %v16545_v24  ;;  %v12731_v18 = vpack.c.bf16 %v16549_v49, %v16548_v14  ;;  %2195 = vmatprep.mubr.f32.mxu0 %v16424_v59  ;;  %v16552_v34 = vld [vmem:[#allocation59_spill] sm:$0xff] }
  0x8c   : > { %9647 = vmatpush1.bf16.msra.mxu0 %v12679_v4  ;;  %v16554_v22 = vand.u32 4294901760, %v12244_v39  ;;  %v16556_v24 = vand.u32 4294901760, %v12258_v35  ;;  %v16557_v49 = vand.u32 4294901760, %v12271_v21  ;;  %9387 = vmatpush1.bf16.msra.mxu1 %v12697_v7  ;;  %v12753_v60 = vpack.c.bf16 %v12326_v41, %v12315_v44  ;;  %v16572_v35 = vld [vmem:[#allocation70_spill] sm:$0xff]  ;;  %v16573_v7 = vld [vmem:[#allocation71_spill] sm:$0xff] }
  0x8d   : > { %16544 = vst [vmem:[#allocation133_spill] sm:$0xff] %v12719_v63  ;;  %16547 = vst [vmem:[#allocation134_spill] sm:$0xff] %v12725_v1  ;;  %9649 = vmatprep.subr.bf16.mxu0 %v12704_v48  ;;  %v16561_v39 = vand.u32 4294901760, %v16539_v40  ;;  %9389 = vmatprep.subr.bf16.mxu1 %v12711_v61  ;;  %v16567_v15 = vand.u32 4294901760, %v12304_v55  ;;  %v16569_v4 = vand.u32 4294901760, %v12315_v44  ;;  %v16574_v40 = vand.u32 4294901760, %v16551_v50 }
  0x8e   : > { %16550 = vst [vmem:[#allocation135_spill] sm:$0xff] %v12731_v18  ;;  %v12742_v13 = vpack.c.bf16 %v16554_v22, %v16553_v58  ;;  %v12748_v14 = vpack.c.bf16 %v16557_v49, %v16556_v24  ;;  %16559 = vst [vmem:[#allocation138_spill] sm:$0xff] %v12753_v60  ;;  %v16563_v22 = vld [vmem:[#allocation67_spill] sm:$0xff]  ;;  %v12767_v24 = vpack.c.bf16 %v12338_v9, %v12333_v54  ;;  %v16566_v49 = vand.u32 4294901760, %v12299_v29 }
  0x8f   : > { %v12760_v58 = vpack.c.bf16 %v16561_v39, %v16560_v28  ;;  %v16570_v28 = vand.u32 4294901760, %v12326_v41  ;;  %v16575_v29 = vand.u32 4294901760, %v16552_v34  ;;  %v16577_v55 = vand.u32 4294901760, %v12333_v54  ;;  %v16644_v34 = vld [vmem:[#allocation87_spill] sm:$0xff] }
  0x90   : > { %16555 = vst [vmem:[#allocation136_spill] sm:$0xff] %v12742_v13  ;;  %16558 = vst [vmem:[#allocation137_spill] sm:$0xff] %v12748_v14  ;;  %v12773_v48 = vpack.c.bf16 %v16567_v15, %v16566_v49  ;;  %9651 = vmatpush1.bf16.msra.mxu0 %v12731_v18  ;;  %v16578_v44 = vand.u32 4294901760, %v12338_v9  ;;  %v16580_v41 = vand.u32 4294901760, %v12382_v8  ;;  %9391 = vmatpush1.bf16.msra.mxu1 %v12753_v60  ;;  %v16584_v54 = vand.u32 4294901760, %v16563_v22  ;;  %v16599_v18 = vld [vmem:[#allocation80_spill] sm:$0xff] }
  0x91   : > { %16562 = vst [vmem:[#allocation139_spill] sm:$0xff] %v12760_v58  ;;  %16565 = vst [vmem:[#allocation140_spill] sm:$0xff] %v12767_v24  ;;  %v12779_v39 = vpack.c.bf16 %v16570_v28, %v16569_v4  ;;  %v12788_v10 = vpack.c.bf16 %v16575_v29, %v16574_v40  ;;  %v16581_v4 = vand.u32 4294901760, %v12390_v52  ;;  %v12805_v28 = vpack.c.bf16 %v12390_v52, %v12382_v8  ;;  %v16587_v29 = vld [vmem:[#allocation77_spill] sm:$0xff]  ;;  %v16643_v22 = vld [vmem:[#allocation42_spill] sm:$0xff] }
  0x92   : > { %16568 = vst [vmem:[#allocation141_spill] sm:$0xff] %v12773_v48  ;;  %v12794_v15 = vpack.c.bf16 %v16578_v44, %v16577_v55  ;;  %9653 = vmatprep.subr.bf16.mxu0 %v12760_v58  ;;  %v16585_v9 = vand.u32 4294901760, %v16564_v53  ;;  %v16588_v44 = vld [vmem:[#allocation79_spill] sm:$0xff]  ;;  %9393 = vmatprep.subr.bf16.mxu1 %v12767_v24  ;;  %v16590_v8 = vand.u32 4294901760, %v12395_v25  ;;  %v16591_v52 = vand.u32 4294901760, %v12402_v62  ;;  %v16600_v24 = vld [vmem:[#allocation82_spill] sm:$0xff] }
  0x93   : > { %16571 = vst [vmem:[#allocation142_spill] sm:$0xff] %v12779_v39  ;;  %16576 = vst [vmem:[#allocation143_spill] sm:$0xff] %v12788_v10  ;;  %v12800_v49 = vpack.c.bf16 %v16581_v4, %v16580_v41  ;;  %v12819_v41 = vpack.c.bf16 %v12402_v62, %v12395_v25  ;;  %v16593_v21 = vand.u32 4294901760, %v12412_v11  ;;  %v16596_v61 = vand.u32 4294901760, %v16572_v35  ;;  %v12978_v53 = vld [vmem:[%s15712_s6 + $0x258] sm:$0xff] }
  0x94   : > { %16579 = vst [vmem:[#allocation144_spill] sm:$0xff] %v12794_v15  ;;  %16583 = vst [vmem:[#allocation146_spill] sm:$0xff] %v12805_v28  ;;  %v12812_v40 = vpack.c.bf16 %v16585_v9, %v16584_v54  ;;  %v12825_v4 = vpack.c.bf16 %v16591_v52, %v16590_v8  ;;  %v16594_v54 = vand.u32 4294901760, %v12424_v20  ;;  %v16597_v55 = vand.u32 4294901760, %v16573_v7  ;;  %9655 = vmatpush1.bf16.msra.mxu0 %v12788_v10  ;;  %v16637_v10 = vld [vmem:[#allocation31_spill] sm:$0xff]  ;;  %v12973_v7 = vld [vmem:[%s15712_s6 + $0x248] sm:$0xff] }
  0x95   : > { %16582 = vst [vmem:[#allocation145_spill] sm:$0xff] %v12800_v49  ;;  %16589 = vst [vmem:[#allocation148_spill] sm:$0xff] %v12819_v41  ;;  %v16601_v8 = vand.u32 4294901760, %v12437_v27  ;;  %v16602_v52 = vand.u32 4294901760, %v12447_v45  ;;  %9395 = vmatpush1.bf16.msra.mxu1 %v12805_v28  ;;  %v16609_v62 = vand.u32 4294901760, %v16588_v44  ;;  %v16616_v25 = vand.u32 4294901760, %v12519_v33 }
  0x96   : > { %16586 = vst [vmem:[#allocation147_spill] sm:$0xff] %v12812_v40  ;;  %16592 = vst [vmem:[#allocation149_spill] sm:$0xff] %v12825_v4  ;;  %v12831_v9 = vpack.c.bf16 %v16594_v54, %v16593_v21  ;;  %v12837_v58 = vpack.c.bf16 %v16597_v55, %v16596_v61  ;;  %v16604_v21 = vand.u32 4294901760, %v12462_v23  ;;  %v16605_v54 = vand.u32 4294901760, %v12473_v31  ;;  %9657 = vmatprep.subr.bf16.mxu0 %v12812_v40  ;;  %v12952_v28 = vld [vmem:[%s15712_s6 + $0x228] sm:$0xff]  ;;  %v12967_v44 = vld [vmem:[%s15712_s6 + $0x230] sm:$0xff] }
  0x97   : > { %v12846_v60 = vpack.c.bf16 %v16602_v52, %v16601_v8  ;;  %v12857_v61 = vpack.c.bf16 %v12424_v20, %v12412_v11  ;;  %v16608_v55 = vand.u32 4294901760, %v16587_v29  ;;  %9397 = vmatprep.subr.bf16.mxu1 %v12819_v41  ;;  %v12869_v52 = vpack.c.bf16 %v12447_v45, %v12437_v27  ;;  %v8288_v41 = vld [vmem:[%s15712_s6 + $0x210] sm:$0xff]  ;;  %v16642_v29 = vld [vmem:[#allocation81_spill] sm:$0xff] }
  0x98   : > { %16595 = vst [vmem:[#allocation150_spill] sm:$0xff] %v12831_v9  ;;  %16598 = vst [vmem:[#allocation151_spill] sm:$0xff] %v12837_v58  ;;  %v12852_v35 = vpack.c.bf16 %v16605_v54, %v16604_v21  ;;  %v16612_v21 = vand.u32 4294901760, %v12487_v43  ;;  %v16613_v54 = vand.u32 4294901760, %v12492_v17  ;;  %v16615_v20 = vand.u32 4294901760, %v12511_v57  ;;  %9659 = vmatpush1.bf16.msra.mxu0 %v12837_v58  ;;  %v16636_v58 = vld [vmem:[#allocation66_spill] sm:$0xff] }
  0x99   : > { %16603 = vst [vmem:[#allocation152_spill] sm:$0xff] %v12846_v60  ;;  %16607 = vst [vmem:[#allocation154_spill] sm:$0xff] %v12857_v61  ;;  %v12864_v8 = vpack.c.bf16 %v16609_v62, %v16608_v55  ;;  %v16618_v62 = vand.u32 4294901760, %v16599_v18  ;;  %v16619_v55 = vand.u32 4294901760, %v16600_v24  ;;  %9399 = vmatpush1.bf16.msra.mxu1 %v12857_v61  ;;  %v12893_v27 = vpack.c.bf16 %v12473_v31, %v12462_v23  ;;  %v16625_v31 = vld [vmem:[#allocation5_spill] sm:$0xff]  ;;  %v16626_v23 = vld [vmem:[#allocation91_spill] sm:$0xff] }
  0x9a   : > { %16606 = vst [vmem:[#allocation153_spill] sm:$0xff] %v12852_v35  ;;  %16611 = vst [vmem:[#allocation156_spill] sm:$0xff] %v12869_v52  ;;  %v12875_v11 = vpack.c.bf16 %v16613_v54, %v16612_v21  ;;  %v12881_v40 = vpack.c.bf16 %v16616_v25, %v16615_v20  ;;  %9401 = vmatprep.subr.bf16.mxu1 %v12869_v52  ;;  %v12899_v25 = vpack.c.bf16 %v12492_v17, %v12487_v43  ;;  %v16624_v54 = vld [vmem:[#allocation23_spill] sm:$0xff]  ;;  %v16627_v43 = vld [vmem:[#allocation6_spill] sm:$0xff] }
  0x9b   : > { %16610 = vst [vmem:[#allocation155_spill] sm:$0xff] %v12864_v8  ;;  %v12888_v45 = vpack.c.bf16 %v16619_v55, %v16618_v62  ;;  %16621 = vst [vmem:[#allocation160_spill] sm:$0xff] %v12893_v27  ;;  %9661 = vmatprep.subr.bf16.mxu0 %v12864_v8  ;;  %v12905_v21 = vpack.c.bf16 %v12519_v33, %v12511_v57  ;;  %v16628_v17 = vld [vmem:[#allocation43_spill] sm:$0xff]  ;;  %v16629_v33 = vld [vmem:[#allocation13_spill] sm:$0xff]  ;;  %v2360_v26 = vand.u32 4294901760, %v8288_v41 }
  0x9c   : > { %16614 = vst [vmem:[#allocation157_spill] sm:$0xff] %v12875_v11  ;;  %16617 = vst [vmem:[#allocation158_spill] sm:$0xff] %v12881_v40  ;;  %v16630_v57 = vld [vmem:[#allocation46_spill] sm:$0xff]  ;;  %v16632_v62 = vld [vmem:[#allocation55_spill] sm:$0xff] }
  0x9d   : > { %16620 = vst [vmem:[#allocation159_spill] sm:$0xff] %v12888_v45  ;;  %16622 = vst [vmem:[#allocation161_spill] sm:$0xff] %v12899_v25  ;;  %9663 = vmatpush1.bf16.msra.mxu0 %v12888_v45  ;;  %9403 = vmatpush1.bf16.msra.mxu1 %v12893_v27  ;;  %v16631_v20 = vld [vmem:[#allocation14_spill] sm:$0xff]  ;;  %v16633_v55 = vld [vmem:[#allocation20_spill] sm:$0xff] }
  0x9e   : > { %16623 = vst [vmem:[#allocation162_spill] sm:$0xff] %v12905_v21  ;;  %9665 = vmatprep.subr.bf16.mxu0 %v16624_v54  ;;  %9405 = vmatprep.subr.bf16.mxu1 %v12899_v25  ;;  %v16634_v45 = vld [vmem:[#allocation58_spill] sm:$0xff]  ;;  %v8287_v25 = vld [vmem:[%s15712_s6 + $0x208] sm:$0xff]  ;;  %v8289_v27 = vld [vmem:[%s15712_s6 + $0x218] sm:$0xff] }
  0x9f   : > { %v16635_v8 = vld [vmem:[#allocation22_spill] sm:$0xff]  ;;  %v16641_v52 = vld [vmem:[#allocation40_spill] sm:$0xff]  ;;  %v12957_v24 = vld [vmem:[%s15712_s6 + $0x238] sm:$0xff]  ;;  %v2354_v50 = vand.u32 4294901760, %v8287_v25  ;;  %v2358_v46 = vand.u32 4294901760, %v8289_v27 }
  0xa0   : > { %2197 = vmatmul.mubr.f32.vlgmr.msra.gmra.mrb[0].mxu0 %v12284_v0  ;;  %v8286_v61 = vld [vmem:[%s15712_s6 + $0x200] sm:$0xff] }
  0xa1   : > { %9667 = vmatpush1.bf16.msra.mxu0 %v11593_v12  ;;  %2202 = vmatprep.mubr.f32.mxu0 %v16424_v59  ;;  %v12962_v18 = vld [vmem:[%s15712_s6 + $0x220] sm:$0xff]  ;;  %v2356_v36 = vand.u32 4294901760, %v8286_v61  ;;  %v16652_v12 = vand.u32 4294901760, %v12952_v28  ;;  %v13103_v42 = vsub.f32 %v8289_v27, %v2358_v46 }
  0xa2   : > { %9407 = vmatpush1.bf16.msra.mxu1 %v12905_v21  ;;  %9669 = vmatprep.subr.bf16.mxu0 %v11680_v37  ;;  %v16639_v21 = vld [vmem:[#allocation32_spill] sm:$0xff]  ;;  %v16651_v37 = vld [vmem:[#allocation61_spill] sm:$0xff] }
  0xa3   : > { %9409 = vmatprep.subr.bf16.mxu1 %v16625_v31  ;;  %16664 = vst [vmem:[#allocation169_spill] sm:$0xff] %v13103_v42 }
  0xa4   : > { %2204 = vmatmul.mubr.f32.gmra.mrb[2].mxu0 %v12532_v56 }
  0xa5   : > { %1002 = vmatmul.mubr.f32.vlgmr.msra.gmra.mrb[0].mxu1 %v16626_v23  ;;  %9671 = vmatpush1.bf16.msra.mxu0 %v11709_v47  ;;  %v16638_v23 = vld [vmem:[#allocation69_spill] sm:$0xff]  ;;  %v13039_v47 = vld [vmem:[%s15712_s6 + $0x298] sm:$0xff] }
  0xa6   : > { %9411 = vmatpush1.bf16.msra.mxu1 %v16627_v43  ;;  %9673 = vmatprep.subr.bf16.mxu0 %v16628_v17  ;;  %v16648_v17 = vld [vmem:[#allocation53_spill] sm:$0xff]  ;;  %v13107_v43 = vsub.f32 %v8288_v41, %v2360_v26  ;;  %v16674_v41 = vand.u32 4294901760, %v12952_v28 }
  0xa7   : > { %9413 = vmatprep.subr.bf16.mxu1 %v16629_v33  ;;  %1007 = vmatprep.mubr.f32.mxu1 %v16424_v59  ;;  %v13105_v33 = vsub.f32 %v8286_v61, %v2356_v36 }
  0xa8   : > { %2306 = vmatprep.mubr.f32.mxu0 %v16424_v59 }
  0xa9   : > { %9675 = vmatpush1.bf16.msra.mxu0 %v16630_v57  ;;  %1010 = vmatmul.mubr.f32.gmra.mrb[2].mxu1 %v12561_v3  ;;  %v16640_v3 = vld [vmem:[#allocation78_spill] sm:$0xff]  ;;  %v13007_v57 = vld [vmem:[%s15712_s6 + $0x278] sm:$0xff]  ;;  %v16696_v40 = vand.u32 4294901760, %v13105_v33 }
  0xaa   : > { %9415 = vmatpush1.bf16.msra.mxu1 %v16631_v20  ;;  %9677 = vmatprep.subr.bf16.mxu0 %v16632_v62  ;;  %v13002_v62 = vld [vmem:[%s15712_s6 + $0x268] sm:$0xff]  ;;  %v13092_v20 = vld [vmem:[%s15712_s6 + $0x2b0] sm:$0xff]  ;;  %v16668_v27 = vand.u32 4294901760, %v13007_v57 }
  0xab   : > { %9417 = vmatprep.subr.bf16.mxu1 %v16633_v55  ;;  %1112 = vmatprep.mubr.f32.mxu1 %v16424_v59  ;;  %v13087_v55 = vld [vmem:[%s15712_s6 + $0x2a0] sm:$0xff]  ;;  %v16667_v61 = vand.u32 4294901760, %v13002_v62 }
  0xad   : > { %9679 = vmatpush1.bf16.msra.mxu0 %v16634_v45  ;;  %v13015_v45 = vld [vmem:[%s15712_s6 + $0x260] sm:$0xff] }
  0xae   : > { %9419 = vmatpush1.bf16.msra.mxu1 %v16635_v8  ;;  %9681 = vmatprep.subr.bf16.mxu0 %v16636_v58  ;;  %v13020_v58 = vld [vmem:[%s15712_s6 + $0x270] sm:$0xff]  ;;  %v13082_v8 = vld [vmem:[%s15712_s6 + $0x2b8] sm:$0xff]  ;;  %v16670_v31 = vand.u32 4294901760, %v13015_v45 }
  0xaf   : > { %9421 = vmatprep.subr.bf16.mxu1 %v16637_v10  ;;  %v16662_v10 = vand.u32 4294901760, %v12990_v6 }
  0xb1   : > { %9683 = vmatpush1.bf16.msra.mxu0 %v16638_v23  ;;  %v13029_v23 = vpack.c.bf16 %v2360_v26, %v2356_v36  ;;  %v13136_v26 = vld [vmem:[%s15712_s6 + $0x2c8] sm:$0xff] }
  0xb2   : > { %9423 = vmatpush1.bf16.msra.mxu1 %v16639_v21  ;;  %9685 = vmatprep.subr.bf16.mxu0 %v16640_v3  ;;  %v13027_v3 = vpack.c.bf16 %v2358_v46, %v2354_v50  ;;  %v13161_v46 = vsub.f32 %v12952_v28, %v16674_v41  ;;  %v16682_v28 = vand.u32 4294901760, %v12962_v18 }
  0xb3   : > { %9425 = vmatprep.subr.bf16.mxu1 %v16641_v52  ;;  %16650 = vst [vmem:[#allocation164_spill] sm:$0xff] %v13029_v23 }
  0xb4   : > { %16649 = vst [vmem:[#allocation163_spill] sm:$0xff] %v13027_v3 }
  0xb5   : > { %9687 = vmatpush1.bf16.msra.mxu0 %v16642_v29 }
  0xb6   : > { %9427 = vmatpush1.bf16.msra.mxu1 %v16643_v22  ;;  %9689 = vmatprep.subr.bf16.mxu0 %v16644_v34  ;;  %v16646_v34 = vld [vmem:[#allocation86_spill] sm:$0xff] }
  0xb7   : > { %9429 = vmatprep.subr.bf16.mxu1 %v16645_v51  ;;  %v13023_v29 = vand.u32 4294901760, %v16646_v34  ;;  %v16656_v51 = vand.u32 4294901760, %v12967_v44 }
  0xb9   : > { %9691 = vmatpush1.bf16.msra.mxu0 %v12203_v5  ;;  %16647 = vst [vmem:[#allocation86_spill] sm:$0xff] %v13023_v29  ;;  %v13034_v5 = vld [vmem:[%s15712_s6 + $0x288] sm:$0xff]  ;;  %v13141_v36 = vsub.f32 %v16646_v34, %v13023_v29  ;;  %v16681_v34 = vand.u32 4294901760, %v12957_v24 }
  0xba   : > { %9431 = vmatpush1.bf16.msra.mxu1 %v16648_v17  ;;  %9693 = vmatprep.subr.bf16.mxu0 %v12366_v2  ;;  %v16653_v2 = vand.u32 4294901760, %v12957_v24  ;;  %v16655_v17 = vand.u32 4294901760, %v12962_v18  ;;  %v16678_v29 = vand.u32 4294901760, %v13034_v5 }
  0xbb   : > { %9433 = vmatprep.subr.bf16.mxu1 %v16651_v37  ;;  %v13059_v37 = vld [vmem:[%s15712_s6 + $0x280] sm:$0xff]  ;;  %16673 = vst [vmem:[#allocation172_spill] sm:$0xff] %v13141_v36 }
  0xbc   : > { %v13046_v54 = vpack.c.bf16 %v16653_v2, %v16652_v12  ;;  %v13052_v22 = vpack.c.bf16 %v16656_v51, %v16655_v17  ;;  %v13064_v12 = vld [vmem:[%s15712_s6 + $0x290] sm:$0xff]  ;;  %v13069_v2 = vld [vmem:[%s15712_s6 + $0x2a8] sm:$0xff]  ;;  %v16658_v51 = vand.u32 4294901760, %v12973_v7  ;;  %v16659_v17 = vand.u32 4294901760, %v12978_v53 }
  0xbd   : > { %9695 = vmatpush1.bf16.msra.mxu0 %v12553_v38  ;;  %v16671_v38 = vand.u32 4294901760, %v13020_v58  ;;  %v16684_v41 = vand.u32 4294901760, %v13064_v12 }
  0xbe   : > { %16654 = vst [vmem:[#allocation165_spill] sm:$0xff] %v13046_v54  ;;  %16657 = vst [vmem:[#allocation166_spill] sm:$0xff] %v13052_v22  ;;  %v13075_v21 = vpack.c.bf16 %v16659_v17, %v16658_v51  ;;  %v13094_v51 = vsub.f32 %v8287_v25, %v2354_v50  ;;  %v16661_v17 = vand.u32 4294901760, %v12985_v30  ;;  %9435 = vmatpush1.bf16.msra.mxu1 %v16665_v19  ;;  %9697 = vmatprep.subr.bf16.mxu0 %v13027_v3  ;;  %v16675_v50 = vld [vmem:[#allocation85_spill] sm:$0xff]  ;;  %v16677_v3 = vld [vmem:[#allocation76_spill] sm:$0xff] }
  0xbf   : > { %v13131_v25 = vpack.c.bf16 %v16671_v38, %v16670_v31  ;;  %v13152_v38 = vld [vmem:[%s15712_s6 + $0x2c0] sm:$0xff]  ;;  %v16679_v31 = vand.u32 4294901760, %v13039_v47  ;;  %v16695_v19 = vand.u32 4294901760, %v13103_v42 }
  0xc0   : > { %16660 = vst [vmem:[#allocation167_spill] sm:$0xff] %v13075_v21  ;;  %v13101_v52 = vpack.c.bf16 %v16662_v10, %v16661_v17  ;;  %v16666_v10 = vld [vmem:[#allocation75_spill] sm:$0xff]  ;;  %2308 = vmatmul.mubr.f32.vlgmr.msra.gmra.mrb[0].mxu0 %v12284_v0  ;;  %v13125_v17 = vpack.c.bf16 %v16668_v27, %v16667_v61  ;;  %v16676_v0 = vmax.f32 %v16675_v50, 0.0  ;;  %v16683_v50 = vand.u32 4294901760, %v13059_v37 }
  0xc1   : > { %9437 = vmatprep.subr.bf16.mxu1 %v16666_v10  ;;  %16672 = vst [vmem:[#allocation171_spill] sm:$0xff] %v13131_v25  ;;  %9699 = vmatpush1.bf16.msra.mxu0 %v13029_v23  ;;  %v13147_v61 = vld [vmem:[%s15712_s6 + $0x2d8] sm:$0xff]  ;;  %v13173_v27 = vpack.c.bf16 %v16679_v31, %v16678_v29  ;;  %v13178_v10 = vsub.f32 %v12957_v24, %v16681_v34  ;;  %v16686_v29 = vand.u32 4294901760, %v13069_v2  ;;  %v16687_v31 = vand.u32 4294901760, %v13082_v8 }
  0xc2   : > { %16663 = vst [vmem:[#allocation168_spill] sm:$0xff] %v13101_v52  ;;  %16669 = vst [vmem:[#allocation170_spill] sm:$0xff] %v13125_v17  ;;  %2313 = vmatprep.mubr.f32.mxu0 %v16424_v59  ;;  %v13165_v23 = vand.u32 4294901760, %v16676_v0  ;;  %9439 = vmatpush1.bf16.msra.mxu1 %v16677_v3  ;;  %v13183_v0 = vsub.f32 %v12962_v18, %v16682_v28  ;;  %v16689_v24 = vand.u32 4294901760, %v13087_v55  ;;  %v16690_v34 = vand.u32 4294901760, %v13092_v20  ;;  %v13234_v28 = vld [vmem:[%s15712_s6 + $0x2e0] sm:$0xff] }
  0xc3   : > { %9701 = vmatprep.subr.bf16.mxu0 %v13046_v54  ;;  %16680 = vst [vmem:[#allocation85_spill] sm:$0xff] %v13173_v27  ;;  %9441 = vmatprep.subr.bf16.mxu1 %v12686_v32  ;;  %v13190_v54 = vpack.c.bf16 %v16684_v41, %v16683_v50  ;;  %v13196_v3 = vpack.c.bf16 %v16687_v31, %v16686_v29  ;;  %v13208_v32 = vld [vmem:[%s15712_s6 + $0x2d0] sm:$0xff]  ;;  %v13215_v29 = vld [vmem:[%s15712_s6 + $0x2e8] sm:$0xff]  ;;  %v13220_v31 = vld [vmem:[%s15712_s6 + $0x2f8] sm:$0xff]  ;;  %v13227_v50 = vand.u32 4294901760, %v13141_v36 }
  0xc4   : > { %v13202_v18 = vpack.c.bf16 %v16690_v34, %v16689_v24  ;;  %2315 = vmatmul.mubr.f32.gmra.mrb[2].mxu0 %v12532_v56  ;;  %v16692_v24 = vand.u32 4294901760, %v13094_v51  ;;  %v16694_v41 = vld [vmem:[#allocation93_spill] sm:$0xff]  ;;  %v13239_v56 = vld [vmem:[%s15712_s6 + $0x2f0] sm:$0xff] }
  0xc5   : > { %16685 = vst [vmem:[#allocation173_spill] sm:$0xff] %v13190_v54  ;;  %16688 = vst [vmem:[#allocation174_spill] sm:$0xff] %v13196_v3  ;;  %1116 = vmatmul.mubr.f32.vlgmr.msra.gmra.mrb[0].mxu1 %v16694_v41  ;;  %9703 = vmatpush1.bf16.msra.mxu0 %v13052_v22  ;;  %v2482_v41 = vsub.f32 %v13105_v33, %v16696_v40  ;;  %v16697_v22 = vand.u32 4294901760, %v13107_v43  ;;  %v2454_v35 = vsub.f32 %v13141_v36, %v13227_v50 }
  0xc6   : > { %16691 = vst [vmem:[#allocation175_spill] sm:$0xff] %v13202_v18  ;;  %v2476_v34 = vsub.f32 %v13094_v51, %v16692_v24  ;;  %16693 = vst [vmem:[#allocation176_spill] sm:$0xff] %v13227_v50  ;;  %v2488_v24 = vsub.f32 %v13103_v42, %v16695_v19  ;;  %9443 = vmatpush1.bf16.msra.mxu1 %v12692_v16  ;;  %9705 = vmatprep.subr.bf16.mxu0 %v13075_v21  ;;  %v16698_v42 = vand.u32 4294901760, %v12967_v44 }
  0xc7   : > { %v2494_v11 = vsub.f32 %v13107_v43, %v16697_v22  ;;  %9445 = vmatprep.subr.bf16.mxu1 %v12719_v63  ;;  %1121 = vmatprep.mubr.f32.mxu1 %v16424_v59  ;;  %v16699_v16 = vand.u32 4294901760, %v12973_v7  ;;  %v16700_v19 = vand.u32 4294901760, %v12978_v53  ;;  %v16701_v22 = vld [vmem:[#allocation115_spill] sm:$0xff]  ;;  %v16709_v50 = vand.u32 4294901760, %v12990_v6 }
  0xc8   : > { %v13259_v40 = vsub.f32 %v12967_v44, %v16698_v42  ;;  %2450 = vmatprep.mubr.f32.mxu0 %v16424_v59  ;;  %v2477_v63 = vand.u32 4294901760, %v2476_v34  ;;  %v16703_v34 = vand.u32 4294901760, %v13136_v26  ;;  %v16704_v44 = vand.u32 4294901760, %v13147_v61 }
  0xc9   : > { %v13268_v60 = vsub.f32 %v12973_v7, %v16699_v16  ;;  %v13273_v9 = vsub.f32 %v12978_v53, %v16700_v19  ;;  %9707 = vmatpush1.bf16.msra.mxu0 %v13101_v52  ;;  %1125 = vmatmul.mubr.f32.gmra.mrb[2].mxu1 %v16701_v22  ;;  %v2489_v16 = vand.u32 4294901760, %v2488_v24  ;;  %v2483_v7 = vand.u32 4294901760, %v2482_v41 }
  0xca   : > { %v2495_v21 = vand.u32 4294901760, %v2494_v11  ;;  %v16702_v53 = vand.u32 4294901760, %v13161_v46  ;;  %9447 = vmatpush1.bf16.msra.mxu1 %v12725_v1  ;;  %9709 = vmatprep.subr.bf16.mxu0 %v13125_v17  ;;  %v13293_v42 = vpack.c.bf16 %v16704_v44, %v16703_v34  ;;  %v16706_v22 = vand.u32 4294901760, %v13178_v10 }
  0xcb   : > { %v16707_v11 = vand.u32 4294901760, %v13183_v0  ;;  %9449 = vmatprep.subr.bf16.mxu1 %v12742_v13  ;;  %1291 = vmatprep.mubr.f32.mxu1 %v16424_v59  ;;  %v16708_v34 = vand.u32 4294901760, %v12985_v30  ;;  %v16711_v13 = vand.u32 4294901760, %v13208_v32  ;;  %v16713_v1 = vand.u32 4294901760, %v13215_v29 }
  0xcc   : > { %v13285_v19 = vsub.f32 %v13161_v46, %v16702_v53  ;;  %16705 = vst [vmem:[#allocation177_spill] sm:$0xff] %v13293_v42  ;;  %v13298_v41 = vsub.f32 %v13178_v10, %v16706_v22  ;;  %v16710_v53 = vand.u32 4294901760, %v13152_v38  ;;  %v16714_v44 = vand.u32 4294901760, %v13220_v31 }
  0xcd   : > { %v13303_v24 = vsub.f32 %v13183_v0, %v16707_v11  ;;  %v13313_v22 = vsub.f32 %v12985_v30, %v16708_v34  ;;  %v13318_v11 = vsub.f32 %v12990_v6, %v16709_v50  ;;  %v16716_v30 = vand.u32 4294901760, %v13234_v28  ;;  %9711 = vmatpush1.bf16.msra.mxu0 %v13131_v25 }
  0xce   : > { %v13324_v17 = vpack.c.bf16 %v16711_v13, %v16710_v53  ;;  %v13330_v52 = vpack.c.bf16 %v16714_v44, %v16713_v1  ;;  %v16717_v34 = vand.u32 4294901760, %v13239_v56  ;;  %v16719_v6 = vand.u32 4294901760, %v13002_v62  ;;  %9451 = vmatpush1.bf16.msra.mxu1 %v12748_v14  ;;  %9713 = vmatprep.subr.bf16.mxu0 %v13173_v27 }
  0xcf   : > { %v13344_v13 = vpack.c.bf16 %v2489_v16, %v2477_v63  ;;  %v13346_v53 = vand.u32 4294901760, %v2454_v35  ;;  %v13348_v59 = vpack.c.bf16 %v2495_v21, %v2483_v7  ;;  %v16724_v63 = vand.u32 4294901760, %v13007_v57  ;;  %9453 = vmatprep.subr.bf16.mxu1 %v12773_v48 }
  0xd0   : > { %16712 = vst [vmem:[#allocation178_spill] sm:$0xff] %v13324_v17  ;;  %16715 = vst [vmem:[#allocation179_spill] sm:$0xff] %v13330_v52  ;;  %v13336_v36 = vpack.c.bf16 %v16717_v34, %v16716_v30  ;;  %v13341_v50 = vsub.f32 %v13002_v62, %v16719_v6  ;;  %v16723_v62 = vand.u32 4294901760, %v13259_v40  ;;  %v16725_v21 = vand.u32 4294901760, %v13268_v60 }
  0xd1   : > { %16720 = vst [vmem:[#allocation181_spill] sm:$0xff] %v13344_v13  ;;  %16721 = vst [vmem:[#allocation182_spill] sm:$0xff] %v13346_v53  ;;  %v13363_v35 = vsub.f32 %v13007_v57, %v16724_v63  ;;  %v16726_v7 = vand.u32 4294901760, %v13273_v9  ;;  %v2541_v30 = vand.u32 4294901760, %v13318_v11  ;;  %v16727_v57 = vand.u32 4294901760, %v13015_v45  ;;  %9715 = vmatpush1.bf16.msra.mxu0 %v13190_v54 }
  0xd2   : > { %16718 = vst [vmem:[#allocation180_spill] sm:$0xff] %v13336_v36  ;;  %16722 = vst [vmem:[#allocation183_spill] sm:$0xff] %v13348_v59  ;;  %v13358_v34 = vsub.f32 %v13259_v40, %v16723_v62  ;;  %v13369_v16 = vsub.f32 %v13268_v60, %v16725_v21  ;;  %v2529_v62 = vand.u32 4294901760, %v13313_v22  ;;  %v16728_v1 = vand.u32 4294901760, %v13020_v58  ;;  %9455 = vmatpush1.bf16.msra.mxu1 %v12779_v39 }
  0xd3   : > { %v13374_v6 = vsub.f32 %v13273_v9, %v16726_v7  ;;  %v13382_v63 = vsub.f32 %v13015_v45, %v16727_v57  ;;  %v16729_v48 = vand.u32 4294901760, %v13034_v5  ;;  %v16730_v14 = vand.u32 4294901760, %v13039_v47  ;;  %9717 = vmatprep.subr.bf16.mxu0 %v13196_v3  ;;  %9457 = vmatprep.subr.bf16.mxu1 %v12794_v15  ;;  %v11219_v15 = vld [vmem:[#allocation3 + $0x9] sm:$0xff] }
  0xd4   : > { %v13387_v21 = vsub.f32 %v13020_v58, %v16728_v1  ;;  %v16731_v45 = vand.u32 4294901760, %v13059_v37  ;;  %v16732_v58 = vand.u32 4294901760, %v13064_v12  ;;  %v16746_v54 = vand.u32 4294901760, %v13105_v33 }
  0xd5   : > { %v13392_v7 = vsub.f32 %v13034_v5, %v16729_v48  ;;  %v13398_v44 = vsub.f32 %v13039_v47, %v16730_v14  ;;  %v16733_v5 = vand.u32 4294901760, %v13069_v2  ;;  %v16734_v14 = vand.u32 4294901760, %v13082_v8  ;;  %9719 = vmatpush1.bf16.msra.mxu0 %v13202_v18 }
  0xd6   : > { %v13403_v57 = vsub.f32 %v13059_v37, %v16731_v45  ;;  %v13408_v1 = vsub.f32 %v13064_v12, %v16732_v58  ;;  %v16735_v45 = vand.u32 4294901760, %v13087_v55  ;;  %v16736_v58 = vand.u32 4294901760, %v13092_v20  ;;  %9459 = vmatpush1.bf16.msra.mxu1 %v12800_v49  ;;  %9721 = vmatprep.subr.bf16.mxu0 %v13293_v42  ;;  %v16743_v49 = vld [vmem:[#allocation169_spill] sm:$0xff] }
  0xd7   : > { %v13413_v48 = vsub.f32 %v13069_v2, %v16733_v5  ;;  %v13421_v37 = vsub.f32 %v13082_v8, %v16734_v14  ;;  %v13436_v47 = vsub.f32 %v13313_v22, %v2529_v62  ;;  %v13439_v8 = vsub.f32 %v13318_v11, %v2541_v30  ;;  %9461 = vmatprep.subr.bf16.mxu1 %v12825_v4 }
  0xd8   : > { %v13426_v12 = vsub.f32 %v13087_v55, %v16735_v45  ;;  %v13431_v2 = vsub.f32 %v13092_v20, %v16736_v58  ;;  %v16737_v14 = vand.u32 4294901760, %v13136_v26  ;;  %v2553_v45 = vand.u32 4294901760, %v13382_v63 }
  0xd9   : > { %v2565_v20 = vand.u32 4294901760, %v13387_v21  ;;  %v13450_v5 = vsub.f32 %v11219_v15, %v13165_v23  ;;  %v16739_v18 = vand.u32 4294901760, %v13147_v61  ;;  %v16742_v15 = vand.u32 4294901760, %v13094_v51  ;;  %9723 = vmatpush1.bf16.msra.mxu0 %v13324_v17 }
  0xda   : > { %v13444_v55 = vsub.f32 %v13136_v26, %v16737_v14  ;;  %v16740_v26 = vand.u32 4294901760, %v13152_v38  ;;  %v16741_v14 = vand.u32 4294901760, %v13208_v32  ;;  %v16744_v42 = vand.u32 4294901760, %v16743_v49  ;;  %9725 = vmatprep.subr.bf16.mxu0 %v13330_v52 }
  0xdb   : > { %16738 = vst [vmem:[#allocation184_spill] sm:$0xff] %v13450_v5  ;;  %v13465_v39 = vsub.f32 %v13147_v61, %v16739_v18  ;;  %v13486_v18 = vand.u32 4294901760, %v13450_v5  ;;  %v16747_v4 = vand.u32 4294901760, %v13107_v43  ;;  %v16752_v27 = vand.u32 4294901760, %v13183_v0 }
  0xdc   : > { %v13472_v3 = vsub.f32 %v13152_v38, %v16740_v26  ;;  %v13477_v58 = vsub.f32 %v13208_v32, %v16741_v14  ;;  %v13483_v61 = vpack.c.bf16 %v16744_v42, %v16742_v15  ;;  %v16749_v26 = vand.u32 4294901760, %v13161_v46 }
  0xdd   : > { %v13492_v38 = vpack.c.bf16 %v16747_v4, %v16746_v54  ;;  %v16750_v32 = vand.u32 4294901760, %v13178_v10  ;;  %v16753_v42 = vand.u32 4294901760, %v13259_v40  ;;  %v16756_v4 = vand.u32 4294901760, %v13268_v60  ;;  %9727 = vmatpush1.bf16.msra.mxu0 %v13336_v36 }
  0xde   : > { %16745 = vst [vmem:[#allocation169_spill] sm:$0xff] %v13483_v61  ;;  %v16755_v61 = vand.u32 4294901760, %v13215_v29  ;;  %v16757_v54 = vand.u32 4294901760, %v13273_v9  ;;  %9729 = vmatprep.subr.bf16.mxu0 %v13344_v13 }
  0xdf   : > { %16748 = vst [vmem:[#allocation185_spill] sm:$0xff] %v13492_v38  ;;  %v13498_v14 = vpack.c.bf16 %v16750_v32, %v16749_v26  ;;  %v13504_v15 = vpack.c.bf16 %v16753_v42, %v16752_v27  ;;  %v13518_v26 = vpack.c.bf16 %v2541_v30, %v2529_v62  ;;  %v16760_v32 = vand.u32 4294901760, %v13341_v50 }
  0xe0   : > { %v13510_v25 = vsub.f32 %v13215_v29, %v16755_v61  ;;  %v13516_v38 = vpack.c.bf16 %v16757_v54, %v16756_v4  ;;  %v16761_v27 = vand.u32 4294901760, %v13363_v35  ;;  %v16764_v61 = vand.u32 4294901760, %v13220_v31  ;;  %2456 = vmatmul.mubr.f32.vlgmr.msra.gmra.mrb[0].mxu0 %v13346_v53  ;;  %v16812_v53 = vld [vmem:[#allocation89_spill] sm:$0xff] }
  0xe1   : > { %16751 = vst [vmem:[#allocation186_spill] sm:$0xff] %v13498_v14  ;;  %16754 = vst [vmem:[#allocation187_spill] sm:$0xff] %v13504_v15  ;;  %v16763_v15 = vld [vmem:[#allocation150_spill] sm:$0xff]  ;;  %v13534_v4 = vpack.c.bf16 %v2565_v20, %v2553_v45  ;;  %v16766_v30 = vand.u32 4294901760, %v13392_v7  ;;  %v16767_v62 = vand.u32 4294901760, %v13398_v44  ;;  %v16771_v29 = vand.u32 4294901760, %v13408_v1  ;;  %9731 = vmatpush1.bf16.msra.mxu0 %v13348_v59 }
  0xe2   : > { %16758 = vst [vmem:[#allocation188_spill] sm:$0xff] %v13516_v38  ;;  %16759 = vst [vmem:[#allocation189_spill] sm:$0xff] %v13518_v26  ;;  %v13524_v42 = vpack.c.bf16 %v16761_v27, %v16760_v32  ;;  %9463 = vmatpush1.bf16.msra.mxu1 %v16763_v15  ;;  %v13532_v14 = vsub.f32 %v13220_v31, %v16764_v61  ;;  %v16769_v32 = vld [vmem:[#allocation152_spill] sm:$0xff]  ;;  %v16770_v15 = vand.u32 4294901760, %v13403_v57  ;;  %v16773_v31 = vand.u32 4294901760, %v13413_v48 }
  0xe3   : > { %16765 = vst [vmem:[#allocation191_spill] sm:$0xff] %v13534_v4  ;;  %v13540_v54 = vpack.c.bf16 %v16767_v62, %v16766_v30  ;;  %9465 = vmatprep.subr.bf16.mxu1 %v16769_v32  ;;  %v16774_v61 = vand.u32 4294901760, %v13421_v37  ;;  %v16776_v26 = vand.u32 4294901760, %v13426_v12  ;;  %v16777_v30 = vand.u32 4294901760, %v13431_v2 }
  0xe4   : > { %16762 = vst [vmem:[#allocation190_spill] sm:$0xff] %v13524_v42  ;;  %v13548_v42 = vpack.c.bf16 %v16771_v29, %v16770_v15  ;;  %v2465_v32 = vsub.f32 %v13450_v5, %v13486_v18  ;;  %v16779_v15 = vand.u32 4294901760, %v13234_v28  ;;  %v16790_v38 = vand.u32 4294901760, %v13472_v3 }
  0xe5   : > { %16768 = vst [vmem:[#allocation192_spill] sm:$0xff] %v13540_v54  ;;  %v13554_v4 = vpack.c.bf16 %v16774_v61, %v16773_v31  ;;  %v13560_v62 = vpack.c.bf16 %v16777_v30, %v16776_v26  ;;  %v2525_v26 = vand.u32 4294901760, %v13369_v16  ;;  %v2537_v61 = vand.u32 4294901760, %v13374_v6 }
  0xe6   : > { %16772 = vst [vmem:[#allocation193_spill] sm:$0xff] %v13548_v42  ;;  %v13568_v29 = vsub.f32 %v13234_v28, %v16779_v15  ;;  %v16780_v42 = vand.u32 4294901760, %v13239_v56  ;;  %v16781_v30 = vand.u32 4294901760, %v13341_v50  ;;  %v16783_v28 = vand.u32 4294901760, %v13465_v39 }
  0xe7   : > { %16775 = vst [vmem:[#allocation194_spill] sm:$0xff] %v13554_v4  ;;  %16778 = vst [vmem:[#allocation195_spill] sm:$0xff] %v13560_v62  ;;  %v16782_v62 = vand.u32 4294901760, %v13444_v55  ;;  %v16785_v4 = vld [vmem:[#allocation153_spill] sm:$0xff]  ;;  %v16787_v16 = vand.u32 4294901760, %v13298_v41  ;;  %v2531_v6 = vand.u32 4294901760, %v13436_v47  ;;  %v2554_v41 = vsub.f32 %v13382_v63, %v2553_v45 }
  0xe8   : > { %v13573_v31 = vsub.f32 %v13239_v56, %v16780_v42  ;;  %v2548_v27 = vsub.f32 %v13341_v50, %v16781_v30  ;;  %9467 = vmatpush1.bf16.msra.mxu1 %v16785_v4  ;;  %v16786_v56 = vand.u32 4294901760, %v13285_v19  ;;  %v16789_v30 = vand.u32 4294901760, %v13363_v35  ;;  %v16793_v4 = vld [vmem:[#allocation157_spill] sm:$0xff] }
  0xe9   : > { %v13585_v15 = vpack.c.bf16 %v16783_v28, %v16782_v62  ;;  %v16791_v62 = vand.u32 4294901760, %v13477_v58  ;;  %9469 = vmatprep.subr.bf16.mxu1 %v16793_v4  ;;  %v2543_v19 = vand.u32 4294901760, %v13439_v8  ;;  %v16795_v8 = vand.u32 4294901760, %v13303_v24 }
  0xea   : > { %v13593_v42 = vpack.c.bf16 %v16787_v16, %v16786_v56  ;;  %v2560_v54 = vsub.f32 %v13363_v35, %v16789_v30  ;;  %v2566_v16 = vsub.f32 %v13387_v21, %v2565_v20  ;;  %v13612_v30 = vand.u32 4294901760, %v2465_v32 }
  0xeb   : > { %16784 = vst [vmem:[#allocation196_spill] sm:$0xff] %v13585_v15  ;;  %v13603_v28 = vpack.c.bf16 %v16791_v62, %v16790_v38  ;;  %v16796_v45 = vand.u32 4294901760, %v13358_v34  ;;  %v13623_v56 = vpack.c.bf16 %v2537_v61, %v2525_v26  ;;  %v2549_v47 = vand.u32 4294901760, %v2548_v27  ;;  %v16803_v38 = vld [vmem:[#allocation158_spill] sm:$0xff] }
  0xec   : > { %16788 = vst [vmem:[#allocation197_spill] sm:$0xff] %v13593_v42  ;;  %16794 = vst [vmem:[#allocation199_spill] sm:$0xff] %v13612_v30  ;;  %v16799_v4 = vmov 0.0   ;;  %v16800_v20 = vand.u32 4294901760, %v13510_v25  ;;  %v16801_v32 = vand.u32 4294901760, %v13532_v14  ;;  %9471 = vmatpush1.bf16.msra.mxu1 %v16803_v38  ;;  %9733 = vmatprep.subr.bf16.mxu0 %v13593_v42  ;;  %v2561_v24 = vand.u32 4294901760, %v2560_v54 }
  0xed   : > { %16792 = vst [vmem:[#allocation198_spill] sm:$0xff] %v13603_v28  ;;  %v13621_v62 = vpack.c.bf16 %v16796_v45, %v16795_v8  ;;  %16798 = vst [vmem:[#allocation201_spill] sm:$0xff] %v13623_v56  ;;  %2461 = vmatprep.mubr.f32.mxu0 %v16799_v4  ;;  %v16804_v34 = vand.u32 4294901760, %v13392_v7  ;;  %v16805_v26 = vand.u32 4294901760, %v13398_v44  ;;  %v16806_v61 = vand.u32 4294901760, %v13568_v29 }
  0xee   : > { %v13630_v13 = vpack.c.bf16 %v16801_v32, %v16800_v20  ;;  %v16807_v45 = vand.u32 4294901760, %v13573_v31  ;;  %v16809_v20 = vld [vmem:[#allocation5_spill] sm:$0xff]  ;;  %v13647_v32 = vpack.c.bf16 %v2543_v19, %v2531_v6  ;;  %v2555_v42 = vand.u32 4294901760, %v2554_v41  ;;  %2467 = vmatmul.mubr.f32.gmra.mrb[2].mxu0 %v13612_v30 }
  0xef   : > { %16797 = vst [vmem:[#allocation200_spill] sm:$0xff] %v13621_v62  ;;  %v2572_v8 = vsub.f32 %v13392_v7, %v16804_v34  ;;  %v2584_v27 = vsub.f32 %v13398_v44, %v16805_v26  ;;  %9473 = vmatprep.subr.bf16.mxu1 %v16809_v20  ;;  %v2567_v54 = vand.u32 4294901760, %v2566_v16  ;;  %v16811_v38 = vand.u32 4294901760, %v13403_v57  ;;  %1293 = vmatmul.mubr.f32.vlgmr.msra.gmra.mrb[0].mxu1 %v16812_v53  ;;  %v16816_v16 = vld [vmem:[#allocation6_spill] sm:$0xff] }
  0xf0   : > { %16802 = vst [vmem:[#allocation202_spill] sm:$0xff] %v13630_v13  ;;  %v13644_v59 = vpack.c.bf16 %v16807_v45, %v16806_v61  ;;  %16810 = vst [vmem:[#allocation5_spill] sm:$0xff] %v13647_v32  ;;  %9735 = vmatpush1.bf16.msra.mxu0 %v13621_v62  ;;  %v16813_v26 = vand.u32 4294901760, %v13408_v1  ;;  %v16814_v45 = vand.u32 4294901760, %v13413_v48  ;;  %v16815_v19 = vand.u32 4294901760, %v13421_v37  ;;  %9475 = vmatpush1.bf16.msra.mxu1 %v16816_v16 }
  0xf1   : > { %v2578_v34 = vsub.f32 %v13403_v57, %v16811_v38  ;;  %9737 = vmatprep.subr.bf16.mxu0 %v13623_v56  ;;  %v13666_v38 = vpack.c.bf16 %v2561_v24, %v2549_v47  ;;  %v2573_v30 = vand.u32 4294901760, %v2572_v8  ;;  %v2585_v62 = vand.u32 4294901760, %v2584_v27  ;;  %1298 = vmatprep.mubr.f32.mxu1 %v16799_v4  ;;  %v16822_v56 = vld [vmem:[#allocation109_spill] sm:$0xff] }
  0xf2   : > { %16808 = vst [vmem:[#allocation203_spill] sm:$0xff] %v13644_v59  ;;  %v2590_v61 = vsub.f32 %v13408_v1, %v16813_v26  ;;  %v2596_v6 = vsub.f32 %v13413_v48, %v16814_v45  ;;  %v2608_v41 = vsub.f32 %v13421_v37, %v16815_v19  ;;  %v16818_v59 = vld [vmem:[#allocation13_spill] sm:$0xff]  ;;  %v13670_v26 = vpack.c.bf16 %v2567_v54, %v2555_v42  ;;  %v16823_v42 = vld [vmem:[#allocation14_spill] sm:$0xff] }
  0xf3   : > { %16817 = vst [vmem:[#allocation6_spill] sm:$0xff] %v13666_v38  ;;  %9477 = vmatprep.subr.bf16.mxu1 %v16818_v59  ;;  %v16820_v45 = vand.u32 4294901760, %v13426_v12  ;;  %v16821_v19 = vand.u32 4294901760, %v13431_v2  ;;  %2697 = vmatprep.mubr.f32.mxu0 %v16799_v4  ;;  %v2579_v47 = vand.u32 4294901760, %v2578_v34  ;;  %v13683_v54 = vpack.c.bf16 %v2585_v62, %v2573_v30  ;;  %v16827_v34 = vld [vmem:[#allocation20_spill] sm:$0xff] }
  0xf4   : > { %16819 = vst [vmem:[#allocation13_spill] sm:$0xff] %v13670_v26  ;;  %9739 = vmatpush1.bf16.msra.mxu0 %v13647_v32  ;;  %v2591_v24 = vand.u32 4294901760, %v2590_v61  ;;  %v2597_v8 = vand.u32 4294901760, %v2596_v6  ;;  %v2609_v27 = vand.u32 4294901760, %v2608_v41  ;;  %1300 = vmatmul.mubr.f32.gmra.mrb[2].mxu1 %v16822_v56  ;;  %v16826_v15 = vand.u32 4294901760, %v13465_v39 }
  0xf5   : > { %v2602_v13 = vsub.f32 %v13426_v12, %v16820_v45  ;;  %v2614_v28 = vsub.f32 %v13431_v2, %v16821_v19  ;;  %9479 = vmatpush1.bf16.msra.mxu1 %v16823_v42  ;;  %9741 = vmatprep.subr.bf16.mxu0 %v13666_v38  ;;  %16824 = vst [vmem:[#allocation204_spill] sm:$0xff] %v13683_v54  ;;  %v16825_v45 = vand.u32 4294901760, %v13444_v55  ;;  %v16830_v62 = vand.u32 4294901760, %v13472_v3  ;;  %v16832_v42 = vld [vmem:[#allocation22_spill] sm:$0xff] }
  0xf6   : > { %v2632_v32 = vsub.f32 %v13465_v39, %v16826_v15  ;;  %9481 = vmatprep.subr.bf16.mxu1 %v16827_v34  ;;  %1402 = vmatprep.mubr.f32.mxu1 %v16799_v4  ;;  %v13694_v41 = vpack.c.bf16 %v2591_v24, %v2579_v47  ;;  %v13696_v30 = vpack.c.bf16 %v2609_v27, %v2597_v8  ;;  %v16831_v38 = vand.u32 4294901760, %v13477_v58  ;;  %v16835_v27 = vld [vmem:[#allocation31_spill] sm:$0xff]  ;;  %v16839_v34 = vld [vmem:[#allocation32_spill] sm:$0xff] }
  0xf7   : > { %v2620_v19 = vsub.f32 %v13444_v55, %v16825_v45  ;;  %v2603_v61 = vand.u32 4294901760, %v2602_v13  ;;  %v2615_v6 = vand.u32 4294901760, %v2614_v28  ;;  %v2626_v45 = vsub.f32 %v13472_v3, %v16830_v62 }
  0xf8   : > { %9743 = vmatpush1.bf16.msra.mxu0 %v13670_v26  ;;  %16828 = vst [vmem:[#allocation205_spill] sm:$0xff] %v13694_v41  ;;  %16829 = vst [vmem:[#allocation206_spill] sm:$0xff] %v13696_v30  ;;  %v2638_v15 = vsub.f32 %v13477_v58, %v16831_v38  ;;  %v2633_v28 = vand.u32 4294901760, %v2632_v32  ;;  %v16833_v26 = vand.u32 4294901760, %v13510_v25  ;;  %v16834_v24 = vand.u32 4294901760, %v13532_v14 }
  0xf9   : > { %9483 = vmatpush1.bf16.msra.mxu1 %v16832_v42  ;;  %9745 = vmatprep.subr.bf16.mxu0 %v13683_v54  ;;  %v2621_v13 = vand.u32 4294901760, %v2620_v19  ;;  %v13713_v62 = vpack.c.bf16 %v2615_v6, %v2603_v61  ;;  %v2627_v38 = vand.u32 4294901760, %v2626_v45  ;;  %v16837_v54 = vand.u32 4294901760, %v13568_v29 }
  0xfa   : > { %v2644_v47 = vsub.f32 %v13510_v25, %v16833_v26  ;;  %v2656_v8 = vsub.f32 %v13532_v14, %v16834_v24  ;;  %9485 = vmatprep.subr.bf16.mxu1 %v16835_v27  ;;  %v2639_v42 = vand.u32 4294901760, %v2638_v15  ;;  %v16838_v19 = vand.u32 4294901760, %v13573_v31  ;;  %v16841_v27 = vld [vmem:[#allocation40_spill] sm:$0xff] }
  0xfb   : > { %16836 = vst [vmem:[#allocation207_spill] sm:$0xff] %v13713_v62  ;;  %v2650_v32 = vsub.f32 %v13568_v29, %v16837_v54  ;;  %v13724_v24 = vpack.c.bf16 %v2633_v28, %v2621_v13  ;;  %v16847_v28 = vld [vmem:[#allocation53_spill] sm:$0xff] }
  0xfc   : > { %9747 = vmatpush1.bf16.msra.mxu0 %v13694_v41  ;;  %v2662_v26 = vsub.f32 %v13573_v31, %v16838_v19  ;;  %v2645_v61 = vand.u32 4294901760, %v2644_v47  ;;  %v2657_v6 = vand.u32 4294901760, %v2656_v8  ;;  %v13728_v45 = vpack.c.bf16 %v2639_v42, %v2627_v38  ;;  %v16843_v41 = vld [vmem:[#allocation42_spill] sm:$0xff]  ;;  %v16849_v47 = vld [vmem:[#allocation61_spill] sm:$0xff]  ;;  %v16851_v38 = vld [vmem:[#allocation63_spill] sm:$0xff] }
  0xfd   : > { %9487 = vmatpush1.bf16.msra.mxu1 %v16839_v34  ;;  %9749 = vmatprep.subr.bf16.mxu0 %v13696_v30  ;;  %16840 = vst [vmem:[#allocation208_spill] sm:$0xff] %v13724_v24  ;;  %v2651_v15 = vand.u32 4294901760, %v2650_v32  ;;  %v16845_v34 = vld [vmem:[#allocation51_spill] sm:$0xff]  ;;  %v13742_v42 = vpack.c.bf16 %v16743_v49, %v13094_v51  ;;  %v13748_v8 = vpack.c.bf16 %v13107_v43, %v13105_v33  ;;  %v16854_v49 = vld [vmem:[#allocation86_spill] sm:$0xff]  ;;  %v13767_v43 = vld [vmem:[%s15713_s7 + $0x80] sm:$0xff] }
  0xfe   : > { %9489 = vmatprep.subr.bf16.mxu1 %v16841_v27  ;;  %16842 = vst [vmem:[#allocation40_spill] sm:$0xff] %v13728_v45  ;;  %v2663_v54 = vand.u32 4294901760, %v2662_v26  ;;  %v13732_v19 = vpack.c.bf16 %v2657_v6, %v2645_v61  ;;  %v13754_v32 = vpack.c.bf16 %v13178_v10, %v13161_v46  ;;  %v16853_v26 = vld [vmem:[#allocation75_spill] sm:$0xff]  ;;  %v13761_v51 = vpack.c.bf16 %v13259_v40, %v13183_v0  ;;  %v13772_v33 = vld [vmem:[%s15713_s7 + $0x88] sm:$0xff]  ;;  %v16856_v10 = vld [vmem:[#allocation76_spill] sm:$0xff] }
  0xff   : > { %16848 = vst [vmem:[#allocation53_spill] sm:$0xff] %v13742_v42  ;;  %16850 = vst [vmem:[#allocation61_spill] sm:$0xff] %v13748_v8  ;;  %v13778_v46 = vpack.c.bf16 %v13273_v9, %v13268_v60  ;;  %v16858_v0 = vld [vmem:[#allocation23_spill] sm:$0xff]  ;;  %v16099_v40 = vand.u32 4294901760, %v13767_v43  ;;  %v16098_v61 = vand.u32 4294901760, %v13772_v33  ;;  %v13788_v6 = vpack.c.bf16 %v13318_v11, %v13313_v22  ;;  %v13793_v60 = vld [vmem:[%s15713_s7 + $0x90] sm:$0xff] }
 0x100   : > { %9751 = vmatpush1.bf16.msra.mxu0 %v13713_v62  ;;  %16844 = vst [vmem:[#allocation42_spill] sm:$0xff] %v13732_v19  ;;  %v13736_v13 = vpack.c.bf16 %v2663_v54, %v2651_v15  ;;  %16852 = vst [vmem:[#allocation63_spill] sm:$0xff] %v13754_v32  ;;  %v13798_v9 = vld [vmem:[%s15713_s7 + $0x98] sm:$0xff]  ;;  %v16860_v15 = vld [vmem:[#allocation26_spill] sm:$0xff]  ;;  %v13804_v54 = vpack.c.bf16 %v13363_v35, %v13341_v50  ;;  %v13820_v50 = vpack.c.bf16 %v13387_v21, %v13382_v63 }
 0x101   : > { %9491 = vmatpush1.bf16.msra.mxu1 %v16843_v41  ;;  %9753 = vmatprep.subr.bf16.mxu0 %v13724_v24  ;;  %16855 = vst [vmem:[#allocation75_spill] sm:$0xff] %v13761_v51  ;;  %16857 = vst [vmem:[#allocation86_spill] sm:$0xff] %v13778_v46  ;;  %v13810_v22 = vpack.c.bf16 %v16098_v61, %v16099_v40  ;;  %v16863_v11 = vld [vmem:[#allocation34_spill] sm:$0xff]  ;;  %v13826_v35 = vld [vmem:[%s15713_s7 + $0xa0] sm:$0xff]  ;;  %v13837_v63 = vpack.c.bf16 %v13398_v44, %v13392_v7 }
 0x102   : > { %9493 = vmatprep.subr.bf16.mxu1 %v16845_v34  ;;  %16846 = vst [vmem:[#allocation51_spill] sm:$0xff] %v13736_v13  ;;  %16859 = vst [vmem:[#allocation76_spill] sm:$0xff] %v13788_v6  ;;  %v13831_v61 = vld [vmem:[%s15713_s7 + $0xa8] sm:$0xff]  ;;  %v13852_v44 = vpack.c.bf16 %v13408_v1, %v13403_v57  ;;  %v13857_v7 = vld [vmem:[%s15713_s7 + $0xb0] sm:$0xff] }
 0x103   : > { %16861 = vst [vmem:[#allocation209_spill] sm:$0xff] %v13804_v54  ;;  %16862 = vst [vmem:[#allocation210_spill] sm:$0xff] %v13810_v22  ;;  %v16865_v40 = vld [vmem:[#allocation37_spill] sm:$0xff]  ;;  %v16872_v57 = vand.u32 4294901760, %v13831_v61  ;;  %v16888_v24 = vld [vmem:[#allocation8_spill] sm:$0xff] }
 0x104   : > { %9755 = vmatpush1.bf16.msra.mxu0 %v13728_v45  ;;  %16864 = vst [vmem:[#allocation211_spill] sm:$0xff] %v13820_v50  ;;  %16866 = vst [vmem:[#allocation212_spill] sm:$0xff] %v13837_v63  ;;  %v16887_v45 = vld [vmem:[#allocation78_spill] sm:$0xff]  ;;  %v16889_v62 = vand.u32 4294901760, %v16888_v24  ;;  %v16890_v30 = vld [vmem:[#allocation9_spill] sm:$0xff] }
 0x105   : > { %9495 = vmatpush1.bf16.msra.mxu1 %v16847_v28  ;;  %9757 = vmatprep.subr.bf16.mxu0 %v13732_v19  ;;  %16869 = vst [vmem:[#allocation214_spill] sm:$0xff] %v13852_v44 }
 0x106   : > { %9497 = vmatprep.subr.bf16.mxu1 %v16849_v47 }
 0x108   : > { %9759 = vmatpush1.bf16.msra.mxu0 %v13736_v13 }
 0x109   : > { %9499 = vmatpush1.bf16.msra.mxu1 %v16851_v38  ;;  %9761 = vmatprep.subr.bf16.mxu0 %v13742_v42 }
 0x10a   : > { %9501 = vmatprep.subr.bf16.mxu1 %v16853_v26 }
 0x10b   : > { %2699 = vmatmul.mubr.f32.vlgmr.msra.gmra.mrb[0].mxu0 %v16854_v49 }
 0x10c   : > { %9763 = vmatpush1.bf16.msra.mxu0 %v13748_v8  ;;  %2704 = vmatprep.mubr.f32.mxu0 %v16799_v4  ;;  %v13868_v8 = vpack.c.bf16 %v13421_v37, %v13413_v48  ;;  %v13887_v48 = vld [vmem:[%s15713_s7 + $0xc0] sm:$0xff]  ;;  %v13892_v37 = vld [vmem:[%s15713_s7 + $0xc8] sm:$0xff] }
 0x10d   : > { %9503 = vmatpush1.bf16.msra.mxu1 %v16856_v10  ;;  %9765 = vmatprep.subr.bf16.mxu0 %v13754_v32  ;;  %v16109_v32 = vand.u32 4294901760, %v13826_v35 }
 0x10e   : > { %9505 = vmatprep.subr.bf16.mxu1 %v16858_v0  ;;  %16871 = vst [vmem:[#allocation215_spill] sm:$0xff] %v13868_v8 }
 0x10f   : > { %2706 = vmatmul.mubr.f32.gmra.mrb[2].mxu0 %v13165_v23  ;;  %v13874_v1 = vpack.c.bf16 %v16872_v57, %v16109_v32  ;;  %v16876_v57 = vld [vmem:[#allocation58_spill] sm:$0xff]  ;;  %v13898_v32 = vpack.c.bf16 %v13465_v39, %v13444_v55  ;;  %v13922_v55 = vld [vmem:[%s15713_s7 + $0xd8] sm:$0xff] }
 0x110   : > { %1404 = vmatmul.mubr.f32.vlgmr.msra.gmra.mrb[0].mxu1 %v16812_v53  ;;  %9767 = vmatpush1.bf16.msra.mxu0 %v13761_v51  ;;  %v16104_v51 = vand.u32 4294901760, %v13793_v60  ;;  %v13917_v39 = vld [vmem:[%s15713_s7 + $0xd0] sm:$0xff] }
 0x111   : > { %9507 = vmatpush1.bf16.msra.mxu1 %v16860_v15  ;;  %9769 = vmatprep.subr.bf16.mxu0 %v13778_v46  ;;  %v16103_v46 = vand.u32 4294901760, %v13798_v9  ;;  %16873 = vst [vmem:[#allocation216_spill] sm:$0xff] %v13874_v1  ;;  %16877 = vst [vmem:[#allocation218_spill] sm:$0xff] %v13898_v32  ;;  %v410_v15 = vld [vmem:[%s374_s27] sm:$0xff] }
 0x112   : > { %9509 = vmatprep.subr.bf16.mxu1 %v16863_v11  ;;  %1409 = vmatprep.mubr.f32.mxu1 %v16799_v4 }
 0x113   : > { %2840 = vmatprep.mubr.f32.mxu0 %v16799_v4  ;;  %v13843_v21 = vpack.c.bf16 %v16103_v46, %v16104_v51  ;;  %v13862_v46 = vld [vmem:[%s15713_s7 + $0xb8] sm:$0xff]  ;;  %v16870_v51 = vld [vmem:[#allocation46_spill] sm:$0xff] }
 0x114   : > { %9771 = vmatpush1.bf16.msra.mxu0 %v13788_v6  ;;  %1411 = vmatmul.mubr.f32.gmra.mrb[2].mxu1 %v16822_v56  ;;  %v16868_v6 = vld [vmem:[#allocation43_spill] sm:$0xff]  ;;  %v16113_v42 = vand.u32 4294901760, %v13862_v46  ;;  %v16891_v56 = vand.u32 4294901760, %v16890_v30 }
 0x115   : > { %9511 = vmatpush1.bf16.msra.mxu1 %v16865_v40  ;;  %9773 = vmatprep.subr.bf16.mxu0 %v13804_v54  ;;  %16867 = vst [vmem:[#allocation213_spill] sm:$0xff] %v13843_v21  ;;  %v16114_v54 = vand.u32 4294901760, %v13857_v7 }
 0x116   : > { %9513 = vmatprep.subr.bf16.mxu1 %v16868_v6  ;;  %1513 = vmatprep.mubr.f32.mxu1 %v16799_v4 }
 0x118   : > { %9775 = vmatpush1.bf16.msra.mxu0 %v13820_v50  ;;  %v16874_v50 = vld [vmem:[#allocation55_spill] sm:$0xff] }
 0x119   : > { %9515 = vmatpush1.bf16.msra.mxu1 %v16870_v51  ;;  %9777 = vmatprep.subr.bf16.mxu0 %v13837_v63  ;;  %v13882_v63 = vpack.c.bf16 %v13431_v2, %v13426_v12  ;;  %v13904_v12 = vpack.c.bf16 %v16113_v42, %v16114_v54  ;;  %v16879_v2 = vld [vmem:[#allocation66_spill] sm:$0xff]  ;;  %v16881_v42 = vld [vmem:[#allocation69_spill] sm:$0xff]  ;;  %v13928_v54 = vpack.c.bf16 %v13532_v14, %v13510_v25 }
 0x11a   : > { %9517 = vmatprep.subr.bf16.mxu1 %v16874_v50  ;;  %v1545_v25 = vsub.f32 %v16890_v30, %v16891_v56  ;;  %v16892_v14 = vld [vmem:[#allocation10_spill] sm:$0xff]  ;;  %v13962_v56 = vld [vmem:[%s15713_s7 + $0xe0] sm:$0xff]  ;;  %v16899_v30 = vld [vmem:[#allocation81_spill] sm:$0xff] }
 0x11b   : > { %16875 = vst [vmem:[#allocation217_spill] sm:$0xff] %v13882_v63  ;;  %16878 = vst [vmem:[#allocation219_spill] sm:$0xff] %v13904_v12  ;;  %v16893_v53 = vand.u32 4294901760, %v16892_v14 }
 0x11c   : > { %9779 = vmatpush1.bf16.msra.mxu0 %v13852_v44  ;;  %v16124_v44 = vand.u32 4294901760, %v13887_v48  ;;  %16882 = vst [vmem:[#allocation221_spill] sm:$0xff] %v13928_v54  ;;  %16897 = vst [vmem:[#allocation9_spill] sm:$0xff] %v13962_v56 }
 0x11d   : > { %9519 = vmatpush1.bf16.msra.mxu1 %v16876_v57  ;;  %9781 = vmatprep.subr.bf16.mxu0 %v13868_v8  ;;  %v13912_v8 = vpack.c.bf16 %v13477_v58, %v13472_v3  ;;  %v16883_v3 = vld [vmem:[#allocation7_spill] sm:$0xff] }
 0x11e   : > { %9521 = vmatprep.subr.bf16.mxu1 %v16879_v2  ;;  %v16884_v58 = vand.u32 4294901760, %v16883_v3  ;;  %v1546_v2 = vand.u32 4294901760, %v1545_v25  ;;  %v16911_v25 = vld [vmem:[#allocation88_spill] sm:$0xff] }
 0x11f   : > { %16880 = vst [vmem:[#allocation220_spill] sm:$0xff] %v13912_v8 }
 0x120   : > { %9783 = vmatpush1.bf16.msra.mxu0 %v13882_v63  ;;  %v1539_v13 = vsub.f32 %v16883_v3, %v16884_v58  ;;  %v16885_v63 = vand.u32 4294901760, %v13892_v37  ;;  %v1557_v3 = vsub.f32 %v16892_v14, %v16893_v53  ;;  %v16128_v58 = vand.u32 4294901760, %v13917_v39  ;;  %v13967_v53 = vld [vmem:[%s15713_s7 + $0xe8] sm:$0xff] }
 0x121   : > { %9523 = vmatpush1.bf16.msra.mxu1 %v16881_v42  ;;  %9785 = vmatprep.subr.bf16.mxu0 %v13898_v32  ;;  %v1551_v32 = vsub.f32 %v16888_v24, %v16889_v62  ;;  %v16127_v42 = vand.u32 4294901760, %v13922_v55  ;;  %16898 = vst [vmem:[#allocation10_spill] sm:$0xff] %v13967_v53  ;;  %v16918_v40 = vand.u32 4294901760, %v13967_v53 }
 0x122   : > { %v13937_v19 = vpack.c.bf16 %v16885_v63, %v16124_v44  ;;  %9525 = vmatprep.subr.bf16.mxu1 %v16887_v45  ;;  %v13954_v63 = vpack.c.bf16 %v13573_v31, %v13568_v29  ;;  %v16895_v44 = vld [vmem:[#allocation15_spill] sm:$0xff]  ;;  %v1540_v29 = vand.u32 4294901760, %v1539_v13  ;;  %v16900_v31 = vld [vmem:[#allocation16_spill] sm:$0xff]  ;;  %v1558_v57 = vand.u32 4294901760, %v1557_v3 }
 0x123   : > { %v16896_v62 = vand.u32 4294901760, %v16895_v44  ;;  %v16901_v14 = vand.u32 4294901760, %v16900_v31  ;;  %v1552_v45 = vand.u32 4294901760, %v1551_v32  ;;  %v13994_v32 = vld [vmem:[%s15713_s7 + $0xf0] sm:$0xff]  ;;  %v16912_v3 = vld [vmem:[#allocation163_spill] sm:$0xff] }
 0x124   : > { %16886 = vst [vmem:[#allocation7_spill] sm:$0xff] %v13937_v19  ;;  %9787 = vmatpush1.bf16.msra.mxu0 %v13912_v8  ;;  %16894 = vst [vmem:[#allocation8_spill] sm:$0xff] %v13954_v63  ;;  %v16903_v8 = vld [vmem:[#allocation87_spill] sm:$0xff]  ;;  %v16933_v22 = vand.u32 4294901760, %v13994_v32 }
 0x125   : > { %v1563_v24 = vsub.f32 %v16895_v44, %v16896_v62  ;;  %9527 = vmatpush1.bf16.msra.mxu1 %v16899_v30  ;;  %9789 = vmatprep.subr.bf16.mxu0 %v13928_v54  ;;  %v1575_v44 = vsub.f32 %v16900_v31, %v16901_v14  ;;  %v13978_v62 = vpack.c.bf16 %v16127_v42, %v16128_v58  ;;  %v16904_v30 = vld [vmem:[#allocation17_spill] sm:$0xff]  ;;  %v16906_v31 = vld [vmem:[#allocation100_spill] sm:$0xff]  ;;  %v16907_v42 = vld [vmem:[#allocation18_spill] sm:$0xff] }
 0x126   : > { %9529 = vmatprep.subr.bf16.mxu1 %v16903_v8  ;;  %v16905_v50 = vand.u32 4294901760, %v16904_v30  ;;  %v1518_v14 = vand.u32 4294901760, %v16906_v31  ;;  %v16908_v58 = vand.u32 4294901760, %v16907_v42  ;;  %16909 = vst [vmem:[#allocation16_spill] sm:$0xff] %v13994_v32  ;;  %v16915_v31 = vld [vmem:[#allocation25_spill] sm:$0xff]  ;;  %v14023_v0 = vpack.c.bf16 %v1552_v45, %v1540_v29  ;;  %v16924_v19 = vld [vmem:[#allocation27_spill] sm:$0xff] }
 0x127   : > { %16902 = vst [vmem:[#allocation15_spill] sm:$0xff] %v13978_v62  ;;  %v1564_v6 = vand.u32 4294901760, %v1563_v24  ;;  %v1576_v24 = vand.u32 4294901760, %v1575_v44  ;;  %v16916_v51 = vand.u32 4294901760, %v16915_v31  ;;  %v16920_v44 = vld [vmem:[#allocation102_spill] sm:$0xff]  ;;  %v411_v62 = vld [vmem:[%s374_s27 + $0x8] sm:$0xff] }
 0x128   : > { %v1569_v13 = vsub.f32 %v16904_v30, %v16905_v50  ;;  %9791 = vmatpush1.bf16.msra.mxu0 %v13954_v63  ;;  %v1581_v8 = vsub.f32 %v16907_v42, %v16908_v58  ;;  %v13999_v50 = vld [vmem:[%s15713_s7 + $0xf8] sm:$0xff]  ;;  %v16913_v42 = vld [vmem:[#allocation24_spill] sm:$0xff]  ;;  %v16917_v63 = vand.u32 4294901760, %v13962_v56  ;;  %16921 = vst [vmem:[#allocation18_spill] sm:$0xff] %v14023_v0  ;;  %v16925_v12 = vand.u32 4294901760, %v16924_v19 }
 0x129   : > { %16910 = vst [vmem:[#allocation17_spill] sm:$0xff] %v13999_v50  ;;  %9531 = vmatpush1.bf16.msra.mxu1 %v16911_v25  ;;  %9793 = vmatprep.subr.bf16.mxu0 %v16912_v3  ;;  %v16914_v58 = vand.u32 4294901760, %v16913_v42  ;;  %v1599_v54 = vsub.f32 %v16915_v31, %v16916_v51  ;;  %v8252_v25 = vld [vmem:[%s15710_s4] ss:$0 sm:$0xff]  ;;  %v8253_v45 = vld [vmem:[%s15710_s4 + $0x1] ss:$0 sm:$0xff] }
 0x12a   : > { %v14017_v11 = vpack.c.bf16 %v16918_v40, %v16917_v63  ;;  %9533 = vmatprep.subr.bf16.mxu1 %v16920_v44  ;;  %v417_v51 = vmul.f32 %v8252_v25, %v410_v15  ;;  %v16923_v31 = vld [vmem:[#allocation172_spill] sm:$0xff]  ;;  %v1593_v40 = vsub.f32 %v16924_v19, %v16925_v12  ;;  %v418_v1 = vmul.f32 %v8252_v25, %v411_v62  ;;  %v16929_v44 = vld [vmem:[#allocation110_spill] sm:$0xff]  ;;  %v16932_v62 = vld [vmem:[#allocation165_spill] sm:$0xff] }
 0x12b   : > { %v1587_v30 = vsub.f32 %v16913_v42, %v16914_v58  ;;  %v14025_v42 = vpack.c.bf16 %v1558_v57, %v1546_v2  ;;  %v1570_v58 = vand.u32 4294901760, %v1569_v13  ;;  %2843 = vmatmul.mubr.f32.vlgmr.msra.gmra.mrb[0].mxu0 %v16923_v31  ;;  %v16926_v57 = vld [vmem:[#allocation164_spill] sm:$0xff]  ;;  %v1582_v2 = vand.u32 4294901760, %v1581_v8  ;;  %v16989_v56 = vld [vmem:[#allocation175_spill] sm:$0xff] }
 0x12c   : > { %16919 = vst [vmem:[#allocation100_spill] sm:$0xff] %v14017_v11  ;;  %9795 = vmatpush1.bf16.msra.mxu0 %v16926_v57  ;;  %v16927_v29 = vld [vmem:[#allocation28_spill] sm:$0xff]  ;;  %v16930_v21 = vand.u32 4294901760, %v16929_v44  ;;  %2848 = vmatprep.mubr.f32.mxu0 %v16799_v4  ;;  %v424_v12 = vadd.f32 %v8253_v45, %v417_v51  ;;  %v1600_v63 = vand.u32 4294901760, %v1599_v54  ;;  %v16934_v8 = vand.u32 4294901760, %v13999_v50 }
 0x12d   : > { %16922 = vst [vmem:[#allocation24_spill] sm:$0xff] %v14025_v42  ;;  %v16928_v15 = vand.u32 4294901760, %v16927_v29  ;;  %v16931_v11 = vld [vmem:[#allocation72_spill] sm:$0xff]  ;;  %9797 = vmatprep.subr.bf16.mxu0 %v16932_v62  ;;  %v1588_v25 = vand.u32 4294901760, %v1587_v30 }
 0x12e   : > { %v1528_v19 = vsub.f32 %v16929_v44, %v16930_v21  ;;  %9535 = vmatpush1.bf16.msra.mxu1 %v16931_v11  ;;  %v14050_v31 = vpack.c.bf16 %v16934_v8, %v16933_v22  ;;  %v16937_v21 = vld [vmem:[#allocation33_spill] sm:$0xff]  ;;  %v16939_v11 = vld [vmem:[#allocation35_spill] sm:$0xff]  ;;  %v14061_v54 = vmax.f32 %v424_v12, 0.0  ;;  %v14066_v22 = vpack.c.bf16 %v1582_v2, %v1570_v58 }
 0x12f   : > { %v1605_v13 = vsub.f32 %v16927_v29, %v16928_v15  ;;  %v425_v29 = vadd.f32 %v8253_v45, %v418_v1  ;;  %9537 = vmatprep.subr.bf16.mxu1 %v14023_v0  ;;  %v14053_v15 = vpack.c.bf16 %v1576_v24, %v1564_v6  ;;  %v16938_v44 = vand.u32 4294901760, %v16937_v21  ;;  %2851 = vmatmul.mubr.f32.gmra.mrb[2].mxu0 %v13450_v5  ;;  %v16944_v1 = vld [vmem:[#allocation166_spill] sm:$0xff] }
 0x130   : > { %16935 = vst [vmem:[#allocation25_spill] sm:$0xff] %v14050_v31  ;;  %v16940_v53 = vand.u32 4294901760, %v16939_v11  ;;  %16941 = vst [vmem:[#allocation28_spill] sm:$0xff] %v14061_v54  ;;  %9799 = vmatpush1.bf16.msra.mxu0 %v16944_v1  ;;  %v1594_v6 = vand.u32 4294901760, %v1593_v40  ;;  %v1529_v45 = vand.u32 4294901760, %v1528_v19  ;;  %v14071_v8 = vpack.c.bf16 %v1600_v63, %v1588_v25  ;;  %v16951_v19 = vld [vmem:[#allocation44_spill] sm:$0xff]  ;;  %2953 = vmatprep.mubr.f32.mxu0 %v16799_v4 }
 0x131   : > { %16936 = vst [vmem:[#allocation27_spill] sm:$0xff] %v14053_v15  ;;  %v1611_v51 = vsub.f32 %v16937_v21, %v16938_v44  ;;  %v14064_v50 = vmax.f32 %v425_v29, 0.0  ;;  %1519 = vmatmul.mubr.f32.vlgmr.msra.gmra.mrb[0].mxu1 %v1518_v14  ;;  %16943 = vst [vmem:[#allocation33_spill] sm:$0xff] %v14066_v22  ;;  %v1606_v24 = vand.u32 4294901760, %v1605_v13  ;;  %v16949_v14 = vld [vmem:[#allocation38_spill] sm:$0xff]  ;;  %v16952_v21 = vand.u32 4294901760, %v16951_v19 }
 0x132   : > { %v1623_v30 = vsub.f32 %v16939_v11, %v16940_v53  ;;  %442 = vst [vmem:[#allocation4 + $0x1] sm:$0xff] %v14061_v54  ;;  %9539 = vmatpush1.bf16.msra.mxu1 %v14025_v42  ;;  %16945 = vst [vmem:[#allocation35_spill] sm:$0xff] %v14071_v8  ;;  %v16946_v11 = vld [vmem:[#allocation167_spill] sm:$0xff]  ;;  %v16947_v53 = vld [vmem:[#allocation36_spill] sm:$0xff]  ;;  %v16950_v58 = vand.u32 4294901760, %v16949_v14  ;;  %1524 = vmatprep.mubr.f32.mxu1 %v16799_v4 }
 0x133   : > { %16942 = vst [vmem:[#allocation110_spill] sm:$0xff] %v14064_v50  ;;  %9801 = vmatprep.subr.bf16.mxu0 %v16946_v11  ;;  %v16948_v12 = vand.u32 4294901760, %v16947_v53  ;;  %443 = vst [vmem:[#allocation4 + $0x9] sm:$0xff] %v14064_v50  ;;  %9541 = vmatprep.subr.bf16.mxu1 %v14053_v15  ;;  %v1612_v40 = vand.u32 4294901760, %v1611_v51  ;;  %v1635_v63 = vsub.f32 %v16951_v19, %v16952_v21  ;;  %v16953_v25 = vld [vmem:[#allocation45_spill] sm:$0xff]  ;;  %v16962_v0 = vld [vmem:[#allocation54_spill] sm:$0xff] }
 0x134   : > { %v1629_v2 = vsub.f32 %v16949_v14, %v16950_v58  ;;  %v1624_v13 = vand.u32 4294901760, %v1623_v30  ;;  %v16954_v44 = vand.u32 4294901760, %v16953_v25  ;;  %v16957_v14 = vld [vmem:[#allocation47_spill] sm:$0xff]  ;;  %v16959_v30 = vld [vmem:[#allocation48_spill] sm:$0xff] }
 0x135   : > { %v1617_v29 = vsub.f32 %v16947_v53, %v16948_v12  ;;  %v14090_v53 = vpack.c.bf16 %v1606_v24, %v1594_v6  ;;  %v16956_v12 = vld [vmem:[#allocation168_spill] sm:$0xff]  ;;  %v16958_v58 = vand.u32 4294901760, %v16957_v14  ;;  %v16960_v15 = vand.u32 4294901760, %v16959_v30  ;;  %1530 = vmatmul.mubr.f32.gmra.mrb[2].mxu1 %v1529_v45 }
 0x136   : > { %v1647_v42 = vsub.f32 %v16953_v25, %v16954_v44  ;;  %9803 = vmatpush1.bf16.msra.mxu0 %v16956_v12  ;;  %9543 = vmatpush1.bf16.msra.mxu1 %v14066_v22  ;;  %v1630_v25 = vand.u32 4294901760, %v1629_v2  ;;  %v16961_v44 = vld [vmem:[#allocation170_spill] sm:$0xff]  ;;  %v16963_v6 = vand.u32 4294901760, %v16962_v0  ;;  %v16964_v31 = vld [vmem:[#allocation56_spill] sm:$0xff] }
 0x137   : > { %16955 = vst [vmem:[#allocation36_spill] sm:$0xff] %v14090_v53  ;;  %v1641_v51 = vsub.f32 %v16957_v14, %v16958_v58  ;;  %v1653_v19 = vsub.f32 %v16959_v30, %v16960_v15  ;;  %v1618_v21 = vand.u32 4294901760, %v1617_v29  ;;  %9805 = vmatprep.subr.bf16.mxu0 %v16961_v44  ;;  %v16965_v5 = vand.u32 4294901760, %v16964_v31  ;;  %9545 = vmatprep.subr.bf16.mxu1 %v14071_v8  ;;  %v16967_v29 = vld [vmem:[#allocation171_spill] sm:$0xff]  ;;  %v16968_v30 = vld [vmem:[#allocation57_spill] sm:$0xff] }
 0x138   : > { %v1659_v24 = vsub.f32 %v16962_v0, %v16963_v6  ;;  %v14108_v14 = vpack.c.bf16 %v1624_v13, %v1612_v40  ;;  %v1636_v15 = vand.u32 4294901760, %v1635_v63  ;;  %v1648_v45 = vand.u32 4294901760, %v1647_v42  ;;  %1760 = vmatprep.mubr.f32.mxu1 %v16799_v4  ;;  %v16970_v6 = vld [vmem:[#allocation59_spill] sm:$0xff]  ;;  %v16973_v40 = vld [vmem:[#allocation85_spill] sm:$0xff] }
 0x139   : > { %v1671_v50 = vsub.f32 %v16964_v31, %v16965_v5  ;;  %v1642_v2 = vand.u32 4294901760, %v1641_v51  ;;  %v1654_v58 = vand.u32 4294901760, %v1653_v19  ;;  %v16969_v22 = vand.u32 4294901760, %v16968_v30  ;;  %v16975_v51 = vld [vmem:[#allocation67_spill] sm:$0xff] }
 0x13a   : > { %16966 = vst [vmem:[#allocation38_spill] sm:$0xff] %v14108_v14  ;;  %9807 = vmatpush1.bf16.msra.mxu0 %v16967_v29  ;;  %v16971_v32 = vand.u32 4294901760, %v16970_v6  ;;  %9547 = vmatpush1.bf16.msra.mxu1 %v14090_v53  ;;  %v14119_v31 = vpack.c.bf16 %v1630_v25, %v1618_v21  ;;  %v1660_v42 = vand.u32 4294901760, %v1659_v24  ;;  %v14123_v63 = vpack.c.bf16 %v1648_v45, %v1636_v15  ;;  %v16979_v21 = vld [vmem:[#allocation173_spill] sm:$0xff]  ;;  %v16980_v24 = vld [vmem:[#allocation174_spill] sm:$0xff] }
 0x13b   : > { %v1665_v0 = vsub.f32 %v16968_v30, %v16969_v22  ;;  %9809 = vmatprep.subr.bf16.mxu0 %v16973_v40  ;;  %v1672_v13 = vand.u32 4294901760, %v1671_v50  ;;  %9549 = vmatprep.subr.bf16.mxu1 %v14108_v14  ;;  %v16976_v19 = vand.u32 4294901760, %v16975_v51  ;;  %v16977_v30 = vld [vmem:[#allocation68_spill] sm:$0xff]  ;;  %v16981_v15 = vld [vmem:[#allocation70_spill] sm:$0xff] }
 0x13c   : > { %v1677_v5 = vsub.f32 %v16970_v6, %v16971_v32  ;;  %16972 = vst [vmem:[#allocation44_spill] sm:$0xff] %v14119_v31  ;;  %16974 = vst [vmem:[#allocation45_spill] sm:$0xff] %v14123_v63  ;;  %v16978_v8 = vand.u32 4294901760, %v16977_v30  ;;  %v14131_v6 = vpack.c.bf16 %v1654_v58, %v1642_v2  ;;  %v16982_v45 = vand.u32 4294901760, %v16981_v15 }
 0x13d   : > { %v1683_v22 = vsub.f32 %v16975_v51, %v16976_v19  ;;  %v1666_v25 = vand.u32 4294901760, %v1665_v0  ;;  %v14135_v50 = vpack.c.bf16 %v1672_v13, %v1660_v42  ;;  %v16983_v19 = vld [vmem:[#allocation71_spill] sm:$0xff]  ;;  %v16985_v0 = vld [vmem:[#allocation77_spill] sm:$0xff] }
 0x13e   : > { %v1695_v32 = vsub.f32 %v16977_v30, %v16978_v8  ;;  %9811 = vmatpush1.bf16.msra.mxu0 %v16979_v21  ;;  %v1678_v53 = vand.u32 4294901760, %v1677_v5  ;;  %9551 = vmatpush1.bf16.msra.mxu1 %v14119_v31  ;;  %v1689_v51 = vsub.f32 %v16981_v15, %v16982_v45  ;;  %v16984_v14 = vand.u32 4294901760, %v16983_v19  ;;  %v16987_v42 = vld [vmem:[#allocation79_spill] sm:$0xff]  ;;  %v16990_v45 = vld [vmem:[#allocation177_spill] sm:$0xff] }
 0x13f   : > { %9813 = vmatprep.subr.bf16.mxu0 %v16980_v24  ;;  %9553 = vmatprep.subr.bf16.mxu1 %v14123_v63  ;;  %v1684_v2 = vand.u32 4294901760, %v1683_v22  ;;  %v16986_v5 = vand.u32 4294901760, %v16985_v0  ;;  %v16988_v13 = vand.u32 4294901760, %v16987_v42  ;;  %v16991_v22 = vld [vmem:[#allocation80_spill] sm:$0xff]  ;;  %v16993_v63 = vld [vmem:[#allocation82_spill] sm:$0xff] }
 0x140   : > { %v1701_v8 = vsub.f32 %v16983_v19, %v16984_v14  ;;  %v1696_v58 = vand.u32 4294901760, %v1695_v32  ;;  %v14151_v54 = vpack.c.bf16 %v1678_v53, %v1666_v25  ;;  %v1690_v15 = vand.u32 4294901760, %v1689_v51 }
 0x141   : > { %v1707_v30 = vsub.f32 %v16985_v0, %v16986_v5  ;;  %v1719_v31 = vsub.f32 %v16987_v42, %v16988_v13  ;;  %v16992_v32 = vand.u32 4294901760, %v16991_v22  ;;  %v16994_v0 = vand.u32 4294901760, %v16993_v63 }
 0x142   : > { %9815 = vmatpush1.bf16.msra.mxu0 %v16989_v56  ;;  %9555 = vmatpush1.bf16.msra.mxu1 %v14131_v6  ;;  %v1702_v14 = vand.u32 4294901760, %v1701_v8  ;;  %v14163_v53 = vpack.c.bf16 %v1696_v58, %v1684_v2  ;;  %v16996_v2 = vld [vmem:[#allocation176_spill] sm:$0xff]  ;;  %v16997_v58 = vld [vmem:[#allocation185_spill] sm:$0xff] }
 0x143   : > { %9817 = vmatprep.subr.bf16.mxu0 %v16990_v45  ;;  %v1713_v19 = vsub.f32 %v16991_v22, %v16992_v32  ;;  %v1725_v5 = vsub.f32 %v16993_v63, %v16994_v0  ;;  %9557 = vmatprep.subr.bf16.mxu1 %v14135_v50  ;;  %v1708_v25 = vand.u32 4294901760, %v1707_v30  ;;  %v1720_v42 = vand.u32 4294901760, %v1719_v31  ;;  %v16995_v31 = vld [vmem:[#allocation169_spill] sm:$0xff]  ;;  %v16998_v30 = vld [vmem:[#allocation186_spill] sm:$0xff]  ;;  %v17001_v32 = vld [vmem:[#allocation188_spill] sm:$0xff] }
 0x144   : > { %v14167_v51 = vpack.c.bf16 %v1702_v14, %v1690_v15  ;;  %v16999_v15 = vld [vmem:[#allocation97_spill] sm:$0xff]  ;;  %v17000_v14 = vld [vmem:[#allocation187_spill] sm:$0xff] }
 0x145   : > { %v1714_v8 = vand.u32 4294901760, %v1713_v19  ;;  %v1726_v13 = vand.u32 4294901760, %v1725_v5  ;;  %v14171_v22 = vpack.c.bf16 %v1720_v42, %v1708_v25  ;;  %v17002_v19 = vld [vmem:[#allocation65_spill] sm:$0xff]  ;;  %v17004_v5 = vld [vmem:[#allocation14_spill] sm:$0xff]  ;;  %v17006_v42 = vld [vmem:[#allocation20_spill] sm:$0xff] }
 0x146   : > { %9819 = vmatpush1.bf16.msra.mxu0 %v13324_v17  ;;  %9559 = vmatpush1.bf16.msra.mxu1 %v14151_v54  ;;  %v17003_v0 = vld [vmem:[#allocation189_spill] sm:$0xff]  ;;  %v17005_v25 = vld [vmem:[#allocation190_spill] sm:$0xff] }
 0x147   : > { %9821 = vmatprep.subr.bf16.mxu0 %v13330_v52  ;;  %9561 = vmatprep.subr.bf16.mxu1 %v14163_v53  ;;  %v14175_v63 = vpack.c.bf16 %v1726_v13, %v1714_v8  ;;  %v17007_v8 = vld [vmem:[#allocation191_spill] sm:$0xff]  ;;  %v17008_v13 = vld [vmem:[#allocation22_spill] sm:$0xff] }
 0x14a   : > { %9823 = vmatpush1.bf16.msra.mxu0 %v13336_v36  ;;  %9563 = vmatpush1.bf16.msra.mxu1 %v14167_v51 }
 0x14b   : > { %9825 = vmatprep.subr.bf16.mxu0 %v16995_v31  ;;  %9565 = vmatprep.subr.bf16.mxu1 %v14171_v22  ;;  %v17031_v31 = vld [vmem:[#allocation103_spill] sm:$0xff] }
 0x14d   : > { %2957 = vmatmul.mubr.f32.vlgmr.msra.gmra.mrb[0].mxu0 %v16996_v2 }
 0x14e   : > { %9827 = vmatpush1.bf16.msra.mxu0 %v16997_v58  ;;  %2962 = vmatprep.mubr.f32.mxu0 %v16799_v4  ;;  %v17026_v58 = vld [vmem:[#allocation98_spill] sm:$0xff] }
 0x14f   : > { %9567 = vmatpush1.bf16.msra.mxu1 %v14175_v63  ;;  %9829 = vmatprep.subr.bf16.mxu0 %v16998_v30  ;;  %v17015_v30 = vld [vmem:[#allocation196_spill] sm:$0xff] }
 0x150   : > { %9889 = vmatprep.subr.bf16.mxu1 %v16809_v20 }
 0x151   : > { %2966 = vmatmul.mubr.f32.gmra.mrb[2].mxu0 %v13486_v18 }
 0x152   : > { %1762 = vmatmul.mubr.f32.vlgmr.msra.gmra.mrb[0].mxu1 %v16999_v15  ;;  %9831 = vmatpush1.bf16.msra.mxu0 %v17000_v14  ;;  %v17009_v15 = vld [vmem:[#allocation192_spill] sm:$0xff]  ;;  %v17011_v14 = vld [vmem:[#allocation193_spill] sm:$0xff] }
 0x153   : > { %9891 = vmatpush1.bf16.msra.mxu1 %v16816_v16  ;;  %1767 = vmatprep.mubr.f32.mxu1 %v16799_v4 }
 0x154   : > { %9893 = vmatprep.subr.bf16.mxu1 %v16818_v59  ;;  %9833 = vmatprep.subr.bf16.mxu0 %v17001_v32  ;;  %v17010_v32 = vld [vmem:[#allocation31_spill] sm:$0xff] }
 0x155   : > { %3132 = vmatprep.mubr.f32.mxu0 %v16799_v4 }
 0x156   : > { %1769 = vmatmul.mubr.f32.gmra.mrb[2].mxu1 %v17002_v19  ;;  %9835 = vmatpush1.bf16.msra.mxu0 %v17003_v0  ;;  %v17012_v19 = vld [vmem:[#allocation32_spill] sm:$0xff]  ;;  %v17013_v0 = vld [vmem:[#allocation194_spill] sm:$0xff] }
 0x157   : > { %9895 = vmatpush1.bf16.msra.mxu1 %v17004_v5  ;;  %9837 = vmatprep.subr.bf16.mxu0 %v17005_v25  ;;  %v17014_v25 = vld [vmem:[#allocation195_spill] sm:$0xff] }
 0x158   : > { %9897 = vmatprep.subr.bf16.mxu1 %v17006_v42  ;;  %3358 = vmatprep.mubr.f32.mxu1 %v16799_v4 }
 0x15a   : > { %9839 = vmatpush1.bf16.msra.mxu0 %v17007_v8  ;;  %v17016_v8 = vld [vmem:[#allocation198_spill] sm:$0xff] }
 0x15b   : > { %9899 = vmatpush1.bf16.msra.mxu1 %v17008_v13  ;;  %9841 = vmatprep.subr.bf16.mxu0 %v17009_v15  ;;  %v17017_v15 = vld [vmem:[#allocation202_spill] sm:$0xff] }
 0x15c   : > { %9901 = vmatprep.subr.bf16.mxu1 %v17010_v32 }
 0x15e   : > { %9843 = vmatpush1.bf16.msra.mxu0 %v17011_v14  ;;  %v17018_v14 = vld [vmem:[#allocation203_spill] sm:$0xff] }
 0x15f   : > { %9903 = vmatpush1.bf16.msra.mxu1 %v17012_v19  ;;  %9845 = vmatprep.subr.bf16.mxu0 %v17013_v0  ;;  %v17025_v0 = vand.u32 4294901760, %v13772_v33 }
 0x160   : > { %9905 = vmatprep.subr.bf16.mxu1 %v16841_v27 }
 0x162   : > { %9847 = vmatpush1.bf16.msra.mxu0 %v17014_v25  ;;  %v17023_v25 = vld [vmem:[#allocation199_spill] sm:$0xff] }
 0x163   : > { %9907 = vmatpush1.bf16.msra.mxu1 %v16843_v41  ;;  %9849 = vmatprep.subr.bf16.mxu0 %v17015_v30  ;;  %v17022_v30 = vld [vmem:[#allocation95_spill] sm:$0xff] }
 0x164   : > { %9909 = vmatprep.subr.bf16.mxu1 %v16845_v34 }
 0x166   : > { %9851 = vmatpush1.bf16.msra.mxu0 %v17016_v8  ;;  %v17021_v8 = vld [vmem:[#allocation94_spill] sm:$0xff] }
 0x167   : > { %9911 = vmatpush1.bf16.msra.mxu1 %v16847_v28  ;;  %9853 = vmatprep.subr.bf16.mxu0 %v17017_v15  ;;  %v17019_v15 = vld [vmem:[#allocation90_spill] sm:$0xff] }
 0x168   : > { %9913 = vmatprep.subr.bf16.mxu1 %v16849_v47 }
 0x16a   : > { %9855 = vmatpush1.bf16.msra.mxu0 %v17018_v14  ;;  %v17020_v14 = vld [vmem:[#allocation182_spill] sm:$0xff] }
 0x16b   : > { %9915 = vmatpush1.bf16.msra.mxu1 %v16851_v38  ;;  %9857 = vmatprep.subr.bf16.mxu0 %v16912_v3 }
 0x16c   : > { %9917 = vmatprep.subr.bf16.mxu1 %v16853_v26 }
 0x16d   : > { %3134 = vmatmul.mubr.f32.vlgmr.msra.gmra.mrb[0].mxu0 %v16854_v49 }
 0x16e   : > { %9859 = vmatpush1.bf16.msra.mxu0 %v16926_v57  ;;  %3139 = vmatprep.mubr.f32.mxu0 %v16799_v4  ;;  %v17117_v57 = vld [vmem:[#allocation157_spill] sm:$0xff] }
 0x16f   : > { %9919 = vmatpush1.bf16.msra.mxu1 %v16856_v10  ;;  %9861 = vmatprep.subr.bf16.mxu0 %v16932_v62  ;;  %v17076_v62 = vld [vmem:[#allocation132_spill] sm:$0xff] }
 0x170   : > { %9921 = vmatprep.subr.bf16.mxu1 %v17019_v15  ;;  %v17024_v15 = vand.u32 4294901760, %v13767_v43 }
 0x171   : > { %3141 = vmatmul.mubr.f32.gmra.mrb[2].mxu0 %v13165_v23 }
 0x172   : > { %3364 = vmatmul.mubr.f32.vlgmr.msra.gmra.mrb[4].mxu1 %v17020_v14  ;;  %9863 = vmatpush1.bf16.msra.mxu0 %v16944_v1  ;;  %v14238_v14 = vsub.f32 %v13767_v43, %v17024_v15  ;;  %v17028_v15 = vld [vmem:[#allocation101_spill] sm:$0xff]  ;;  %v17070_v1 = vld [vmem:[#allocation123_spill] sm:$0xff] }
 0x173   : > { %9923 = vmatpush1.bf16.msra.mxu1 %v17021_v8  ;;  %9865 = vmatprep.subr.bf16.mxu0 %v16946_v11  ;;  %v14243_v8 = vsub.f32 %v13772_v33, %v17025_v0  ;;  %v17029_v33 = vand.u32 4294901760, %v13793_v60  ;;  %v17030_v0 = vand.u32 4294901760, %v13798_v9 }
 0x174   : > { %9925 = vmatprep.subr.bf16.mxu1 %v17022_v30  ;;  %3369 = vmatprep.mubr.f32.mxu1 %v16799_v4  ;;  %v17027_v30 = vld [vmem:[#allocation99_spill] sm:$0xff] }
 0x175   : > { %3243 = vmatprep.mubr.f32.mxu0 %v16799_v4  ;;  %v16164_v43 = vand.u32 4294901760, %v14243_v8 }
 0x176   : > { %9867 = vmatpush1.bf16.msra.mxu0 %v16956_v12  ;;  %3375 = vmatmul.mubr.f32.gmra.mrb[6].mxu1 %v17023_v25  ;;  %v16162_v25 = vand.u32 4294901760, %v14238_v14  ;;  %v17061_v12 = vld [vmem:[#allocation113_spill] sm:$0xff] }
 0x177   : > { %9927 = vmatpush1.bf16.msra.mxu1 %v17026_v58  ;;  %9869 = vmatprep.subr.bf16.mxu0 %v16961_v44  ;;  %v14257_v58 = vsub.f32 %v13793_v60, %v17029_v33  ;;  %v17037_v60 = vand.u32 4294901760, %v13862_v46  ;;  %v17053_v44 = vld [vmem:[#allocation111_spill] sm:$0xff] }
 0x178   : > { %9929 = vmatprep.subr.bf16.mxu1 %v17027_v30  ;;  %3605 = vmatprep.mubr.f32.mxu1 %v16799_v4  ;;  %v14262_v30 = vsub.f32 %v13798_v9, %v17030_v0  ;;  %v17034_v0 = vand.u32 4294901760, %v13831_v61 }
 0x179   : > { %v14295_v9 = vsub.f32 %v13862_v46, %v17037_v60  ;;  %v17041_v60 = vld [vmem:[#allocation52_spill] sm:$0xff]  ;;  %v17044_v46 = vld [vmem:[#allocation107_spill] sm:$0xff] }
 0x17a   : > { %9871 = vmatpush1.bf16.msra.mxu0 %v16967_v29  ;;  %v17032_v29 = vld [vmem:[#allocation104_spill] sm:$0xff] }
 0x17b   : > { %9931 = vmatpush1.bf16.msra.mxu1 %v17028_v15  ;;  %9873 = vmatprep.subr.bf16.mxu0 %v16973_v40  ;;  %v6131_v15 = vsub.f32 %v14238_v14, %v16162_v25  ;;  %v6138_v40 = vsub.f32 %v14243_v8, %v16164_v43  ;;  %v14284_v25 = vsub.f32 %v13831_v61, %v17034_v0  ;;  %v17039_v61 = vand.u32 4294901760, %v14257_v58 }
 0x17c   : > { %9933 = vmatprep.subr.bf16.mxu1 %v17031_v31  ;;  %v17033_v31 = vand.u32 4294901760, %v13826_v35 }
 0x17e   : > { %9875 = vmatpush1.bf16.msra.mxu0 %v16979_v21  ;;  %v14279_v33 = vsub.f32 %v13826_v35, %v17033_v31  ;;  %v17035_v21 = vld [vmem:[#allocation105_spill] sm:$0xff]  ;;  %v6132_v35 = vand.u32 4294901760, %v6131_v15  ;;  %v6139_v31 = vand.u32 4294901760, %v6138_v40 }
 0x17f   : > { %9935 = vmatpush1.bf16.msra.mxu1 %v17032_v29  ;;  %9877 = vmatprep.subr.bf16.mxu0 %v16980_v24  ;;  %v17036_v29 = vand.u32 4294901760, %v13857_v7  ;;  %v17038_v24 = vld [vmem:[#allocation106_spill] sm:$0xff] }
 0x180   : > { %9937 = vmatprep.subr.bf16.mxu1 %v17035_v21  ;;  %v6145_v21 = vsub.f32 %v14257_v58, %v17039_v61  ;;  %v10496_v15 = vpack.c.bf16 %v6139_v31, %v6132_v35  ;;  %v17046_v31 = vand.u32 4294901760, %v14284_v25 }
 0x181   : > { %v14290_v43 = vsub.f32 %v13857_v7, %v17036_v29  ;;  %v17040_v7 = vand.u32 4294901760, %v14262_v30 }
 0x182   : > { %9879 = vmatpush1.bf16.msra.mxu0 %v16989_v56 }
 0x183   : > { %9939 = vmatpush1.bf16.msra.mxu1 %v17038_v24  ;;  %9881 = vmatprep.subr.bf16.mxu0 %v16990_v45  ;;  %v6152_v0 = vsub.f32 %v14262_v30, %v17040_v7  ;;  %v17042_v45 = vand.u32 4294901760, %v13887_v48  ;;  %v17043_v7 = vand.u32 4294901760, %v13892_v37  ;;  %v17045_v24 = vand.u32 4294901760, %v14279_v33 }
 0x184   : > { %9941 = vmatprep.subr.bf16.mxu1 %v17041_v60  ;;  %v6146_v60 = vand.u32 4294901760, %v6145_v21 }
 0x185   : > { %v14315_v61 = vsub.f32 %v13887_v48, %v17042_v45  ;;  %v14320_v29 = vsub.f32 %v13892_v37, %v17043_v7  ;;  %v6153_v40 = vand.u32 4294901760, %v6152_v0  ;;  %v6159_v35 = vsub.f32 %v14279_v33, %v17045_v24  ;;  %v17047_v45 = vld [vmem:[#allocation64_spill] sm:$0xff] }
 0x186   : > { %9883 = vmatpush1.bf16.msra.mxu0 %v13324_v17  ;;  %v6166_v48 = vsub.f32 %v14284_v25, %v17046_v31  ;;  %v17048_v17 = vand.u32 4294901760, %v14290_v43  ;;  %v17050_v24 = vand.u32 4294901760, %v13917_v39 }
 0x187   : > { %9943 = vmatpush1.bf16.msra.mxu1 %v17044_v46  ;;  %9885 = vmatprep.subr.bf16.mxu0 %v13330_v52  ;;  %v17049_v46 = vand.u32 4294901760, %v14295_v9  ;;  %v6160_v56 = vand.u32 4294901760, %v6159_v35 }
 0x188   : > { %9945 = vmatprep.subr.bf16.mxu1 %v17047_v45  ;;  %v6173_v37 = vsub.f32 %v14290_v43, %v17048_v17  ;;  %v14343_v31 = vsub.f32 %v13917_v39, %v17050_v24  ;;  %v17051_v45 = vand.u32 4294901760, %v13922_v55  ;;  %v17052_v17 = vld [vmem:[#allocation108_spill] sm:$0xff]  ;;  %v17054_v39 = vand.u32 4294901760, %v14315_v61 }
 0x189   : > { %v6180_v7 = vsub.f32 %v14295_v9, %v17049_v46  ;;  %v10500_v46 = vpack.c.bf16 %v6153_v40, %v6146_v60  ;;  %v17055_v24 = vand.u32 4294901760, %v14320_v29  ;;  %v17062_v60 = vld [vmem:[#allocation28_spill] sm:$0xff] }
 0x18a   : > { %9887 = vmatpush1.bf16.msra.mxu0 %v13336_v36  ;;  %v14348_v52 = vsub.f32 %v13922_v55, %v17051_v45  ;;  %v6167_v36 = vand.u32 4294901760, %v6166_v48  ;;  %v6174_v0 = vand.u32 4294901760, %v6173_v37  ;;  %v6187_v55 = vsub.f32 %v14315_v61, %v17054_v39  ;;  %v17057_v48 = vld [vmem:[#allocation9_spill] sm:$0xff] }
 0x18b   : > { %9947 = vmatpush1.bf16.msra.mxu1 %v17052_v17  ;;  %10497 = vmatprep.subr.bf16.mxu0 %v10496_v15  ;;  %v6181_v21 = vand.u32 4294901760, %v6180_v7  ;;  %v6194_v45 = vsub.f32 %v14320_v29, %v17055_v24  ;;  %v17059_v7 = vld [vmem:[#allocation10_spill] sm:$0xff]  ;;  %v14376_v40 = vand.u32 4294901760, %v17062_v60 }
 0x18c   : > { %9949 = vmatprep.subr.bf16.mxu1 %v17053_v44  ;;  %v17056_v44 = vld [vmem:[#allocation116_spill] sm:$0xff]  ;;  %v10504_v35 = vpack.c.bf16 %v6167_v36, %v6160_v56  ;;  %v17060_v17 = vand.u32 4294901760, %v17059_v7  ;;  %v6188_v36 = vand.u32 4294901760, %v6187_v55  ;;  %v17068_v55 = vld [vmem:[#allocation17_spill] sm:$0xff] }
 0x18d   : > { %3245 = vmatmul.mubr.f32.vlgmr.msra.gmra.mrb[0].mxu0 %v16854_v49  ;;  %v10508_v24 = vpack.c.bf16 %v6181_v21, %v6174_v0  ;;  %v6195_v56 = vand.u32 4294901760, %v6194_v45  ;;  %v17069_v45 = vand.u32 4294901760, %v17068_v55  ;;  %v17071_v21 = vld [vmem:[#allocation92_spill] sm:$0xff] }
 0x18e   : > { %10499 = vmatpush3.bf16.msra.mxu0 %v10496_v15  ;;  %3250 = vmatprep.mubr.f32.mxu0 %v16799_v4  ;;  %v17058_v15 = vand.u32 4294901760, %v17057_v48  ;;  %v14371_v39 = vsub.f32 %v17059_v7, %v17060_v17  ;;  %v17066_v17 = vld [vmem:[#allocation16_spill] sm:$0xff] }
 0x18f   : > { %9951 = vmatpush1.bf16.msra.mxu1 %v17056_v44  ;;  %10501 = vmatprep.subr.bf16.mxu0 %v10500_v46  ;;  %v17063_v44 = vand.u32 4294901760, %v14343_v31  ;;  %v17067_v11 = vand.u32 4294901760, %v17066_v17 }
 0x190   : > { %v14366_v37 = vsub.f32 %v17057_v48, %v17058_v15  ;;  %9953 = vmatprep.subr.bf16.mxu1 %v17061_v12  ;;  %v17064_v15 = vand.u32 4294901760, %v14348_v52  ;;  %v17065_v12 = vld [vmem:[#allocation121_spill] sm:$0xff] }
 0x191   : > { %3252 = vmatmul.mubr.f32.gmra.mrb[2].mxu0 %v13165_v23  ;;  %v6201_v48 = vsub.f32 %v14343_v31, %v17063_v44  ;;  %v14396_v44 = vsub.f32 %v17068_v55, %v17069_v45  ;;  %v17073_v55 = vand.u32 4294901760, %v14371_v39 }
 0x192   : > { %3607 = vmatmul.mubr.f32.vlgmr.msra.gmra.mrb[4].mxu1 %v16854_v49  ;;  %10503 = vmatpush3.bf16.msra.mxu0 %v10500_v46  ;;  %v6208_v7 = vsub.f32 %v14348_v52, %v17064_v15  ;;  %v14391_v46 = vsub.f32 %v17066_v17, %v17067_v11  ;;  %v10512_v15 = vpack.c.bf16 %v6195_v56, %v6188_v36  ;;  %v17072_v11 = vand.u32 4294901760, %v14366_v37  ;;  %v17074_v36 = vld [vmem:[#allocation126_spill] sm:$0xff] }
 0x193   : > { %9955 = vmatpush1.bf16.msra.mxu1 %v17065_v12  ;;  %10505 = vmatprep.subr.bf16.mxu0 %v10504_v35  ;;  %v6202_v12 = vand.u32 4294901760, %v6201_v48  ;;  %v17075_v48 = vld [vmem:[#allocation130_spill] sm:$0xff] }
 0x194   : > { %9957 = vmatprep.subr.bf16.mxu1 %v17070_v1  ;;  %3612 = vmatprep.mubr.f32.mxu1 %v16799_v4  ;;  %v6209_v0 = vand.u32 4294901760, %v6208_v7  ;;  %v6215_v17 = vsub.f32 %v14366_v37, %v17072_v11  ;;  %v6222_v1 = vsub.f32 %v14371_v39, %v17073_v55  ;;  %v16179_v45 = vand.u32 4294901760, %v14391_v46 }
 0x195   : > { %8749 = vmatprep.mubr.f32.mxu0 %v14376_v40 }
 0x196   : > { %10507 = vmatpush3.bf16.msra.mxu0 %v10504_v35  ;;  %3614 = vmatmul.mubr.f32.gmra.mrb[6].mxu1 %v13165_v23  ;;  %v16180_v35 = vand.u32 4294901760, %v14396_v44  ;;  %v10516_v56 = vpack.c.bf16 %v6209_v0, %v6202_v12  ;;  %v6216_v7 = vand.u32 4294901760, %v6215_v17  ;;  %v6229_v11 = vsub.f32 %v14391_v46, %v16179_v45  ;;  %v17079_v17 = vld [vmem:[#allocation146_spill] sm:$0xff]  ;;  %v17080_v45 = vld [vmem:[#allocation148_spill] sm:$0xff] }
 0x197   : > { %9959 = vmatpush1.bf16.msra.mxu1 %v17071_v21  ;;  %10509 = vmatprep.subr.bf16.mxu0 %v10508_v24  ;;  %v6223_v21 = vand.u32 4294901760, %v6222_v1 }
 0x198   : > { %9961 = vmatprep.subr.bf16.mxu1 %v17074_v36  ;;  %3748 = vmatprep.mubr.f32.mxu1 %v16799_v4  ;;  %v6236_v55 = vsub.f32 %v14396_v44, %v16180_v35  ;;  %v17077_v36 = vld [vmem:[#allocation138_spill] sm:$0xff]  ;;  %v6230_v0 = vand.u32 4294901760, %v6229_v11  ;;  %v17085_v11 = vld [vmem:[#allocation160_spill] sm:$0xff] }
 0x199   : > { %v17081_v35 = vld [vmem:[#allocation154_spill] sm:$0xff] }
 0x19a   : > { %10511 = vmatpush3.bf16.msra.mxu0 %v10508_v24  ;;  %v10520_v24 = vpack.c.bf16 %v6223_v21, %v6216_v7  ;;  %v6237_v12 = vand.u32 4294901760, %v6236_v55  ;;  %v17083_v7 = vld [vmem:[#allocation110_spill] sm:$0xff] }
 0x19b   : > { %9963 = vmatpush1.bf16.msra.mxu1 %v17075_v48  ;;  %10513 = vmatprep.subr.bf16.mxu0 %v10512_v15  ;;  %v17078_v48 = vld [vmem:[#allocation140_spill] sm:$0xff]  ;;  %v14430_v21 = vand.u32 4294901760, %v17083_v7  ;;  %v17087_v55 = vld [vmem:[#allocation162_spill] sm:$0xff] }
 0x19c   : > { %9965 = vmatprep.subr.bf16.mxu1 %v17076_v62  ;;  %v10524_v1 = vpack.c.bf16 %v6237_v12, %v6230_v0  ;;  %v10528_v62 = vpack.c.bf16 %v14243_v8, %v14238_v14  ;;  %v17089_v0 = vld [vmem:[#allocation184_spill] sm:$0xff]  ;;  %v10544_v12 = vpack.c.bf16 %v14320_v29, %v14315_v61 }
 0x19e   : > { %10515 = vmatpush3.bf16.msra.mxu0 %v10512_v15  ;;  %v17082_v15 = vld [vmem:[#allocation156_spill] sm:$0xff] }
 0x19f   : > { %9967 = vmatpush1.bf16.msra.mxu1 %v17077_v36  ;;  %10517 = vmatprep.subr.bf16.mxu0 %v10516_v56  ;;  %v17088_v36 = vld [vmem:[#allocation172_spill] sm:$0xff] }
 0x1a0   : > { %9969 = vmatprep.subr.bf16.mxu1 %v17078_v48  ;;  %v10548_v48 = vpack.c.bf16 %v14348_v52, %v14343_v31 }
 0x1a2   : > { %10519 = vmatpush3.bf16.msra.mxu0 %v10516_v56  ;;  %v14434_v56 = vsub.f32 %v17062_v60, %v14376_v40  ;;  %v10536_v60 = vpack.c.bf16 %v14284_v25, %v14279_v33 }
 0x1a3   : > { %9971 = vmatpush1.bf16.msra.mxu1 %v17079_v17  ;;  %10521 = vmatprep.subr.bf16.mxu0 %v10520_v24  ;;  %v10552_v17 = vpack.c.bf16 %v14371_v39, %v14366_v37 }
 0x1a4   : > { %9973 = vmatprep.subr.bf16.mxu1 %v17080_v45  ;;  %17084 = vst [vmem:[#allocation47_spill] sm:$0xff] %v14434_v56  ;;  %v10532_v45 = vpack.c.bf16 %v14262_v30, %v14257_v58 }
 0x1a6   : > { %10523 = vmatpush3.bf16.msra.mxu0 %v10520_v24  ;;  %v10540_v24 = vpack.c.bf16 %v14295_v9, %v14290_v43 }
 0x1a7   : > { %9975 = vmatpush1.bf16.msra.mxu1 %v17081_v35  ;;  %10525 = vmatprep.subr.bf16.mxu0 %v10524_v1  ;;  %v17086_v35 = vld [vmem:[#allocation161_spill] sm:$0xff] }
 0x1a8   : > { %9977 = vmatprep.subr.bf16.mxu1 %v17082_v15  ;;  %v16181_v15 = vand.u32 4294901760, %v14434_v56 }
 0x1aa   : > { %10527 = vmatpush3.bf16.msra.mxu0 %v10524_v1  ;;  %v10556_v1 = vpack.c.bf16 %v14396_v44, %v14391_v46 }
 0x1ab   : > { %9979 = vmatpush1.bf16.msra.mxu1 %v17085_v11  ;;  %10529 = vmatprep.subr.bf16.mxu0 %v10528_v62  ;;  %v17091_v11 = vld [vmem:[#allocation210_spill] sm:$0xff] }
 0x1ac   : > { %9981 = vmatprep.subr.bf16.mxu1 %v17086_v35  ;;  %v17094_v35 = vld [vmem:[#allocation129_spill] sm:$0xff] }
 0x1ad   : > { %8750 = vmatmul.mubr.f32.vlgmr.msra.gmra.mrb[4].mxu0 %v14430_v21 }
 0x1ae   : > { %10531 = vmatpush3.bf16.msra.mxu0 %v10528_v62  ;;  %8784 = vmatprep.mubr.f32.mxu0 %v14434_v56  ;;  %v14474_v62 = vsub.f32 %v17083_v7, %v14430_v21  ;;  %v17092_v7 = vld [vmem:[#allocation213_spill] sm:$0xff] }
 0x1af   : > { %9983 = vmatpush1.bf16.msra.mxu1 %v17087_v55  ;;  %10533 = vmatprep.subr.bf16.mxu0 %v10532_v45  ;;  %v17095_v55 = vld [vmem:[#allocation216_spill] sm:$0xff] }
 0x1b0   : > { %9985 = vmatprep.subr.bf16.mxu1 %v16809_v20  ;;  %17090 = vst [vmem:[#allocation48_spill] sm:$0xff] %v14474_v62 }
 0x1b2   : > { %3751 = vmatmul.mubr.f32.vlgmr.msra.gmra.mrb[4].mxu1 %v17088_v36  ;;  %10535 = vmatpush3.bf16.msra.mxu0 %v10532_v45  ;;  %v17093_v45 = vld [vmem:[#allocation128_spill] sm:$0xff]  ;;  %v17097_v36 = vld [vmem:[#allocation134_spill] sm:$0xff] }
 0x1b3   : > { %9987 = vmatpush1.bf16.msra.mxu1 %v16816_v16  ;;  %10537 = vmatprep.subr.bf16.mxu0 %v10536_v60 }
 0x1b4   : > { %9989 = vmatprep.subr.bf16.mxu1 %v16818_v59  ;;  %3756 = vmatprep.mubr.f32.mxu1 %v16799_v4 }
 0x1b6   : > { %10539 = vmatpush3.bf16.msra.mxu0 %v10536_v60  ;;  %3759 = vmatmul.mubr.f32.gmra.mrb[6].mxu1 %v17089_v0  ;;  %v17096_v60 = vld [vmem:[#allocation133_spill] sm:$0xff]  ;;  %v17099_v0 = vld [vmem:[#allocation136_spill] sm:$0xff] }
 0x1b7   : > { %9991 = vmatpush1.bf16.msra.mxu1 %v17004_v5  ;;  %10541 = vmatprep.subr.bf16.mxu0 %v10540_v24 }
 0x1b8   : > { %9993 = vmatprep.subr.bf16.mxu1 %v17006_v42  ;;  %3861 = vmatprep.mubr.f32.mxu1 %v16799_v4 }
 0x1ba   : > { %10543 = vmatpush3.bf16.msra.mxu0 %v10540_v24  ;;  %v17098_v24 = vld [vmem:[#allocation219_spill] sm:$0xff] }
 0x1bb   : > { %9995 = vmatpush1.bf16.msra.mxu1 %v17008_v13  ;;  %10545 = vmatprep.subr.bf16.mxu0 %v10544_v12 }
 0x1bc   : > { %9997 = vmatprep.subr.bf16.mxu1 %v17010_v32 }
 0x1be   : > { %10547 = vmatpush3.bf16.msra.mxu0 %v10544_v12  ;;  %v17101_v12 = vld [vmem:[#allocation7_spill] sm:$0xff] }
 0x1bf   : > { %9999 = vmatpush1.bf16.msra.mxu1 %v17012_v19  ;;  %10549 = vmatprep.subr.bf16.mxu0 %v10548_v48 }
 0x1c0   : > { %10001 = vmatprep.subr.bf16.mxu1 %v16841_v27 }
 0x1c2   : > { %10551 = vmatpush3.bf16.msra.mxu0 %v10548_v48  ;;  %v17102_v48 = vld [vmem:[#allocation141_spill] sm:$0xff] }
 0x1c3   : > { %10003 = vmatpush1.bf16.msra.mxu1 %v16843_v41  ;;  %10553 = vmatprep.subr.bf16.mxu0 %v10552_v17 }
 0x1c4   : > { %10005 = vmatprep.subr.bf16.mxu1 %v16845_v34 }
 0x1c6   : > { %10555 = vmatpush3.bf16.msra.mxu0 %v10552_v17  ;;  %v17103_v17 = vld [vmem:[#allocation142_spill] sm:$0xff] }
 0x1c7   : > { %10007 = vmatpush1.bf16.msra.mxu1 %v16847_v28  ;;  %10557 = vmatprep.subr.bf16.mxu0 %v10556_v1 }
 0x1c8   : > { %10009 = vmatprep.subr.bf16.mxu1 %v16849_v47 }
 0x1ca   : > { %10559 = vmatpush3.bf16.msra.mxu0 %v10556_v1  ;;  %v17105_v1 = vld [vmem:[#allocation144_spill] sm:$0xff] }
 0x1cb   : > { %10011 = vmatpush1.bf16.msra.mxu1 %v16851_v38  ;;  %10561 = vmatprep.subr.bf16.mxu0 %v17091_v11 }
 0x1cc   : > { %10013 = vmatprep.subr.bf16.mxu1 %v16853_v26 }
 0x1cd   : > { %8785 = vmatmul.mubr.f32.vlgmr.msra.gmra.mrb[4].mxu0 %v14474_v62 }
 0x1ce   : > { %10563 = vmatpush3.bf16.msra.mxu0 %v17091_v11  ;;  %8819 = vmatprep.mubr.f32.mxu0 %v16181_v15  ;;  %v16185_v15 = vand.u32 4294901760, %v14474_v62  ;;  %v445_v62 = vld [vmem:[#allocation4 + $0x8] sm:$0xff] }
 0x1cf   : > { %10015 = vmatpush1.bf16.msra.mxu1 %v16856_v10  ;;  %10565 = vmatprep.subr.bf16.mxu0 %v17092_v7 }
 0x1d0   : > { %10017 = vmatprep.subr.bf16.mxu1 %v17093_v45  ;;  %v17106_v45 = vld [vmem:[#allocation145_spill] sm:$0xff] }
 0x1d2   : > { %3865 = vmatmul.mubr.f32.vlgmr.msra.gmra.mrb[4].mxu1 %v16996_v2  ;;  %10567 = vmatpush3.bf16.msra.mxu0 %v17092_v7  ;;  %v17100_v2 = vld [vmem:[#allocation137_spill] sm:$0xff] }
 0x1d3   : > { %10019 = vmatpush1.bf16.msra.mxu1 %v17094_v35  ;;  %10569 = vmatprep.subr.bf16.mxu0 %v17095_v55  ;;  %v17107_v35 = vld [vmem:[#allocation100_spill] sm:$0xff] }
 0x1d4   : > { %10021 = vmatprep.subr.bf16.mxu1 %v17096_v60  ;;  %3870 = vmatprep.mubr.f32.mxu1 %v16799_v4  ;;  %v17108_v60 = vld [vmem:[#allocation149_spill] sm:$0xff] }
 0x1d6   : > { %10571 = vmatpush3.bf16.msra.mxu0 %v17095_v55  ;;  %3874 = vmatmul.mubr.f32.gmra.mrb[6].mxu1 %v13486_v18  ;;  %v17104_v18 = vld [vmem:[#allocation15_spill] sm:$0xff] }
 0x1d7   : > { %10023 = vmatpush1.bf16.msra.mxu1 %v17097_v36  ;;  %10573 = vmatprep.subr.bf16.mxu0 %v17098_v24  ;;  %v17109_v36 = vld [vmem:[#allocation150_spill] sm:$0xff] }
 0x1d8   : > { %10025 = vmatprep.subr.bf16.mxu1 %v17099_v0  ;;  %4040 = vmatprep.mubr.f32.mxu1 %v16799_v4  ;;  %v17110_v0 = vld [vmem:[#allocation25_spill] sm:$0xff] }
 0x1da   : > { %10575 = vmatpush3.bf16.msra.mxu0 %v17098_v24 }
 0x1db   : > { %10027 = vmatpush1.bf16.msra.mxu1 %v17100_v2  ;;  %10577 = vmatprep.subr.bf16.mxu0 %v17101_v12  ;;  %v17111_v2 = vand.u32 4294901760, %v14238_v14  ;;  %v17118_v14 = vld [vmem:[#allocation158_spill] sm:$0xff] }
 0x1dc   : > { %10029 = vmatprep.subr.bf16.mxu1 %v17102_v48  ;;  %v17112_v48 = vand.u32 4294901760, %v14243_v8  ;;  %v17119_v8 = vand.u32 4294901760, %v14279_v33 }
 0x1de   : > { %10579 = vmatpush3.bf16.msra.mxu0 %v17101_v12 }
 0x1df   : > { %10031 = vmatpush1.bf16.msra.mxu1 %v17103_v17  ;;  %10581 = vmatprep.subr.bf16.mxu0 %v17104_v18  ;;  %v10592_v17 = vpack.c.bf16 %v17112_v48, %v17111_v2  ;;  %v17120_v2 = vand.u32 4294901760, %v14284_v25 }
 0x1e0   : > { %10033 = vmatprep.subr.bf16.mxu1 %v17105_v1  ;;  %v17113_v1 = vld [vmem:[#allocation152_spill] sm:$0xff] }
 0x1e1   : > { %v10600_v48 = vpack.c.bf16 %v17120_v2, %v17119_v8 }
 0x1e2   : > { %10583 = vmatpush3.bf16.msra.mxu0 %v17104_v18 }
 0x1e3   : > { %10035 = vmatpush1.bf16.msra.mxu1 %v17106_v45  ;;  %10585 = vmatprep.subr.bf16.mxu0 %v17107_v35  ;;  %v17114_v45 = vld [vmem:[#allocation153_spill] sm:$0xff] }
 0x1e4   : > { %10037 = vmatprep.subr.bf16.mxu1 %v17108_v60  ;;  %v17115_v60 = vand.u32 4294901760, %v14257_v58  ;;  %v17122_v58 = vand.u32 4294901760, %v14295_v9 }
 0x1e6   : > { %10587 = vmatpush3.bf16.msra.mxu0 %v17107_v35 }
 0x1e7   : > { %10039 = vmatpush1.bf16.msra.mxu1 %v17109_v36  ;;  %10589 = vmatprep.subr.bf16.mxu0 %v17110_v0  ;;  %v17116_v36 = vand.u32 4294901760, %v14262_v30 }
 0x1e8   : > { %10041 = vmatprep.subr.bf16.mxu1 %v17113_v1 }
 0x1e9   : > { %v10596_v56 = vpack.c.bf16 %v17116_v36, %v17115_v60  ;;  %v17142_v36 = vld [vmem:[#allocation81_spill] sm:$0xff] }
 0x1ea   : > { %10591 = vmatpush3.bf16.msra.mxu0 %v17110_v0 }
 0x1eb   : > { %10043 = vmatpush1.bf16.msra.mxu1 %v17114_v45  ;;  %10593 = vmatprep.subr.bf16.mxu0 %v10592_v17 }
 0x1ec   : > { %10045 = vmatprep.subr.bf16.mxu1 %v17117_v57  ;;  %v17121_v57 = vand.u32 4294901760, %v14290_v43  ;;  %v17126_v43 = vand.u32 4294901760, %v14348_v52  ;;  %v17129_v52 = vand.u32 4294901760, %v14391_v46 }
 0x1ed   : > { %8820 = vmatmul.mubr.f32.vlgmr.msra.gmra.mrb[4].mxu0 %v16185_v15  ;;  %v17150_v15 = vld [vmem:[#allocation96_spill] sm:$0xff] }
 0x1ee   : > { %10595 = vmatpush3.bf16.msra.mxu0 %v10592_v17  ;;  %8854 = vmatprep.mubr.f32.mxu0 %v14376_v40  ;;  %v10604_v30 = vpack.c.bf16 %v17122_v58, %v17121_v57  ;;  %v14625_v17 = vld [vmem:[%s15713_s7 + $0x18] sm:$0xff]  ;;  %v14645_v57 = vld [vmem:[%s15713_s7 + $0x20] sm:$0xff]  ;;  %v14650_v58 = vld [vmem:[%s15713_s7 + $0x28] sm:$0xff] }
 0x1ef   : > { %10047 = vmatpush1.bf16.msra.mxu1 %v17118_v14  ;;  %10597 = vmatprep.subr.bf16.mxu0 %v10596_v56  ;;  %v16189_v2 = vand.u32 4294901760, %v14625_v17 }
 0x1f0   : > { %10049 = vmatprep.subr.bf16.mxu1 %v16809_v20  ;;  %v17123_v20 = vand.u32 4294901760, %v14315_v61  ;;  %v5993_v61 = vld [vmem:[%s15713_s7] sm:$0xff] }
 0x1f2   : > { %4042 = vmatmul.mubr.f32.vlgmr.msra.gmra.mrb[4].mxu1 %v16854_v49  ;;  %10599 = vmatpush3.bf16.msra.mxu0 %v10596_v56  ;;  %v14620_v56 = vld [vmem:[%s15713_s7 + $0x10] sm:$0xff] }
 0x1f3   : > { %10051 = vmatpush1.bf16.msra.mxu1 %v16816_v16  ;;  %10601 = vmatprep.subr.bf16.mxu0 %v10600_v48  ;;  %v17124_v16 = vand.u32 4294901760, %v14320_v29  ;;  %v17139_v29 = vld [vmem:[#allocation66_spill] sm:$0xff]  ;;  %v16190_v8 = vand.u32 4294901760, %v14620_v56 }
 0x1f4   : > { %10053 = vmatprep.subr.bf16.mxu1 %v16818_v59  ;;  %4047 = vmatprep.mubr.f32.mxu1 %v16799_v4  ;;  %v17125_v59 = vand.u32 4294901760, %v14343_v31  ;;  %v5994_v31 = vld [vmem:[%s15713_s7 + $0x8] sm:$0xff] }
 0x1f5   : > { %v10608_v25 = vpack.c.bf16 %v17124_v16, %v17123_v20  ;;  %v6714_v46 = vand.u32 4294901760, %v5994_v31 }
 0x1f6   : > { %10603 = vmatpush3.bf16.msra.mxu0 %v10600_v48  ;;  %4049 = vmatmul.mubr.f32.gmra.mrb[6].mxu1 %v13165_v23  ;;  %v10612_v9 = vpack.c.bf16 %v17126_v43, %v17125_v59  ;;  %v17143_v48 = vld [vmem:[#allocation87_spill] sm:$0xff]  ;;  %v14663_v59 = vpack.c.bf16 %v16189_v2, %v16190_v8  ;;  %v16188_v43 = vand.u32 4294901760, %v14645_v57  ;;  %v14713_v8 = vld [vmem:[%s15713_s7 + $0x50] sm:$0xff] }
 0x1f7   : > { %10055 = vmatpush1.bf16.msra.mxu1 %v17004_v5  ;;  %10605 = vmatprep.subr.bf16.mxu0 %v10604_v30  ;;  %v17127_v5 = vand.u32 4294901760, %v14366_v37  ;;  %v17140_v37 = vld [vmem:[#allocation69_spill] sm:$0xff]  ;;  %v17153_v2 = vld [vmem:[#allocation27_spill] sm:$0xff] }
 0x1f8   : > { %10057 = vmatprep.subr.bf16.mxu1 %v17006_v42  ;;  %4151 = vmatprep.mubr.f32.mxu1 %v16799_v4  ;;  %v17128_v42 = vand.u32 4294901760, %v14371_v39  ;;  %v6711_v39 = vand.u32 4294901760, %v5993_v61  ;;  %17145 = vst [vmem:[#allocation54_spill] sm:$0xff] %v14663_v59 }
 0x1fa   : > { %10607 = vmatpush3.bf16.msra.mxu0 %v10604_v30  ;;  %v10616_v33 = vpack.c.bf16 %v17128_v42, %v17127_v5  ;;  %v14637_v14 = vpack.c.bf16 %v6714_v46, %v6711_v39  ;;  %v17146_v5 = vld [vmem:[#allocation102_spill] sm:$0xff] }
 0x1fb   : > { %10059 = vmatpush1.bf16.msra.mxu1 %v17008_v13  ;;  %10609 = vmatprep.subr.bf16.mxu0 %v10608_v25  ;;  %v17130_v13 = vand.u32 4294901760, %v14396_v44  ;;  %v17141_v44 = vld [vmem:[#allocation78_spill] sm:$0xff] }
 0x1fc   : > { %10061 = vmatprep.subr.bf16.mxu1 %v17010_v32  ;;  %v14671_v42 = vld [vmem:[%s15713_s7 + $0x30] sm:$0xff] }
 0x1fd   : > { %v10620_v32 = vpack.c.bf16 %v17130_v13, %v17129_v52  ;;  %v17147_v52 = vld [vmem:[#allocation72_spill] sm:$0xff] }
 0x1fe   : > { %10611 = vmatpush3.bf16.msra.mxu0 %v10608_v25  ;;  %v17144_v25 = vld [vmem:[#allocation88_spill] sm:$0xff] }
 0x1ff   : > { %10063 = vmatpush1.bf16.msra.mxu1 %v17012_v19  ;;  %10613 = vmatprep.subr.bf16.mxu0 %v10612_v9  ;;  %v17138_v19 = vld [vmem:[#allocation58_spill] sm:$0xff] }
 0x200   : > { %10065 = vmatprep.subr.bf16.mxu1 %v16841_v27  ;;  %v17133_v27 = vld [vmem:[#allocation34_spill] sm:$0xff] }
 0x202   : > { %10615 = vmatpush3.bf16.msra.mxu0 %v10612_v9  ;;  %v16187_v9 = vand.u32 4294901760, %v14650_v58 }
 0x203   : > { %10067 = vmatpush1.bf16.msra.mxu1 %v16843_v41  ;;  %10617 = vmatprep.subr.bf16.mxu0 %v10616_v33  ;;  %v17132_v41 = vld [vmem:[#allocation26_spill] sm:$0xff] }
 0x204   : > { %10069 = vmatprep.subr.bf16.mxu1 %v16845_v34  ;;  %v17131_v34 = vld [vmem:[#allocation23_spill] sm:$0xff]  ;;  %v14686_v13 = vpack.c.bf16 %v16187_v9, %v16188_v43 }
 0x205   : > { %v17154_v43 = vld [vmem:[#allocation119_spill] sm:$0xff] }
 0x206   : > { %10619 = vmatpush3.bf16.msra.mxu0 %v10616_v33  ;;  %v14676_v33 = vld [vmem:[%s15713_s7 + $0x38] sm:$0xff]  ;;  %17148 = vst [vmem:[#allocation56_spill] sm:$0xff] %v14686_v13 }
 0x207   : > { %10071 = vmatpush1.bf16.msra.mxu1 %v16847_v28  ;;  %10621 = vmatprep.subr.bf16.mxu0 %v10620_v32  ;;  %v17134_v28 = vld [vmem:[#allocation37_spill] sm:$0xff] }
 0x208   : > { %10073 = vmatprep.subr.bf16.mxu1 %v16849_v47  ;;  %v444_v47 = vld [vmem:[#allocation4] sm:$0xff] }
 0x20a   : > { %10623 = vmatpush3.bf16.msra.mxu0 %v10620_v32  ;;  %v6729_v32 = vand.u32 4294901760, %v14671_v42 }
 0x20b   : > { %10075 = vmatpush1.bf16.msra.mxu1 %v16851_v38  ;;  %10625 = vmatprep.subr.bf16.mxu0 %v17091_v11  ;;  %v17135_v38 = vld [vmem:[#allocation43_spill] sm:$0xff] }
 0x20c   : > { %10077 = vmatprep.subr.bf16.mxu1 %v16853_v26  ;;  %v14594_v26 = vand.u32 4294901760, %v444_v47 }
 0x20d   : > { %8855 = vmatmul.mubr.f32.vlgmr.msra.gmra.mrb[4].mxu0 %v14430_v21 }
 0x20e   : > { %10627 = vmatpush3.bf16.msra.mxu0 %v17091_v11  ;;  %8889 = vmatprep.mubr.f32.mxu0 %v14376_v40 }
 0x20f   : > { %10079 = vmatpush1.bf16.msra.mxu1 %v16856_v10  ;;  %10629 = vmatprep.subr.bf16.mxu0 %v17092_v7  ;;  %v17137_v10 = vld [vmem:[#allocation55_spill] sm:$0xff] }
 0x210   : > { %10081 = vmatprep.subr.bf16.mxu1 %v17131_v34 }
 0x212   : > { %4153 = vmatmul.mubr.f32.vlgmr.msra.gmra.mrb[4].mxu1 %v16854_v49  ;;  %10631 = vmatpush3.bf16.msra.mxu0 %v17092_v7  ;;  %v17136_v49 = vld [vmem:[#allocation46_spill] sm:$0xff] }
 0x213   : > { %10083 = vmatpush1.bf16.msra.mxu1 %v17132_v41  ;;  %10633 = vmatprep.subr.bf16.mxu0 %v17095_v55 }
 0x214   : > { %10085 = vmatprep.subr.bf16.mxu1 %v17133_v27  ;;  %4158 = vmatprep.mubr.f32.mxu1 %v16799_v4 }
 0x216   : > { %10635 = vmatpush3.bf16.msra.mxu0 %v17095_v55  ;;  %4160 = vmatmul.mubr.f32.gmra.mrb[6].mxu1 %v13165_v23  ;;  %v14601_v23 = vsub.f32 %v444_v47, %v14594_v26  ;;  %v6732_v47 = vand.u32 4294901760, %v14676_v33  ;;  %v16201_v55 = vand.u32 4294901760, %v14713_v8 }
 0x217   : > { %10087 = vmatpush1.bf16.msra.mxu1 %v17134_v28  ;;  %10637 = vmatprep.subr.bf16.mxu0 %v17098_v24 }
 0x218   : > { %10089 = vmatprep.subr.bf16.mxu1 %v17135_v38  ;;  %4262 = vmatprep.mubr.f32.mxu1 %v16799_v4  ;;  %v16186_v40 = vand.u32 4294901760, %v14601_v23  ;;  %v14705_v9 = vpack.c.bf16 %v6732_v47, %v6729_v32 }
 0x21a   : > { %10639 = vmatpush3.bf16.msra.mxu0 %v17098_v24  ;;  %v6794_v60 = vsub.f32 %v14601_v23, %v16186_v40  ;;  %v17151_v40 = vld [vmem:[#allocation24_spill] sm:$0xff]  ;;  %17152 = vst [vmem:[#allocation57_spill] sm:$0xff] %v14705_v9 }
 0x21b   : > { %10091 = vmatpush1.bf16.msra.mxu1 %v17136_v49  ;;  %10641 = vmatprep.subr.bf16.mxu0 %v17101_v12 }
 0x21c   : > { %10093 = vmatprep.subr.bf16.mxu1 %v17137_v10  ;;  %v6795_v16 = vand.u32 4294901760, %v6794_v60  ;;  %v17149_v60 = vld [vmem:[#allocation18_spill] sm:$0xff] }
 0x21e   : > { %10643 = vmatpush3.bf16.msra.mxu0 %v17101_v12 }
 0x21f   : > { %10095 = vmatpush1.bf16.msra.mxu1 %v17138_v19  ;;  %10645 = vmatprep.subr.bf16.mxu0 %v17104_v18 }
 0x220   : > { %10097 = vmatprep.subr.bf16.mxu1 %v17139_v29 }
 0x222   : > { %10647 = vmatpush3.bf16.msra.mxu0 %v17104_v18 }
 0x223   : > { %10099 = vmatpush1.bf16.msra.mxu1 %v17140_v37  ;;  %10649 = vmatprep.subr.bf16.mxu0 %v17107_v35 }
 0x224   : > { %10101 = vmatprep.subr.bf16.mxu1 %v17141_v44 }
 0x225   : > { %v14627_v1 = vpop.f32.mrb[0].mxu1 }
 0x226   : > { %v14629_v45 = vpop.f32.mrb[1].mxu1  ;;  %10651 = vmatpush3.bf16.msra.mxu0 %v17107_v35  ;;  %v17155_v35 = vld [vmem:[#allocation33_spill] sm:$0xff] }
 0x227   : > { %10103 = vmatpush1.bf16.msra.mxu1 %v17142_v36  ;;  %10653 = vmatprep.subr.bf16.mxu0 %v17110_v0 }
 0x228   : > { %10105 = vmatprep.subr.bf16.mxu1 %v17143_v48 }
 0x229   : > { %v14652_v30 = vpop.f32.mrb[2].mxu1 }
 0x22a   : > { %v14654_v20 = vpop.f32.mrb[3].mxu1  ;;  %10655 = vmatpush3.bf16.msra.mxu0 %v17110_v0  ;;  %v14735_v0 = vsub.f32 %v5994_v31, %v6714_v46  ;;  %v14751_v31 = vand.u32 4294901760, %v445_v62 }
 0x22b   : > { %10107 = vmatpush1.bf16.msra.mxu1 %v17144_v25  ;;  %10657 = vmatprep.subr.bf16.mxu0 %v14637_v14 }
 0x22c   : > { %10109 = vmatprep.subr.bf16.mxu1 %v17146_v5 }
 0x22d   : > { %8890 = vmatmul.mubr.f32.vlgmr.msra.gmra.mrb[4].mxu0 %v14430_v21  ;;  %v14694_v21 = vld [vmem:[%s15713_s7 + $0x40] sm:$0xff] }
 0x22e   : > { %10659 = vmatpush3.bf16.msra.mxu0 %v14637_v14  ;;  %8924 = vmatprep.mubr.f32.mxu0 %v6795_v16  ;;  %v14699_v16 = vld [vmem:[%s15713_s7 + $0x48] sm:$0xff]  ;;  %v17156_v18 = vand.u32 4294901760, %v14694_v21 }
 0x22f   : > { %10111 = vmatpush1.bf16.msra.mxu1 %v17147_v52  ;;  %10661 = vmatprep.subr.bf16.mxu0 %v14663_v59  ;;  %v17157_v12 = vand.u32 4294901760, %v14699_v16 }
 0x230   : > { %10113 = vmatprep.subr.bf16.mxu1 %v17149_v60  ;;  %v14733_v60 = vsub.f32 %v5993_v61, %v6711_v39  ;;  %v14772_v39 = vld [vmem:[%s15713_s7 + $0x78] sm:$0xff] }
 0x231   : > { %v14743_v24 = vpack.c.bf16 %v17157_v12, %v17156_v18  ;;  %v17160_v18 = vld [vmem:[#allocation36_spill] sm:$0xff] }
 0x232   : > { %4268 = vmatmul.mubr.f32.vlgmr.msra.gmra.mrb[4].mxu1 %v17150_v15  ;;  %10663 = vmatpush3.bf16.msra.mxu0 %v14663_v59  ;;  %v14718_v15 = vld [vmem:[%s15713_s7 + $0x58] sm:$0xff]  ;;  %v17168_v59 = vld [vmem:[#allocation44_spill] sm:$0xff] }
 0x233   : > { %10115 = vmatpush1.bf16.msra.mxu1 %v17151_v40  ;;  %10665 = vmatprep.subr.bf16.mxu0 %v14686_v13  ;;  %v14725_v40 = vld [vmem:[%s15713_s7 + $0x60] sm:$0xff]  ;;  %17158 = vst [vmem:[#allocation59_spill] sm:$0xff] %v14743_v24  ;;  %v16200_v7 = vand.u32 4294901760, %v14718_v15 }
 0x234   : > { %10117 = vmatprep.subr.bf16.mxu1 %v17153_v2  ;;  %4273 = vmatprep.mubr.f32.mxu1 %v16799_v4  ;;  %v14730_v2 = vld [vmem:[%s15713_s7 + $0x68] sm:$0xff]  ;;  %v16210_v61 = vand.u32 4294901760, %v14725_v40 }
 0x235   : > { %v14762_v46 = vpack.c.bf16 %v16200_v7, %v16201_v55  ;;  %v17163_v55 = vld [vmem:[#allocation38_spill] sm:$0xff]  ;;  %v17164_v11 = vand.u32 4294901760, %v14730_v2 }
 0x236   : > { %10667 = vmatpush3.bf16.msra.mxu0 %v14686_v13  ;;  %4279 = vmatmul.mubr.f32.gmra.mrb[6].mxu1 %v17154_v43  ;;  %v17159_v43 = vld [vmem:[#allocation35_spill] sm:$0xff] }
 0x237   : > { %10119 = vmatpush1.bf16.msra.mxu1 %v17155_v35  ;;  %10669 = vmatprep.subr.bf16.mxu0 %v14705_v9  ;;  %v17162_v35 = vand.u32 4294901760, %v14625_v17  ;;  %v14789_v3 = vpack.c.bf16 %v17164_v11, %v16210_v61  ;;  %v17169_v61 = vand.u32 4294901760, %v14645_v57 }
 0x238   : > { %10121 = vmatprep.subr.bf16.mxu1 %v17159_v43  ;;  %4509 = vmatprep.mubr.f32.mxu1 %v16799_v4  ;;  %v14767_v43 = vld [vmem:[%s15713_s7 + $0x70] sm:$0xff] }
 0x239   : > { %v14782_v7 = vsub.f32 %v14625_v17, %v17162_v35  ;;  %17165 = vst [vmem:[#allocation67_spill] sm:$0xff] %v14789_v3  ;;  %v17166_v17 = vand.u32 4294901760, %v14733_v60 }
 0x23a   : > { %10671 = vmatpush3.bf16.msra.mxu0 %v14705_v9  ;;  %v14792_v9 = vsub.f32 %v445_v62, %v14751_v31  ;;  %v14823_v62 = vsub.f32 %v14676_v33, %v6732_v47 }
 0x23b   : > { %10123 = vmatpush1.bf16.msra.mxu1 %v17160_v18  ;;  %10673 = vmatprep.subr.bf16.mxu0 %v14743_v24  ;;  %v17161_v18 = vand.u32 4294901760, %v14620_v56  ;;  %v6815_v35 = vsub.f32 %v14733_v60, %v17166_v17  ;;  %v17176_v33 = vand.u32 4294901760, %v14782_v7 }
 0x23c   : > { %10125 = vmatprep.subr.bf16.mxu1 %v17163_v55  ;;  %v17167_v55 = vand.u32 4294901760, %v14735_v0 }
 0x23d   : > { %v14777_v12 = vsub.f32 %v14620_v56, %v17161_v18  ;;  %v14810_v18 = vsub.f32 %v14645_v57, %v17169_v61  ;;  %v17170_v56 = vand.u32 4294901760, %v14650_v58  ;;  %v17172_v57 = vand.u32 4294901760, %v14767_v43 }
 0x23e   : > { %10675 = vmatpush3.bf16.msra.mxu0 %v14743_v24  ;;  %v6822_v13 = vsub.f32 %v14735_v0, %v17167_v55  ;;  %v17171_v24 = vld [vmem:[#allocation45_spill] sm:$0xff]  ;;  %v14820_v55 = vsub.f32 %v14671_v42, %v6729_v32  ;;  %v17173_v61 = vand.u32 4294901760, %v14772_v39  ;;  %v6836_v32 = vsub.f32 %v14782_v7, %v17176_v33 }
 0x23f   : > { %10127 = vmatpush1.bf16.msra.mxu1 %v17168_v59  ;;  %10677 = vmatprep.subr.bf16.mxu0 %v14762_v46  ;;  %v14815_v17 = vsub.f32 %v14650_v58, %v17170_v56  ;;  %v6816_v58 = vand.u32 4294901760, %v6815_v35  ;;  %v16213_v47 = vand.u32 4294901760, %v14810_v18  ;;  %v17179_v59 = vand.u32 4294901760, %v14699_v16 }
 0x240   : > { %10129 = vmatprep.subr.bf16.mxu1 %v17171_v24  ;;  %v14830_v11 = vpack.c.bf16 %v17173_v61, %v17172_v57  ;;  %v6823_v56 = vand.u32 4294901760, %v6822_v13  ;;  %v17175_v24 = vand.u32 4294901760, %v14777_v12  ;;  %v17177_v13 = vand.u32 4294901760, %v14792_v9 }
 0x241   : > { %v16214_v57 = vand.u32 4294901760, %v14823_v62  ;;  %v6837_v35 = vand.u32 4294901760, %v6836_v32 }
 0x242   : > { %10679 = vmatpush3.bf16.msra.mxu0 %v14762_v46  ;;  %17174 = vst [vmem:[#allocation68_spill] sm:$0xff] %v14830_v11  ;;  %v6829_v42 = vsub.f32 %v14777_v12, %v17175_v24  ;;  %v10688_v61 = vpack.c.bf16 %v6823_v56, %v6816_v58  ;;  %v17178_v24 = vand.u32 4294901760, %v14694_v21  ;;  %v6843_v58 = vsub.f32 %v14810_v18, %v16213_v47 }
 0x243   : > { %10131 = vmatpush1.bf16.msra.mxu1 %v14131_v6  ;;  %10681 = vmatprep.subr.bf16.mxu0 %v14789_v3  ;;  %v6804_v6 = vsub.f32 %v14792_v9, %v17177_v13  ;;  %v17180_v56 = vand.u32 4294901760, %v14815_v17  ;;  %v17182_v47 = vand.u32 4294901760, %v14713_v8 }
 0x244   : > { %10133 = vmatprep.subr.bf16.mxu1 %v14135_v50  ;;  %v14852_v33 = vsub.f32 %v14694_v21, %v17178_v24  ;;  %v14857_v50 = vsub.f32 %v14699_v16, %v17179_v59  ;;  %v6830_v13 = vand.u32 4294901760, %v6829_v42  ;;  %v17181_v16 = vand.u32 4294901760, %v14820_v55 }
 0x245   : > { %v6850_v21 = vsub.f32 %v14815_v17, %v17180_v56  ;;  %v6805_v24 = vand.u32 4294901760, %v6804_v6  ;;  %v14880_v56 = vsub.f32 %v14713_v8, %v17182_v47 }
 0x246   : > { %10683 = vmatpush3.bf16.msra.mxu0 %v14789_v3  ;;  %v6857_v59 = vsub.f32 %v14820_v55, %v17181_v16  ;;  %v10692_v16 = vpack.c.bf16 %v6837_v35, %v6830_v13  ;;  %v17184_v8 = vand.u32 4294901760, %v14852_v33  ;;  %v17185_v3 = vand.u32 4294901760, %v14857_v50 }
 0x247   : > { %10135 = vmatpush1.bf16.msra.mxu1 %v14151_v54  ;;  %10685 = vmatprep.subr.bf16.mxu0 %v14830_v11  ;;  %v6864_v54 = vsub.f32 %v14823_v62, %v16214_v57  ;;  %v6844_v57 = vand.u32 4294901760, %v6843_v58  ;;  %v17187_v58 = vand.u32 4294901760, %v14730_v2 }
 0x248   : > { %10137 = vmatprep.subr.bf16.mxu1 %v14163_v53  ;;  %v17183_v53 = vand.u32 4294901760, %v14718_v15  ;;  %v6858_v32 = vand.u32 4294901760, %v6857_v59  ;;  %v6871_v47 = vsub.f32 %v14852_v33, %v17184_v8  ;;  %v17189_v59 = vld [vmem:[#allocation89_spill] sm:$0xff] }
 0x249   : > { %v6865_v42 = vand.u32 4294901760, %v6864_v54 }
 0x24a   : > { %10687 = vmatpush3.bf16.msra.mxu0 %v14830_v11  ;;  %v14885_v6 = vsub.f32 %v14718_v15, %v17183_v53  ;;  %v6851_v11 = vand.u32 4294901760, %v6850_v21  ;;  %v6878_v15 = vsub.f32 %v14857_v50, %v17185_v3  ;;  %v14907_v21 = vsub.f32 %v14730_v2, %v17187_v58  ;;  %v17188_v3 = vld [vmem:[#allocation11_spill] sm:$0xff] }
 0x24b   : > { %10139 = vmatpush1.bf16.msra.mxu1 %v14167_v51  ;;  %10689 = vmatprep.subr.bf16.mxu0 %v10688_v61  ;;  %v6884_v51 = vand.u32 4294901760, %v14880_v56  ;;  %v6872_v54 = vand.u32 4294901760, %v6871_v47  ;;  %v17193_v47 = vld [vmem:[#allocation19_spill] sm:$0xff] }
 0x24c   : > { %10141 = vmatprep.subr.bf16.mxu1 %v14171_v22  ;;  %v6891_v35 = vand.u32 4294901760, %v14885_v6  ;;  %v10696_v22 = vpack.c.bf16 %v6851_v11, %v6844_v57  ;;  %v17190_v57 = vld [vmem:[#allocation12_spill] sm:$0xff] }
 0x24d   : > { %8925 = vmatmul.mubr.f32.vlgmr.msra.gmra.mrb[4].mxu0 %v6805_v24  ;;  %v10700_v24 = vpack.c.bf16 %v6865_v42, %v6858_v32  ;;  %v6885_v11 = vsub.f32 %v14880_v56, %v6884_v51  ;;  %v16219_v42 = vand.u32 4294901760, %v14907_v21  ;;  %v17191_v32 = vand.u32 4294901760, %v14767_v43 }
 0x24e   : > { %10691 = vmatpush3.bf16.msra.mxu0 %v10688_v61  ;;  %8959 = vmatprep.mubr.f32.mxu0 %v14594_v26  ;;  %v17186_v61 = vand.u32 4294901760, %v14725_v40 }
 0x24f   : > { %10143 = vmatpush1.bf16.msra.mxu1 %v14175_v63  ;;  %10693 = vmatprep.subr.bf16.mxu0 %v10692_v16  ;;  %v6879_v63 = vand.u32 4294901760, %v6878_v15  ;;  %v14923_v53 = vsub.f32 %v14767_v43, %v17191_v32 }
 0x250   : > { %v14902_v13 = vsub.f32 %v14725_v40, %v17186_v61  ;;  %10145 = vmatprep.subr.bf16.mxu1 %v17188_v3  ;;  %v6892_v40 = vsub.f32 %v14885_v6, %v6891_v35  ;;  %v6886_v61 = vand.u32 4294901760, %v6885_v11  ;;  %v17194_v3 = vld [vmem:[#allocation109_spill] sm:$0xff]  ;;  %v17197_v11 = vld [vmem:[#allocation30_spill] sm:$0xff] }
 0x251   : > { %v10704_v15 = vpack.c.bf16 %v6879_v63, %v6872_v54  ;;  %v16220_v32 = vand.u32 4294901760, %v14923_v53  ;;  %v17196_v54 = vld [vmem:[#allocation29_spill] sm:$0xff] }
 0x252   : > { %4511 = vmatmul.mubr.f32.vlgmr.msra.gmra.mrb[4].mxu1 %v17189_v59  ;;  %10695 = vmatpush3.bf16.msra.mxu0 %v10692_v16  ;;  %v16221_v2 = vand.u32 4294901760, %v14902_v13  ;;  %v17192_v16 = vand.u32 4294901760, %v14772_v39  ;;  %v6893_v58 = vand.u32 4294901760, %v6892_v40 }
 0x253   : > { %10147 = vmatpush1.bf16.msra.mxu1 %v17190_v57  ;;  %10697 = vmatprep.subr.bf16.mxu0 %v10696_v22  ;;  %v17195_v57 = vld [vmem:[#allocation21_spill] sm:$0xff] }
 0x254   : > { %v14928_v8 = vsub.f32 %v14772_v39, %v17192_v16  ;;  %10149 = vmatprep.subr.bf16.mxu1 %v17193_v47  ;;  %4516 = vmatprep.mubr.f32.mxu1 %v16799_v4  ;;  %v6899_v43 = vsub.f32 %v14902_v13, %v16221_v2  ;;  %v6906_v39 = vsub.f32 %v14907_v21, %v16219_v42  ;;  %v17198_v42 = vld [vmem:[#allocation39_spill] sm:$0xff] }
 0x255   : > { %v10708_v63 = vpack.c.bf16 %v6893_v58, %v6886_v61  ;;  %v6913_v47 = vsub.f32 %v14923_v53, %v16220_v32 }
 0x256   : > { %10699 = vmatpush3.bf16.msra.mxu0 %v10696_v22  ;;  %4518 = vmatmul.mubr.f32.gmra.mrb[6].mxu1 %v17194_v3  ;;  %v16222_v22 = vand.u32 4294901760, %v14928_v8  ;;  %v6900_v40 = vand.u32 4294901760, %v6899_v43  ;;  %v6907_v16 = vand.u32 4294901760, %v6906_v39 }
 0x257   : > { %10151 = vmatpush1.bf16.msra.mxu1 %v17195_v57  ;;  %10701 = vmatprep.subr.bf16.mxu0 %v10700_v24  ;;  %v6914_v61 = vand.u32 4294901760, %v6913_v47 }
 0x258   : > { %10153 = vmatprep.subr.bf16.mxu1 %v17196_v54  ;;  %4652 = vmatprep.mubr.f32.mxu1 %v16799_v4  ;;  %v6920_v57 = vsub.f32 %v14928_v8, %v16222_v22  ;;  %v17199_v54 = vld [vmem:[#allocation41_spill] sm:$0xff]  ;;  %v17203_v22 = vld [vmem:[#allocation50_spill] sm:$0xff] }
 0x25a   : > { %10703 = vmatpush3.bf16.msra.mxu0 %v10700_v24  ;;  %v10712_v24 = vpack.c.bf16 %v6907_v16, %v6900_v40  ;;  %v6921_v58 = vand.u32 4294901760, %v6920_v57 }
 0x25b   : > { %10155 = vmatpush1.bf16.msra.mxu1 %v17197_v11  ;;  %10705 = vmatprep.subr.bf16.mxu0 %v10704_v15  ;;  %v17200_v11 = vld [vmem:[#allocation49_spill] sm:$0xff] }
 0x25c   : > { %10157 = vmatprep.subr.bf16.mxu1 %v17198_v42  ;;  %v10716_v42 = vpack.c.bf16 %v6921_v58, %v6914_v61  ;;  %v10732_v61 = vpack.c.bf16 %v14823_v62, %v14820_v55  ;;  %v17213_v58 = vld [vmem:[#allocation112_spill] sm:$0xff] }
 0x25e   : > { %10707 = vmatpush3.bf16.msra.mxu0 %v10704_v15  ;;  %v17204_v15 = vld [vmem:[#allocation60_spill] sm:$0xff] }
 0x25f   : > { %10159 = vmatpush1.bf16.msra.mxu1 %v17199_v54  ;;  %10709 = vmatprep.subr.bf16.mxu0 %v10708_v63  ;;  %v10728_v54 = vpack.c.bf16 %v14815_v17, %v14810_v18 }
 0x260   : > { %10161 = vmatprep.subr.bf16.mxu1 %v17200_v11  ;;  %v3246_v43 = vpop.f32.mrb[0].mxu0  ;;  %v10736_v11 = vpack.c.bf16 %v14857_v50, %v14852_v33 }
 0x261   : > { %v14955_v39 = vadd.f32 %v3246_v43, %v14627_v1  ;;  %v3248_v32 = vpop.f32.mrb[1].mxu0  ;;  %v17207_v1 = vld [vmem:[#allocation62_spill] sm:$0xff]  ;;  %v10740_v43 = vpack.c.bf16 %v14885_v6, %v14880_v56  ;;  %v17262_v56 = vld [vmem:[#allocation85_spill] sm:$0xff]  ;;  %v15141_v6 = vld [vmem:[%s15713_s7 + $0x100] sm:$0xff] }
 0x262   : > { %v14958_v2 = vadd.f32 %v3248_v32, %v14629_v45  ;;  %10711 = vmatpush3.bf16.msra.mxu0 %v10708_v63  ;;  %v10720_v45 = vpack.c.bf16 %v14735_v0, %v14733_v60  ;;  %v17208_v32 = vld [vmem:[#allocation73_spill] sm:$0xff]  ;;  %v17210_v63 = vld [vmem:[#allocation83_spill] sm:$0xff] }
 0x263   : > { %17201 = vst [vmem:[#allocation70_spill] sm:$0xff] %v14955_v39  ;;  %10163 = vmatpush1.bf16.msra.mxu1 %v17203_v22  ;;  %10713 = vmatprep.subr.bf16.mxu0 %v10712_v24  ;;  %v17209_v22 = vld [vmem:[#allocation74_spill] sm:$0xff] }
 0x264   : > { %17202 = vst [vmem:[#allocation71_spill] sm:$0xff] %v14958_v2  ;;  %10165 = vmatprep.subr.bf16.mxu1 %v17204_v15  ;;  %v3253_v40 = vpop.f32.mrb[2].mxu0  ;;  %v10748_v15 = vpack.c.bf16 %v14928_v8, %v14923_v53 }
 0x265   : > { %v14963_v16 = vadd.f32 %v3253_v40, %v14652_v30  ;;  %v3255_v47 = vpop.f32.mrb[3].mxu0  ;;  %v10724_v30 = vpack.c.bf16 %v14782_v7, %v14777_v12  ;;  %v17214_v40 = vand.u32 4294901760, %v14601_v23 }
 0x266   : > { %v14966_v57 = vadd.f32 %v3255_v47, %v14654_v20  ;;  %10715 = vmatpush3.bf16.msra.mxu0 %v10712_v24  ;;  %v17211_v20 = vld [vmem:[#allocation84_spill] sm:$0xff]  ;;  %v17212_v24 = vld [vmem:[#allocation91_spill] sm:$0xff]  ;;  %v17215_v47 = vld [vmem:[#allocation54_spill] sm:$0xff] }
 0x267   : > { %17205 = vst [vmem:[#allocation77_spill] sm:$0xff] %v14963_v16  ;;  %10167 = vmatpush1.bf16.msra.mxu1 %v17207_v1  ;;  %10717 = vmatprep.subr.bf16.mxu0 %v10716_v42  ;;  %v17216_v1 = vld [vmem:[#allocation114_spill] sm:$0xff]  ;;  %v17288_v16 = vld [vmem:[#allocation205_spill] sm:$0xff] }
 0x268   : > { %17206 = vst [vmem:[#allocation79_spill] sm:$0xff] %v14966_v57  ;;  %10169 = vmatprep.subr.bf16.mxu1 %v17208_v32  ;;  %v17218_v32 = vld [vmem:[#allocation117_spill] sm:$0xff]  ;;  %v17284_v57 = vld [vmem:[#allocation204_spill] sm:$0xff] }
 0x26a   : > { %10719 = vmatpush3.bf16.msra.mxu0 %v10716_v42  ;;  %v10744_v42 = vpack.c.bf16 %v14907_v21, %v14902_v13 }
 0x26b   : > { %10171 = vmatpush1.bf16.msra.mxu1 %v17209_v22  ;;  %10721 = vmatprep.subr.bf16.mxu0 %v10720_v45  ;;  %v17219_v22 = vld [vmem:[#allocation56_spill] sm:$0xff] }
 0x26c   : > { %10173 = vmatprep.subr.bf16.mxu1 %v17210_v63  ;;  %v17222_v63 = vld [vmem:[#allocation120_spill] sm:$0xff] }
 0x26d   : > { %8960 = vmatmul.mubr.f32.vlgmr.msra.gmra.mrb[4].mxu0 %v14751_v31 }
 0x26e   : > { %10723 = vmatpush3.bf16.msra.mxu0 %v10720_v45  ;;  %8994 = vmatprep.mubr.f32.mxu0 %v14601_v23  ;;  %v17217_v45 = vld [vmem:[#allocation93_spill] sm:$0xff]  ;;  %v17221_v23 = vld [vmem:[#allocation115_spill] sm:$0xff] }
 0x26f   : > { %10175 = vmatpush1.bf16.msra.mxu1 %v17211_v20  ;;  %10725 = vmatprep.subr.bf16.mxu0 %v10724_v30  ;;  %v17223_v20 = vld [vmem:[#allocation57_spill] sm:$0xff] }
 0x270   : > { %10177 = vmatprep.subr.bf16.mxu1 %v17131_v34 }
 0x272   : > { %4655 = vmatmul.mubr.f32.vlgmr.msra.gmra.mrb[4].mxu1 %v17212_v24  ;;  %10727 = vmatpush3.bf16.msra.mxu0 %v10724_v30  ;;  %v17220_v30 = vld [vmem:[#allocation118_spill] sm:$0xff]  ;;  %v17225_v24 = vld [vmem:[#allocation124_spill] sm:$0xff] }
 0x273   : > { %10179 = vmatpush1.bf16.msra.mxu1 %v17132_v41  ;;  %10729 = vmatprep.subr.bf16.mxu0 %v10728_v54 }
 0x274   : > { %10181 = vmatprep.subr.bf16.mxu1 %v17133_v27  ;;  %4660 = vmatprep.mubr.f32.mxu1 %v16799_v4 }
 0x276   : > { %10731 = vmatpush3.bf16.msra.mxu0 %v10728_v54  ;;  %4663 = vmatmul.mubr.f32.gmra.mrb[6].mxu1 %v17213_v58  ;;  %v17224_v54 = vld [vmem:[#allocation122_spill] sm:$0xff]  ;;  %v17227_v58 = vld [vmem:[#allocation125_spill] sm:$0xff] }
 0x277   : > { %10183 = vmatpush1.bf16.msra.mxu1 %v17134_v28  ;;  %10733 = vmatprep.subr.bf16.mxu0 %v10732_v61 }
 0x278   : > { %10185 = vmatprep.subr.bf16.mxu1 %v17135_v38  ;;  %4765 = vmatprep.mubr.f32.mxu1 %v16799_v4 }
 0x27a   : > { %10735 = vmatpush3.bf16.msra.mxu0 %v10732_v61  ;;  %v17226_v61 = vld [vmem:[#allocation59_spill] sm:$0xff] }
 0x27b   : > { %10187 = vmatpush1.bf16.msra.mxu1 %v17136_v49  ;;  %10737 = vmatprep.subr.bf16.mxu0 %v10736_v11 }
 0x27c   : > { %10189 = vmatprep.subr.bf16.mxu1 %v17137_v10 }
 0x27e   : > { %10739 = vmatpush3.bf16.msra.mxu0 %v10736_v11  ;;  %v17228_v11 = vld [vmem:[#allocation127_spill] sm:$0xff] }
 0x27f   : > { %10191 = vmatpush1.bf16.msra.mxu1 %v17138_v19  ;;  %10741 = vmatprep.subr.bf16.mxu0 %v10740_v43 }
 0x280   : > { %10193 = vmatprep.subr.bf16.mxu1 %v17139_v29 }
 0x282   : > { %10743 = vmatpush3.bf16.msra.mxu0 %v10740_v43  ;;  %v17229_v43 = vld [vmem:[#allocation131_spill] sm:$0xff] }
 0x283   : > { %10195 = vmatpush1.bf16.msra.mxu1 %v17140_v37  ;;  %10745 = vmatprep.subr.bf16.mxu0 %v10744_v42 }
 0x284   : > { %10197 = vmatprep.subr.bf16.mxu1 %v17141_v44 }
 0x286   : > { %10747 = vmatpush3.bf16.msra.mxu0 %v10744_v42  ;;  %v17230_v42 = vld [vmem:[#allocation135_spill] sm:$0xff] }
 0x287   : > { %10199 = vmatpush1.bf16.msra.mxu1 %v17142_v36  ;;  %10749 = vmatprep.subr.bf16.mxu0 %v10748_v15 }
 0x288   : > { %10201 = vmatprep.subr.bf16.mxu1 %v17143_v48 }
 0x28a   : > { %10751 = vmatpush3.bf16.msra.mxu0 %v10748_v15  ;;  %v17231_v15 = vld [vmem:[#allocation67_spill] sm:$0xff] }
 0x28b   : > { %10203 = vmatpush1.bf16.msra.mxu1 %v17144_v25  ;;  %10753 = vmatprep.subr.bf16.mxu0 %v14637_v14 }
 0x28c   : > { %10205 = vmatprep.subr.bf16.mxu1 %v17146_v5 }
 0x28d   : > { %8995 = vmatmul.mubr.f32.vlgmr.msra.gmra.mrb[4].mxu0 %v14792_v9 }
 0x28e   : > { %10755 = vmatpush3.bf16.msra.mxu0 %v14637_v14  ;;  %9029 = vmatprep.mubr.f32.mxu0 %v17214_v40  ;;  %v17232_v40 = vld [vmem:[#allocation139_spill] sm:$0xff] }
 0x28f   : > { %10207 = vmatpush1.bf16.msra.mxu1 %v17147_v52  ;;  %10757 = vmatprep.subr.bf16.mxu0 %v17215_v47 }
 0x290   : > { %10209 = vmatprep.subr.bf16.mxu1 %v17216_v1  ;;  %v17233_v1 = vld [vmem:[#allocation143_spill] sm:$0xff] }
 0x292   : > { %4769 = vmatmul.mubr.f32.vlgmr.msra.gmra.mrb[4].mxu1 %v17217_v45  ;;  %10759 = vmatpush3.bf16.msra.mxu0 %v17215_v47  ;;  %v17234_v45 = vld [vmem:[#allocation68_spill] sm:$0xff] }
 0x293   : > { %10211 = vmatpush1.bf16.msra.mxu1 %v17218_v32  ;;  %10761 = vmatprep.subr.bf16.mxu0 %v17219_v22  ;;  %v17235_v32 = vand.u32 4294901760, %v14733_v60  ;;  %v17244_v60 = vand.u32 4294901760, %v14810_v18 }
 0x294   : > { %10213 = vmatprep.subr.bf16.mxu1 %v17220_v30  ;;  %4774 = vmatprep.mubr.f32.mxu1 %v16799_v4  ;;  %v17236_v30 = vand.u32 4294901760, %v14735_v0  ;;  %v17243_v0 = vld [vmem:[#allocation159_spill] sm:$0xff] }
 0x296   : > { %10763 = vmatpush3.bf16.msra.mxu0 %v17219_v22  ;;  %4778 = vmatmul.mubr.f32.gmra.mrb[6].mxu1 %v17221_v23  ;;  %v10784_v23 = vpack.c.bf16 %v17236_v30, %v17235_v32  ;;  %v17265_v32 = vld [vmem:[#allocation175_spill] sm:$0xff] }
 0x297   : > { %10215 = vmatpush1.bf16.msra.mxu1 %v17222_v63  ;;  %10765 = vmatprep.subr.bf16.mxu0 %v17223_v20  ;;  %v17237_v63 = vld [vmem:[#allocation147_spill] sm:$0xff] }
 0x298   : > { %10217 = vmatprep.subr.bf16.mxu1 %v17224_v54  ;;  %4944 = vmatprep.mubr.f32.mxu1 %v16799_v4  ;;  %v17238_v54 = vld [vmem:[#allocation151_spill] sm:$0xff] }
 0x29a   : > { %10767 = vmatpush3.bf16.msra.mxu0 %v17223_v20 }
 0x29b   : > { %10219 = vmatpush1.bf16.msra.mxu1 %v17225_v24  ;;  %10769 = vmatprep.subr.bf16.mxu0 %v17226_v61  ;;  %v17239_v24 = vand.u32 4294901760, %v14777_v12 }
 0x29c   : > { %10221 = vmatprep.subr.bf16.mxu1 %v17227_v58  ;;  %v17240_v58 = vand.u32 4294901760, %v14782_v7  ;;  %v17246_v7 = vand.u32 4294901760, %v14820_v55 }
 0x29e   : > { %10771 = vmatpush3.bf16.msra.mxu0 %v17226_v61 }
 0x29f   : > { %10223 = vmatpush1.bf16.msra.mxu1 %v17228_v11  ;;  %10773 = vmatprep.subr.bf16.mxu0 %v14762_v46  ;;  %v10788_v11 = vpack.c.bf16 %v17240_v58, %v17239_v24  ;;  %v15193_v24 = vld [vmem:[%s15713_s7 + $0x128] sm:$0xff] }
 0x2a0   : > { %10225 = vmatprep.subr.bf16.mxu1 %v17229_v43  ;;  %v17241_v43 = vld [vmem:[#allocation155_spill] sm:$0xff] }
 0x2a2   : > { %10775 = vmatpush3.bf16.msra.mxu0 %v14762_v46 }
 0x2a3   : > { %10227 = vmatpush1.bf16.msra.mxu1 %v17230_v42  ;;  %10777 = vmatprep.subr.bf16.mxu0 %v17231_v15  ;;  %v17242_v42 = vand.u32 4294901760, %v14792_v9  ;;  %v17247_v9 = vand.u32 4294901760, %v14823_v62 }
 0x2a4   : > { %10229 = vmatprep.subr.bf16.mxu1 %v17232_v40  ;;  %v17245_v40 = vand.u32 4294901760, %v14815_v17  ;;  %v17253_v17 = vand.u32 4294901760, %v14928_v8 }
 0x2a5   : > { %v10796_v12 = vpack.c.bf16 %v17247_v9, %v17246_v7  ;;  %v15219_v7 = vld [vmem:[%s15713_s7 + $0x138] sm:$0xff] }
 0x2a6   : > { %10779 = vmatpush3.bf16.msra.mxu0 %v17231_v15 }
 0x2a7   : > { %10231 = vmatpush1.bf16.msra.mxu1 %v17233_v1  ;;  %10781 = vmatprep.subr.bf16.mxu0 %v17234_v45  ;;  %v10792_v1 = vpack.c.bf16 %v17245_v40, %v17244_v60  ;;  %v17268_v40 = vld [vmem:[#allocation179_spill] sm:$0xff] }
 0x2a8   : > { %10233 = vmatprep.subr.bf16.mxu1 %v17237_v63 }
 0x2aa   : > { %10783 = vmatpush3.bf16.msra.mxu0 %v17234_v45 }
 0x2ab   : > { %10235 = vmatpush1.bf16.msra.mxu1 %v17238_v54  ;;  %10785 = vmatprep.subr.bf16.mxu0 %v10784_v23  ;;  %v15188_v54 = vld [vmem:[%s15713_s7 + $0x120] sm:$0xff] }
 0x2ac   : > { %10237 = vmatprep.subr.bf16.mxu1 %v17241_v43  ;;  %v16231_v60 = vand.u32 4294901760, %v15188_v54 }
 0x2ad   : > { %9030 = vmatmul.mubr.f32.vlgmr.msra.gmra.mrb[4].mxu0 %v17242_v42  ;;  %v17267_v42 = vld [vmem:[#allocation178_spill] sm:$0xff] }
 0x2ae   : > { %10787 = vmatpush3.bf16.msra.mxu0 %v10784_v23  ;;  %9064 = vmatprep.mubr.f32.mxu0 %v14594_v26 }
 0x2af   : > { %10239 = vmatpush1.bf16.msra.mxu1 %v17243_v0  ;;  %10789 = vmatprep.subr.bf16.mxu0 %v10788_v11 }
 0x2b0   : > { %10241 = vmatprep.subr.bf16.mxu1 %v17131_v34  ;;  %v17248_v34 = vand.u32 4294901760, %v14852_v33  ;;  %v17261_v33 = vld [vmem:[#allocation171_spill] sm:$0xff] }
 0x2b2   : > { %4946 = vmatmul.mubr.f32.vlgmr.msra.gmra.mrb[4].mxu1 %v17189_v59  ;;  %10791 = vmatpush3.bf16.msra.mxu0 %v10788_v11 }
 0x2b3   : > { %10243 = vmatpush1.bf16.msra.mxu1 %v17132_v41  ;;  %10793 = vmatprep.subr.bf16.mxu0 %v10792_v1  ;;  %v17249_v41 = vand.u32 4294901760, %v14857_v50  ;;  %v439_v50 = vld [vmem:[#allocation2 + $0xa] sm:$0xff] }
 0x2b4   : > { %10245 = vmatprep.subr.bf16.mxu1 %v17133_v27  ;;  %4951 = vmatprep.mubr.f32.mxu1 %v16799_v4  ;;  %v10804_v27 = vpack.c.bf16 %v6891_v35, %v6884_v51  ;;  %v15146_v51 = vld [vmem:[%s15713_s7 + $0x108] sm:$0xff] }
 0x2b5   : > { %v10800_v18 = vpack.c.bf16 %v17249_v41, %v17248_v34  ;;  %v7415_v8 = vand.u32 4294901760, %v15146_v51  ;;  %v17269_v34 = vld [vmem:[#allocation180_spill] sm:$0xff] }
 0x2b6   : > { %10795 = vmatpush3.bf16.msra.mxu0 %v10792_v1  ;;  %4953 = vmatmul.mubr.f32.gmra.mrb[6].mxu1 %v17194_v3  ;;  %v15214_v1 = vld [vmem:[%s15713_s7 + $0x130] sm:$0xff] }
 0x2b7   : > { %10247 = vmatpush1.bf16.msra.mxu1 %v17134_v28  ;;  %10797 = vmatprep.subr.bf16.mxu0 %v10796_v12  ;;  %v17250_v28 = vand.u32 4294901760, %v14902_v13  ;;  %v15152_v13 = vand.u32 4294901760, %v439_v50 }
 0x2b8   : > { %10249 = vmatprep.subr.bf16.mxu1 %v17135_v38  ;;  %5055 = vmatprep.mubr.f32.mxu1 %v16799_v4  ;;  %v17251_v38 = vand.u32 4294901760, %v14907_v21 }
 0x2ba   : > { %10799 = vmatpush3.bf16.msra.mxu0 %v10796_v12  ;;  %v10808_v62 = vpack.c.bf16 %v17251_v38, %v17250_v28  ;;  %v15240_v28 = vld [vmem:[%s15713_s7 + $0x140] sm:$0xff]  ;;  %v15245_v38 = vld [vmem:[%s15713_s7 + $0x148] sm:$0xff] }
 0x2bb   : > { %10251 = vmatpush1.bf16.msra.mxu1 %v17136_v49  ;;  %10801 = vmatprep.subr.bf16.mxu0 %v10800_v18  ;;  %v17252_v49 = vand.u32 4294901760, %v14923_v53  ;;  %v7412_v53 = vand.u32 4294901760, %v15141_v6  ;;  %v17293_v2 = vand.u32 4294901760, %v15240_v28 }
 0x2bc   : > { %10253 = vmatprep.subr.bf16.mxu1 %v17137_v10 }
 0x2bd   : > { %v10812_v10 = vpack.c.bf16 %v17253_v17, %v17252_v49  ;;  %v15180_v30 = vpack.c.bf16 %v7415_v8, %v7412_v53  ;;  %v17271_v49 = vld [vmem:[#allocation183_spill] sm:$0xff] }
 0x2be   : > { %10803 = vmatpush3.bf16.msra.mxu0 %v10800_v18  ;;  %v7433_v18 = vand.u32 4294901760, %v15219_v7 }
 0x2bf   : > { %10255 = vmatpush1.bf16.msra.mxu1 %v17138_v19  ;;  %10805 = vmatprep.subr.bf16.mxu0 %v10804_v27  ;;  %v17254_v19 = vld [vmem:[#allocation163_spill] sm:$0xff] }
 0x2c0   : > { %10257 = vmatprep.subr.bf16.mxu1 %v17139_v29  ;;  %v17255_v29 = vld [vmem:[#allocation164_spill] sm:$0xff] }
 0x2c2   : > { %10807 = vmatpush3.bf16.msra.mxu0 %v10804_v27  ;;  %v17270_v27 = vld [vmem:[#allocation181_spill] sm:$0xff] }
 0x2c3   : > { %10259 = vmatpush1.bf16.msra.mxu1 %v17140_v37  ;;  %10809 = vmatprep.subr.bf16.mxu0 %v10808_v62  ;;  %v17256_v37 = vld [vmem:[#allocation165_spill] sm:$0xff] }
 0x2c4   : > { %10261 = vmatprep.subr.bf16.mxu1 %v17141_v44  ;;  %v446_v44 = vld [vmem:[#allocation4 + $0x2] sm:$0xff] }
 0x2c6   : > { %10811 = vmatpush3.bf16.msra.mxu0 %v10808_v62 }
 0x2c7   : > { %10263 = vmatpush1.bf16.msra.mxu1 %v17142_v36  ;;  %10813 = vmatprep.subr.bf16.mxu0 %v10812_v10  ;;  %v17258_v36 = vld [vmem:[#allocation167_spill] sm:$0xff] }
 0x2c8   : > { %10265 = vmatprep.subr.bf16.mxu1 %v17143_v48  ;;  %v17259_v48 = vld [vmem:[#allocation168_spill] sm:$0xff] }
 0x2ca   : > { %10815 = vmatpush3.bf16.msra.mxu0 %v10812_v10  ;;  %v16227_v10 = vand.u32 4294901760, %v15240_v28 }
 0x2cb   : > { %10267 = vmatpush1.bf16.msra.mxu1 %v17144_v25  ;;  %10817 = vmatprep.subr.bf16.mxu0 %v14637_v14  ;;  %v438_v25 = vld [vmem:[#allocation2 + $0x2] sm:$0xff] }
 0x2cc   : > { %10269 = vmatprep.subr.bf16.mxu1 %v17146_v5  ;;  %v17260_v5 = vld [vmem:[#allocation170_spill] sm:$0xff] }
 0x2cd   : > { %9065 = vmatmul.mubr.f32.vlgmr.msra.gmra.mrb[4].mxu0 %v14751_v31 }
 0x2ce   : > { %10819 = vmatpush3.bf16.msra.mxu0 %v14637_v14  ;;  %9099 = vmatprep.mubr.f32.mxu0 %v14594_v26  ;;  %v17257_v26 = vld [vmem:[#allocation166_spill] sm:$0xff]  ;;  %v15124_v14 = vand.u32 4294901760, %v446_v44 }
 0x2cf   : > { %10271 = vmatpush1.bf16.msra.mxu1 %v17147_v52  ;;  %10821 = vmatprep.subr.bf16.mxu0 %v17215_v47  ;;  %v15130_v52 = vand.u32 4294901760, %v438_v25 }
 0x2d0   : > { %10273 = vmatprep.subr.bf16.mxu1 %v17254_v19  ;;  %v15133_v55 = vsub.f32 %v446_v44, %v15124_v14  ;;  %v16226_v44 = vand.u32 4294901760, %v15245_v38 }
 0x2d1   : > { %v15150_v35 = vsub.f32 %v438_v25, %v15130_v52  ;;  %v17273_v25 = vld [vmem:[#allocation197_spill] sm:$0xff] }
 0x2d2   : > { %5057 = vmatmul.mubr.f32.vlgmr.msra.gmra.mrb[4].mxu1 %v17189_v59  ;;  %10823 = vmatpush3.bf16.msra.mxu0 %v17215_v47  ;;  %v16225_v21 = vand.u32 4294901760, %v15133_v55  ;;  %v17263_v59 = vld [vmem:[#allocation173_spill] sm:$0xff]  ;;  %v15168_v47 = vld [vmem:[%s15713_s7 + $0x118] sm:$0xff] }
 0x2d3   : > { %10275 = vmatpush1.bf16.msra.mxu1 %v17255_v29  ;;  %10825 = vmatprep.subr.bf16.mxu0 %v17219_v22  ;;  %v7421_v63 = vand.u32 4294901760, %v15168_v47 }
 0x2d4   : > { %10277 = vmatprep.subr.bf16.mxu1 %v17256_v37  ;;  %5062 = vmatprep.mubr.f32.mxu1 %v16799_v4 }
 0x2d6   : > { %10827 = vmatpush3.bf16.msra.mxu0 %v17219_v22  ;;  %5064 = vmatmul.mubr.f32.gmra.mrb[6].mxu1 %v17194_v3  ;;  %v17264_v3 = vld [vmem:[#allocation174_spill] sm:$0xff]  ;;  %v16224_v22 = vand.u32 4294901760, %v15150_v35 }
 0x2d7   : > { %10279 = vmatpush1.bf16.msra.mxu1 %v17257_v26  ;;  %10829 = vmatprep.subr.bf16.mxu0 %v17223_v20 }
 0x2d8   : > { %10281 = vmatprep.subr.bf16.mxu1 %v17258_v36  ;;  %5166 = vmatprep.mubr.f32.mxu1 %v16799_v4  ;;  %v5170_v58 = vsub.f32 %v15150_v35, %v16224_v22 }
 0x2da   : > { %10831 = vmatpush3.bf16.msra.mxu0 %v17223_v20  ;;  %v15173_v20 = vsub.f32 %v439_v50, %v15152_v13  ;;  %v5171_v9 = vand.u32 4294901760, %v5170_v58  ;;  %v15258_v50 = vld [vmem:[%s15713_s7 + $0x150] sm:$0xff]  ;;  %v15270_v58 = vld [vmem:[%s15713_s7 + $0x160] sm:$0xff] }
 0x2db   : > { %10283 = vmatpush1.bf16.msra.mxu1 %v17259_v48  ;;  %10833 = vmatprep.subr.bf16.mxu0 %v17226_v61 }
 0x2dc   : > { %10285 = vmatprep.subr.bf16.mxu1 %v17260_v5  ;;  %v16223_v11 = vand.u32 4294901760, %v15173_v20 }
 0x2de   : > { %10835 = vmatpush3.bf16.msra.mxu0 %v17226_v61  ;;  %v7495_v61 = vsub.f32 %v15133_v55, %v16225_v21  ;;  %v5181_v12 = vsub.f32 %v15173_v20, %v16223_v11  ;;  %v16229_v11 = vand.u32 4294901760, %v15258_v50  ;;  %v17277_v21 = vld [vmem:[#allocation5_spill] sm:$0xff] }
 0x2df   : > { %10287 = vmatpush1.bf16.msra.mxu1 %v17261_v33  ;;  %10837 = vmatprep.subr.bf16.mxu0 %v14762_v46 }
 0x2e0   : > { %10289 = vmatprep.subr.bf16.mxu1 %v17262_v56  ;;  %v7496_v43 = vand.u32 4294901760, %v7495_v61  ;;  %v5182_v62 = vand.u32 4294901760, %v5181_v12  ;;  %v15263_v61 = vld [vmem:[%s15713_s7 + $0x158] sm:$0xff]  ;;  %v15281_v12 = vsub.f32 %v15146_v51, %v7415_v8  ;;  %v16233_v51 = vand.u32 4294901760, %v15270_v58 }
 0x2e2   : > { %10839 = vmatpush3.bf16.msra.mxu0 %v14762_v46  ;;  %v15163_v46 = vld [vmem:[%s15713_s7 + $0x110] sm:$0xff]  ;;  %v16235_v22 = vand.u32 4294901760, %v15281_v12 }
 0x2e3   : > { %10291 = vmatpush1.bf16.msra.mxu1 %v17263_v59  ;;  %10841 = vmatprep.subr.bf16.mxu0 %v17231_v15  ;;  %v7418_v23 = vand.u32 4294901760, %v15163_v46 }
 0x2e4   : > { %10293 = vmatprep.subr.bf16.mxu1 %v17264_v3 }
 0x2e5   : > { %v15206_v0 = vpack.c.bf16 %v7421_v63, %v7418_v23 }
 0x2e6   : > { %10843 = vmatpush3.bf16.msra.mxu0 %v17231_v15  ;;  %v17266_v15 = vld [vmem:[#allocation177_spill] sm:$0xff] }
 0x2e7   : > { %10295 = vmatpush1.bf16.msra.mxu1 %v17265_v32  ;;  %10845 = vmatprep.subr.bf16.mxu0 %v17234_v45 }
 0x2e8   : > { %10297 = vmatprep.subr.bf16.mxu1 %v17266_v15 }
 0x2ea   : > { %10847 = vmatpush3.bf16.msra.mxu0 %v17234_v45  ;;  %v16230_v45 = vand.u32 4294901760, %v15193_v24 }
 0x2eb   : > { %10299 = vmatpush1.bf16.msra.mxu1 %v17267_v42  ;;  %10849 = vmatprep.subr.bf16.mxu0 %v15180_v30 }
 0x2ec   : > { %10301 = vmatprep.subr.bf16.mxu1 %v17268_v40  ;;  %v15232_v41 = vpack.c.bf16 %v16230_v45, %v16231_v60 }
 0x2ed   : > { %9100 = vmatmul.mubr.f32.vlgmr.msra.gmra.mrb[4].mxu0 %v14751_v31  ;;  %v7430_v31 = vand.u32 4294901760, %v15214_v1 }
 0x2ee   : > { %10851 = vmatpush3.bf16.msra.mxu0 %v15180_v30  ;;  %9134 = vmatprep.mubr.f32.mxu0 %v7496_v43  ;;  %v15275_v43 = vld [vmem:[%s15713_s7 + $0x168] sm:$0xff] }
 0x2ef   : > { %10303 = vmatpush1.bf16.msra.mxu1 %v17269_v34  ;;  %10853 = vmatprep.subr.bf16.mxu0 %v15206_v0  ;;  %v15250_v17 = vpack.c.bf16 %v7433_v18, %v7430_v31 }
 0x2f0   : > { %10305 = vmatprep.subr.bf16.mxu1 %v17270_v27  ;;  %v447_v27 = vld [vmem:[#allocation4 + $0xa] sm:$0xff] }
 0x2f1   : > { %17272 = vst [vmem:[#allocation80_spill] sm:$0xff] %v15250_v17  ;;  %v15297_v8 = vand.u32 4294901760, %v447_v27 }
 0x2f2   : > { %5172 = vmatmul.mubr.f32.vlgmr.msra.gmra.mrb[4].mxu1 %v5171_v9  ;;  %10855 = vmatpush3.bf16.msra.mxu0 %v15206_v0  ;;  %v15278_v9 = vsub.f32 %v15141_v6, %v7412_v53  ;;  %v17276_v6 = vld [vmem:[#allocation201_spill] sm:$0xff]  ;;  %v16232_v53 = vand.u32 4294901760, %v15275_v43 }
 0x2f3   : > { %10307 = vmatpush1.bf16.msra.mxu1 %v17271_v49  ;;  %10857 = vmatprep.subr.bf16.mxu0 %v15232_v41  ;;  %v17274_v49 = vld [vmem:[#allocation200_spill] sm:$0xff]  ;;  %v15338_v60 = vsub.f32 %v447_v27, %v15297_v8  ;;  %v15369_v27 = vsub.f32 %v15219_v7, %v7433_v18  ;;  %v17295_v18 = vld [vmem:[#allocation207_spill] sm:$0xff] }
 0x2f4   : > { %10309 = vmatprep.subr.bf16.mxu1 %v17273_v25  ;;  %5177 = vmatprep.mubr.f32.mxu1 %v16799_v4  ;;  %v15289_v25 = vpack.c.bf16 %v16226_v44, %v16227_v10  ;;  %v15313_v44 = vld [vmem:[%s15713_s7 + $0x170] sm:$0xff]  ;;  %v15318_v10 = vld [vmem:[%s15713_s7 + $0x178] sm:$0xff]  ;;  %v15335_v45 = vpack.c.bf16 %v16232_v53, %v16233_v51  ;;  %v17282_v51 = vand.u32 4294901760, %v15188_v54 }
 0x2f6   : > { %10859 = vmatpush3.bf16.msra.mxu0 %v15232_v41  ;;  %5183 = vmatmul.mubr.f32.gmra.mrb[6].mxu1 %v5182_v62  ;;  %17275 = vst [vmem:[#allocation82_spill] sm:$0xff] %v15289_v25  ;;  %v16228_v62 = vand.u32 4294901760, %v15263_v61  ;;  %17280 = vst [vmem:[#allocation97_spill] sm:$0xff] %v15335_v45 }
 0x2f7   : > { %10311 = vmatpush1.bf16.msra.mxu1 %v17274_v49  ;;  %10861 = vmatprep.subr.bf16.mxu0 %v15250_v17  ;;  %v16234_v49 = vand.u32 4294901760, %v15278_v9 }
 0x2f8   : > { %10313 = vmatprep.subr.bf16.mxu1 %v17276_v6  ;;  %5413 = vmatprep.mubr.f32.mxu1 %v16799_v4  ;;  %v15308_v6 = vpack.c.bf16 %v16228_v62, %v16229_v11  ;;  %v15328_v62 = vsub.f32 %v15168_v47, %v7421_v63  ;;  %v17279_v11 = vld [vmem:[#allocation6_spill] sm:$0xff]  ;;  %v7523_v63 = vsub.f32 %v15281_v12, %v16235_v22 }
 0x2f9   : > { %v7516_v47 = vsub.f32 %v15278_v9, %v16234_v49  ;;  %v15366_v22 = vsub.f32 %v15214_v1, %v7430_v31 }
 0x2fa   : > { %10863 = vmatpush3.bf16.msra.mxu0 %v15250_v17  ;;  %17278 = vst [vmem:[#allocation176_spill] sm:$0xff] %v15308_v6  ;;  %v17290_v7 = vand.u32 4294901760, %v15328_v62 }
 0x2fb   : > { %10315 = vmatpush1.bf16.msra.mxu1 %v17277_v21  ;;  %10865 = vmatprep.subr.bf16.mxu0 %v15289_v25  ;;  %v15323_v21 = vsub.f32 %v15163_v46, %v7418_v23  ;;  %v15356_v23 = vsub.f32 %v15188_v54, %v17282_v51  ;;  %v17283_v46 = vand.u32 4294901760, %v15193_v24  ;;  %v17285_v54 = vand.u32 4294901760, %v15313_v44 }
 0x2fc   : > { %10317 = vmatprep.subr.bf16.mxu1 %v17279_v11  ;;  %v17281_v11 = vld [vmem:[#allocation13_spill] sm:$0xff]  ;;  %v17286_v51 = vand.u32 4294901760, %v15318_v10  ;;  %v7537_v31 = vsub.f32 %v15328_v62, %v17290_v7  ;;  %v15398_v7 = vsub.f32 %v15240_v28, %v17293_v2  ;;  %v17298_v28 = vld [vmem:[#allocation208_spill] sm:$0xff] }
 0x2fd   : > { %v15361_v49 = vsub.f32 %v15193_v24, %v17283_v46  ;;  %v7517_v24 = vand.u32 4294901760, %v7516_v47  ;;  %v7524_v46 = vand.u32 4294901760, %v7523_v63  ;;  %v17292_v47 = vand.u32 4294901760, %v15338_v60 }
 0x2fe   : > { %10867 = vmatpush3.bf16.msra.mxu0 %v15289_v25  ;;  %v15376_v53 = vpack.c.bf16 %v17286_v51, %v17285_v54  ;;  %v17291_v54 = vld [vmem:[#allocation206_spill] sm:$0xff]  ;;  %v7538_v63 = vand.u32 4294901760, %v7537_v31  ;;  %v17296_v51 = vand.u32 4294901760, %v15356_v23 }
 0x2ff   : > { %10319 = vmatpush1.bf16.msra.mxu1 %v17281_v11  ;;  %10869 = vmatprep.subr.bf16.mxu0 %v15308_v6  ;;  %v17294_v11 = vand.u32 4294901760, %v15245_v38  ;;  %v17304_v25 = vld [vmem:[#allocation42_spill] sm:$0xff] }
 0x300   : > { %10321 = vmatprep.subr.bf16.mxu1 %v17284_v57  ;;  %17287 = vst [vmem:[#allocation65_spill] sm:$0xff] %v15376_v53  ;;  %v17289_v57 = vand.u32 4294901760, %v15323_v21 }
 0x302   : > { %10871 = vmatpush3.bf16.msra.mxu0 %v15308_v6  ;;  %v7530_v1 = vsub.f32 %v15323_v21, %v17289_v57  ;;  %v10880_v57 = vpack.c.bf16 %v7524_v46, %v7517_v24  ;;  %v7544_v24 = vsub.f32 %v15356_v23, %v17296_v51  ;;  %v17297_v46 = vand.u32 4294901760, %v15361_v49 }
 0x303   : > { %10323 = vmatpush1.bf16.msra.mxu1 %v17288_v16  ;;  %10873 = vmatprep.subr.bf16.mxu0 %v15335_v45  ;;  %v7505_v16 = vsub.f32 %v15338_v60, %v17292_v47 }
 0x304   : > { %10325 = vmatprep.subr.bf16.mxu1 %v17291_v54  ;;  %v15403_v54 = vsub.f32 %v15245_v38, %v17294_v11  ;;  %v7531_v47 = vand.u32 4294901760, %v7530_v1  ;;  %v7551_v2 = vsub.f32 %v15361_v49, %v17297_v46  ;;  %v17299_v38 = vand.u32 4294901760, %v15366_v22 }
 0x305   : > { %v7506_v39 = vand.u32 4294901760, %v7505_v16  ;;  %v17302_v16 = vand.u32 4294901760, %v15263_v61  ;;  %v7545_v6 = vand.u32 4294901760, %v7544_v24  ;;  %v17309_v24 = vand.u32 4294901760, %v15275_v43 }
 0x306   : > { %10875 = vmatpush3.bf16.msra.mxu0 %v15335_v45  ;;  %v7558_v11 = vsub.f32 %v15366_v22, %v17299_v38  ;;  %v17301_v45 = vand.u32 4294901760, %v15258_v50  ;;  %v17303_v38 = vld [vmem:[#allocation40_spill] sm:$0xff]  ;;  %v17306_v17 = vand.u32 4294901760, %v15403_v54 }
 0x307   : > { %10327 = vmatpush1.bf16.msra.mxu1 %v17295_v18  ;;  %10877 = vmatprep.subr.bf16.mxu0 %v15376_v53  ;;  %v17300_v18 = vand.u32 4294901760, %v15369_v27 }
 0x308   : > { %10329 = vmatprep.subr.bf16.mxu1 %v17298_v28  ;;  %v15426_v46 = vsub.f32 %v15258_v50, %v17301_v45  ;;  %v15431_v28 = vsub.f32 %v15263_v61, %v17302_v16  ;;  %v7559_v51 = vand.u32 4294901760, %v7558_v11  ;;  %v17305_v45 = vand.u32 4294901760, %v15398_v7 }
 0x309   : > { %v7565_v1 = vsub.f32 %v15369_v27, %v17300_v18  ;;  %v10884_v18 = vpack.c.bf16 %v7538_v63, %v7531_v47  ;;  %v7579_v61 = vsub.f32 %v15403_v54, %v17306_v17  ;;  %v17307_v47 = vld [vmem:[#allocation51_spill] sm:$0xff]  ;;  %v17310_v17 = vld [vmem:[#allocation53_spill] sm:$0xff] }
 0x30a   : > { %10879 = vmatpush3.bf16.msra.mxu0 %v15376_v53  ;;  %v7552_v53 = vand.u32 4294901760, %v7551_v2  ;;  %v7572_v50 = vsub.f32 %v15398_v7, %v17305_v45  ;;  %v7585_v16 = vand.u32 4294901760, %v15426_v46  ;;  %v7592_v63 = vand.u32 4294901760, %v15431_v28 }
 0x30b   : > { %10331 = vmatpush1.bf16.msra.mxu1 %v17303_v38  ;;  %10881 = vmatprep.subr.bf16.mxu0 %v10880_v57  ;;  %v7566_v31 = vand.u32 4294901760, %v7565_v1  ;;  %v15453_v2 = vsub.f32 %v15275_v43, %v17309_v24  ;;  %v7580_v38 = vand.u32 4294901760, %v7579_v61  ;;  %v17313_v45 = vand.u32 4294901760, %v15318_v10  ;;  %v17314_v61 = vld [vmem:[#allocation63_spill] sm:$0xff] }
 0x30c   : > { %10333 = vmatprep.subr.bf16.mxu1 %v17304_v25  ;;  %v17308_v25 = vand.u32 4294901760, %v15270_v58  ;;  %v7573_v1 = vand.u32 4294901760, %v7572_v50 }
 0x30d   : > { %9135 = vmatmul.mubr.f32.vlgmr.msra.gmra.mrb[4].mxu0 %v7506_v39  ;;  %v10888_v39 = vpack.c.bf16 %v7552_v53, %v7545_v6  ;;  %v10892_v11 = vpack.c.bf16 %v7566_v31, %v7559_v51  ;;  %v7586_v53 = vsub.f32 %v15426_v46, %v7585_v16  ;;  %v17311_v6 = vld [vmem:[#allocation61_spill] sm:$0xff]  ;;  %v7606_v31 = vand.u32 4294901760, %v15453_v2 }
 0x30e   : > { %10883 = vmatpush3.bf16.msra.mxu0 %v10880_v57  ;;  %9169 = vmatprep.mubr.f32.mxu0 %v15124_v14  ;;  %v15448_v57 = vsub.f32 %v15270_v58, %v17308_v25  ;;  %v7593_v58 = vsub.f32 %v15431_v28, %v7592_v63  ;;  %v17312_v51 = vand.u32 4294901760, %v15313_v44  ;;  %v15474_v50 = vsub.f32 %v15318_v10, %v17313_v45 }
 0x30f   : > { %10335 = vmatpush1.bf16.msra.mxu1 %v17307_v47  ;;  %10885 = vmatprep.subr.bf16.mxu0 %v10884_v18  ;;  %v10896_v47 = vpack.c.bf16 %v7580_v38, %v7573_v1  ;;  %v7587_v25 = vand.u32 4294901760, %v7586_v53  ;;  %v7607_v10 = vsub.f32 %v15453_v2, %v7606_v31  ;;  %v17316_v1 = vld [vmem:[#allocation86_spill] sm:$0xff]  ;;  %v17317_v53 = vld [vmem:[#allocation76_spill] sm:$0xff] }
 0x310   : > { %10337 = vmatprep.subr.bf16.mxu1 %v17310_v17  ;;  %v7599_v43 = vand.u32 4294901760, %v15448_v57  ;;  %v7594_v24 = vand.u32 4294901760, %v7593_v58  ;;  %v17315_v17 = vld [vmem:[#allocation75_spill] sm:$0xff] }
 0x312   : > { %5415 = vmatmul.mubr.f32.vlgmr.msra.gmra.mrb[4].mxu1 %v15130_v52  ;;  %10887 = vmatpush3.bf16.msra.mxu0 %v10884_v18  ;;  %v15469_v18 = vsub.f32 %v15313_v44, %v17312_v51  ;;  %v7600_v44 = vsub.f32 %v15448_v57, %v7599_v43  ;;  %v10900_v38 = vpack.c.bf16 %v7594_v24, %v7587_v25  ;;  %v7608_v51 = vand.u32 4294901760, %v7607_v10 }
 0x313   : > { %10339 = vmatpush1.bf16.msra.mxu1 %v17311_v6  ;;  %10889 = vmatprep.subr.bf16.mxu0 %v10888_v39 }
 0x314   : > { %10341 = vmatprep.subr.bf16.mxu1 %v17314_v61  ;;  %5420 = vmatprep.mubr.f32.mxu1 %v16799_v4  ;;  %v16246_v6 = vand.u32 4294901760, %v15469_v18  ;;  %v7601_v58 = vand.u32 4294901760, %v7600_v44  ;;  %v17321_v44 = vld [vmem:[#allocation214_spill] sm:$0xff] }
 0x316   : > { %10891 = vmatpush3.bf16.msra.mxu0 %v10888_v39  ;;  %5422 = vmatmul.mubr.f32.gmra.mrb[6].mxu1 %v15152_v13  ;;  %v16247_v39 = vand.u32 4294901760, %v15474_v50  ;;  %v7614_v45 = vsub.f32 %v15469_v18, %v16246_v6  ;;  %v17322_v6 = vld [vmem:[#allocation215_spill] sm:$0xff] }
 0x317   : > { %10343 = vmatpush1.bf16.msra.mxu1 %v17315_v17  ;;  %10893 = vmatprep.subr.bf16.mxu0 %v10892_v11  ;;  %v17318_v17 = vld [vmem:[#allocation209_spill] sm:$0xff] }
 0x318   : > { %10345 = vmatprep.subr.bf16.mxu1 %v17316_v1  ;;  %5556 = vmatprep.mubr.f32.mxu1 %v16799_v4  ;;  %v7621_v61 = vsub.f32 %v15474_v50, %v16247_v39  ;;  %v17319_v1 = vld [vmem:[#allocation211_spill] sm:$0xff]  ;;  %v7615_v25 = vand.u32 4294901760, %v7614_v45  ;;  %v17323_v39 = vld [vmem:[#allocation217_spill] sm:$0xff]  ;;  %v10924_v45 = vpack.c.bf16 %v15369_v27, %v15366_v22 }
 0x31a   : > { %10895 = vmatpush3.bf16.msra.mxu0 %v10892_v11  ;;  %v10904_v11 = vpack.c.bf16 %v7608_v51, %v7601_v58  ;;  %v7622_v24 = vand.u32 4294901760, %v7621_v61  ;;  %v17325_v58 = vld [vmem:[#allocation220_spill] sm:$0xff]  ;;  %v17326_v51 = vld [vmem:[#allocation221_spill] sm:$0xff]  ;;  %v10928_v61 = vpack.c.bf16 %v15403_v54, %v15398_v7 }
 0x31b   : > { %10347 = vmatpush1.bf16.msra.mxu1 %v17317_v53  ;;  %10897 = vmatprep.subr.bf16.mxu0 %v10896_v47  ;;  %v17320_v53 = vld [vmem:[#allocation212_spill] sm:$0xff] }
 0x31c   : > { %10349 = vmatprep.subr.bf16.mxu1 %v17318_v17  ;;  %v10908_v10 = vpack.c.bf16 %v7622_v24, %v7615_v25  ;;  %v17324_v17 = vld [vmem:[#allocation218_spill] sm:$0xff]  ;;  %v10940_v25 = vpack.c.bf16 %v15474_v50, %v15469_v18  ;;  %v17328_v24 = vand.u32 4294901760, %v15133_v55 }
 0x31e   : > { %10899 = vmatpush3.bf16.msra.mxu0 %v10896_v47  ;;  %v10912_v47 = vpack.c.bf16 %v15281_v12, %v15278_v9 }
 0x31f   : > { %10351 = vmatpush1.bf16.msra.mxu1 %v17319_v1  ;;  %10901 = vmatprep.subr.bf16.mxu0 %v10900_v38  ;;  %v10932_v1 = vpack.c.bf16 %v15431_v28, %v15426_v46 }
 0x320   : > { %10353 = vmatprep.subr.bf16.mxu1 %v17320_v53  ;;  %v17329_v53 = vld [vmem:[#allocation169_spill] sm:$0xff] }
 0x322   : > { %10903 = vmatpush3.bf16.msra.mxu0 %v10900_v38  ;;  %v10916_v38 = vpack.c.bf16 %v15328_v62, %v15323_v21 }
 0x323   : > { %10355 = vmatpush1.bf16.msra.mxu1 %v17321_v44  ;;  %10905 = vmatprep.subr.bf16.mxu0 %v10904_v11  ;;  %v17330_v44 = vand.u32 4294901760, %v15150_v35 }
 0x324   : > { %10357 = vmatprep.subr.bf16.mxu1 %v17322_v6  ;;  %v17327_v6 = vld [vmem:[#allocation8_spill] sm:$0xff] }
 0x326   : > { %10907 = vmatpush3.bf16.msra.mxu0 %v10904_v11  ;;  %v10936_v11 = vpack.c.bf16 %v15453_v2, %v15448_v57 }
 0x327   : > { %10359 = vmatpush1.bf16.msra.mxu1 %v17323_v39  ;;  %10909 = vmatprep.subr.bf16.mxu0 %v10908_v10  ;;  %v10920_v39 = vpack.c.bf16 %v15361_v49, %v15356_v23 }
 0x328   : > { %10361 = vmatprep.subr.bf16.mxu1 %v17324_v17  ;;  %v17334_v17 = vld [vmem:[#allocation187_spill] sm:$0xff] }
 0x32a   : > { %10911 = vmatpush3.bf16.msra.mxu0 %v10908_v10  ;;  %v17331_v10 = vld [vmem:[#allocation185_spill] sm:$0xff] }
 0x32b   : > { %10363 = vmatpush1.bf16.msra.mxu1 %v17325_v58  ;;  %10913 = vmatprep.subr.bf16.mxu0 %v10912_v47  ;;  %v17335_v58 = vld [vmem:[#allocation80_spill] sm:$0xff] }
 0x32c   : > { %10365 = vmatprep.subr.bf16.mxu1 %v17326_v51  ;;  %v17338_v51 = vld [vmem:[#allocation82_spill] sm:$0xff] }
 0x32d   : > { %9170 = vmatmul.mubr.f32.vlgmr.msra.gmra.mrb[4].mxu0 %v15297_v8 }
 0x32e   : > { %10915 = vmatpush3.bf16.msra.mxu0 %v10912_v47  ;;  %9204 = vmatprep.mubr.f32.mxu0 %v15133_v55  ;;  %v17332_v47 = vld [vmem:[#allocation186_spill] sm:$0xff]  ;;  %v17333_v55 = vand.u32 4294901760, %v15173_v20 }
 0x32f   : > { %10367 = vmatpush1.bf16.msra.mxu1 %v17327_v6  ;;  %10917 = vmatprep.subr.bf16.mxu0 %v10916_v38  ;;  %v17339_v6 = vld [vmem:[#allocation190_spill] sm:$0xff] }
 0x330   : > { %10369 = vmatprep.subr.bf16.mxu1 %v17254_v19 }
 0x332   : > { %5559 = vmatmul.mubr.f32.vlgmr.msra.gmra.mrb[4].mxu1 %v15150_v35  ;;  %10919 = vmatpush3.bf16.msra.mxu0 %v10916_v38  ;;  %v17336_v35 = vld [vmem:[#allocation188_spill] sm:$0xff]  ;;  %v17337_v38 = vld [vmem:[#allocation189_spill] sm:$0xff] }
 0x333   : > { %10371 = vmatpush1.bf16.msra.mxu1 %v17255_v29  ;;  %10921 = vmatprep.subr.bf16.mxu0 %v10920_v39 }
 0x334   : > { %10373 = vmatprep.subr.bf16.mxu1 %v17256_v37  ;;  %5564 = vmatprep.mubr.f32.mxu1 %v16799_v4 }
 0x336   : > { %10923 = vmatpush3.bf16.msra.mxu0 %v10920_v39  ;;  %5567 = vmatmul.mubr.f32.gmra.mrb[6].mxu1 %v15173_v20  ;;  %v17340_v20 = vld [vmem:[#allocation191_spill] sm:$0xff]  ;;  %v17341_v39 = vld [vmem:[#allocation176_spill] sm:$0xff] }
 0x337   : > { %10375 = vmatpush1.bf16.msra.mxu1 %v17257_v26  ;;  %10925 = vmatprep.subr.bf16.mxu0 %v10924_v45 }
 0x338   : > { %10377 = vmatprep.subr.bf16.mxu1 %v17258_v36  ;;  %5669 = vmatprep.mubr.f32.mxu1 %v16799_v4 }
 0x33a   : > { %10927 = vmatpush3.bf16.msra.mxu0 %v10924_v45  ;;  %v17342_v45 = vld [vmem:[#allocation192_spill] sm:$0xff] }
 0x33b   : > { %10379 = vmatpush1.bf16.msra.mxu1 %v17259_v48  ;;  %10929 = vmatprep.subr.bf16.mxu0 %v10928_v61 }
 0x33c   : > { %10381 = vmatprep.subr.bf16.mxu1 %v17260_v5 }
 0x33e   : > { %10931 = vmatpush3.bf16.msra.mxu0 %v10928_v61  ;;  %v17343_v61 = vld [vmem:[#allocation193_spill] sm:$0xff] }
 0x33f   : > { %10383 = vmatpush1.bf16.msra.mxu1 %v17261_v33  ;;  %10933 = vmatprep.subr.bf16.mxu0 %v10932_v1 }
 0x340   : > { %10385 = vmatprep.subr.bf16.mxu1 %v17262_v56 }
 0x342   : > { %10935 = vmatpush3.bf16.msra.mxu0 %v10932_v1  ;;  %v17344_v1 = vld [vmem:[#allocation97_spill] sm:$0xff] }
 0x343   : > { %10387 = vmatpush1.bf16.msra.mxu1 %v17263_v59  ;;  %10937 = vmatprep.subr.bf16.mxu0 %v10936_v11 }
 0x344   : > { %10389 = vmatprep.subr.bf16.mxu1 %v17264_v3 }
 0x346   : > { %10939 = vmatpush3.bf16.msra.mxu0 %v10936_v11  ;;  %v17345_v11 = vld [vmem:[#allocation194_spill] sm:$0xff] }
 0x347   : > { %10391 = vmatpush1.bf16.msra.mxu1 %v17265_v32  ;;  %10941 = vmatprep.subr.bf16.mxu0 %v10940_v25 }
 0x348   : > { %10393 = vmatprep.subr.bf16.mxu1 %v17266_v15 }
 0x34a   : > { %10943 = vmatpush3.bf16.msra.mxu0 %v10940_v25  ;;  %v17346_v25 = vld [vmem:[#allocation195_spill] sm:$0xff] }
 0x34b   : > { %10395 = vmatpush1.bf16.msra.mxu1 %v17267_v42  ;;  %10945 = vmatprep.subr.bf16.mxu0 %v15180_v30 }
 0x34c   : > { %10397 = vmatprep.subr.bf16.mxu1 %v17268_v40 }
 0x34d   : > { %9205 = vmatmul.mubr.f32.vlgmr.msra.gmra.mrb[4].mxu0 %v15338_v60 }
 0x34e   : > { %10947 = vmatpush3.bf16.msra.mxu0 %v15180_v30  ;;  %9239 = vmatprep.mubr.f32.mxu0 %v17328_v24  ;;  %v17347_v24 = vld [vmem:[#allocation65_spill] sm:$0xff] }
 0x34f   : > { %10399 = vmatpush1.bf16.msra.mxu1 %v17269_v34  ;;  %10949 = vmatprep.subr.bf16.mxu0 %v15206_v0 }
 0x350   : > { %10401 = vmatprep.subr.bf16.mxu1 %v17329_v53  ;;  %v17348_v53 = vand.u32 4294901760, %v15278_v9  ;;  %v17356_v9 = vld [vmem:[#allocation203_spill] sm:$0xff] }
 0x352   : > { %5673 = vmatmul.mubr.f32.vlgmr.msra.gmra.mrb[4].mxu1 %v17330_v44  ;;  %10951 = vmatpush3.bf16.msra.mxu0 %v15206_v0  ;;  %v17349_v44 = vand.u32 4294901760, %v15281_v12  ;;  %v17357_v12 = vand.u32 4294901760, %v15356_v23  ;;  %v17377_v23 = vld [vmem:[#allocation70_spill] sm:$0xff] }
 0x353   : > { %10403 = vmatpush1.bf16.msra.mxu1 %v17331_v10  ;;  %10953 = vmatprep.subr.bf16.mxu0 %v15232_v41 }
 0x354   : > { %10405 = vmatprep.subr.bf16.mxu1 %v17332_v47  ;;  %5678 = vmatprep.mubr.f32.mxu1 %v16799_v4  ;;  %v10976_v10 = vpack.c.bf16 %v17349_v44, %v17348_v53  ;;  %v17350_v47 = vld [vmem:[#allocation196_spill] sm:$0xff] }
 0x356   : > { %10955 = vmatpush3.bf16.msra.mxu0 %v15232_v41  ;;  %5682 = vmatmul.mubr.f32.gmra.mrb[6].mxu1 %v17333_v55  ;;  %v17351_v55 = vld [vmem:[#allocation198_spill] sm:$0xff] }
 0x357   : > { %10407 = vmatpush1.bf16.msra.mxu1 %v17334_v17  ;;  %10957 = vmatprep.subr.bf16.mxu0 %v17335_v58  ;;  %v17352_v17 = vand.u32 4294901760, %v15323_v21 }
 0x358   : > { %10409 = vmatprep.subr.bf16.mxu1 %v17336_v35  ;;  %5848 = vmatprep.mubr.f32.mxu1 %v16799_v4  ;;  %v17353_v35 = vand.u32 4294901760, %v15328_v62  ;;  %v17360_v62 = vand.u32 4294901760, %v15369_v27 }
 0x35a   : > { %10959 = vmatpush3.bf16.msra.mxu0 %v17335_v58 }
 0x35b   : > { %10411 = vmatpush1.bf16.msra.mxu1 %v17337_v38  ;;  %10961 = vmatprep.subr.bf16.mxu0 %v17338_v51  ;;  %v10980_v38 = vpack.c.bf16 %v17353_v35, %v17352_v17 }
 0x35c   : > { %10413 = vmatprep.subr.bf16.mxu1 %v17339_v6  ;;  %v17354_v6 = vld [vmem:[#allocation202_spill] sm:$0xff] }
 0x35e   : > { %10963 = vmatpush3.bf16.msra.mxu0 %v17338_v51 }
 0x35f   : > { %10415 = vmatpush1.bf16.msra.mxu1 %v17340_v20  ;;  %10965 = vmatprep.subr.bf16.mxu0 %v17341_v39  ;;  %v17355_v20 = vand.u32 4294901760, %v15338_v60  ;;  %v17359_v60 = vand.u32 4294901760, %v15366_v22  ;;  %v17368_v22 = vld [vmem:[#allocation213_spill] sm:$0xff] }
 0x360   : > { %10417 = vmatprep.subr.bf16.mxu1 %v17342_v45  ;;  %v17358_v45 = vand.u32 4294901760, %v15361_v49 }
 0x361   : > { %v10988_v21 = vpack.c.bf16 %v17360_v62, %v17359_v60 }
 0x362   : > { %10967 = vmatpush3.bf16.msra.mxu0 %v17341_v39 }
 0x363   : > { %10419 = vmatpush1.bf16.msra.mxu1 %v17343_v61  ;;  %10969 = vmatprep.subr.bf16.mxu0 %v17344_v1  ;;  %v10984_v61 = vpack.c.bf16 %v17358_v45, %v17357_v12 }
 0x364   : > { %10421 = vmatprep.subr.bf16.mxu1 %v17345_v11 }
 0x366   : > { %10971 = vmatpush3.bf16.msra.mxu0 %v17344_v1 }
 0x367   : > { %10423 = vmatpush1.bf16.msra.mxu1 %v17346_v25  ;;  %10973 = vmatprep.subr.bf16.mxu0 %v17347_v24 }
 0x368   : > { %10425 = vmatprep.subr.bf16.mxu1 %v17350_v47 }
 0x36a   : > { %10975 = vmatpush3.bf16.msra.mxu0 %v17347_v24 }
 0x36b   : > { %10427 = vmatpush1.bf16.msra.mxu1 %v17351_v55  ;;  %10977 = vmatprep.subr.bf16.mxu0 %v10976_v10 }
 0x36c   : > { %10429 = vmatprep.subr.bf16.mxu1 %v17354_v6 }
 0x36d   : > { %9240 = vmatmul.mubr.f32.vlgmr.msra.gmra.mrb[4].mxu0 %v17355_v20 }
 0x36e   : > { %10979 = vmatpush3.bf16.msra.mxu0 %v10976_v10  ;;  %9274 = vmatprep.mubr.f32.mxu0 %v15124_v14 }
 0x36f   : > { %10431 = vmatpush1.bf16.msra.mxu1 %v17356_v9  ;;  %10981 = vmatprep.subr.bf16.mxu0 %v10980_v38 }
 0x370   : > { %10433 = vmatprep.subr.bf16.mxu1 %v17254_v19  ;;  %v17361_v19 = vand.u32 4294901760, %v15398_v7 }
 0x372   : > { %5850 = vmatmul.mubr.f32.vlgmr.msra.gmra.mrb[4].mxu1 %v15130_v52  ;;  %10983 = vmatpush3.bf16.msra.mxu0 %v10980_v38 }
 0x373   : > { %10435 = vmatpush1.bf16.msra.mxu1 %v17255_v29  ;;  %10985 = vmatprep.subr.bf16.mxu0 %v10984_v61  ;;  %v17362_v29 = vand.u32 4294901760, %v15403_v54  ;;  %v17378_v54 = vld [vmem:[#allocation71_spill] sm:$0xff] }
 0x374   : > { %10437 = vmatprep.subr.bf16.mxu1 %v17256_v37  ;;  %5855 = vmatprep.mubr.f32.mxu1 %v16799_v4  ;;  %v10996_v37 = vpack.c.bf16 %v7592_v63, %v7585_v16  ;;  %v17379_v63 = vld [vmem:[#allocation77_spill] sm:$0xff] }
 0x375   : > { %v10992_v49 = vpack.c.bf16 %v17362_v29, %v17361_v19 }
 0x376   : > { %10987 = vmatpush3.bf16.msra.mxu0 %v10984_v61  ;;  %5857 = vmatmul.mubr.f32.gmra.mrb[6].mxu1 %v15152_v13 }
 0x377   : > { %10439 = vmatpush1.bf16.msra.mxu1 %v17257_v26  ;;  %10989 = vmatprep.subr.bf16.mxu0 %v10988_v21  ;;  %v11000_v26 = vpack.c.bf16 %v7606_v31, %v7599_v43  ;;  %v17380_v43 = vld [vmem:[#allocation79_spill] sm:$0xff] }
 0x378   : > { %10441 = vmatprep.subr.bf16.mxu1 %v17258_v36  ;;  %5959 = vmatprep.mubr.f32.mxu1 %v16799_v4  ;;  %v17363_v36 = vand.u32 4294901760, %v15469_v18 }
 0x37a   : > { %10991 = vmatpush3.bf16.msra.mxu0 %v10988_v21 }
 0x37b   : > { %10443 = vmatpush1.bf16.msra.mxu1 %v17259_v48  ;;  %10993 = vmatprep.subr.bf16.mxu0 %v10992_v49  ;;  %v17364_v48 = vand.u32 4294901760, %v15474_v50 }
 0x37c   : > { %10445 = vmatprep.subr.bf16.mxu1 %v17260_v5 }
 0x37d   : > { %v11004_v5 = vpack.c.bf16 %v17364_v48, %v17363_v36 }
 0x37e   : > { %10995 = vmatpush3.bf16.msra.mxu0 %v10992_v49 }
 0x37f   : > { %10447 = vmatpush1.bf16.msra.mxu1 %v17261_v33  ;;  %10997 = vmatprep.subr.bf16.mxu0 %v10996_v37  ;;  %v17365_v33 = vld [vmem:[#allocation210_spill] sm:$0xff] }
 0x380   : > { %10449 = vmatprep.subr.bf16.mxu1 %v17262_v56  ;;  %v17366_v56 = vld [vmem:[#allocation47_spill] sm:$0xff] }
 0x382   : > { %10999 = vmatpush3.bf16.msra.mxu0 %v10996_v37 }
 0x383   : > { %10451 = vmatpush1.bf16.msra.mxu1 %v17263_v59  ;;  %11001 = vmatprep.subr.bf16.mxu0 %v11000_v26  ;;  %v17367_v59 = vand.u32 4294901760, %v17366_v56 }
 0x384   : > { %10453 = vmatprep.subr.bf16.mxu1 %v17264_v3 }
 0x385   : > { %v6110_v3 = vsub.f32 %v17366_v56, %v17367_v59 }
 0x386   : > { %11003 = vmatpush3.bf16.msra.mxu0 %v11000_v26 }
 0x387   : > { %10455 = vmatpush1.bf16.msra.mxu1 %v17265_v32  ;;  %11005 = vmatprep.subr.bf16.mxu0 %v11004_v5  ;;  %v17372_v32 = vld [vmem:[#allocation15_spill] sm:$0xff] }
 0x388   : > { %10457 = vmatprep.subr.bf16.mxu1 %v17266_v15  ;;  %v17374_v15 = vld [vmem:[#allocation48_spill] sm:$0xff] }
 0x38a   : > { %11007 = vmatpush3.bf16.msra.mxu0 %v11004_v5 }
 0x38b   : > { %10459 = vmatpush1.bf16.msra.mxu1 %v17267_v42  ;;  %11009 = vmatprep.subr.bf16.mxu0 %v15180_v30  ;;  %v17375_v42 = vand.u32 4294901760, %v17374_v15 }
 0x38c   : > { %10461 = vmatprep.subr.bf16.mxu1 %v17268_v40  ;;  %v17376_v40 = vld [vmem:[#allocation25_spill] sm:$0xff] }
 0x38d   : > { %9275 = vmatmul.mubr.f32.vlgmr.msra.gmra.mrb[4].mxu0 %v15297_v8 }
 0x38e   : > { %11011 = vmatpush3.bf16.msra.mxu0 %v15180_v30  ;;  %9309 = vmatprep.mubr.f32.mxu0 %v15124_v14  ;;  %v6111_v14 = vand.u32 4294901760, %v6110_v3  ;;  %v17373_v30 = vld [vmem:[#allocation100_spill] sm:$0xff] }
 0x38f   : > { %10463 = vmatpush1.bf16.msra.mxu1 %v17269_v34  ;;  %11013 = vmatprep.subr.bf16.mxu0 %v15206_v0 }
 0x390   : > { %10465 = vmatprep.subr.bf16.mxu1 %v17365_v33 }
 0x392   : > { %5961 = vmatmul.mubr.f32.vlgmr.msra.gmra.mrb[4].mxu1 %v15130_v52  ;;  %11015 = vmatpush3.bf16.msra.mxu0 %v15206_v0  ;;  %v17369_v52 = vld [vmem:[#allocation216_spill] sm:$0xff]  ;;  %v6120_v0 = vsub.f32 %v17374_v15, %v17375_v42 }
 0x393   : > { %10467 = vmatpush3.bf16.msra.mxu1 %v17365_v33  ;;  %5966 = vmatprep.mubr.f32.mxu1 %v16799_v4  ;;  %v17370_v4 = vld [vmem:[#allocation219_spill] sm:$0xff] }
 0x394   : > { %10469 = vmatprep.subr.bf16.mxu1 %v17368_v22  ;;  %11017 = vmatprep.subr.bf16.mxu0 %v15232_v41  ;;  %v6121_v34 = vand.u32 4294901760, %v6120_v0 }
 0x396   : > { %5968 = vmatmul.mubr.f32.gmra.mrb[6].mxu1 %v15152_v13  ;;  %11019 = vmatpush3.bf16.msra.mxu0 %v15232_v41  ;;  %v17371_v13 = vld [vmem:[#allocation7_spill] sm:$0xff] }
 0x397   : > { %10471 = vmatpush3.bf16.msra.mxu1 %v17368_v22  ;;  %11021 = vmatprep.subr.bf16.mxu0 %v17335_v58 }
 0x398   : > { %10473 = vmatprep.subr.bf16.mxu1 %v17369_v52  ;;  %8714 = vmatprep.mubr.f32.mxu1 %v6111_v14 }
 0x39a   : > { %11023 = vmatpush3.bf16.msra.mxu0 %v17335_v58 }
 0x39b   : > { %10475 = vmatpush3.bf16.msra.mxu1 %v17369_v52  ;;  %11025 = vmatprep.subr.bf16.mxu0 %v17338_v51 }
 0x39c   : > { %10477 = vmatprep.subr.bf16.mxu1 %v17370_v4 }
 0x39e   : > { %11027 = vmatpush3.bf16.msra.mxu0 %v17338_v51  ;;  %v8351_v51 = vld [vmem:[%s15710_s4 + $0x2] ss:$0 sm:$0xff] }
 0x39f   : > { %10479 = vmatpush3.bf16.msra.mxu1 %v17370_v4  ;;  %11029 = vmatprep.subr.bf16.mxu0 %v17341_v39 }
 0x3a0   : > { %10481 = vmatprep.subr.bf16.mxu1 %v17371_v13 }
 0x3a2   : > { %11031 = vmatpush3.bf16.msra.mxu0 %v17341_v39  ;;  %v8318_v39 = vld [vmem:[%s15711_s5] ss:$0 sm:$0xff] }
 0x3a3   : > { %10483 = vmatpush3.bf16.msra.mxu1 %v17371_v13  ;;  %11033 = vmatprep.subr.bf16.mxu0 %v17344_v1 }
 0x3a4   : > { %10485 = vmatprep.subr.bf16.mxu1 %v17372_v32 }
 0x3a6   : > { %11035 = vmatpush3.bf16.msra.mxu0 %v17344_v1 }
 0x3a7   : > { %10487 = vmatpush3.bf16.msra.mxu1 %v17372_v32  ;;  %11037 = vmatprep.subr.bf16.mxu0 %v17347_v24 }
 0x3a8   : > { %10489 = vmatprep.subr.bf16.mxu1 %v17373_v30 }
 0x3aa   : > { %11039 = vmatpush3.bf16.msra.mxu0 %v17347_v24 }
 0x3ab   : > { %10491 = vmatpush3.bf16.msra.mxu1 %v17373_v30 }
 0x3ac   : > { %10493 = vmatprep.subr.bf16.mxu1 %v17376_v40 }
 0x3ad   : > { %9310 = vmatmul.mubr.f32.vlgmr.msra.gmra.mrb[4].mxu0 %v15297_v8 }
 0x3af   : > { %10495 = vmatpush3.bf16.msra.mxu1 %v17376_v40 }
 0x3b2   : > { %8715 = vmatmul.mubr.f32.vlgmr.msra.gmra.mrb[8].mxu1 %v6121_v34 }
 0x465   : > { %v5962_v41 = vpop.f32.mrb[4].mxu1 }
 0x466   : > { %v5978_v27 = vmax.f32 %v17377_v23, %v5962_v41  ;;  %v5964_v7 = vpop.f32.mrb[5].mxu1 }
 0x467   : > { %v5979_v46 = vmax.f32 %v17378_v54, %v5964_v7 }
 0x469   : > { %v5982_v28 = vmax.f32 %v5978_v27, %v5979_v46  ;;  %v5969_v16 = vpop.f32.mrb[6].mxu1 }
 0x46a   : > { %v5980_v57 = vmax.f32 %v17379_v63, %v5969_v16  ;;  %v5971_v2 = vpop.f32.mrb[7].mxu1 }
 0x46b   : > { %v5981_v31 = vmax.f32 %v17380_v43, %v5971_v2  ;;  %v5991_v44 = vadd.f32 %v8318_v39, %v5982_v28 }
 0x46d   : > { %v5983_v18 = vmax.f32 %v5980_v57, %v5981_v31 }
 0x46f   : > { %v5992_v24 = vadd.f32 %v8318_v39, %v5983_v18 }
 0x480   : > { %v9311_v8 = vpop.f32.mrb[4].mxu0 }
 0x481   : > { %v8085_v50 = vpop.f32.mrb[5].mxu0 }
 0x485   : > { %v8716_v58 = vpop.f32.mrb[8].mxu1 }
 0x486   : > { %v6113_v1 = vpop.f32.mrb[9].mxu1  ;;  %v11044_v11 = vadd.f32 %v9311_v8, %v8716_v58 }
 0x487   : > { %v11045_v25 = vadd.f32 %v8085_v50, %v6113_v1 }
 0x488   : > { %v8103_v53 = vadd.f32 %v11044_v11, %v8351_v51 }
 0x489   : > { %v8102_v10 = vadd.f32 %v11045_v25, %v8351_v51 }
 0x48a   : > { %v8105_v47 = vadd.f32 %v8103_v53, %v5992_v24 }
 0x48b   : > { %v8104_v55 = vadd.f32 %v8102_v10, %v5991_v44 }
 0x48c   : > { %8107 = vst [vmem:[%s379_s11 + $0x8] sm:$0xff] %v8105_v47  ;;  %v8117_v17 = vmul.f32 %v8105_v47, %v8105_v47 }
 0x48d   : > { %8106 = vst [vmem:[%s379_s11] sm:$0xff] %v8104_v55  ;;  %v8108_v35 = vadd.f32 %v8105_v47, %v8104_v55  ;;  %v8116_v38 = vmul.f32 %v8104_v55, %v8104_v55 }
 0x48f   : > { %v8109_v6 = vrot.slane %v8108_v35, 4  ;;  %v8118_v20 = vadd.f32 %v8117_v17, %v8116_v38 }
 0x491   : > { %v8110_v9 = vadd.f32 %v8109_v6, %v8108_v35  ;;  %v8119_v12 = vrot.slane %v8118_v20, 4 }
 0x493   : > { %v8111_v45 = vrot.slane %v8110_v9, 2  ;;  %v8120_v61 = vadd.f32 %v8119_v12, %v8118_v20 }
 0x495   : > { %v8112_v60 = vadd.f32 %v8111_v45, %v8110_v9  ;;  %v8121_v62 = vrot.slane %v8120_v61, 2 }
 0x497   : > { %v8113_v21 = vrot.slane %v8112_v60, 1  ;;  %v8122_v19 = vadd.f32 %v8121_v62, %v8120_v61 }
 0x499   : > { %v8114_v29 = vadd.f32 %v8113_v21, %v8112_v60  ;;  %v8123_v49 = vrot.slane %v8122_v19, 1 }
 0x49b   : > { %8115 = vst [vmem:[%s383_s15] sm:$0x1] %v8114_v29  ;;  %v8124_v37 = vadd.f32 %v8123_v49, %v8122_v19 }
 0x49d   : > { %8125 = vst [vmem:[%s383_s15 + $0x1] sm:$0x1] %v8124_v37 }
 0x49e PF: > { %s20_s30 = sadd.s32 1, %s11226_s30  }
 0x49f   : > { %p17_p4 = scmp.ge.s32.totalorder %s20_s30, 4  }
 0x4a1   :  { %19 = sbr.rel (!%p17_p4) target bundleno = 1 (0x1), region = 104 }

// kernel: attention_block.3
= control target key start
LH: loop header
LB: loop body
LE: loop exit
PB: predicated region body
PF: predicated region fallthrough
CT: control target
= control target key end

     0   :  { %s4086_s15 = smov 0   ;;  %s5296_s0 = inlined_call_operand.vmem [shape: f32[2,16,128], index: 0, kind: input, shape index: {}]   ;;  %s5297_s1 = inlined_call_operand.vmem [shape: f32[2,16,128], index: 1, kind: input, shape index: {}]   ;;  %s5298_s2 = inlined_call_operand.vmem [shape: f32[3,128], index: 2, kind: input, shape index: {}]   ;;  %s5299_s3 = inlined_call_operand.vmem [shape: f32[3,128,128], index: 3, kind: input, shape index: {}]   ;;  %s5300_s4 = inlined_call_operand.vmem [shape: f32[2,16,128], index: 4, kind: output, shape index: {}]  }
   0x1 LB: > { %s2428_s16 = sadd.s32 4294967295, %s4058_s15   ;;  %p2432_p0 = scmp.ge.s32.totalorder %s4058_s15, 1  ;;  %s4058_s15 = sphi %s4086_s15, %s14_s15  }
   0x2   : > { %p172_p1 = scmp.lt.s32.totalorder %s4058_s15, 3 }
   0x4   : > { %p173_p2 = pnand %p2432_p0, %p172_p1 }
   0x6   : > { %176 = sbr.rel (%p173_p2) target bundleno = 528 (0x210), region = 36 }
   0xd   : > { %v4097_v0 = vld [vmem:[%s5299_s3 + $0x80] sm:$0xff]  ;;  %v4102_v1 = vld [vmem:[%s5299_s3 + $0x88] sm:$0xff]  ;;  %p4111_p3 = scmp.lt.s32.totalorder %s2428_s16, 1  ;;  %v4126_v7 = vld [vmem:[%s5299_s3 + $0x90] sm:$0xff]  ;;  %v4060_v9 = vmov 0.0  }
   0xe   : > { %v4107_v2 = vld [vmem:[%s5299_s3] sm:$0xff]  ;;  %v278_v3 = vand.u32 4294901760, %v4097_v0  ;;  %v281_v4 = vand.u32 4294901760, %v4102_v1  ;;  %v4120_v5 = vld [vmem:[%s5299_s3 + $0x8] sm:$0xff]  ;;  %v4131_v8 = vld [vmem:[%s5299_s3 + $0x98] sm:$0xff]  ;;  %v284_v11 = vand.u32 4294901760, %v4126_v7 }
   0xf   : > { %v962_v6 = vand.u32 4294901760, %v4107_v2  ;;  %236 = vst [vmem:[#allocation2] sm:$0x1] %v4060_v9  ;;  %237 = vst [vmem:[#allocation2 + $0x11] sm:$0x1] %v4060_v9  ;;  %v965_v10 = vand.u32 4294901760, %v4120_v5 }
  0x10   : > { %v287_v12 = vand.u32 4294901760, %v4131_v8  ;;  %v4139_v13 = vld [vmem:[%s5299_s3 + $0x10] sm:$0xff]  ;;  %v4144_v14 = vld [vmem:[%s5299_s3 + $0x18] sm:$0xff]  ;;  %v4149_v15 = vld [vmem:[%s5299_s3 + $0xa0] sm:$0xff]  ;;  %v4155_v16 = vpack.c.bf16 %v281_v4, %v278_v3  ;;  %s5623_s16 = smov (!%p4111_p3, %s2428_s16), 1 }
  0x11   : > { %v5316_v17 = vand.u32 4294901760, %v4139_v13  ;;  %v5314_v18 = vand.u32 4294901760, %v4144_v14  ;;  %v4162_v19 = vld [vmem:[%s5299_s3 + $0xa8] sm:$0xff]  ;;  %v290_v20 = vand.u32 4294901760, %v4149_v15  ;;  %v4168_v21 = vld [vmem:[%s5299_s3 + $0x20] sm:$0xff]  ;;  %v4179_v23 = vpack.c.bf16 %v965_v10, %v962_v6  ;;  %v4192_v27 = vld [vmem:[%s5299_s3 + $0xb0] sm:$0xff] }
  0x12   : > { %5435 = vst [vmem:[#allocation3_spill] sm:$0xff] %v4155_v16  ;;  %v4173_v22 = vld [vmem:[%s5299_s3 + $0x28] sm:$0xff]  ;;  %v4185_v24 = vpack.c.bf16 %v287_v12, %v284_v11  ;;  %v5317_v25 = vand.u32 4294901760, %v4162_v19  ;;  %v5310_v26 = vand.u32 4294901760, %v4168_v21  ;;  %v4197_v28 = vld [vmem:[%s5299_s3 + $0xb8] sm:$0xff]  ;;  %3434 = vmatprep.subr.bf16.mxu1 %v4155_v16  ;;  %v4214_v31 = vld [vmem:[%s5299_s3 + $0x30] sm:$0xff] }
  0x13   : > { %v4208_v29 = vpack.c.bf16 %v5314_v18, %v5316_v17  ;;  %v5309_v30 = vand.u32 4294901760, %v4173_v22  ;;  %v4219_v32 = vld [vmem:[%s5299_s3 + $0x38] sm:$0xff]  ;;  %3722 = vmatprep.subr.bf16.mxu0 %v4179_v23  ;;  %3436 = vmatpush3.bf16.msra.mxu1 %v4155_v16  ;;  %v4226_v33 = vld [vmem:[%s5299_s3 + $0xc0] sm:$0xff]  ;;  %v4231_v34 = vld [vmem:[%s5299_s3 + $0xc8] sm:$0xff]  ;;  %v5315_v36 = vand.u32 4294901760, %v4192_v27  ;;  %v5313_v37 = vand.u32 4294901760, %v4197_v28 }
  0x14   : > { %5436 = vst [vmem:[#allocation4_spill] sm:$0xff] %v4185_v24  ;;  %3724 = vmatpush3.bf16.msra.mxu0 %v4179_v23  ;;  %3438 = vmatprep.subr.bf16.mxu1 %v4185_v24  ;;  %v4239_v35 = vpack.c.bf16 %v5317_v25, %v290_v20  ;;  %v4246_v38 = vld [vmem:[%s5299_s3 + $0x40] sm:$0xff]  ;;  %v4251_v39 = vld [vmem:[%s5299_s3 + $0x48] sm:$0xff]  ;;  %s4253_s8 = sshll.u32 %s5623_s16, 4  ;;  %v5302_v41 = vand.u32 4294901760, %v4214_v31  ;;  %v5301_v42 = vand.u32 4294901760, %v4219_v32 }
  0x15   : > { %3726 = vmatprep.subr.bf16.mxu0 %v4208_v29  ;;  %v4260_v40 = vpack.c.bf16 %v5309_v30, %v5310_v26  ;;  %v4267_v43 = vld [vmem:[%s5299_s3 + $0xd0] sm:$0xff]  ;;  %v4272_v44 = vld [vmem:[%s5299_s3 + $0xd8] sm:$0xff]  ;;  %s207_s14 = scalar_lea.vmem %s5296_s0, %s4253_s8  ;;  %v5304_v45 = vand.u32 4294901760, %v4226_v33  ;;  %v5303_v46 = vand.u32 4294901760, %v4231_v34  ;;  %v5306_v47 = vand.u32 4294901760, %v4246_v38  ;;  %v4316_v58 = vld [vmem:[%s5299_s3 + $0xe0] sm:$0xff]  ;;  %s212_s27 = scalar_lea.vmem %s5297_s1, %s4253_s8 }
  0x16   : > { %5437 = vst [vmem:[#allocation5_spill] sm:$0xff] %v4239_v35  ;;  %v5305_v48 = vand.u32 4294901760, %v4251_v39  ;;  %v4286_v49 = vld [vmem:[%s5299_s3 + $0x50] sm:$0xff]  ;;  %v218_v50 = vld [vmem:[%s207_s14] sm:$0xff]  ;;  %v4294_v51 = vpack.c.bf16 %v5313_v37, %v5315_v36  ;;  %v5308_v52 = vand.u32 4294901760, %v4267_v43  ;;  %v5307_v53 = vand.u32 4294901760, %v4272_v44  ;;  %s217_s6 = scalar_lea.vmem %s5300_s4, %s4253_s8 }
  0x17   : > { %3440 = vmatpush3.bf16.msra.mxu1 %v4185_v24  ;;  %v4301_v54 = vld [vmem:[%s5299_s3 + $0x58] sm:$0xff]  ;;  %v219_v55 = vld [vmem:[%s207_s14 + $0x8] sm:$0xff]  ;;  %v2439_v56 = vld [vmem:[%s5298_s2] ss:$0 sm:$0xff]  ;;  %v4311_v57 = vpack.c.bf16 %v5301_v42, %v5302_v41  ;;  %v4325_v61 = vpack.c.bf16 %v5303_v46, %v5304_v45  ;;  %v5312_v62 = vand.u32 4294901760, %v4286_v49  ;;  %v4341_v42 = vsub.f32 %v4097_v0, %v278_v3 }
  0x18   : > { %3728 = vmatpush3.bf16.msra.mxu0 %v4208_v29  ;;  %3442 = vmatprep.subr.bf16.mxu1 %v4239_v35  ;;  %5438 = vst [vmem:[#allocation6_spill] sm:$0xff] %v4294_v51  ;;  %v225_v59 = vmul.f32 %v2439_v56, %v218_v50  ;;  %v2440_v60 = vld [vmem:[%s5298_s2 + $0x1] ss:$0 sm:$0xff]  ;;  %v4331_v63 = vld [vmem:[%s5299_s3 + $0xe8] sm:$0xff]  ;;  %v226_v50 = vmul.f32 %v2439_v56, %v219_v55  ;;  %v5311_v46 = vand.u32 4294901760, %v4301_v54  ;;  %v5321_v3 = vand.u32 4294901760, %v4316_v58 }
  0x19   : > { %3730 = vmatprep.subr.bf16.mxu0 %v4260_v40  ;;  %5439 = vst [vmem:[#allocation7_spill] sm:$0xff] %v4311_v57  ;;  %5440 = vst [vmem:[#allocation8_spill] sm:$0xff] %v4325_v61  ;;  %v4336_v9 = vld [vmem:[%s5299_s3 + $0x60] sm:$0xff]  ;;  %v4348_v41 = vpack.c.bf16 %v5305_v48, %v5306_v47  ;;  %v4354_v55 = vsub.f32 %v4102_v1, %v281_v4  ;;  %v4362_v0 = vpack.c.bf16 %v5307_v53, %v5308_v52  ;;  %v4375_v4 = vld [vmem:[%s5299_s3 + $0x68] sm:$0xff] }
  0x1a   : > { %v232_v45 = vadd.f32 %v2440_v60, %v225_v59  ;;  %v233_v56 = vadd.f32 %v2440_v60, %v226_v50  ;;  %v4368_v59 = vsub.f32 %v4126_v7, %v284_v11  ;;  %v5319_v1 = vand.u32 4294901760, %v4331_v63  ;;  %v4381_v60 = vld [vmem:[%s5299_s3 + $0xf0] sm:$0xff]  ;;  %v4386_v7 = vld [vmem:[%s5299_s3 + $0xf8] sm:$0xff] }
  0x1b   : > { %3444 = vmatpush3.bf16.msra.mxu1 %v4239_v35  ;;  %5441 = vst [vmem:[#allocation9_spill] sm:$0xff] %v4348_v41  ;;  %5442 = vst [vmem:[#allocation10_spill] sm:$0xff] %v4362_v0  ;;  %v5324_v48 = vand.u32 4294901760, %v4336_v9  ;;  %v4391_v50 = vsub.f32 %v4131_v8, %v287_v12  ;;  %v4396_v47 = vld [vmem:[%s5299_s3 + $0x70] sm:$0xff]  ;;  %v4401_v53 = vld [vmem:[%s5299_s3 + $0x78] sm:$0xff]  ;;  %v5318_v30 = vand.u32 4294901760, %v4341_v42  ;;  %v4412_v8 = vsub.f32 %v4120_v5, %v965_v10 }
  0x1c   : > { %3732 = vmatpush3.bf16.msra.mxu0 %v4260_v40  ;;  %3446 = vmatprep.subr.bf16.mxu1 %v4294_v51  ;;  %v234_v11 = vmax.f32 %v232_v45, 0.0  ;;  %v235_v52 = vmax.f32 %v233_v56, 0.0  ;;  %v4407_v45 = vsub.f32 %v4107_v2, %v962_v6  ;;  %v4419_v12 = vpack.c.bf16 %v5311_v46, %v5312_v62 }
  0x1d   : > { %3734 = vmatprep.subr.bf16.mxu0 %v4311_v57  ;;  %5444 = vst [vmem:[#allocation12_spill] sm:$0xff] %v4412_v8  ;;  %v5320_v26 = vand.u32 4294901760, %v4354_v55  ;;  %v5322_v2 = vand.u32 4294901760, %v4368_v59  ;;  %v5323_v5 = vand.u32 4294901760, %v4375_v4  ;;  %v5332_v62 = vand.u32 4294901760, %v4396_v47 }
  0x1e   : > { %5443 = vst [vmem:[#allocation11_spill] sm:$0xff] %v4407_v45  ;;  %5445 = vst [vmem:[#allocation13_spill] sm:$0xff] %v4419_v12  ;;  %v4421_v56 = vand.u32 4294901760, %v234_v11  ;;  %v4430_v46 = vand.u32 4294901760, %v235_v52  ;;  %v5331_v37 = vand.u32 4294901760, %v4401_v53  ;;  %v382_v17 = vsub.f32 %v4341_v42, %v5318_v30 }
  0x1f   : > { %3448 = vmatpush3.bf16.msra.mxu1 %v4294_v51  ;;  %238 = vst [vmem:[#allocation2 + $0x1] sm:$0xff] %v234_v11  ;;  %239 = vst [vmem:[#allocation2 + $0x9] sm:$0xff] %v235_v52  ;;  %v389_v30 = vsub.f32 %v4354_v55, %v5320_v26  ;;  %v396_v6 = vsub.f32 %v4368_v59, %v5322_v2  ;;  %v5448_v26 = vand.u32 4294901760, %v4162_v19  ;;  %v5449_v2 = vand.u32 4294901760, %v4381_v60 }
  0x20   : > { %3736 = vmatpush3.bf16.msra.mxu0 %v4311_v57  ;;  %3450 = vmatprep.subr.bf16.mxu1 %v4325_v61  ;;  %v4436_v18 = vsub.f32 %v234_v11, %v4421_v56  ;;  %v4445_v25 = vsub.f32 %v235_v52, %v4430_v46  ;;  %v4452_v11 = vpack.c.bf16 %v5319_v1, %v5321_v3  ;;  %v5450_v10 = vand.u32 4294901760, %v4386_v7 }
  0x21   : > { %3738 = vmatprep.subr.bf16.mxu0 %v4348_v41  ;;  %v4467_v52 = vpack.c.bf16 %v5323_v5, %v5324_v48  ;;  %v4472_v1 = vsub.f32 %v4149_v15, %v290_v20  ;;  %v4477_v3 = vsub.f32 %v4162_v19, %v5448_v26  ;;  %v4490_v5 = vpack.c.bf16 %v5331_v37, %v5332_v62 }
  0x22   : > { %5446 = vst [vmem:[#allocation14_spill] sm:$0xff] %v4452_v11  ;;  %v4484_v36 = vpack.c.bf16 %v5450_v10, %v5449_v2  ;;  %v5452_v15 = vand.u32 4294901760, %v4436_v18  ;;  %v5453_v19 = vand.u32 4294901760, %v4391_v50  ;;  %v383_v48 = vand.u32 4294901760, %v382_v17 }
  0x23   : > { %3452 = vmatpush3.bf16.msra.mxu1 %v4325_v61  ;;  %5447 = vst [vmem:[#allocation15_spill] sm:$0xff] %v4467_v52  ;;  %5451 = vst [vmem:[#allocation16_spill] sm:$0xff] %v4490_v5  ;;  %v5454_v51 = vand.u32 4294901760, %v4407_v45  ;;  %v5455_v2 = vand.u32 4294901760, %v4412_v8  ;;  %v5456_v37 = vand.u32 4294901760, %v4139_v13  ;;  %v390_v24 = vand.u32 4294901760, %v389_v30 }
  0x24   : > { %3740 = vmatpush3.bf16.msra.mxu0 %v4348_v41  ;;  %3454 = vmatprep.subr.bf16.mxu1 %v4362_v0  ;;  %v361_v20 = vsub.f32 %v4436_v18, %v5452_v15  ;;  %v403_v26 = vsub.f32 %v4391_v50, %v5453_v19  ;;  %v397_v16 = vand.u32 4294901760, %v396_v6 }
  0x25   : > { %3742 = vmatprep.subr.bf16.mxu0 %v4419_v12  ;;  %v4502_v10 = vpack.c.bf16 %v5455_v2, %v5454_v51  ;;  %v4508_v62 = vsub.f32 %v4139_v13, %v5456_v37  ;;  %v5460_v13 = vand.u32 4294901760, %v4192_v27  ;;  %v5464_v2 = vand.u32 4294901760, %v4197_v28 }
  0x26   : > { %v240_v61 = vld [vmem:[#allocation2] sm:$0xff]  ;;  %v362_v15 = vand.u32 4294901760, %v361_v20  ;;  %v241_v17 = vld [vmem:[#allocation2 + $0x8] sm:$0xff]  ;;  %v404_v6 = vand.u32 4294901760, %v403_v26  ;;  %v5462_v20 = vand.u32 4294901760, %v4144_v14  ;;  %v5468_v26 = vand.u32 4294901760, %v4173_v22 }
  0x27   : > { %5457 = vst [vmem:[#allocation17_spill] sm:$0xff] %v4508_v62  ;;  %3456 = vmatpush3.bf16.msra.mxu1 %v4362_v0  ;;  %v4511_v19 = vand.u32 4294901760, %v240_v61  ;;  %v4515_v51 = vand.u32 4294901760, %v241_v17  ;;  %v4522_v37 = vsub.f32 %v4192_v27, %v5460_v13  ;;  %v4536_v35 = vsub.f32 %v4197_v28, %v5464_v2 }
  0x28   : > { %3744 = vmatpush3.bf16.msra.mxu0 %v4419_v12  ;;  %3458 = vmatprep.subr.bf16.mxu1 %v4452_v11  ;;  %v4531_v8 = vsub.f32 %v4144_v14, %v5462_v20  ;;  %v5465_v27 = vand.u32 4294901760, %v4445_v25  ;;  %v4549_v45 = vsub.f32 %v4173_v22, %v5468_v26  ;;  %v3465_v22 = vpack.c.bf16 %v390_v24, %v383_v48 }
  0x29   : > { %5458 = vst [vmem:[#allocation18_spill] sm:$0xff] %v4511_v19  ;;  %5459 = vst [vmem:[#allocation19_spill] sm:$0xff] %v4515_v51  ;;  %3746 = vmatprep.subr.bf16.mxu0 %v4467_v52  ;;  %2835 = vmatprep.mubr.f32.mxu1 %v362_v15  ;;  %v4526_v30 = vsub.f32 %v240_v61, %v4511_v19  ;;  %v5466_v15 = vand.u32 4294901760, %v4168_v21  ;;  %v4555_v2 = vsub.f32 %v241_v17, %v4515_v51 }
  0x2a   : > { %5463 = vst [vmem:[#allocation21_spill] sm:$0xff] %v4531_v8  ;;  %v371_v13 = vsub.f32 %v4445_v25, %v5465_v27  ;;  %5469 = vst [vmem:[#allocation23_spill] sm:$0xff] %v4549_v45  ;;  %v5471_v27 = vand.u32 4294901760, %v4226_v33  ;;  %v5473_v14 = vand.u32 4294901760, %v4477_v3  ;;  %v5474_v24 = vand.u32 4294901760, %v4231_v34 }
  0x2b   : > { %5461 = vst [vmem:[#allocation20_spill] sm:$0xff] %v4526_v30  ;;  %v4544_v61 = vsub.f32 %v4168_v21, %v5466_v15  ;;  %3460 = vmatpush3.bf16.msra.mxu1 %v4452_v11  ;;  %v5347_v28 = vand.u32 4294901760, %v4526_v30  ;;  %5470 = vst [vmem:[#allocation24_spill] sm:$0xff] %v4555_v2  ;;  %v5472_v15 = vand.u32 4294901760, %v4472_v1  ;;  %v5475_v11 = vand.u32 4294901760, %v4522_v37 }
  0x2c   : > { %v4561_v21 = vsub.f32 %v4226_v33, %v5471_v27  ;;  %3748 = vmatpush3.bf16.msra.mxu0 %v4467_v52  ;;  %3462 = vmatprep.subr.bf16.mxu1 %v4484_v36  ;;  %v417_v17 = vsub.f32 %v4477_v3, %v5473_v14  ;;  %v3469_v33 = vpack.c.bf16 %v404_v6, %v397_v16  ;;  %v5350_v27 = vand.u32 4294901760, %v4508_v62 }
  0x2d   : > { %5467 = vst [vmem:[#allocation22_spill] sm:$0xff] %v4544_v61  ;;  %v410_v26 = vsub.f32 %v4472_v1, %v5472_v15  ;;  %3750 = vmatprep.subr.bf16.mxu0 %v4490_v5  ;;  %3150 = vmatprep.mubr.f32.mxu0 %v5347_v28  ;;  %v4579_v48 = vsub.f32 %v4231_v34, %v5474_v24  ;;  %v372_v15 = vand.u32 4294901760, %v371_v13  ;;  %v5476_v0 = vand.u32 4294901760, %v4536_v35 }
  0x2e   : > { %v424_v14 = vsub.f32 %v4522_v37, %v5475_v11  ;;  %v418_v24 = vand.u32 4294901760, %v417_v17  ;;  %v5477_v20 = vand.u32 4294901760, %v4267_v43  ;;  %v5478_v16 = vand.u32 4294901760, %v4272_v44 }
  0x2f   : > { %v431_v30 = vsub.f32 %v4536_v35, %v5476_v0  ;;  %3464 = vmatpush3.bf16.msra.mxu1 %v4484_v36  ;;  %v411_v11 = vand.u32 4294901760, %v410_v26  ;;  %v5479_v13 = vand.u32 4294901760, %v4531_v8  ;;  %v5480_v26 = vand.u32 4294901760, %v4214_v31 }
  0x30   : > { %3752 = vmatpush3.bf16.msra.mxu0 %v4490_v5  ;;  %3466 = vmatprep.subr.bf16.mxu1 %v3465_v22  ;;  %v4597_v0 = vsub.f32 %v4267_v43, %v5477_v20  ;;  %v4602_v6 = vsub.f32 %v4272_v44, %v5478_v16  ;;  %v5482_v43 = vand.u32 4294901760, %v4219_v32  ;;  %v425_v44 = vand.u32 4294901760, %v424_v14 }
  0x31   : > { %3754 = vmatprep.subr.bf16.mxu0 %v4502_v10  ;;  %v3757_v34 = vpack.c.bf16 %v5479_v13, %v5350_v27  ;;  %v4612_v17 = vsub.f32 %v4214_v31, %v5480_v26  ;;  %v432_v16 = vand.u32 4294901760, %v431_v30  ;;  %v5484_v28 = vand.u32 4294901760, %v4561_v21 }
  0x32   : > { %v4617_v20 = vsub.f32 %v4219_v32, %v5482_v43  ;;  %2836 = vmatmul.mubr.f32.vlgmr.msra.gmra.mrb[0].mxu1 %v372_v15  ;;  %v5485_v13 = vand.u32 4294901760, %v4555_v2  ;;  %v5486_v27 = vand.u32 4294901760, %v4544_v61  ;;  %v5487_v31 = vand.u32 4294901760, %v4549_v45 }
  0x33   : > { %5481 = vst [vmem:[#allocation25_spill] sm:$0xff] %v4612_v17  ;;  %v438_v62 = vsub.f32 %v4561_v21, %v5484_v28  ;;  %3468 = vmatpush3.bf16.msra.mxu1 %v3465_v22  ;;  %v5488_v8 = vand.u32 4294901760, %v4579_v48  ;;  %v5354_v15 = vand.u32 4294901760, %v4597_v0  ;;  %v5353_v30 = vand.u32 4294901760, %v4602_v6  ;;  %2870 = vmatprep.mubr.f32.mxu1 %v4421_v56 }
  0x34   : > { %5483 = vst [vmem:[#allocation26_spill] sm:$0xff] %v4617_v20  ;;  %3151 = vmatmul.mubr.f32.vlgmr.msra.gmra.mrb[0].mxu0 %v5485_v13  ;;  %v3761_v26 = vpack.c.bf16 %v5487_v31, %v5486_v27  ;;  %3470 = vmatprep.subr.bf16.mxu1 %v3469_v33  ;;  %v3473_v28 = vpack.c.bf16 %v418_v24, %v411_v11  ;;  %v5489_v22 = vand.u32 4294901760, %v4316_v58  ;;  %v5490_v43 = vand.u32 4294901760, %v4331_v63 }
  0x35   : > { %v445_v32 = vsub.f32 %v4579_v48, %v5488_v8  ;;  %3756 = vmatpush3.bf16.msra.mxu0 %v4502_v10  ;;  %v5355_v8 = vand.u32 4294901760, %v4612_v17  ;;  %v5491_v31 = vand.u32 4294901760, %v4246_v38  ;;  %v5493_v11 = vand.u32 4294901760, %v4251_v39  ;;  %3185 = vmatprep.mubr.f32.mxu0 %v4511_v19 }
  0x36   : > { %v4637_v14 = vsub.f32 %v4316_v58, %v5489_v22  ;;  %v4642_v27 = vsub.f32 %v4331_v63, %v5490_v43  ;;  %3758 = vmatprep.subr.bf16.mxu0 %v3757_v34  ;;  %v3477_v24 = vpack.c.bf16 %v432_v16, %v425_v44  ;;  %v439_v63 = vand.u32 4294901760, %v438_v62 }
  0x37   : > { %v4649_v10 = vsub.f32 %v4246_v38, %v5491_v31  ;;  %v4654_v58 = vsub.f32 %v4251_v39, %v5493_v11  ;;  %v5495_v22 = vand.u32 4294901760, %v4286_v49  ;;  %3472 = vmatpush3.bf16.msra.mxu1 %v3469_v33  ;;  %v446_v13 = vand.u32 4294901760, %v445_v32 }
  0x38   : > { %v452_v38 = vsub.f32 %v4597_v0, %v5354_v15  ;;  %v459_v39 = vsub.f32 %v4602_v6, %v5353_v30  ;;  %v5497_v44 = vand.u32 4294901760, %v4301_v54  ;;  %3474 = vmatprep.subr.bf16.mxu1 %v3473_v28  ;;  %v5499_v16 = vand.u32 4294901760, %v4381_v60 }
  0x39   : > { %5492 = vst [vmem:[#allocation27_spill] sm:$0xff] %v4649_v10  ;;  %5494 = vst [vmem:[#allocation28_spill] sm:$0xff] %v4654_v58  ;;  %v4660_v43 = vsub.f32 %v4286_v49, %v5495_v22  ;;  %3760 = vmatpush3.bf16.msra.mxu0 %v3757_v34  ;;  %v5356_v49 = vand.u32 4294901760, %v4637_v14  ;;  %v5500_v31 = vand.u32 4294901760, %v4386_v7  ;;  %v5358_v22 = vand.u32 4294901760, %v4649_v10  ;;  %v2472_v10 = vld [vmem:[%s5299_s3 + $0x178] sm:$0xff] }
  0x3a   : > { %v4672_v62 = vsub.f32 %v4301_v54, %v5497_v44  ;;  %v4679_v32 = vsub.f32 %v4381_v60, %v5499_v16  ;;  %3762 = vmatprep.subr.bf16.mxu0 %v3761_v26  ;;  %v5501_v54 = vand.u32 4294901760, %v4617_v20  ;;  %v5357_v44 = vand.u32 4294901760, %v4654_v58 }
  0x3b   : > { %5496 = vst [vmem:[#allocation29_spill] sm:$0xff] %v4660_v43  ;;  %v4684_v11 = vsub.f32 %v4386_v7, %v5500_v31  ;;  %3476 = vmatpush3.bf16.msra.mxu1 %v3473_v28  ;;  %v3481_v60 = vpack.c.bf16 %v446_v13, %v439_v63  ;;  %v453_v16 = vand.u32 4294901760, %v452_v38  ;;  %v460_v15 = vand.u32 4294901760, %v459_v39 }
  0x3c   : > { %5498 = vst [vmem:[#allocation30_spill] sm:$0xff] %v4672_v62  ;;  %v3765_v34 = vpack.c.bf16 %v5501_v54, %v5355_v8  ;;  %v5361_v33 = vand.u32 4294901760, %v4672_v62  ;;  %3478 = vmatprep.subr.bf16.mxu1 %v3477_v24  ;;  %v466_v7 = vsub.f32 %v4637_v14, %v5356_v49  ;;  %v5502_v31 = vand.u32 4294901760, %v4642_v27 }
  0x3d   : > { %3764 = vmatpush3.bf16.msra.mxu0 %v3761_v26  ;;  %v479_v8 = vand.u32 4294901760, %v4679_v32  ;;  %v486_v30 = vand.u32 4294901760, %v4684_v11  ;;  %v3769_v28 = vpack.c.bf16 %v5357_v44, %v5358_v22  ;;  %v5503_v26 = vand.u32 4294901760, %v4336_v9 }
  0x3e   : > { %v473_v54 = vsub.f32 %v4642_v27, %v5502_v31  ;;  %3766 = vmatprep.subr.bf16.mxu0 %v3765_v34  ;;  %v5505_v63 = vand.u32 4294901760, %v4375_v4  ;;  %v3485_v39 = vpack.c.bf16 %v460_v15, %v453_v16  ;;  %v5507_v31 = vand.u32 4294901760, %v4660_v43 }
  0x3f   : > { %v4709_v13 = vsub.f32 %v4336_v9, %v5503_v26  ;;  %3480 = vmatpush3.bf16.msra.mxu1 %v3477_v24  ;;  %v467_v44 = vand.u32 4294901760, %v466_v7  ;;  %v480_v58 = vsub.f32 %v4679_v32, %v479_v8  ;;  %v487_v9 = vsub.f32 %v4684_v11, %v486_v30 }
  0x40   : > { %v4714_v38 = vsub.f32 %v4375_v4, %v5505_v63  ;;  %v3773_v49 = vpack.c.bf16 %v5361_v33, %v5507_v31  ;;  %3482 = vmatprep.subr.bf16.mxu1 %v3481_v60  ;;  %v474_v22 = vand.u32 4294901760, %v473_v54  ;;  %v5508_v15 = vand.u32 4294901760, %v4396_v47 }
  0x41   : > { %5504 = vst [vmem:[#allocation31_spill] sm:$0xff] %v4709_v13  ;;  %3768 = vmatpush3.bf16.msra.mxu0 %v3765_v34  ;;  %v5364_v26 = vand.u32 4294901760, %v4709_v13  ;;  %v5510_v16 = vand.u32 4294901760, %v4401_v53  ;;  %v481_v54 = vand.u32 4294901760, %v480_v58  ;;  %v488_v63 = vand.u32 4294901760, %v487_v9 }
  0x42   : > { %5506 = vst [vmem:[#allocation32_spill] sm:$0xff] %v4714_v38  ;;  %3770 = vmatprep.subr.bf16.mxu0 %v3769_v28  ;;  %v4727_v24 = vsub.f32 %v4396_v47, %v5508_v15  ;;  %v3489_v7 = vpack.c.bf16 %v474_v22, %v467_v44  ;;  %v5512_v31 = vand.u32 4294901760, %v4341_v42  ;;  %v5513_v33 = vand.u32 4294901760, %v4354_v55 }
  0x43   : > { %v4732_v34 = vsub.f32 %v4401_v53, %v5510_v16  ;;  %3484 = vmatpush3.bf16.msra.mxu1 %v3481_v60  ;;  %v5514_v47 = vand.u32 4294901760, %v4714_v38  ;;  %v5515_v22 = vand.u32 4294901760, %v4368_v59  ;;  %v5516_v58 = vand.u32 4294901760, %v4391_v50  ;;  %v243_v38 = vld [vmem:[#allocation2 + $0xa] sm:$0xff] }
  0x44   : > { %5509 = vst [vmem:[#allocation33_spill] sm:$0xff] %v4727_v24  ;;  %3486 = vmatprep.subr.bf16.mxu1 %v3485_v39  ;;  %v4738_v4 = vpack.c.bf16 %v5513_v33, %v5512_v31  ;;  %v5363_v53 = vand.u32 4294901760, %v4727_v24  ;;  %v5517_v33 = vand.u32 4294901760, %v4472_v1  ;;  %v3493_v16 = vpack.c.bf16 %v488_v63, %v481_v54 }
  0x45   : > { %5511 = vst [vmem:[#allocation34_spill] sm:$0xff] %v4732_v34  ;;  %3772 = vmatpush3.bf16.msra.mxu0 %v3769_v28  ;;  %v3777_v15 = vpack.c.bf16 %v5514_v47, %v5364_v26  ;;  %v5362_v60 = vand.u32 4294901760, %v4732_v34  ;;  %v4750_v44 = vpack.c.bf16 %v5516_v58, %v5515_v22  ;;  %v5518_v28 = vand.u32 4294901760, %v4477_v3  ;;  %v2466_v26 = vld [vmem:[%s5299_s3 + $0x148] sm:$0xff] }
  0x46   : > { %3774 = vmatprep.subr.bf16.mxu0 %v3773_v49  ;;  %v5519_v47 = vand.u32 4294901760, %v4522_v37  ;;  %v5520_v22 = vand.u32 4294901760, %v4536_v35  ;;  %v5522_v54 = vand.u32 4294901760, %v4579_v48 }
  0x47   : > { %3488 = vmatpush3.bf16.msra.mxu1 %v3485_v39  ;;  %v4756_v9 = vpack.c.bf16 %v5518_v28, %v5517_v33  ;;  %v3781_v31 = vpack.c.bf16 %v5362_v60, %v5363_v53  ;;  %v3497_v39 = vpack.c.bf16 %v4354_v55, %v4341_v42  ;;  %v5523_v42 = vand.u32 4294901760, %v4597_v0 }
  0x48   : > { %3490 = vmatprep.subr.bf16.mxu1 %v3489_v7  ;;  %v4768_v58 = vpack.c.bf16 %v5520_v22, %v5519_v47  ;;  %v5524_v55 = vand.u32 4294901760, %v4602_v6  ;;  %v5525_v33 = vand.u32 4294901760, %v4637_v14  ;;  %v5526_v28 = vand.u32 4294901760, %v4642_v27 }
  0x49   : > { %3776 = vmatpush3.bf16.msra.mxu0 %v3773_v49  ;;  %v5521_v49 = vand.u32 4294901760, %v4561_v21 }
  0x4a   : > { %3778 = vmatprep.subr.bf16.mxu0 %v3777_v15 }
  0x4b   : > { %3492 = vmatpush3.bf16.msra.mxu1 %v3489_v7  ;;  %v4774_v63 = vpack.c.bf16 %v5522_v54, %v5521_v49  ;;  %v3501_v7 = vpack.c.bf16 %v4391_v50, %v4368_v59  ;;  %v3505_v59 = vpack.c.bf16 %v4477_v3, %v4472_v1  ;;  %v4799_v50 = vpack.c.bf16 %v486_v30, %v479_v8  ;;  %v242_v1 = vld [vmem:[#allocation2 + $0x2] sm:$0xff]  ;;  %v2459_v8 = vld [vmem:[%s5299_s3 + $0x110] sm:$0xff] }
  0x4c   : > { %3494 = vmatprep.subr.bf16.mxu1 %v3493_v16  ;;  %v3513_v3 = vpack.c.bf16 %v4579_v48, %v4561_v21  ;;  %v3517_v30 = vpack.c.bf16 %v4602_v6, %v4597_v0  ;;  %v2457_v21 = vld [vmem:[%s5299_s3 + $0x100] sm:$0xff]  ;;  %v2458_v48 = vld [vmem:[%s5299_s3 + $0x108] sm:$0xff]  ;;  %v3525_v0 = vpack.c.bf16 %v4684_v11, %v4679_v32  ;;  %v1669_v32 = vand.u32 4294901760, %v2459_v8 }
  0x4d   : > { %3780 = vmatpush3.bf16.msra.mxu0 %v3777_v15  ;;  %v4782_v15 = vpack.c.bf16 %v5524_v55, %v5523_v42  ;;  %v2462_v42 = vld [vmem:[%s5299_s3 + $0x128] sm:$0xff] }
  0x4e   : > { %3782 = vmatprep.subr.bf16.mxu0 %v3781_v31  ;;  %v4853_v55 = vsub.f32 %v2459_v8, %v1669_v32 }
  0x4f   : > { %3496 = vmatpush3.bf16.msra.mxu1 %v3493_v16  ;;  %v4790_v16 = vpack.c.bf16 %v5526_v28, %v5525_v33 }
  0x50   : > { %3498 = vmatprep.subr.bf16.mxu1 %v3497_v39 }
  0x51   : > { %3784 = vmatpush3.bf16.msra.mxu0 %v3781_v31  ;;  %v3509_v31 = vpack.c.bf16 %v4536_v35, %v4522_v37  ;;  %v4813_v35 = vand.u32 4294901760, %v242_v1  ;;  %v3521_v37 = vpack.c.bf16 %v4642_v27, %v4637_v14  ;;  %v1663_v14 = vand.u32 4294901760, %v2457_v21 }
  0x52   : > { %3786 = vmatprep.subr.bf16.mxu0 %v4179_v23  ;;  %2871 = vmatmul.mubr.f32.vlgmr.msra.gmra.mrb[0].mxu1 %v4430_v46  ;;  %v1666_v27 = vand.u32 4294901760, %v2458_v48 }
  0x53   : > { %3500 = vmatpush3.bf16.msra.mxu1 %v3497_v39  ;;  %2905 = vmatprep.mubr.f32.mxu1 %v4436_v18  ;;  %v4826_v6 = vsub.f32 %v242_v1, %v4813_v35  ;;  %v2460_v39 = vld [vmem:[%s5299_s3 + $0x118] sm:$0xff]  ;;  %v4839_v22 = vsub.f32 %v2457_v21, %v1663_v14 }
  0x54   : > { %3186 = vmatmul.mubr.f32.vlgmr.msra.gmra.mrb[0].mxu0 %v4515_v51  ;;  %3502 = vmatprep.subr.bf16.mxu1 %v3501_v7  ;;  %v4841_v49 = vsub.f32 %v2458_v48, %v1666_v27  ;;  %v1672_v11 = vand.u32 4294901760, %v2460_v39  ;;  %v4845_v54 = vpack.c.bf16 %v1666_v27, %v1663_v14  ;;  %v2463_v48 = vld [vmem:[%s5299_s3 + $0x130] sm:$0xff]  ;;  %v5368_v14 = vand.u32 4294901760, %v4853_v55 }
  0x55   : > { %3788 = vmatpush3.bf16.msra.mxu0 %v4179_v23  ;;  %3220 = vmatprep.mubr.f32.mxu0 %v4511_v19  ;;  %v5365_v47 = vand.u32 4294901760, %v4826_v6  ;;  %v5369_v28 = vand.u32 4294901760, %v4839_v22 }
  0x56   : > { %3790 = vmatprep.subr.bf16.mxu0 %v4208_v29  ;;  %v4871_v21 = vpack.c.bf16 %v1672_v11, %v1669_v32  ;;  %v5529_v32 = vld [vmem:[#allocation4_spill] sm:$0xff]  ;;  %v5546_v45 = vand.u32 4294901760, %v4841_v49 }
  0x57   : > { %3504 = vmatpush3.bf16.msra.mxu1 %v3501_v7  ;;  %v2461_v7 = vld [vmem:[%s5299_s3 + $0x120] sm:$0xff]  ;;  %v1746_v33 = vsub.f32 %v4826_v6, %v5365_v47  ;;  %v5532_v47 = vand.u32 4294901760, %v4436_v18 }
  0x58   : > { %3506 = vmatprep.subr.bf16.mxu1 %v3505_v59  ;;  %v1675_v1 = vand.u32 4294901760, %v2461_v7  ;;  %v1774_v61 = vsub.f32 %v4841_v49, %v5546_v45 }
  0x59   : > { %3792 = vmatpush3.bf16.msra.mxu0 %v4208_v29  ;;  %v1747_v27 = vand.u32 4294901760, %v1746_v33 }
  0x5a   : > { %3794 = vmatprep.subr.bf16.mxu0 %v4260_v40 }
  0x5b   : > { %3508 = vmatpush3.bf16.msra.mxu1 %v3505_v59  ;;  %v5366_v59 = vand.u32 4294901760, %v4841_v49 }
  0x5c   : > { %3510 = vmatprep.subr.bf16.mxu1 %v3509_v31 }
  0x5d   : > { %3796 = vmatpush3.bf16.msra.mxu0 %v4260_v40 }
  0x5e   : > { %3798 = vmatprep.subr.bf16.mxu0 %v4311_v57 }
  0x5f   : > { %3512 = vmatpush3.bf16.msra.mxu1 %v3509_v31  ;;  %v4860_v31 = vsub.f32 %v2460_v39, %v1672_v11  ;;  %v4882_v39 = vsub.f32 %v2461_v7, %v1675_v1  ;;  %v1681_v11 = vand.u32 4294901760, %v2463_v48 }
  0x60   : > { %3514 = vmatprep.subr.bf16.mxu1 %v3513_v3 }
  0x61   : > { %3800 = vmatpush3.bf16.msra.mxu0 %v4311_v57  ;;  %v5367_v8 = vand.u32 4294901760, %v4860_v31 }
  0x62   : > { %3802 = vmatprep.subr.bf16.mxu0 %v4348_v41 }
  0x63   : > { %3516 = vmatpush3.bf16.msra.mxu1 %v3513_v3  ;;  %v5527_v3 = vld [vmem:[#allocation3_spill] sm:$0xff]  ;;  %v4894_v33 = vpack.c.bf16 %v5367_v8, %v5368_v14  ;;  %v4909_v14 = vsub.f32 %v2463_v48, %v1681_v11  ;;  %v2467_v48 = vld [vmem:[%s5299_s3 + $0x150] sm:$0xff] }
  0x64   : > { %3518 = vmatprep.subr.bf16.mxu1 %v3517_v30 }
  0x65   : > { %3804 = vmatpush3.bf16.msra.mxu0 %v4348_v41  ;;  %5530 = vst [vmem:[#allocation4_spill] sm:$0xff] %v4894_v33 }
  0x66   : > { %3806 = vmatprep.subr.bf16.mxu0 %v4419_v12 }
  0x67   : > { %3520 = vmatpush3.bf16.msra.mxu1 %v3517_v30  ;;  %v1678_v30 = vand.u32 4294901760, %v2462_v42 }
  0x68   : > { %3522 = vmatprep.subr.bf16.mxu1 %v3521_v37 }
  0x69   : > { %3808 = vmatpush3.bf16.msra.mxu0 %v4419_v12  ;;  %v4884_v60 = vsub.f32 %v2462_v42, %v1678_v30  ;;  %v4897_v7 = vpack.c.bf16 %v1678_v30, %v1675_v1  ;;  %v2465_v42 = vld [vmem:[%s5299_s3 + $0x140] sm:$0xff]  ;;  %v5533_v30 = vld [vmem:[#allocation5_spill] sm:$0xff] }
  0x6a   : > { %3810 = vmatprep.subr.bf16.mxu0 %v4467_v52 }
  0x6b   : > { %3524 = vmatpush3.bf16.msra.mxu1 %v3521_v37  ;;  %v4868_v37 = vpack.c.bf16 %v5366_v59, %v5369_v28  ;;  %5531 = vst [vmem:[#allocation35_spill] sm:$0xff] %v4897_v7  ;;  %v5376_v59 = vand.u32 4294901760, %v4882_v39  ;;  %v5375_v8 = vand.u32 4294901760, %v4884_v60  ;;  %v1687_v28 = vand.u32 4294901760, %v2465_v42 }
  0x6c   : > { %3526 = vmatprep.subr.bf16.mxu1 %v3525_v0 }
  0x6d   : > { %3812 = vmatpush3.bf16.msra.mxu0 %v4467_v52  ;;  %5528 = vst [vmem:[#allocation3_spill] sm:$0xff] %v4868_v37  ;;  %v4920_v18 = vpack.c.bf16 %v5375_v8, %v5376_v59  ;;  %v4933_v24 = vsub.f32 %v2465_v42, %v1687_v28 }
  0x6e   : > { %3814 = vmatprep.subr.bf16.mxu0 %v4490_v5 }
  0x6f   : > { %3528 = vmatpush3.bf16.msra.mxu1 %v3525_v0  ;;  %v2464_v0 = vld [vmem:[%s5299_s3 + $0x138] sm:$0xff]  ;;  %5534 = vst [vmem:[#allocation5_spill] sm:$0xff] %v4920_v18  ;;  %v2470_v18 = vld [vmem:[%s5299_s3 + $0x168] sm:$0xff]  ;;  %v5399_v62 = vand.u32 4294901760, %v4933_v24 }
  0x70   : > { %3530 = vmatprep.subr.bf16.mxu1 %v5527_v3  ;;  %v1684_v53 = vand.u32 4294901760, %v2464_v0 }
  0x71   : > { %3816 = vmatpush3.bf16.msra.mxu0 %v4490_v5 }
  0x72   : > { %3818 = vmatprep.subr.bf16.mxu0 %v4845_v54  ;;  %2906 = vmatmul.mubr.f32.vlgmr.msra.gmra.mrb[0].mxu1 %v4445_v25  ;;  %v4911_v1 = vsub.f32 %v2464_v0, %v1684_v53  ;;  %v2468_v0 = vld [vmem:[%s5299_s3 + $0x158] sm:$0xff] }
  0x73   : > { %3532 = vmatpush3.bf16.msra.mxu1 %v5527_v3  ;;  %2940 = vmatprep.mubr.f32.mxu1 %v5532_v47  ;;  %v4923_v47 = vpack.c.bf16 %v1684_v53, %v1681_v11  ;;  %v5536_v53 = vld [vmem:[#allocation6_spill] sm:$0xff]  ;;  %v1693_v11 = vand.u32 4294901760, %v2467_v48  ;;  %v1696_v59 = vand.u32 4294901760, %v2468_v0 }
  0x74   : > { %3221 = vmatmul.mubr.f32.vlgmr.msra.gmra.mrb[0].mxu0 %v4515_v51  ;;  %3534 = vmatprep.subr.bf16.mxu1 %v5529_v32  ;;  %v1690_v51 = vand.u32 4294901760, %v2466_v26  ;;  %v5387_v34 = vand.u32 4294901760, %v4911_v1 }
  0x75   : > { %3820 = vmatpush3.bf16.msra.mxu0 %v4845_v54  ;;  %3255 = vmatprep.mubr.f32.mxu0 %v1747_v27  ;;  %5535 = vst [vmem:[#allocation36_spill] sm:$0xff] %v4923_v47  ;;  %v5388_v27 = vand.u32 4294901760, %v4909_v14  ;;  %v4957_v19 = vsub.f32 %v2467_v48, %v1693_v11  ;;  %v4973_v48 = vpack.c.bf16 %v1696_v59, %v1693_v11  ;;  %v5542_v11 = vld [vmem:[#allocation10_spill] sm:$0xff] }
  0x76   : > { %3822 = vmatprep.subr.bf16.mxu0 %v4871_v21  ;;  %v4935_v8 = vsub.f32 %v2466_v26, %v1690_v51  ;;  %v4947_v42 = vpack.c.bf16 %v1690_v51, %v1687_v28  ;;  %v2469_v26 = vld [vmem:[%s5299_s3 + $0x160] sm:$0xff]  ;;  %v4962_v51 = vand.u32 4294901760, %v243_v38 }
  0x77   : > { %3536 = vmatpush3.bf16.msra.mxu1 %v5529_v32  ;;  %v4944_v13 = vpack.c.bf16 %v5387_v34, %v5388_v27  ;;  %v4959_v34 = vsub.f32 %v2468_v0, %v1696_v59  ;;  %v5539_v28 = vld [vmem:[#allocation8_spill] sm:$0xff]  ;;  %v1699_v27 = vand.u32 4294901760, %v2469_v26  ;;  %5541 = vst [vmem:[#allocation38_spill] sm:$0xff] %v4973_v48  ;;  %v2471_v0 = vld [vmem:[%s5299_s3 + $0x170] sm:$0xff]  ;;  %v5414_v37 = vand.u32 4294901760, %v4957_v19 }
  0x78   : > { %3538 = vmatprep.subr.bf16.mxu1 %v5533_v30  ;;  %5538 = vst [vmem:[#allocation37_spill] sm:$0xff] %v4947_v42  ;;  %v5398_v43 = vand.u32 4294901760, %v4935_v8  ;;  %v4989_v59 = vsub.f32 %v243_v38, %v4962_v51 }
  0x79   : > { %3824 = vmatpush3.bf16.msra.mxu0 %v4871_v21  ;;  %5537 = vst [vmem:[#allocation6_spill] sm:$0xff] %v4944_v13  ;;  %v1702_v13 = vand.u32 4294901760, %v2470_v18  ;;  %v5413_v20 = vand.u32 4294901760, %v4959_v34  ;;  %v4983_v17 = vsub.f32 %v2469_v26, %v1699_v27  ;;  %v5545_v26 = vand.u32 4294901760, %v4839_v22 }
  0x7a   : > { %3826 = vmatprep.subr.bf16.mxu0 %v4897_v7  ;;  %v4970_v33 = vpack.c.bf16 %v5398_v43, %v5399_v62  ;;  %v1705_v62 = vand.u32 4294901760, %v2471_v0 }
  0x7b   : > { %3540 = vmatpush3.bf16.msra.mxu1 %v5533_v30  ;;  %v4985_v43 = vsub.f32 %v2470_v18, %v1702_v13  ;;  %v4997_v5 = vpack.c.bf16 %v5413_v20, %v5414_v37  ;;  %v5000_v18 = vpack.c.bf16 %v1702_v13, %v1699_v27  ;;  %v1767_v38 = vsub.f32 %v4839_v22, %v5545_v26  ;;  %v5547_v27 = vld [vmem:[#allocation14_spill] sm:$0xff] }
  0x7c   : > { %3542 = vmatprep.subr.bf16.mxu1 %v5536_v53  ;;  %5540 = vst [vmem:[#allocation8_spill] sm:$0xff] %v4970_v33  ;;  %v1708_v33 = vand.u32 4294901760, %v2472_v10  ;;  %v5419_v2 = vand.u32 4294901760, %v4983_v17  ;;  %v5010_v12 = vsub.f32 %v2471_v0, %v1705_v62  ;;  %v1775_v0 = vand.u32 4294901760, %v1774_v61 }
  0x7d   : > { %3828 = vmatpush3.bf16.msra.mxu0 %v4897_v7  ;;  %5543 = vst [vmem:[#allocation10_spill] sm:$0xff] %v4997_v5  ;;  %5544 = vst [vmem:[#allocation39_spill] sm:$0xff] %v5000_v18  ;;  %v5418_v52 = vand.u32 4294901760, %v4985_v43  ;;  %v5549_v37 = vand.u32 4294901760, %v4853_v55  ;;  %v5550_v5 = vand.u32 4294901760, %v4860_v31  ;;  %v5552_v61 = vand.u32 4294901760, %v4882_v39 }
  0x7e   : > { %3830 = vmatprep.subr.bf16.mxu0 %v4923_v47  ;;  %v5012_v20 = vsub.f32 %v2472_v10, %v1708_v33  ;;  %v5018_v26 = vpack.c.bf16 %v1708_v33, %v1705_v62  ;;  %v1768_v10 = vand.u32 4294901760, %v1767_v38  ;;  %v1864_v62 = vand.u32 4294901760, %v5010_v12 }
  0x7f   : > { %3544 = vmatpush3.bf16.msra.mxu1 %v5536_v53  ;;  %v5024_v45 = vpack.c.bf16 %v5418_v52, %v5419_v2  ;;  %v1781_v13 = vsub.f32 %v4853_v55, %v5549_v37  ;;  %v5551_v52 = vand.u32 4294901760, %v4989_v59  ;;  %v1795_v37 = vsub.f32 %v4882_v39, %v5552_v61 }
  0x80   : > { %3546 = vmatprep.subr.bf16.mxu1 %v5539_v28  ;;  %v1871_v33 = vand.u32 4294901760, %v5012_v20  ;;  %v5556_v7 = vand.u32 4294901760, %v4911_v1 }
  0x81   : > { %3832 = vmatpush3.bf16.msra.mxu0 %v4923_v47  ;;  %5548 = vst [vmem:[#allocation14_spill] sm:$0xff] %v5024_v45  ;;  %v1756_v2 = vsub.f32 %v4989_v59, %v5551_v52  ;;  %v1782_v41 = vand.u32 4294901760, %v1781_v13 }
  0x82   : > { %3834 = vmatprep.subr.bf16.mxu0 %v4947_v42  ;;  %v5047_v45 = vpack.c.bf16 %v1871_v33, %v1864_v62  ;;  %v1816_v13 = vsub.f32 %v4911_v1, %v5556_v7 }
  0x83   : > { %3548 = vmatpush3.bf16.msra.mxu1 %v5539_v28  ;;  %v1757_v52 = vand.u32 4294901760, %v1756_v2 }
  0x84   : > { %3550 = vmatprep.subr.bf16.mxu1 %v5542_v11  ;;  %5554 = vst [vmem:[#allocation40_spill] sm:$0xff] %v5047_v45 }
  0x85   : > { %3836 = vmatpush3.bf16.msra.mxu0 %v4947_v42  ;;  %v3849_v42 = vpack.c.bf16 %v1775_v0, %v1768_v10  ;;  %v5558_v10 = vand.u32 4294901760, %v4933_v24 }
  0x86   : > { %3838 = vmatprep.subr.bf16.mxu0 %v4973_v48 }
  0x87   : > { %3552 = vmatpush3.bf16.msra.mxu1 %v5542_v11  ;;  %v1823_v0 = vsub.f32 %v4933_v24, %v5558_v10 }
  0x88   : > { %3554 = vmatprep.subr.bf16.mxu1 %v5547_v27 }
  0x89   : > { %3840 = vmatpush3.bf16.msra.mxu0 %v4973_v48  ;;  %v1788_v48 = vsub.f32 %v4860_v31, %v5550_v5  ;;  %v5553_v5 = vand.u32 4294901760, %v4884_v60 }
  0x8a   : > { %3842 = vmatprep.subr.bf16.mxu0 %v5000_v18 }
  0x8b   : > { %3556 = vmatpush3.bf16.msra.mxu1 %v5547_v27  ;;  %v1802_v38 = vsub.f32 %v4884_v60, %v5553_v5  ;;  %v1789_v47 = vand.u32 4294901760, %v1788_v48  ;;  %v5555_v5 = vand.u32 4294901760, %v4909_v14  ;;  %v5557_v48 = vand.u32 4294901760, %v4445_v25 }
  0x8c   : > { %3558 = vmatprep.subr.bf16.mxu1 %v4484_v36  ;;  %v5560_v25 = vand.u32 4294901760, %v4957_v19 }
  0x8d   : > { %3844 = vmatpush3.bf16.msra.mxu0 %v5000_v18  ;;  %v1796_v18 = vand.u32 4294901760, %v1795_v37  ;;  %v1803_v61 = vand.u32 4294901760, %v1802_v38  ;;  %v3853_v57 = vpack.c.bf16 %v1789_v47, %v1782_v41  ;;  %v1809_v45 = vsub.f32 %v4909_v14, %v5555_v5 }
  0x8e   : > { %3846 = vmatprep.subr.bf16.mxu0 %v5018_v26  ;;  %v1817_v47 = vand.u32 4294901760, %v1816_v13  ;;  %v5559_v37 = vand.u32 4294901760, %v4935_v8  ;;  %v1824_v38 = vand.u32 4294901760, %v1823_v0  ;;  %v5562_v5 = vand.u32 4294901760, %v4983_v17 }
  0x8f   : > { %3560 = vmatpush3.bf16.msra.mxu1 %v4484_v36  ;;  %v3857_v2 = vpack.c.bf16 %v1803_v61, %v1796_v18  ;;  %v1810_v41 = vand.u32 4294901760, %v1809_v45  ;;  %v1872_v0 = vsub.f32 %v5012_v20, %v1871_v33  ;;  %v5583_v33 = vld [vmem:[#allocation39_spill] sm:$0xff] }
  0x90   : > { %3562 = vmatprep.subr.bf16.mxu1 %v4738_v4  ;;  %v1830_v7 = vsub.f32 %v4935_v8, %v5559_v37  ;;  %v1851_v13 = vsub.f32 %v4983_v17, %v5562_v5  ;;  %v5590_v5 = vld [vmem:[#allocation16_spill] sm:$0xff] }
  0x91   : > { %3848 = vmatpush3.bf16.msra.mxu0 %v5018_v26  ;;  %v3861_v45 = vpack.c.bf16 %v1817_v47, %v1810_v41  ;;  %v1865_v47 = vsub.f32 %v5010_v12, %v1864_v62 }
  0x92   : > { %3850 = vmatprep.subr.bf16.mxu0 %v3849_v42  ;;  %2941 = vmatmul.mubr.f32.vlgmr.msra.gmra.mrb[0].mxu1 %v5557_v48  ;;  %v5563_v48 = vand.u32 4294901760, %v4985_v43 }
  0x93   : > { %3564 = vmatpush3.bf16.msra.mxu1 %v4738_v4  ;;  %2975 = vmatprep.mubr.f32.mxu1 %v4421_v56  ;;  %v1837_v4 = vsub.f32 %v4957_v19, %v5560_v25 }
  0x94   : > { %3256 = vmatmul.mubr.f32.vlgmr.msra.gmra.mrb[0].mxu0 %v1757_v52  ;;  %3566 = vmatprep.subr.bf16.mxu1 %v4750_v44  ;;  %v1831_v52 = vand.u32 4294901760, %v1830_v7  ;;  %v1858_v10 = vsub.f32 %v4985_v43, %v5563_v48  ;;  %v1866_v7 = vand.u32 4294901760, %v1865_v47 }
  0x95   : > { %3852 = vmatpush3.bf16.msra.mxu0 %v3849_v42  ;;  %3290 = vmatprep.mubr.f32.mxu0 %v4813_v35  ;;  %v5561_v42 = vand.u32 4294901760, %v4959_v34 }
  0x96   : > { %3854 = vmatprep.subr.bf16.mxu0 %v3853_v57  ;;  %v3865_v61 = vpack.c.bf16 %v1831_v52, %v1824_v38  ;;  %v1859_v41 = vand.u32 4294901760, %v1858_v10 }
  0x97   : > { %3568 = vmatpush3.bf16.msra.mxu1 %v4750_v44  ;;  %v1844_v18 = vsub.f32 %v4959_v34, %v5561_v42 }
  0x98   : > { %3570 = vmatprep.subr.bf16.mxu1 %v4756_v9 }
  0x99   : > { %3856 = vmatpush3.bf16.msra.mxu0 %v3853_v57  ;;  %v1838_v57 = vand.u32 4294901760, %v1837_v4  ;;  %v1845_v44 = vand.u32 4294901760, %v1844_v18  ;;  %v5584_v4 = vld [vmem:[#allocation24_spill] sm:$0xff] }
  0x9a   : > { %3858 = vmatprep.subr.bf16.mxu0 %v3857_v2  ;;  %v5585_v42 = vand.u32 4294901760, %v5584_v4 }
  0x9b   : > { %3572 = vmatpush3.bf16.msra.mxu1 %v4756_v9  ;;  %v3869_v9 = vpack.c.bf16 %v1845_v44, %v1838_v57  ;;  %v5588_v57 = vld [vmem:[#allocation23_spill] sm:$0xff] }
  0x9c   : > { %3574 = vmatprep.subr.bf16.mxu1 %v4768_v58  ;;  %v1055_v18 = vsub.f32 %v5584_v4, %v5585_v42  ;;  %v5589_v44 = vand.u32 4294901760, %v5588_v57  ;;  %v5608_v42 = vld [vmem:[#allocation31_spill] sm:$0xff] }
  0x9d   : > { %3860 = vmatpush3.bf16.msra.mxu0 %v3857_v2  ;;  %v1852_v2 = vand.u32 4294901760, %v1851_v13 }
  0x9e   : > { %3862 = vmatprep.subr.bf16.mxu0 %v3861_v45 }
  0x9f   : > { %3576 = vmatpush3.bf16.msra.mxu1 %v4768_v58  ;;  %v3873_v37 = vpack.c.bf16 %v1859_v41, %v1852_v2  ;;  %v1873_v58 = vand.u32 4294901760, %v1872_v0  ;;  %v5591_v0 = vld [vmem:[#allocation25_spill] sm:$0xff] }
  0xa0   : > { %3578 = vmatprep.subr.bf16.mxu1 %v4774_v63 }
  0xa1   : > { %3864 = vmatpush3.bf16.msra.mxu0 %v3861_v45  ;;  %v3877_v25 = vpack.c.bf16 %v1873_v58, %v1866_v7  ;;  %v5586_v45 = vld [vmem:[#allocation22_spill] sm:$0xff] }
  0xa2   : > { %3866 = vmatprep.subr.bf16.mxu0 %v3865_v61  ;;  %v5587_v38 = vand.u32 4294901760, %v5586_v45  ;;  %v5593_v58 = vld [vmem:[#allocation26_spill] sm:$0xff] }
  0xa3   : > { %3580 = vmatpush3.bf16.msra.mxu1 %v4774_v63  ;;  %v3881_v63 = vpack.c.bf16 %v4841_v49, %v4839_v22  ;;  %v3905_v22 = vpack.c.bf16 %v4985_v43, %v4983_v17  ;;  %v5572_v43 = vld [vmem:[#allocation13_spill] sm:$0xff] }
  0xa4   : > { %3582 = vmatprep.subr.bf16.mxu1 %v4782_v15  ;;  %v1094_v52 = vsub.f32 %v5586_v45, %v5587_v38 }
  0xa5   : > { %3868 = vmatpush3.bf16.msra.mxu0 %v3865_v61  ;;  %v1101_v61 = vsub.f32 %v5588_v57, %v5589_v44 }
  0xa6   : > { %3870 = vmatprep.subr.bf16.mxu0 %v3869_v9  ;;  %v1095_v2 = vand.u32 4294901760, %v1094_v52  ;;  %v5610_v52 = vld [vmem:[#allocation32_spill] sm:$0xff] }
  0xa7   : > { %3584 = vmatpush3.bf16.msra.mxu1 %v4782_v15  ;;  %v3885_v15 = vpack.c.bf16 %v4860_v31, %v4853_v55  ;;  %v5575_v31 = vld [vmem:[#allocation12_spill] sm:$0xff]  ;;  %v1102_v41 = vand.u32 4294901760, %v1101_v61  ;;  %v5611_v44 = vand.u32 4294901760, %v5610_v52 }
  0xa8   : > { %3586 = vmatprep.subr.bf16.mxu1 %v4790_v16 }
  0xa9   : > { %3872 = vmatpush3.bf16.msra.mxu0 %v3869_v9  ;;  %v1056_v9 = vand.u32 4294901760, %v1055_v18  ;;  %v5609_v18 = vand.u32 4294901760, %v5608_v42  ;;  %v1157_v61 = vsub.f32 %v5610_v52, %v5611_v44 }
  0xaa   : > { %3874 = vmatprep.subr.bf16.mxu0 %v3873_v37 }
  0xab   : > { %3588 = vmatpush3.bf16.msra.mxu1 %v4790_v16  ;;  %v3889_v16 = vpack.c.bf16 %v4884_v60, %v4882_v39  ;;  %v3901_v60 = vpack.c.bf16 %v4959_v34, %v4957_v19  ;;  %v5564_v19 = vld [vmem:[#allocation20_spill] sm:$0xff]  ;;  %v5578_v39 = vld [vmem:[#allocation15_spill] sm:$0xff]  ;;  %v1150_v38 = vsub.f32 %v5608_v42, %v5609_v18 }
  0xac   : > { %3590 = vmatprep.subr.bf16.mxu1 %v4799_v50  ;;  %v5565_v34 = vand.u32 4294901760, %v5564_v19 }
  0xad   : > { %3876 = vmatpush3.bf16.msra.mxu0 %v3873_v37  ;;  %v5592_v37 = vand.u32 4294901760, %v5591_v0 }
  0xae   : > { %3878 = vmatprep.subr.bf16.mxu0 %v3877_v25  ;;  %v1045_v49 = vsub.f32 %v5564_v19, %v5565_v34 }
  0xaf   : > { %3592 = vmatpush3.bf16.msra.mxu1 %v4799_v50  ;;  %v3893_v50 = vpack.c.bf16 %v4911_v1, %v4909_v14  ;;  %v1108_v7 = vsub.f32 %v5591_v0, %v5592_v37 }
  0xb0   : > { %3594 = vmatprep.subr.bf16.mxu1 %v5527_v3  ;;  %v1046_v17 = vand.u32 4294901760, %v1045_v49  ;;  %v5599_v49 = vld [vmem:[#allocation28_spill] sm:$0xff] }
  0xb1   : > { %3880 = vmatpush3.bf16.msra.mxu0 %v3877_v25  ;;  %v5594_v25 = vand.u32 4294901760, %v5593_v58 }
  0xb2   : > { %3882 = vmatprep.subr.bf16.mxu0 %v3881_v63  ;;  %2976 = vmatmul.mubr.f32.vlgmr.msra.gmra.mrb[0].mxu1 %v4430_v46 }
  0xb3   : > { %3596 = vmatpush3.bf16.msra.mxu1 %v5527_v3  ;;  %3010 = vmatprep.mubr.f32.mxu1 %v4421_v56  ;;  %v3897_v56 = vpack.c.bf16 %v4935_v8, %v4933_v24  ;;  %v3909_v24 = vpack.c.bf16 %v5012_v20, %v5010_v12  ;;  %v5569_v12 = vld [vmem:[#allocation36_spill] sm:$0xff]  ;;  %v5570_v20 = vld [vmem:[#allocation9_spill] sm:$0xff]  ;;  %v5576_v3 = vand.u32 4294901760, %v5575_v31  ;;  %v5577_v8 = vld [vmem:[#allocation38_spill] sm:$0xff] }
  0xb4   : > { %3291 = vmatmul.mubr.f32.vlgmr.msra.gmra.mrb[0].mxu0 %v4962_v51  ;;  %3598 = vmatprep.subr.bf16.mxu1 %v5529_v32 }
  0xb5   : > { %3884 = vmatpush3.bf16.msra.mxu0 %v3881_v63  ;;  %3325 = vmatprep.mubr.f32.mxu0 %v4826_v6  ;;  %v1073_v14 = vsub.f32 %v5575_v31, %v5576_v3  ;;  %v1115_v63 = vsub.f32 %v5593_v58, %v5594_v25  ;;  %v5617_v25 = vld [vmem:[#allocation8_spill] sm:$0xff] }
  0xb6   : > { %3886 = vmatprep.subr.bf16.mxu0 %v3885_v15 }
  0xb7   : > { %3600 = vmatpush3.bf16.msra.mxu1 %v5529_v32  ;;  %v1074_v1 = vand.u32 4294901760, %v1073_v14 }
  0xb8   : > { %3602 = vmatprep.subr.bf16.mxu1 %v5533_v30 }
  0xb9   : > { %3888 = vmatpush3.bf16.msra.mxu0 %v3885_v15  ;;  %v5595_v15 = vld [vmem:[#allocation3_spill] sm:$0xff] }
  0xba   : > { %3890 = vmatprep.subr.bf16.mxu0 %v3889_v16 }
  0xbb   : > { %3604 = vmatpush3.bf16.msra.mxu1 %v5533_v30  ;;  %v5579_v30 = vld [vmem:[#allocation17_spill] sm:$0xff] }
  0xbc   : > { %3606 = vmatprep.subr.bf16.mxu1 %v5536_v53 }
  0xbd   : > { %3892 = vmatpush3.bf16.msra.mxu0 %v3889_v16  ;;  %v5596_v16 = vand.u32 4294901760, %v4989_v59 }
  0xbe   : > { %3894 = vmatprep.subr.bf16.mxu0 %v3893_v50 }
  0xbf   : > { %3608 = vmatpush3.bf16.msra.mxu1 %v5536_v53  ;;  %v5580_v53 = vand.u32 4294901760, %v5579_v30 }
  0xc0   : > { %3610 = vmatprep.subr.bf16.mxu1 %v5539_v28 }
  0xc1   : > { %3896 = vmatpush3.bf16.msra.mxu0 %v3893_v50  ;;  %v3665_v50 = vpack.c.bf16 %v1102_v41, %v1095_v2 }
  0xc2   : > { %3898 = vmatprep.subr.bf16.mxu0 %v3897_v56 }
  0xc3   : > { %3612 = vmatpush3.bf16.msra.mxu1 %v5539_v28  ;;  %v1080_v28 = vsub.f32 %v5579_v30, %v5580_v53  ;;  %v5607_v53 = vld [vmem:[#allocation5_spill] sm:$0xff] }
  0xc4   : > { %3614 = vmatprep.subr.bf16.mxu1 %v5542_v11 }
  0xc5   : > { %3900 = vmatpush3.bf16.msra.mxu0 %v3897_v56  ;;  %v1081_v48 = vand.u32 4294901760, %v1080_v28  ;;  %v1109_v56 = vand.u32 4294901760, %v1108_v7 }
  0xc6   : > { %3902 = vmatprep.subr.bf16.mxu0 %v3901_v60 }
  0xc7   : > { %3616 = vmatpush3.bf16.msra.mxu1 %v5542_v11  ;;  %v5581_v11 = vld [vmem:[#allocation21_spill] sm:$0xff] }
  0xc8   : > { %3618 = vmatprep.subr.bf16.mxu1 %v5547_v27 }
  0xc9   : > { %3904 = vmatpush3.bf16.msra.mxu0 %v3901_v60  ;;  %v1116_v60 = vand.u32 4294901760, %v1115_v63 }
  0xca   : > { %3906 = vmatprep.subr.bf16.mxu0 %v3905_v22 }
  0xcb   : > { %3620 = vmatpush3.bf16.msra.mxu1 %v5547_v27  ;;  %v5582_v27 = vand.u32 4294901760, %v5581_v11 }
  0xcc   : > { %3622 = vmatprep.subr.bf16.mxu1 %v4484_v36 }
  0xcd   : > { %3908 = vmatpush3.bf16.msra.mxu0 %v3905_v22  ;;  %v1087_v62 = vsub.f32 %v5581_v11, %v5582_v27  ;;  %v5597_v22 = vld [vmem:[#allocation27_spill] sm:$0xff] }
  0xce   : > { %3910 = vmatprep.subr.bf16.mxu0 %v3909_v24 }
  0xcf   : > { %3624 = vmatpush3.bf16.msra.mxu1 %v4484_v36  ;;  %v5566_v36 = vand.u32 4294901760, %v4826_v6  ;;  %v1088_v10 = vand.u32 4294901760, %v1087_v62 }
  0xd0   : > { %3626 = vmatprep.subr.bf16.mxu1 %v4179_v23 }
  0xd1   : > { %3912 = vmatpush3.bf16.msra.mxu0 %v3909_v24  ;;  %v3661_v47 = vpack.c.bf16 %v1088_v10, %v1081_v48  ;;  %v5598_v24 = vand.u32 4294901760, %v5597_v22  ;;  %v1151_v48 = vand.u32 4294901760, %v1150_v38  ;;  %v1158_v10 = vand.u32 4294901760, %v1157_v61 }
  0xd2   : > { %3914 = vmatprep.subr.bf16.mxu0 %v4845_v54  ;;  %3011 = vmatmul.mubr.f32.vlgmr.msra.gmra.mrb[0].mxu1 %v4430_v46  ;;  %v5567_v46 = vld [vmem:[#allocation35_spill] sm:$0xff] }
  0xd3   : > { %3628 = vmatpush3.bf16.msra.mxu1 %v4179_v23  ;;  %3045 = vmatprep.mubr.f32.mxu1 %v1046_v17  ;;  %v5568_v23 = vld [vmem:[#allocation7_spill] sm:$0xff]  ;;  %v1122_v34 = vsub.f32 %v5597_v22, %v5598_v24  ;;  %v5600_v17 = vand.u32 4294901760, %v5599_v49  ;;  %v3681_v63 = vpack.c.bf16 %v1158_v10, %v1151_v48 }
  0xd4   : > { %3326 = vmatmul.mubr.f32.vlgmr.msra.gmra.mrb[0].mxu0 %v4989_v59  ;;  %3630 = vmatprep.subr.bf16.mxu1 %v4208_v29  ;;  %v5603_v59 = vld [vmem:[#allocation29_spill] sm:$0xff] }
  0xd5   : > { %3916 = vmatpush3.bf16.msra.mxu0 %v4845_v54  ;;  %3360 = vmatprep.mubr.f32.mxu0 %v5566_v36  ;;  %v1129_v36 = vsub.f32 %v5599_v49, %v5600_v17  ;;  %v3693_v17 = vpack.c.bf16 %v5581_v11, %v5579_v30 }
  0xd6   : > { %3918 = vmatprep.subr.bf16.mxu0 %v4871_v21 }
  0xd7   : > { %3632 = vmatpush3.bf16.msra.mxu1 %v4208_v29  ;;  %v5571_v29 = vld [vmem:[#allocation37_spill] sm:$0xff] }
  0xd8   : > { %3634 = vmatprep.subr.bf16.mxu1 %v4260_v40 }
  0xd9   : > { %3920 = vmatpush3.bf16.msra.mxu0 %v4871_v21 }
  0xda   : > { %3922 = vmatprep.subr.bf16.mxu0 %v5567_v46 }
  0xdb   : > { %3636 = vmatpush3.bf16.msra.mxu1 %v4260_v40  ;;  %v5573_v40 = vld [vmem:[#allocation11_spill] sm:$0xff] }
  0xdc   : > { %3638 = vmatprep.subr.bf16.mxu1 %v5568_v23  ;;  %v5574_v6 = vand.u32 4294901760, %v5573_v40  ;;  %v3689_v24 = vpack.c.bf16 %v5575_v31, %v5573_v40  ;;  %v3701_v31 = vpack.c.bf16 %v5593_v58, %v5591_v0 }
  0xdd   : > { %3924 = vmatpush3.bf16.msra.mxu0 %v5567_v46 }
  0xde   : > { %3926 = vmatprep.subr.bf16.mxu0 %v5569_v12  ;;  %v1066_v55 = vsub.f32 %v5573_v40, %v5574_v6  ;;  %v3697_v40 = vpack.c.bf16 %v5588_v57, %v5586_v45  ;;  %v2355_v57 = vld [vmem:[%s212_s27] sm:$0xff] }
  0xdf   : > { %3640 = vmatpush3.bf16.msra.mxu1 %v5568_v23  ;;  %v5601_v23 = vld [vmem:[#allocation4_spill] sm:$0xff] }
  0xe0   : > { %3642 = vmatprep.subr.bf16.mxu1 %v5570_v20  ;;  %v1067_v32 = vand.u32 4294901760, %v1066_v55  ;;  %v5605_v55 = vld [vmem:[#allocation30_spill] sm:$0xff] }
  0xe1   : > { %3928 = vmatpush3.bf16.msra.mxu0 %v5569_v12  ;;  %v5606_v3 = vand.u32 4294901760, %v5605_v55 }
  0xe2   : > { %3930 = vmatprep.subr.bf16.mxu0 %v5571_v29  ;;  %v3657_v13 = vpack.c.bf16 %v1074_v1, %v1067_v32  ;;  %v1123_v32 = vand.u32 4294901760, %v1122_v34  ;;  %v1130_v1 = vand.u32 4294901760, %v1129_v36  ;;  %v5620_v34 = vld [vmem:[#allocation40_spill] sm:$0xff]  ;;  %v5621_v36 = vld [vmem:[#allocation19_spill] sm:$0xff] }
  0xe3   : > { %3644 = vmatpush3.bf16.msra.mxu1 %v5570_v20  ;;  %v5602_v20 = vld [vmem:[#allocation18_spill] sm:$0xff]  ;;  %v1143_v14 = vsub.f32 %v5605_v55, %v5606_v3 }
  0xe4   : > { %3646 = vmatprep.subr.bf16.mxu1 %v5572_v43  ;;  %v3673_v62 = vpack.c.bf16 %v1130_v1, %v1123_v32 }
  0xe5   : > { %3932 = vmatpush3.bf16.msra.mxu0 %v5571_v29  ;;  %v1144_v27 = vand.u32 4294901760, %v1143_v14 }
  0xe6   : > { %3934 = vmatprep.subr.bf16.mxu0 %v5577_v8 }
  0xe7   : > { %3648 = vmatpush3.bf16.msra.mxu1 %v5572_v43  ;;  %v5604_v43 = vand.u32 4294901760, %v5603_v59 }
  0xe8   : > { %3650 = vmatprep.subr.bf16.mxu1 %v5578_v39 }
  0xe9   : > { %3936 = vmatpush3.bf16.msra.mxu0 %v5577_v8  ;;  %v1136_v6 = vsub.f32 %v5603_v59, %v5604_v43 }
  0xea   : > { %3938 = vmatprep.subr.bf16.mxu0 %v5583_v33 }
  0xeb   : > { %3652 = vmatpush3.bf16.msra.mxu1 %v5578_v39  ;;  %v3669_v39 = vpack.c.bf16 %v1116_v60, %v1109_v56  ;;  %v1137_v28 = vand.u32 4294901760, %v1136_v6  ;;  %v5619_v60 = vld [vmem:[#allocation14_spill] sm:$0xff] }
  0xec   : > { %3654 = vmatprep.subr.bf16.mxu1 %v5590_v5 }
  0xed   : > { %3940 = vmatpush3.bf16.msra.mxu0 %v5583_v33 }
  0xee   : > { %3942 = vmatprep.subr.bf16.mxu0 %v5018_v26 }
  0xef   : > { %3656 = vmatpush3.bf16.msra.mxu1 %v5590_v5  ;;  %v5612_v5 = vld [vmem:[#allocation6_spill] sm:$0xff] }
  0xf0   : > { %3658 = vmatprep.subr.bf16.mxu1 %v3657_v13 }
  0xf1   : > { %3944 = vmatpush3.bf16.msra.mxu0 %v5018_v26 }
  0xf2   : > { %3946 = vmatprep.subr.bf16.mxu0 %v5595_v15  ;;  %3046 = vmatmul.mubr.f32.vlgmr.msra.gmra.mrb[0].mxu1 %v1056_v9  ;;  %v5613_v9 = vld [vmem:[#allocation33_spill] sm:$0xff] }
  0xf3   : > { %3660 = vmatpush3.bf16.msra.mxu1 %v3657_v13  ;;  %3080 = vmatprep.mubr.f32.mxu1 %v5602_v20  ;;  %v3677_v13 = vpack.c.bf16 %v1144_v27, %v1137_v28  ;;  %v5614_v2 = vand.u32 4294901760, %v5613_v9 }
  0xf4   : > { %3361 = vmatmul.mubr.f32.vlgmr.msra.gmra.mrb[0].mxu0 %v5596_v16  ;;  %3662 = vmatprep.subr.bf16.mxu1 %v3661_v47 }
  0xf5   : > { %3948 = vmatpush3.bf16.msra.mxu0 %v5595_v15  ;;  %3395 = vmatprep.mubr.f32.mxu0 %v4813_v35  ;;  %v1164_v41 = vsub.f32 %v5613_v9, %v5614_v2 }
  0xf6   : > { %3950 = vmatprep.subr.bf16.mxu0 %v5601_v23 }
  0xf7   : > { %3664 = vmatpush3.bf16.msra.mxu1 %v3661_v47  ;;  %v5615_v47 = vld [vmem:[#allocation34_spill] sm:$0xff]  ;;  %v1165_v15 = vand.u32 4294901760, %v1164_v41 }
  0xf8   : > { %3666 = vmatprep.subr.bf16.mxu1 %v3665_v50  ;;  %v5616_v37 = vand.u32 4294901760, %v5615_v47 }
  0xf9   : > { %3952 = vmatpush3.bf16.msra.mxu0 %v5601_v23 }
  0xfa   : > { %3954 = vmatprep.subr.bf16.mxu0 %v5607_v53  ;;  %v1171_v7 = vsub.f32 %v5615_v47, %v5616_v37 }
  0xfb   : > { %3668 = vmatpush3.bf16.msra.mxu1 %v3665_v50  ;;  %v5618_v50 = vld [vmem:[#allocation10_spill] sm:$0xff] }
  0xfc   : > { %3670 = vmatprep.subr.bf16.mxu1 %v3669_v39  ;;  %v1172_v16 = vand.u32 4294901760, %v1171_v7 }
  0xfd   : > { %3956 = vmatpush3.bf16.msra.mxu0 %v5607_v53 }
  0xfe   : > { %3958 = vmatprep.subr.bf16.mxu0 %v5612_v5  ;;  %v3685_v56 = vpack.c.bf16 %v1172_v16, %v1165_v15 }
  0xff   : > { %3672 = vmatpush3.bf16.msra.mxu1 %v3669_v39 }
 0x100   : > { %3674 = vmatprep.subr.bf16.mxu1 %v3673_v62 }
 0x101   : > { %3960 = vmatpush3.bf16.msra.mxu0 %v5612_v5 }
 0x102   : > { %3962 = vmatprep.subr.bf16.mxu0 %v5617_v25 }
 0x103   : > { %3676 = vmatpush3.bf16.msra.mxu1 %v3673_v62 }
 0x104   : > { %3678 = vmatprep.subr.bf16.mxu1 %v3677_v13 }
 0x105   : > { %3964 = vmatpush3.bf16.msra.mxu0 %v5617_v25 }
 0x106   : > { %3966 = vmatprep.subr.bf16.mxu0 %v5618_v50 }
 0x107   : > { %3680 = vmatpush3.bf16.msra.mxu1 %v3677_v13 }
 0x108   : > { %3682 = vmatprep.subr.bf16.mxu1 %v3681_v63 }
 0x109   : > { %3968 = vmatpush3.bf16.msra.mxu0 %v5618_v50 }
 0x10a   : > { %3970 = vmatprep.subr.bf16.mxu0 %v5619_v60 }
 0x10b   : > { %3684 = vmatpush3.bf16.msra.mxu1 %v3681_v63 }
 0x10c   : > { %3686 = vmatprep.subr.bf16.mxu1 %v3685_v56 }
 0x10d   : > { %3972 = vmatpush3.bf16.msra.mxu0 %v5619_v60 }
 0x10e   : > { %3974 = vmatprep.subr.bf16.mxu0 %v5620_v34 }
 0x10f   : > { %3688 = vmatpush3.bf16.msra.mxu1 %v3685_v56 }
 0x110   : > { %3690 = vmatprep.subr.bf16.mxu1 %v3689_v24 }
 0x111   : > { %3976 = vmatpush3.bf16.msra.mxu0 %v5620_v34 }
 0x112   : > { %3978 = vmatprep.subr.bf16.mxu0 %v4845_v54  ;;  %3081 = vmatmul.mubr.f32.vlgmr.msra.gmra.mrb[0].mxu1 %v5621_v36 }
 0x113   : > { %3692 = vmatpush3.bf16.msra.mxu1 %v3689_v24  ;;  %3115 = vmatprep.mubr.f32.mxu1 %v5564_v19  ;;  %v3717_v19 = vpack.c.bf16 %v5615_v47, %v5613_v9 }
 0x114   : > { %3396 = vmatmul.mubr.f32.vlgmr.msra.gmra.mrb[0].mxu0 %v4962_v51  ;;  %3694 = vmatprep.subr.bf16.mxu1 %v3693_v17 }
 0x115   : > { %3980 = vmatpush3.bf16.msra.mxu0 %v4845_v54  ;;  %3430 = vmatprep.mubr.f32.mxu0 %v4813_v35  ;;  %v3705_v54 = vpack.c.bf16 %v5599_v49, %v5597_v22  ;;  %v3709_v35 = vpack.c.bf16 %v5605_v55, %v5603_v59 }
 0x116   : > { %3982 = vmatprep.subr.bf16.mxu0 %v4871_v21 }
 0x117   : > { %3696 = vmatpush3.bf16.msra.mxu1 %v3693_v17 }
 0x118   : > { %3698 = vmatprep.subr.bf16.mxu1 %v3697_v40 }
 0x119   : > { %3984 = vmatpush3.bf16.msra.mxu0 %v4871_v21  ;;  %v3713_v21 = vpack.c.bf16 %v5610_v52, %v5608_v42 }
 0x11a   : > { %3986 = vmatprep.subr.bf16.mxu0 %v5567_v46 }
 0x11b   : > { %3700 = vmatpush3.bf16.msra.mxu1 %v3697_v40 }
 0x11c   : > { %3702 = vmatprep.subr.bf16.mxu1 %v3701_v31 }
 0x11d   : > { %3988 = vmatpush3.bf16.msra.mxu0 %v5567_v46 }
 0x11e   : > { %3990 = vmatprep.subr.bf16.mxu0 %v5569_v12 }
 0x11f   : > { %3704 = vmatpush3.bf16.msra.mxu1 %v3701_v31 }
 0x120   : > { %3706 = vmatprep.subr.bf16.mxu1 %v3705_v54 }
 0x121   : > { %3992 = vmatpush3.bf16.msra.mxu0 %v5569_v12 }
 0x122   : > { %3994 = vmatprep.subr.bf16.mxu0 %v5571_v29 }
 0x123   : > { %3708 = vmatpush3.bf16.msra.mxu1 %v3705_v54 }
 0x124   : > { %3710 = vmatprep.subr.bf16.mxu1 %v3709_v35 }
 0x125   : > { %3996 = vmatpush3.bf16.msra.mxu0 %v5571_v29  ;;  %v2473_v29 = vld [vmem:[%s5298_s2 + $0x2] ss:$0 sm:$0xff] }
 0x126   : > { %3998 = vmatprep.subr.bf16.mxu0 %v5577_v8 }
 0x127   : > { %3712 = vmatpush3.bf16.msra.mxu1 %v3709_v35 }
 0x128   : > { %3714 = vmatprep.subr.bf16.mxu1 %v3713_v21 }
 0x129   : > { %4000 = vmatpush3.bf16.msra.mxu0 %v5577_v8 }
 0x12a   : > { %4002 = vmatprep.subr.bf16.mxu0 %v5583_v33 }
 0x12b   : > { %3716 = vmatpush3.bf16.msra.mxu1 %v3713_v21 }
 0x12c   : > { %3718 = vmatprep.subr.bf16.mxu1 %v3717_v19 }
 0x12d   : > { %4004 = vmatpush3.bf16.msra.mxu0 %v5583_v33  ;;  %v2356_v33 = vld [vmem:[%s212_s27 + $0x8] sm:$0xff] }
 0x12e   : > { %4006 = vmatprep.subr.bf16.mxu0 %v5018_v26 }
 0x12f   : > { %3720 = vmatpush3.bf16.msra.mxu1 %v3717_v19 }
 0x131   : > { %4008 = vmatpush3.bf16.msra.mxu0 %v5018_v26 }
 0x132   : > { %3116 = vmatmul.mubr.f32.vlgmr.msra.gmra.mrb[0].mxu1 %v5584_v4 }
 0x134   : > { %3431 = vmatmul.mubr.f32.vlgmr.msra.gmra.mrb[0].mxu0 %v4962_v51 }
 0x205   : > { %v3117_v46 = vpop.f32.mrb[0].mxu1 }
 0x206   : > { %v1319_v8 = vpop.f32.mrb[1].mxu1 }
 0x207   : > { %v3432_v12 = vpop.f32.mrb[0].mxu0 }
 0x208   : > { %v4009_v30 = vadd.f32 %v3432_v12, %v3117_v46  ;;  %v2336_v11 = vpop.f32.mrb[1].mxu0 }
 0x209   : > { %v4010_v45 = vadd.f32 %v2336_v11, %v1319_v8 }
 0x20a   : > { %v2354_v26 = vadd.f32 %v4009_v30, %v2473_v29 }
 0x20b   : > { %v2353_v51 = vadd.f32 %v4010_v45, %v2473_v29 }
 0x20c   : > { %v2358_v4 = vmul.f32 %v2356_v33, %v2354_v26 }
 0x20d   : > { %v2357_v0 = vmul.f32 %v2355_v57, %v2353_v51 }
 0x20e   : > { %2360 = vst [vmem:[%s217_s6 + $0x8] sm:$0xff] %v2358_v4 }
 0x20f   : > { %2359 = vst [vmem:[%s217_s6] sm:$0xff] %v2357_v0 }
 0x210 PF: > { %s14_s15 = sadd.s32 1, %s4058_s15  }
 0x211   : > { %p11_p4 = scmp.ge.s32.totalorder %s14_s15, 4  }
 0x213   :  { %13 = sbr.rel (!%p11_p4) target bundleno = 1 (0x1), region = 71 }

</bundles_post_ra>
